<compile_context>
chip_gen: v5e
topology: v5e:2x2
jax: 0.10.0
libtpu: 0.0.40
codegen_flags: <defaults>
</compile_context>

<pallas_src>
import functools

import numpy as np
import jax
import jax.numpy as jnp
from jax.experimental import pallas as pl
from jax.experimental.pallas import tpu as pltpu

OC1, OC2, OC3 = 3, 6, 16     # conv output channels (fixed by the module)
HID = 64                     # fc1 hidden width
KS = 5                       # conv kernel size
NCP = 8                      # fc2 rows padded to a sublane tile (avoids M=1 matmul)


# --------------------------- layout helpers (host) --------------------------- #

def _pdims(h, w):
    """Padded plane is (h+4, w+4), flattened to mp lane columns.  mg margin
    columns on each end of a lane-batched block keep every 5x5 tap slice of the
    shared-margin layout a static, in-bounds contiguous slice."""
    hp, wp = h + 4, w + 4
    mp = hp * wp
    mg = 2 * wp + 2
    return hp, wp, mp, mg


def _sel_pool(h, w):
    """(mp, (h//2)*(w//2)) 0/1 matrix: pick the 2x2/stride-2 pool-corner columns
    of an h x w conv output (padded-flat layout) in compact row-major order."""
    _, wp, mp, _ = _pdims(h, w)
    ho, wo = h // 2, w // 2
    s = np.zeros((mp, ho * wo), np.float32)
    for i in range(ho):
        for j in range(wo):
            s[(2 * i + 2) * wp + (2 * j + 2), i * wo + j] = 1.0
    return s


def _sel_pool_interleave(h, w, bt):
    """Block-diagonal selector for the last conv: (bt*mp, p*bt).  Picks the pool
    corners of every image in the lane-batched block AND interleaves them
    spatial-major / batch-minor (column s*bt + b) -- exactly the layout the
    single fused fc1 matmul consumes."""
    _, wp, mp, _ = _pdims(h, w)
    ho, wo = h // 2, w // 2
    s = np.zeros((bt * mp, ho * wo * bt), np.float32)
    for b in range(bt):
        for i in range(ho):
            for j in range(wo):
                s[b * mp + (2 * i + 2) * wp + (2 * j + 2), (i * wo + j) * bt + b] = 1.0
    return s


# ------------------------------ fused kernel -------------------------------- #

def _build_kernel(c0, h, w, bt, n_classes):
    _, wpA, mpA, mgA = _pdims(h, w)
    hB, wB = h // 2, w // 2
    _, wpB, mpB, mgB = _pdims(hB, wB)
    hC, wC = h // 4, w // 4
    _, wpC, mpC, mgC = _pdims(hC, wC)
    p = (h // 8) * (w // 8)          # pooled positions per channel after pool3
    bf16, f32 = jnp.bfloat16, jnp.float32

    def conv_pool(in_ref, w_ref, cin, wp, mp, mg, slab, ybuf):
        """5x5 'same' conv of the whole lane-batched block + fused 2x2/s2 max pool.
        Returns (oc, bt*mp); pool-corner columns are exact, everything else is
        finite garbage that the following corner selector discards."""
        wcols = bt * mp
        # im2col slab: ONE contiguous slice per tap (shared-margin layout), so the
        # 25 per-tap matmuls collapse into a single K = 25*cin MXU matmul.
        for ki in range(KS):
            for kj in range(KS):
                t = ki * KS + kj
                d = (ki - 2) * wp + (kj - 2)
                slab[t * cin:(t + 1) * cin, :] = in_ref[:, mg + d:mg + d + wcols]
        acc = jnp.dot(w_ref[...], slab[...].astype(bf16),
                      preferred_element_type=f32)
        # 2x2/stride-2 max pool via 4 shifted reads of a small margin buffer.
        # Only the (oc, wp+1) tail needs zeroing (finite-garbage invariant for the
        # selector matmul); pool-corner reads never leave their own image block.
        ybuf[:, wcols:] = jnp.zeros((ybuf.shape[0], ybuf.shape[1] - wcols), f32)
        ybuf[:, 0:wcols] = acc
        return jnp.maximum(
            jnp.maximum(ybuf[:, 0:wcols], ybuf[:, 1:1 + wcols]),
            jnp.maximum(ybuf[:, wp:wp + wcols], ybuf[:, wp + 1:wp + 1 + wcols]))

    def pool_scatter(m, sel, bias, mp, wp_n, mp_n, mg_n, ho, wo, dst):
        """Per-image compact corner selection (+ bias + ReLU), then scatter each
        pooled row into the next layer's zero-padded shared-margin layout with
        contiguous static stores (no big scatter matmul)."""
        dst[...] = jnp.zeros(dst.shape, f32)   # padding+margins; cheap & megacore-safe
        for b in range(bt):
            pc = jnp.dot(m[:, b * mp:(b + 1) * mp].astype(bf16), sel,
                         preferred_element_type=f32)
            pc = jnp.maximum(pc + bias, 0.0)
            for i in range(ho):
                col = mg_n + b * mp_n + (i + 2) * wp_n + 2
                dst[:, col:col + wo] = pc[:, i * wo:(i + 1) * wo]

    def kernel(x_ref, w1, b1, s1, w2, b2, s2, w3, b3, s3, wf1, bf1, wf2, bf2,
               o_ref, slab1, ybuf1, slab2, ybuf2, slab3, ybuf3, in2, in3, ft):
        # conv1 + ReLU + pool1
        m = conv_pool(x_ref, w1, c0, wpA, mpA, mgA, slab1, ybuf1)
        pool_scatter(m, s1[...], b1[...], mpA, wpB, mpB, mgB, hB, wB, in2)
        # conv2 + ReLU + pool2
        m = conv_pool(in2, w2, OC1, wpB, mpB, mgB, slab2, ybuf2)
        pool_scatter(m, s2[...], b2[...], mpB, wpC, mpC, mgC, hC, wC, in3)
        # conv3 + ReLU + pool3 (corner pick + batch interleave in one small matmul)
        m = conv_pool(in3, w3, OC2, wpC, mpC, mgC, slab3, ybuf3)
        feat = jnp.dot(m.astype(bf16), s3[...], preferred_element_type=f32)
        feat = jnp.maximum(feat + b3[...], 0.0)          # (16, p*bt), spatial-major

        # flatten: (16, p*bt) -> (16*p, bt) with p contiguous block stores; the
        # PyTorch flatten order is folded into the host-side fc1 weight layout.
        for s in range(p):
            ft[s * OC3:(s + 1) * OC3, :] = feat[:, s * bt:(s + 1) * bt]

        # fc1 + ReLU as ONE lane-dense K=16*p matmul.
        hv = jnp.dot(wf1[...], ft[...].astype(bf16),
                     preferred_element_type=f32) + bf1[...]
        hv = jnp.maximum(hv, 0.0)
        # TODO(synk): nn.Dropout(0.3) is train-time only; identity at inference.

        # fc2 (rows padded to 8) + sigmoid / softmax over classes.
        z = jnp.dot(wf2[...], hv.astype(bf16),
                    preferred_element_type=f32) + bf2[...]
        z = z[0:n_classes, :]
        if n_classes == 1:
            o_ref[...] = 1.0 / (1.0 + jnp.exp(-z))
        else:
            z = z - jnp.max(z, axis=0, keepdims=True)
            e = jnp.exp(z)
            o_ref[...] = e / jnp.sum(e, axis=0, keepdims=True)

    return kernel


# ------------------------------ wrapper / glue ------------------------------- #

def cnn_forward(params, x, n_classes=1, block_batch=4):
    n, c0, h, w = x.shape
    assert h % 8 == 0 and w % 8 == 0, "spatial dims must be divisible by 8"
    bt = min(block_batch, n)
    assert n % bt == 0, "batch must be divisible by the per-step image tile"
    g = n // bt
    f32, bf16 = jnp.float32, jnp.bfloat16
    p = (h // 8) * (w // 8)

    _, wpA, mpA, mgA = _pdims(h, w)
    _, wpB, mpB, mgB = _pdims(h // 2, w // 2)
    _, wpC, mpC, mgC = _pdims(h // 4, w // 4)
    la = bt * mpA + 2 * mgA

    # Input -> lane-batched, shared-margin, padded-flat layout (wrapper-side glue).
    xp = jnp.pad(x.astype(f32), ((0, 0), (0, 0), (2, 2), (2, 2)))
    xf = xp.reshape(n, c0, mpA).reshape(g, bt, c0, mpA).transpose(0, 2, 1, 3)
    xb = jnp.pad(xf.reshape(g, c0, bt * mpA), ((0, 0), (0, 0), (mgA, mgA)))

    def conv_w(wt):   # (OC, C, 5, 5) -> (OC, 25*C), tap-major / channel-minor, bf16
        return (wt.astype(f32).transpose(0, 2, 3, 1)
                .reshape(wt.shape[0], -1).astype(bf16))

    w1m, w2m, w3m = conv_w(params["w1"]), conv_w(params["w2"]), conv_w(params["w3"])
    b1c = params["b1"].astype(f32).reshape(-1, 1)
    b2c = params["b2"].astype(f32).reshape(-1, 1)
    b3c = params["b3"].astype(f32).reshape(-1, 1)

    sel1 = jnp.asarray(_sel_pool(h, w), bf16)                           # (mpA, hB*wB)
    sel2 = jnp.asarray(_sel_pool(h // 2, w // 2), bf16)                 # (mpB, hC*wC)
    sel3 = jnp.asarray(_sel_pool_interleave(h // 4, w // 4, bt), bf16)  # (bt*mpC, p*bt)

    # fc1 weight (flat_in=16*p, HID) re-laid out so the in-kernel (16*p, bt)
    # feature block (rows = s*16 + c) contracts correctly.
    wf1 = params["wf1"].astype(f32)
    wf1r = (wf1.reshape(OC3, p, HID).transpose(2, 1, 0)
            .reshape(HID, p * OC3).astype(bf16))
    bf1c = params["bf1"].astype(f32).reshape(-1, 1)
    ncp = max(NCP, n_classes)
    wf2p = (jnp.zeros((ncp, HID), f32)
            .at[:n_classes].set(params["wf2"].astype(f32).T).astype(bf16))
    bf2p = jnp.zeros((ncp, 1), f32).at[:n_classes, 0].set(params["bf2"].astype(f32))

    kernel = _build_kernel(c0, h, w, bt, n_classes)

    def const(a):
        zeros = (0,) * a.ndim
        return pl.BlockSpec(a.shape, lambda i, _z=zeros: _z)

    out = pl.pallas_call(
        kernel,
        out_shape=jax.ShapeDtypeStruct((g, n_classes, bt), f32),
        grid=(g,),
        in_specs=[
            pl.BlockSpec((None, c0, la), lambda i: (i, 0, 0)),   # per-step image tile
            const(w1m), const(b1c), const(sel1),
            const(w2m), const(b2c), const(sel2),
            const(w3m), const(b3c), const(sel3),
            const(wf1r), const(bf1c), const(wf2p), const(bf2p),
        ],
        out_specs=pl.BlockSpec((None, n_classes, bt), lambda i: (i, 0, 0)),
        scratch_shapes=[
            pltpu.VMEM((25 * c0, bt * mpA), f32),            # im2col slab, layer 1
            pltpu.VMEM((OC1, bt * mpA + wpA + 1), f32),      # conv1 out (+ pool margin)
            pltpu.VMEM((25 * OC1, bt * mpB), f32),           # im2col slab, layer 2
            pltpu.VMEM((OC2, bt * mpB + wpB + 1), f32),      # conv2 out (+ pool margin)
            pltpu.VMEM((25 * OC2, bt * mpC), f32),           # im2col slab, layer 3
            pltpu.VMEM((OC3, bt * mpC + wpC + 1), f32),      # conv3 out (+ pool margin)
            pltpu.VMEM((OC1, bt * mpB + 2 * mgB), f32),      # layer-2 activations
            pltpu.VMEM((OC2, bt * mpC + 2 * mgC), f32),      # layer-3 activations
            pltpu.VMEM((OC3 * p, bt), f32),                  # flattened fc1 features
        ],
        compiler_params=pltpu.CompilerParams(
            dimension_semantics=("parallel",)),              # image tiles across cores
    )(xb, w1m, b1c, sel1, w2m, b2c, sel2, w3m, b3c, sel3,
      wf1r, bf1c, wf2p, bf2p)
    return out.transpose(0, 2, 1).reshape(n, n_classes)


# ------------------------ params + pure-JAX reference ------------------------ #

def _uniform(key, shape, fan_in):
    bound = 1.0 / np.sqrt(float(fan_in))
    return jax.random.uniform(key, shape, jnp.float32, -bound, bound)


def init_params(key, img_shape, n_classes=1):
    c, h, w = img_shape
    flat = OC3 * (h // 8) * (w // 8)
    k = jax.random.split(key, 10)
    return {
        "w1": _uniform(k[0], (OC1, c, KS, KS), c * KS * KS),
        "b1": _uniform(k[1], (OC1,), c * KS * KS),
        "w2": _uniform(k[2], (OC2, OC1, KS, KS), OC1 * KS * KS),
        "b2": _uniform(k[3], (OC2,), OC1 * KS * KS),
        "w3": _uniform(k[4], (OC3, OC2, KS, KS), OC2 * KS * KS),
        "b3": _uniform(k[5], (OC3,), OC2 * KS * KS),
        "wf1": _uniform(k[6], (flat, HID), flat),     # stored as (in, out)
        "bf1": _uniform(k[7], (HID,), flat),
        "wf2": _uniform(k[8], (HID, n_classes), HID),
        "bf2": _uniform(k[9], (n_classes,), HID),
    }


def reference_forward(params, x, n_classes=1):
    hi = jax.lax.Precision.HIGHEST

    def conv(v, wt, b):
        y = jax.lax.conv_general_dilated(
            v, wt, window_strides=(1, 1), padding=((2, 2), (2, 2)),
            dimension_numbers=("NCHW", "OIHW", "NCHW"), precision=hi)
        return jax.nn.relu(y + b[None, :, None, None])

    def pool(v):
        return jax.lax.reduce_window(v, -jnp.inf, jax.lax.max,
                                     (1, 1, 2, 2), (1, 1, 2, 2), "VALID")

    v = pool(conv(x, params["w1"], params["b1"]))
    v = pool(conv(v, params["w2"], params["b2"]))
    v = pool(conv(v, params["w3"], params["b3"]))
    v = v.reshape(v.shape[0], -1)
    v = jax.nn.relu(jnp.dot(v, params["wf1"], precision=hi) + params["bf1"])
    v = jnp.dot(v, params["wf2"], precision=hi) + params["bf2"]
    if n_classes == 1:
        return jax.nn.sigmoid(v)
    return jax.nn.softmax(v, axis=1)


# ---------------------------------- main ------------------------------------- #

if __name__ == "__main__":
    img_shape = (4, 16, 16)   # (C, H, W)
    batch = 8                 # 4 images per grid step -> even, length-2 grid (v7x)
    n_classes = 1

    key = jax.random.PRNGKey(0)
    kx, kp = jax.random.split(key)
    x = jax.random.normal(kx, (batch,) + img_shape, jnp.float32)
    params = init_params(kp, img_shape, n_classes)

    fwd = jax.jit(functools.partial(cnn_forward, n_classes=n_classes, block_batch=4))
    out = jax.block_until_ready(fwd(params, x))

    assert out.shape == (batch, n_classes)
    assert bool(jnp.all(jnp.isfinite(out)))
    assert bool(jnp.all((out >= 0.0) & (out <= 1.0)))   # sigmoid output range

    ref = reference_forward(params, x, n_classes)
    assert bool(jnp.allclose(out, ref, atol=2e-2, rtol=2e-2)), (out, ref)

    print("KERNEL_OK")
</pallas_src>

<mosaic_0001>
module attributes {stable_mosaic.version = 11 : i64} {
  func.func @kernel(%arg0: i32, %arg1: memref<1x4x1684xf32, #tpu.memory_space<vmem>>, %arg2: memref<3x100xbf16, #tpu.memory_space<vmem>>, %arg3: memref<3x1xf32, #tpu.memory_space<vmem>>, %arg4: memref<400x64xbf16, #tpu.memory_space<vmem>>, %arg5: memref<6x75xbf16, #tpu.memory_space<vmem>>, %arg6: memref<6x1xf32, #tpu.memory_space<vmem>>, %arg7: memref<144x16xbf16, #tpu.memory_space<vmem>>, %arg8: memref<16x150xbf16, #tpu.memory_space<vmem>>, %arg9: memref<16x1xf32, #tpu.memory_space<vmem>>, %arg10: memref<256x16xbf16, #tpu.memory_space<vmem>>, %arg11: memref<64x64xbf16, #tpu.memory_space<vmem>>, %arg12: memref<64x1xf32, #tpu.memory_space<vmem>>, %arg13: memref<8x64xbf16, #tpu.memory_space<vmem>>, %arg14: memref<8x1xf32, #tpu.memory_space<vmem>>, %arg15: memref<1x1x4xf32, #tpu.memory_space<vmem>>, %arg16: memref<100x1600xf32, #tpu.memory_space<vmem>>, %arg17: memref<3x1621xf32, #tpu.memory_space<vmem>>, %arg18: memref<75x576xf32, #tpu.memory_space<vmem>>, %arg19: memref<6x589xf32, #tpu.memory_space<vmem>>, %arg20: memref<150x256xf32, #tpu.memory_space<vmem>>, %arg21: memref<16x265xf32, #tpu.memory_space<vmem>>, %arg22: memref<3x628xf32, #tpu.memory_space<vmem>>, %arg23: memref<6x292xf32, #tpu.memory_space<vmem>>, %arg24: memref<64x4xf32, #tpu.memory_space<vmem>>) attributes {dimension_semantics = [#tpu.dimension_semantics<parallel>], iteration_bounds = array<i64: 2>, scalar_prefetch = 0 : i64, scratch_operands = 9 : i64, tpu.core_type = #tpu.core_type<tc>, window_params = [{transform_indices = @transform_0, window_bounds = array<i64: 1, 4, 1684>}, {pipeline_mode = #tpu.pipeline_mode<synchronous>, transform_indices = @transform_1, window_bounds = array<i64: 3, 100>}, {pipeline_mode = #tpu.pipeline_mode<synchronous>, transform_indices = @transform_2, window_bounds = array<i64: 3, 1>}, {pipeline_mode = #tpu.pipeline_mode<synchronous>, transform_indices = @transform_3, window_bounds = array<i64: 400, 64>}, {pipeline_mode = #tpu.pipeline_mode<synchronous>, transform_indices = @transform_4, window_bounds = array<i64: 6, 75>}, {pipeline_mode = #tpu.pipeline_mode<synchronous>, transform_indices = @transform_5, window_bounds = array<i64: 6, 1>}, {pipeline_mode = #tpu.pipeline_mode<synchronous>, transform_indices = @transform_6, window_bounds = array<i64: 144, 16>}, {pipeline_mode = #tpu.pipeline_mode<synchronous>, transform_indices = @transform_7, window_bounds = array<i64: 16, 150>}, {pipeline_mode = #tpu.pipeline_mode<synchronous>, transform_indices = @transform_8, window_bounds = array<i64: 16, 1>}, {pipeline_mode = #tpu.pipeline_mode<synchronous>, transform_indices = @transform_9, window_bounds = array<i64: 256, 16>}, {pipeline_mode = #tpu.pipeline_mode<synchronous>, transform_indices = @transform_10, window_bounds = array<i64: 64, 64>}, {pipeline_mode = #tpu.pipeline_mode<synchronous>, transform_indices = @transform_11, window_bounds = array<i64: 64, 1>}, {pipeline_mode = #tpu.pipeline_mode<synchronous>, transform_indices = @transform_12, window_bounds = array<i64: 8, 64>}, {pipeline_mode = #tpu.pipeline_mode<synchronous>, transform_indices = @transform_13, window_bounds = array<i64: 8, 1>}, {transform_indices = @transform_14, window_bounds = array<i64: 1, 1, 4>}]} {
    %c0 = arith.constant 0 : index
    %c0_0 = arith.constant 0 : index
    %c0_1 = arith.constant 0 : index
    %0 = vector.load %arg1[%c0, %c0_0, %c0_1] : memref<1x4x1684xf32, #tpu.memory_space<vmem>>, vector<1x4x1600xf32>
    %1 = vector.shape_cast %0 : vector<1x4x1600xf32> to vector<4x1600xf32>
    %c0_2 = arith.constant 0 : index
    %c0_3 = arith.constant 0 : index
    %2 = vector.load %arg16[%c0_2, %c0_3] : memref<100x1600xf32, #tpu.memory_space<vmem>>, vector<4x1600xf32>
    tpu.vector_store %arg16[%c0_2, %c0_3], %1 {strides = array<i32>} : memref<100x1600xf32, #tpu.memory_space<vmem>>, vector<4x1600xf32>,
    %c0_4 = arith.constant 0 : index
    %c0_5 = arith.constant 0 : index
    %c1 = arith.constant 1 : index
    %3 = vector.load %arg1[%c0_4, %c0_5, %c1] : memref<1x4x1684xf32, #tpu.memory_space<vmem>>, vector<1x4x1600xf32>
    %4 = vector.shape_cast %3 : vector<1x4x1600xf32> to vector<4x1600xf32>
    %c4 = arith.constant 4 : index
    %c0_6 = arith.constant 0 : index
    %5 = vector.load %arg16[%c4, %c0_6] : memref<100x1600xf32, #tpu.memory_space<vmem>>, vector<4x1600xf32>
    tpu.vector_store %arg16[%c4, %c0_6], %4 {strides = array<i32>} : memref<100x1600xf32, #tpu.memory_space<vmem>>, vector<4x1600xf32>,
    %c0_7 = arith.constant 0 : index
    %c0_8 = arith.constant 0 : index
    %c2 = arith.constant 2 : index
    %6 = vector.load %arg1[%c0_7, %c0_8, %c2] : memref<1x4x1684xf32, #tpu.memory_space<vmem>>, vector<1x4x1600xf32>
    %7 = vector.shape_cast %6 : vector<1x4x1600xf32> to vector<4x1600xf32>
    %c8 = arith.constant 8 : index
    %c0_9 = arith.constant 0 : index
    %8 = vector.load %arg16[%c8, %c0_9] : memref<100x1600xf32, #tpu.memory_space<vmem>>, vector<4x1600xf32>
    tpu.vector_store %arg16[%c8, %c0_9], %7 {strides = array<i32>} : memref<100x1600xf32, #tpu.memory_space<vmem>>, vector<4x1600xf32>,
    %c0_10 = arith.constant 0 : index
    %c0_11 = arith.constant 0 : index
    %c3 = arith.constant 3 : index
    %9 = vector.load %arg1[%c0_10, %c0_11, %c3] : memref<1x4x1684xf32, #tpu.memory_space<vmem>>, vector<1x4x1600xf32>
    %10 = vector.shape_cast %9 : vector<1x4x1600xf32> to vector<4x1600xf32>
    %c12 = arith.constant 12 : index
    %c0_12 = arith.constant 0 : index
    %11 = vector.load %arg16[%c12, %c0_12] : memref<100x1600xf32, #tpu.memory_space<vmem>>, vector<4x1600xf32>
    tpu.vector_store %arg16[%c12, %c0_12], %10 {strides = array<i32>} : memref<100x1600xf32, #tpu.memory_space<vmem>>, vector<4x1600xf32>,
    %c0_13 = arith.constant 0 : index
    %c0_14 = arith.constant 0 : index
    %c4_15 = arith.constant 4 : index
    %12 = vector.load %arg1[%c0_13, %c0_14, %c4_15] : memref<1x4x1684xf32, #tpu.memory_space<vmem>>, vector<1x4x1600xf32>
    %13 = vector.shape_cast %12 : vector<1x4x1600xf32> to vector<4x1600xf32>
    %c16 = arith.constant 16 : index
    %c0_16 = arith.constant 0 : index
    %14 = vector.load %arg16[%c16, %c0_16] : memref<100x1600xf32, #tpu.memory_space<vmem>>, vector<4x1600xf32>
    tpu.vector_store %arg16[%c16, %c0_16], %13 {strides = array<i32>} : memref<100x1600xf32, #tpu.memory_space<vmem>>, vector<4x1600xf32>,
    %c0_17 = arith.constant 0 : index
    %c0_18 = arith.constant 0 : index
    %c20 = arith.constant 20 : index
    %15 = vector.load %arg1[%c0_17, %c0_18, %c20] : memref<1x4x1684xf32, #tpu.memory_space<vmem>>, vector<1x4x1600xf32>
    %16 = vector.shape_cast %15 : vector<1x4x1600xf32> to vector<4x1600xf32>
    %c20_19 = arith.constant 20 : index
    %c0_20 = arith.constant 0 : index
    %17 = vector.load %arg16[%c20_19, %c0_20] : memref<100x1600xf32, #tpu.memory_space<vmem>>, vector<4x1600xf32>
    tpu.vector_store %arg16[%c20_19, %c0_20], %16 {strides = array<i32>} : memref<100x1600xf32, #tpu.memory_space<vmem>>, vector<4x1600xf32>,
    %c0_21 = arith.constant 0 : index
    %c0_22 = arith.constant 0 : index
    %c21 = arith.constant 21 : index
    %18 = vector.load %arg1[%c0_21, %c0_22, %c21] : memref<1x4x1684xf32, #tpu.memory_space<vmem>>, vector<1x4x1600xf32>
    %19 = vector.shape_cast %18 : vector<1x4x1600xf32> to vector<4x1600xf32>
    %c24 = arith.constant 24 : index
    %c0_23 = arith.constant 0 : index
    %20 = vector.load %arg16[%c24, %c0_23] : memref<100x1600xf32, #tpu.memory_space<vmem>>, vector<4x1600xf32>
    tpu.vector_store %arg16[%c24, %c0_23], %19 {strides = array<i32>} : memref<100x1600xf32, #tpu.memory_space<vmem>>, vector<4x1600xf32>,
    %c0_24 = arith.constant 0 : index
    %c0_25 = arith.constant 0 : index
    %c22 = arith.constant 22 : index
    %21 = vector.load %arg1[%c0_24, %c0_25, %c22] : memref<1x4x1684xf32, #tpu.memory_space<vmem>>, vector<1x4x1600xf32>
    %22 = vector.shape_cast %21 : vector<1x4x1600xf32> to vector<4x1600xf32>
    %c28 = arith.constant 28 : index
    %c0_26 = arith.constant 0 : index
    %23 = vector.load %arg16[%c28, %c0_26] : memref<100x1600xf32, #tpu.memory_space<vmem>>, vector<4x1600xf32>
    tpu.vector_store %arg16[%c28, %c0_26], %22 {strides = array<i32>} : memref<100x1600xf32, #tpu.memory_space<vmem>>, vector<4x1600xf32>,
    %c0_27 = arith.constant 0 : index
    %c0_28 = arith.constant 0 : index
    %c23 = arith.constant 23 : index
    %24 = vector.load %arg1[%c0_27, %c0_28, %c23] : memref<1x4x1684xf32, #tpu.memory_space<vmem>>, vector<1x4x1600xf32>
    %25 = vector.shape_cast %24 : vector<1x4x1600xf32> to vector<4x1600xf32>
    %c32 = arith.constant 32 : index
    %c0_29 = arith.constant 0 : index
    %26 = vector.load %arg16[%c32, %c0_29] : memref<100x1600xf32, #tpu.memory_space<vmem>>, vector<4x1600xf32>
    tpu.vector_store %arg16[%c32, %c0_29], %25 {strides = array<i32>} : memref<100x1600xf32, #tpu.memory_space<vmem>>, vector<4x1600xf32>,
    %c0_30 = arith.constant 0 : index
    %c0_31 = arith.constant 0 : index
    %c24_32 = arith.constant 24 : index
    %27 = vector.load %arg1[%c0_30, %c0_31, %c24_32] : memref<1x4x1684xf32, #tpu.memory_space<vmem>>, vector<1x4x1600xf32>
    %28 = vector.shape_cast %27 : vector<1x4x1600xf32> to vector<4x1600xf32>
    %c36 = arith.constant 36 : index
    %c0_33 = arith.constant 0 : index
    %29 = vector.load %arg16[%c36, %c0_33] : memref<100x1600xf32, #tpu.memory_space<vmem>>, vector<4x1600xf32>
    tpu.vector_store %arg16[%c36, %c0_33], %28 {strides = array<i32>} : memref<100x1600xf32, #tpu.memory_space<vmem>>, vector<4x1600xf32>,
    %c0_34 = arith.constant 0 : index
    %c0_35 = arith.constant 0 : index
    %c40 = arith.constant 40 : index
    %30 = vector.load %arg1[%c0_34, %c0_35, %c40] : memref<1x4x1684xf32, #tpu.memory_space<vmem>>, vector<1x4x1600xf32>
    %31 = vector.shape_cast %30 : vector<1x4x1600xf32> to vector<4x1600xf32>
    %c40_36 = arith.constant 40 : index
    %c0_37 = arith.constant 0 : index
    %32 = vector.load %arg16[%c40_36, %c0_37] : memref<100x1600xf32, #tpu.memory_space<vmem>>, vector<4x1600xf32>
    tpu.vector_store %arg16[%c40_36, %c0_37], %31 {strides = array<i32>} : memref<100x1600xf32, #tpu.memory_space<vmem>>, vector<4x1600xf32>,
    %c0_38 = arith.constant 0 : index
    %c0_39 = arith.constant 0 : index
    %c41 = arith.constant 41 : index
    %33 = vector.load %arg1[%c0_38, %c0_39, %c41] : memref<1x4x1684xf32, #tpu.memory_space<vmem>>, vector<1x4x1600xf32>
    %34 = vector.shape_cast %33 : vector<1x4x1600xf32> to vector<4x1600xf32>
    %c44 = arith.constant 44 : index
    %c0_40 = arith.constant 0 : index
    %35 = vector.load %arg16[%c44, %c0_40] : memref<100x1600xf32, #tpu.memory_space<vmem>>, vector<4x1600xf32>
    tpu.vector_store %arg16[%c44, %c0_40], %34 {strides = array<i32>} : memref<100x1600xf32, #tpu.memory_space<vmem>>, vector<4x1600xf32>,
    %c0_41 = arith.constant 0 : index
    %c0_42 = arith.constant 0 : index
    %c42 = arith.constant 42 : index
    %36 = vector.load %arg1[%c0_41, %c0_42, %c42] : memref<1x4x1684xf32, #tpu.memory_space<vmem>>, vector<1x4x1600xf32>
    %37 = vector.shape_cast %36 : vector<1x4x1600xf32> to vector<4x1600xf32>
    %c48 = arith.constant 48 : index
    %c0_43 = arith.constant 0 : index
    %38 = vector.load %arg16[%c48, %c0_43] : memref<100x1600xf32, #tpu.memory_space<vmem>>, vector<4x1600xf32>
    tpu.vector_store %arg16[%c48, %c0_43], %37 {strides = array<i32>} : memref<100x1600xf32, #tpu.memory_space<vmem>>, vector<4x1600xf32>,
    %c0_44 = arith.constant 0 : index
    %c0_45 = arith.constant 0 : index
    %c43 = arith.constant 43 : index
    %39 = vector.load %arg1[%c0_44, %c0_45, %c43] : memref<1x4x1684xf32, #tpu.memory_space<vmem>>, vector<1x4x1600xf32>
    %40 = vector.shape_cast %39 : vector<1x4x1600xf32> to vector<4x1600xf32>
    %c52 = arith.constant 52 : index
    %c0_46 = arith.constant 0 : index
    %41 = vector.load %arg16[%c52, %c0_46] : memref<100x1600xf32, #tpu.memory_space<vmem>>, vector<4x1600xf32>
    tpu.vector_store %arg16[%c52, %c0_46], %40 {strides = array<i32>} : memref<100x1600xf32, #tpu.memory_space<vmem>>, vector<4x1600xf32>,
    %c0_47 = arith.constant 0 : index
    %c0_48 = arith.constant 0 : index
    %c44_49 = arith.constant 44 : index
    %42 = vector.load %arg1[%c0_47, %c0_48, %c44_49] : memref<1x4x1684xf32, #tpu.memory_space<vmem>>, vector<1x4x1600xf32>
    %43 = vector.shape_cast %42 : vector<1x4x1600xf32> to vector<4x1600xf32>
    %c56 = arith.constant 56 : index
    %c0_50 = arith.constant 0 : index
    %44 = vector.load %arg16[%c56, %c0_50] : memref<100x1600xf32, #tpu.memory_space<vmem>>, vector<4x1600xf32>
    tpu.vector_store %arg16[%c56, %c0_50], %43 {strides = array<i32>} : memref<100x1600xf32, #tpu.memory_space<vmem>>, vector<4x1600xf32>,
    %c0_51 = arith.constant 0 : index
    %c0_52 = arith.constant 0 : index
    %c60 = arith.constant 60 : index
    %45 = vector.load %arg1[%c0_51, %c0_52, %c60] : memref<1x4x1684xf32, #tpu.memory_space<vmem>>, vector<1x4x1600xf32>
    %46 = vector.shape_cast %45 : vector<1x4x1600xf32> to vector<4x1600xf32>
    %c60_53 = arith.constant 60 : index
    %c0_54 = arith.constant 0 : index
    %47 = vector.load %arg16[%c60_53, %c0_54] : memref<100x1600xf32, #tpu.memory_space<vmem>>, vector<4x1600xf32>
    tpu.vector_store %arg16[%c60_53, %c0_54], %46 {strides = array<i32>} : memref<100x1600xf32, #tpu.memory_space<vmem>>, vector<4x1600xf32>,
    %c0_55 = arith.constant 0 : index
    %c0_56 = arith.constant 0 : index
    %c61 = arith.constant 61 : index
    %48 = vector.load %arg1[%c0_55, %c0_56, %c61] : memref<1x4x1684xf32, #tpu.memory_space<vmem>>, vector<1x4x1600xf32>
    %49 = vector.shape_cast %48 : vector<1x4x1600xf32> to vector<4x1600xf32>
    %c64 = arith.constant 64 : index
    %c0_57 = arith.constant 0 : index
    %50 = vector.load %arg16[%c64, %c0_57] : memref<100x1600xf32, #tpu.memory_space<vmem>>, vector<4x1600xf32>
    tpu.vector_store %arg16[%c64, %c0_57], %49 {strides = array<i32>} : memref<100x1600xf32, #tpu.memory_space<vmem>>, vector<4x1600xf32>,
    %c0_58 = arith.constant 0 : index
    %c0_59 = arith.constant 0 : index
    %c62 = arith.constant 62 : index
    %51 = vector.load %arg1[%c0_58, %c0_59, %c62] : memref<1x4x1684xf32, #tpu.memory_space<vmem>>, vector<1x4x1600xf32>
    %52 = vector.shape_cast %51 : vector<1x4x1600xf32> to vector<4x1600xf32>
    %c68 = arith.constant 68 : index
    %c0_60 = arith.constant 0 : index
    %53 = vector.load %arg16[%c68, %c0_60] : memref<100x1600xf32, #tpu.memory_space<vmem>>, vector<4x1600xf32>
    tpu.vector_store %arg16[%c68, %c0_60], %52 {strides = array<i32>} : memref<100x1600xf32, #tpu.memory_space<vmem>>, vector<4x1600xf32>,
    %c0_61 = arith.constant 0 : index
    %c0_62 = arith.constant 0 : index
    %c63 = arith.constant 63 : index
    %54 = vector.load %arg1[%c0_61, %c0_62, %c63] : memref<1x4x1684xf32, #tpu.memory_space<vmem>>, vector<1x4x1600xf32>
    %55 = vector.shape_cast %54 : vector<1x4x1600xf32> to vector<4x1600xf32>
    %c72 = arith.constant 72 : index
    %c0_63 = arith.constant 0 : index
    %56 = vector.load %arg16[%c72, %c0_63] : memref<100x1600xf32, #tpu.memory_space<vmem>>, vector<4x1600xf32>
    tpu.vector_store %arg16[%c72, %c0_63], %55 {strides = array<i32>} : memref<100x1600xf32, #tpu.memory_space<vmem>>, vector<4x1600xf32>,
    %c0_64 = arith.constant 0 : index
    %c0_65 = arith.constant 0 : index
    %c64_66 = arith.constant 64 : index
    %57 = vector.load %arg1[%c0_64, %c0_65, %c64_66] : memref<1x4x1684xf32, #tpu.memory_space<vmem>>, vector<1x4x1600xf32>
    %58 = vector.shape_cast %57 : vector<1x4x1600xf32> to vector<4x1600xf32>
    %c76 = arith.constant 76 : index
    %c0_67 = arith.constant 0 : index
    %59 = vector.load %arg16[%c76, %c0_67] : memref<100x1600xf32, #tpu.memory_space<vmem>>, vector<4x1600xf32>
    tpu.vector_store %arg16[%c76, %c0_67], %58 {strides = array<i32>} : memref<100x1600xf32, #tpu.memory_space<vmem>>, vector<4x1600xf32>,
    %c0_68 = arith.constant 0 : index
    %c0_69 = arith.constant 0 : index
    %c80 = arith.constant 80 : index
    %60 = vector.load %arg1[%c0_68, %c0_69, %c80] : memref<1x4x1684xf32, #tpu.memory_space<vmem>>, vector<1x4x1600xf32>
    %61 = vector.shape_cast %60 : vector<1x4x1600xf32> to vector<4x1600xf32>
    %c80_70 = arith.constant 80 : index
    %c0_71 = arith.constant 0 : index
    %62 = vector.load %arg16[%c80_70, %c0_71] : memref<100x1600xf32, #tpu.memory_space<vmem>>, vector<4x1600xf32>
    tpu.vector_store %arg16[%c80_70, %c0_71], %61 {strides = array<i32>} : memref<100x1600xf32, #tpu.memory_space<vmem>>, vector<4x1600xf32>,
    %c0_72 = arith.constant 0 : index
    %c0_73 = arith.constant 0 : index
    %c81 = arith.constant 81 : index
    %63 = vector.load %arg1[%c0_72, %c0_73, %c81] : memref<1x4x1684xf32, #tpu.memory_space<vmem>>, vector<1x4x1600xf32>
    %64 = vector.shape_cast %63 : vector<1x4x1600xf32> to vector<4x1600xf32>
    %c84 = arith.constant 84 : index
    %c0_74 = arith.constant 0 : index
    %65 = vector.load %arg16[%c84, %c0_74] : memref<100x1600xf32, #tpu.memory_space<vmem>>, vector<4x1600xf32>
    tpu.vector_store %arg16[%c84, %c0_74], %64 {strides = array<i32>} : memref<100x1600xf32, #tpu.memory_space<vmem>>, vector<4x1600xf32>,
    %c0_75 = arith.constant 0 : index
    %c0_76 = arith.constant 0 : index
    %c82 = arith.constant 82 : index
    %66 = vector.load %arg1[%c0_75, %c0_76, %c82] : memref<1x4x1684xf32, #tpu.memory_space<vmem>>, vector<1x4x1600xf32>
    %67 = vector.shape_cast %66 : vector<1x4x1600xf32> to vector<4x1600xf32>
    %c88 = arith.constant 88 : index
    %c0_77 = arith.constant 0 : index
    %68 = vector.load %arg16[%c88, %c0_77] : memref<100x1600xf32, #tpu.memory_space<vmem>>, vector<4x1600xf32>
    tpu.vector_store %arg16[%c88, %c0_77], %67 {strides = array<i32>} : memref<100x1600xf32, #tpu.memory_space<vmem>>, vector<4x1600xf32>,
    %c0_78 = arith.constant 0 : index
    %c0_79 = arith.constant 0 : index
    %c83 = arith.constant 83 : index
    %69 = vector.load %arg1[%c0_78, %c0_79, %c83] : memref<1x4x1684xf32, #tpu.memory_space<vmem>>, vector<1x4x1600xf32>
    %70 = vector.shape_cast %69 : vector<1x4x1600xf32> to vector<4x1600xf32>
    %c92 = arith.constant 92 : index
    %c0_80 = arith.constant 0 : index
    %71 = vector.load %arg16[%c92, %c0_80] : memref<100x1600xf32, #tpu.memory_space<vmem>>, vector<4x1600xf32>
    tpu.vector_store %arg16[%c92, %c0_80], %70 {strides = array<i32>} : memref<100x1600xf32, #tpu.memory_space<vmem>>, vector<4x1600xf32>,
    %c0_81 = arith.constant 0 : index
    %c0_82 = arith.constant 0 : index
    %c84_83 = arith.constant 84 : index
    %72 = vector.load %arg1[%c0_81, %c0_82, %c84_83] : memref<1x4x1684xf32, #tpu.memory_space<vmem>>, vector<1x4x1600xf32>
    %73 = vector.shape_cast %72 : vector<1x4x1600xf32> to vector<4x1600xf32>
    %c96 = arith.constant 96 : index
    %c0_84 = arith.constant 0 : index
    %74 = vector.load %arg16[%c96, %c0_84] : memref<100x1600xf32, #tpu.memory_space<vmem>>, vector<4x1600xf32>
    tpu.vector_store %arg16[%c96, %c0_84], %73 {strides = array<i32>} : memref<100x1600xf32, #tpu.memory_space<vmem>>, vector<4x1600xf32>,
    %c0_85 = arith.constant 0 : index
    %c0_86 = arith.constant 0 : index
    %75 = vector.load %arg2[%c0_85, %c0_86] : memref<3x100xbf16, #tpu.memory_space<vmem>>, vector<3x100xbf16>
    %c0_87 = arith.constant 0 : index
    %c0_88 = arith.constant 0 : index
    %76 = vector.load %arg16[%c0_87, %c0_88] : memref<100x1600xf32, #tpu.memory_space<vmem>>, vector<100x1600xf32>
    %77 = arith.truncf %76 : vector<100x1600xf32> to vector<100x1600xbf16>
    %cst = arith.constant dense<0.000000e+00> : vector<3x1600xf32>
    %78 = tpu.matmul %75, %77, %cst {dimension_numbers = #tpu.dot_dimension_numbers<[1], [0], [0], [1], [0, 0, 1, 1], [], []>} : vector<3x100xbf16>, vector<100x1600xbf16>, vector<3x1600xf32> -> vector<3x1600xf32>
    %cst_89 = arith.constant 0.000000e+00 : f32
    %79 = vector.broadcast %cst_89 : f32 to vector<3x21xf32>
    %c0_90 = arith.constant 0 : index
    %c1600 = arith.constant 1600 : index
    %80 = vector.load %arg17[%c0_90, %c1600] : memref<3x1621xf32, #tpu.memory_space<vmem>>, vector<3x21xf32>
    tpu.vector_store %arg17[%c0_90, %c1600], %79 {strides = array<i32>} : memref<3x1621xf32, #tpu.memory_space<vmem>>, vector<3x21xf32>,
    %c0_91 = arith.constant 0 : index
    %c0_92 = arith.constant 0 : index
    %81 = vector.load %arg17[%c0_91, %c0_92] : memref<3x1621xf32, #tpu.memory_space<vmem>>, vector<3x1600xf32>
    tpu.vector_store %arg17[%c0_91, %c0_92], %78 {strides = array<i32>} : memref<3x1621xf32, #tpu.memory_space<vmem>>, vector<3x1600xf32>,
    %c0_93 = arith.constant 0 : index
    %c0_94 = arith.constant 0 : index
    %82 = vector.load %arg17[%c0_93, %c0_94] : memref<3x1621xf32, #tpu.memory_space<vmem>>, vector<3x1600xf32>
    %c0_95 = arith.constant 0 : index
    %c1_96 = arith.constant 1 : index
    %83 = vector.load %arg17[%c0_95, %c1_96] : memref<3x1621xf32, #tpu.memory_space<vmem>>, vector<3x1600xf32>
    %84 = arith.maximumf %82, %83 : vector<3x1600xf32>
    %c0_97 = arith.constant 0 : index
    %c20_98 = arith.constant 20 : index
    %85 = vector.load %arg17[%c0_97, %c20_98] : memref<3x1621xf32, #tpu.memory_space<vmem>>, vector<3x1600xf32>
    %c0_99 = arith.constant 0 : index
    %c21_100 = arith.constant 21 : index
    %86 = vector.load %arg17[%c0_99, %c21_100] : memref<3x1621xf32, #tpu.memory_space<vmem>>, vector<3x1600xf32>
    %87 = arith.maximumf %85, %86 : vector<3x1600xf32>
    %88 = arith.maximumf %84, %87 : vector<3x1600xf32>
    %c0_101 = arith.constant 0 : index
    %c0_102 = arith.constant 0 : index
    %89 = vector.load %arg4[%c0_101, %c0_102] : memref<400x64xbf16, #tpu.memory_space<vmem>>, vector<400x64xbf16>
    %c0_103 = arith.constant 0 : index
    %c0_104 = arith.constant 0 : index
    %90 = vector.load %arg3[%c0_103, %c0_104] : memref<3x1xf32, #tpu.memory_space<vmem>>, vector<3x1xf32>
    %cst_105 = arith.constant 0.000000e+00 : f32
    %91 = vector.broadcast %cst_105 : f32 to vector<3x628xf32>
    %c0_106 = arith.constant 0 : index
    %c0_107 = arith.constant 0 : index
    %92 = vector.load %arg22[%c0_106, %c0_107] : memref<3x628xf32, #tpu.memory_space<vmem>>, vector<3x628xf32>
    tpu.vector_store %arg22[%c0_106, %c0_107], %91 {strides = array<i32>} : memref<3x628xf32, #tpu.memory_space<vmem>>, vector<3x628xf32>,
    %93 = vector.extract_strided_slice %88 {offsets = [0, 0], sizes = [3, 400], strides = [1, 1]} : vector<3x1600xf32> to vector<3x400xf32>
    %94 = arith.truncf %93 : vector<3x400xf32> to vector<3x400xbf16>
    %cst_108 = arith.constant dense<0.000000e+00> : vector<3x64xf32>
    %95 = tpu.matmul %94, %89, %cst_108 {dimension_numbers = #tpu.dot_dimension_numbers<[1], [0], [0], [1], [0, 0, 1, 1], [], []>} : vector<3x400xbf16>, vector<400x64xbf16>, vector<3x64xf32> -> vector<3x64xf32>
    %96 = vector.broadcast %90 : vector<3x1xf32> to vector<3x64xf32>
    %97 = arith.addf %95, %96 : vector<3x64xf32>
    %cst_109 = arith.constant 0.000000e+00 : f32
    %98 = vector.broadcast %cst_109 : f32 to vector<3x64xf32>
    %99 = arith.maximumf %97, %98 : vector<3x64xf32>
    %100 = vector.extract_strided_slice %99 {offsets = [0, 0], sizes = [3, 8], strides = [1, 1]} : vector<3x64xf32> to vector<3x8xf32>
    %c0_110 = arith.constant 0 : index
    %c52_111 = arith.constant 52 : index
    %101 = vector.load %arg22[%c0_110, %c52_111] : memref<3x628xf32, #tpu.memory_space<vmem>>, vector<3x8xf32>
    tpu.vector_store %arg22[%c0_110, %c52_111], %100 {strides = array<i32>} : memref<3x628xf32, #tpu.memory_space<vmem>>, vector<3x8xf32>,
    %102 = vector.extract_strided_slice %99 {offsets = [0, 8], sizes = [3, 8], strides = [1, 1]} : vector<3x64xf32> to vector<3x8xf32>
    %c0_112 = arith.constant 0 : index
    %c64_113 = arith.constant 64 : index
    %103 = vector.load %arg22[%c0_112, %c64_113] : memref<3x628xf32, #tpu.memory_space<vmem>>, vector<3x8xf32>
    tpu.vector_store %arg22[%c0_112, %c64_113], %102 {strides = array<i32>} : memref<3x628xf32, #tpu.memory_space<vmem>>, vector<3x8xf32>,
    %104 = vector.extract_strided_slice %99 {offsets = [0, 16], sizes = [3, 8], strides = [1, 1]} : vector<3x64xf32> to vector<3x8xf32>
    %c0_114 = arith.constant 0 : index
    %c76_115 = arith.constant 76 : index
    %105 = vector.load %arg22[%c0_114, %c76_115] : memref<3x628xf32, #tpu.memory_space<vmem>>, vector<3x8xf32>
    tpu.vector_store %arg22[%c0_114, %c76_115], %104 {strides = array<i32>} : memref<3x628xf32, #tpu.memory_space<vmem>>, vector<3x8xf32>,
    %106 = vector.extract_strided_slice %99 {offsets = [0, 24], sizes = [3, 8], strides = [1, 1]} : vector<3x64xf32> to vector<3x8xf32>
    %c0_116 = arith.constant 0 : index
    %c88_117 = arith.constant 88 : index
    %107 = vector.load %arg22[%c0_116, %c88_117] : memref<3x628xf32, #tpu.memory_space<vmem>>, vector<3x8xf32>
    tpu.vector_store %arg22[%c0_116, %c88_117], %106 {strides = array<i32>} : memref<3x628xf32, #tpu.memory_space<vmem>>, vector<3x8xf32>,
    %108 = vector.extract_strided_slice %99 {offsets = [0, 32], sizes = [3, 8], strides = [1, 1]} : vector<3x64xf32> to vector<3x8xf32>
    %c0_118 = arith.constant 0 : index
    %c100 = arith.constant 100 : index
    %109 = vector.load %arg22[%c0_118, %c100] : memref<3x628xf32, #tpu.memory_space<vmem>>, vector<3x8xf32>
    tpu.vector_store %arg22[%c0_118, %c100], %108 {strides = array<i32>} : memref<3x628xf32, #tpu.memory_space<vmem>>, vector<3x8xf32>,
    %110 = vector.extract_strided_slice %99 {offsets = [0, 40], sizes = [3, 8], strides = [1, 1]} : vector<3x64xf32> to vector<3x8xf32>
    %c0_119 = arith.constant 0 : index
    %c112 = arith.constant 112 : index
    %111 = vector.load %arg22[%c0_119, %c112] : memref<3x628xf32, #tpu.memory_space<vmem>>, vector<3x8xf32>
    tpu.vector_store %arg22[%c0_119, %c112], %110 {strides = array<i32>} : memref<3x628xf32, #tpu.memory_space<vmem>>, vector<3x8xf32>,
    %112 = vector.extract_strided_slice %99 {offsets = [0, 48], sizes = [3, 8], strides = [1, 1]} : vector<3x64xf32> to vector<3x8xf32>
    %c0_120 = arith.constant 0 : index
    %c124 = arith.constant 124 : index
    %113 = vector.load %arg22[%c0_120, %c124] : memref<3x628xf32, #tpu.memory_space<vmem>>, vector<3x8xf32>
    tpu.vector_store %arg22[%c0_120, %c124], %112 {strides = array<i32>} : memref<3x628xf32, #tpu.memory_space<vmem>>, vector<3x8xf32>,
    %114 = vector.extract_strided_slice %99 {offsets = [0, 56], sizes = [3, 8], strides = [1, 1]} : vector<3x64xf32> to vector<3x8xf32>
    %c0_121 = arith.constant 0 : index
    %c136 = arith.constant 136 : index
    %115 = vector.load %arg22[%c0_121, %c136] : memref<3x628xf32, #tpu.memory_space<vmem>>, vector<3x8xf32>
    tpu.vector_store %arg22[%c0_121, %c136], %114 {strides = array<i32>} : memref<3x628xf32, #tpu.memory_space<vmem>>, vector<3x8xf32>,
    %116 = vector.extract_strided_slice %88 {offsets = [0, 400], sizes = [3, 400], strides = [1, 1]} : vector<3x1600xf32> to vector<3x400xf32>
    %117 = arith.truncf %116 : vector<3x400xf32> to vector<3x400xbf16>
    %cst_122 = arith.constant dense<0.000000e+00> : vector<3x64xf32>
    %118 = tpu.matmul %117, %89, %cst_122 {dimension_numbers = #tpu.dot_dimension_numbers<[1], [0], [0], [1], [0, 0, 1, 1], [], []>} : vector<3x400xbf16>, vector<400x64xbf16>, vector<3x64xf32> -> vector<3x64xf32>
    %119 = vector.broadcast %90 : vector<3x1xf32> to vector<3x64xf32>
    %120 = arith.addf %118, %119 : vector<3x64xf32>
    %cst_123 = arith.constant 0.000000e+00 : f32
    %121 = vector.broadcast %cst_123 : f32 to vector<3x64xf32>
    %122 = arith.maximumf %120, %121 : vector<3x64xf32>
    %123 = vector.extract_strided_slice %122 {offsets = [0, 0], sizes = [3, 8], strides = [1, 1]} : vector<3x64xf32> to vector<3x8xf32>
    %c0_124 = arith.constant 0 : index
    %c196 = arith.constant 196 : index
    %124 = vector.load %arg22[%c0_124, %c196] : memref<3x628xf32, #tpu.memory_space<vmem>>, vector<3x8xf32>
    tpu.vector_store %arg22[%c0_124, %c196], %123 {strides = array<i32>} : memref<3x628xf32, #tpu.memory_space<vmem>>, vector<3x8xf32>,
    %125 = vector.extract_strided_slice %122 {offsets = [0, 8], sizes = [3, 8], strides = [1, 1]} : vector<3x64xf32> to vector<3x8xf32>
    %c0_125 = arith.constant 0 : index
    %c208 = arith.constant 208 : index
    %126 = vector.load %arg22[%c0_125, %c208] : memref<3x628xf32, #tpu.memory_space<vmem>>, vector<3x8xf32>
    tpu.vector_store %arg22[%c0_125, %c208], %125 {strides = array<i32>} : memref<3x628xf32, #tpu.memory_space<vmem>>, vector<3x8xf32>,
    %127 = vector.extract_strided_slice %122 {offsets = [0, 16], sizes = [3, 8], strides = [1, 1]} : vector<3x64xf32> to vector<3x8xf32>
    %c0_126 = arith.constant 0 : index
    %c220 = arith.constant 220 : index
    %128 = vector.load %arg22[%c0_126, %c220] : memref<3x628xf32, #tpu.memory_space<vmem>>, vector<3x8xf32>
    tpu.vector_store %arg22[%c0_126, %c220], %127 {strides = array<i32>} : memref<3x628xf32, #tpu.memory_space<vmem>>, vector<3x8xf32>,
    %129 = vector.extract_strided_slice %122 {offsets = [0, 24], sizes = [3, 8], strides = [1, 1]} : vector<3x64xf32> to vector<3x8xf32>
    %c0_127 = arith.constant 0 : index
    %c232 = arith.constant 232 : index
    %130 = vector.load %arg22[%c0_127, %c232] : memref<3x628xf32, #tpu.memory_space<vmem>>, vector<3x8xf32>
    tpu.vector_store %arg22[%c0_127, %c232], %129 {strides = array<i32>} : memref<3x628xf32, #tpu.memory_space<vmem>>, vector<3x8xf32>,
    %131 = vector.extract_strided_slice %122 {offsets = [0, 32], sizes = [3, 8], strides = [1, 1]} : vector<3x64xf32> to vector<3x8xf32>
    %c0_128 = arith.constant 0 : index
    %c244 = arith.constant 244 : index
    %132 = vector.load %arg22[%c0_128, %c244] : memref<3x628xf32, #tpu.memory_space<vmem>>, vector<3x8xf32>
    tpu.vector_store %arg22[%c0_128, %c244], %131 {strides = array<i32>} : memref<3x628xf32, #tpu.memory_space<vmem>>, vector<3x8xf32>,
    %133 = vector.extract_strided_slice %122 {offsets = [0, 40], sizes = [3, 8], strides = [1, 1]} : vector<3x64xf32> to vector<3x8xf32>
    %c0_129 = arith.constant 0 : index
    %c256 = arith.constant 256 : index
    %134 = vector.load %arg22[%c0_129, %c256] : memref<3x628xf32, #tpu.memory_space<vmem>>, vector<3x8xf32>
    tpu.vector_store %arg22[%c0_129, %c256], %133 {strides = array<i32>} : memref<3x628xf32, #tpu.memory_space<vmem>>, vector<3x8xf32>,
    %135 = vector.extract_strided_slice %122 {offsets = [0, 48], sizes = [3, 8], strides = [1, 1]} : vector<3x64xf32> to vector<3x8xf32>
    %c0_130 = arith.constant 0 : index
    %c268 = arith.constant 268 : index
    %136 = vector.load %arg22[%c0_130, %c268] : memref<3x628xf32, #tpu.memory_space<vmem>>, vector<3x8xf32>
    tpu.vector_store %arg22[%c0_130, %c268], %135 {strides = array<i32>} : memref<3x628xf32, #tpu.memory_space<vmem>>, vector<3x8xf32>,
    %137 = vector.extract_strided_slice %122 {offsets = [0, 56], sizes = [3, 8], strides = [1, 1]} : vector<3x64xf32> to vector<3x8xf32>
    %c0_131 = arith.constant 0 : index
    %c280 = arith.constant 280 : index
    %138 = vector.load %arg22[%c0_131, %c280] : memref<3x628xf32, #tpu.memory_space<vmem>>, vector<3x8xf32>
    tpu.vector_store %arg22[%c0_131, %c280], %137 {strides = array<i32>} : memref<3x628xf32, #tpu.memory_space<vmem>>, vector<3x8xf32>,
    %139 = vector.extract_strided_slice %88 {offsets = [0, 800], sizes = [3, 400], strides = [1, 1]} : vector<3x1600xf32> to vector<3x400xf32>
    %140 = arith.truncf %139 : vector<3x400xf32> to vector<3x400xbf16>
    %cst_132 = arith.constant dense<0.000000e+00> : vector<3x64xf32>
    %141 = tpu.matmul %140, %89, %cst_132 {dimension_numbers = #tpu.dot_dimension_numbers<[1], [0], [0], [1], [0, 0, 1, 1], [], []>} : vector<3x400xbf16>, vector<400x64xbf16>, vector<3x64xf32> -> vector<3x64xf32>
    %142 = vector.broadcast %90 : vector<3x1xf32> to vector<3x64xf32>
    %143 = arith.addf %141, %142 : vector<3x64xf32>
    %cst_133 = arith.constant 0.000000e+00 : f32
    %144 = vector.broadcast %cst_133 : f32 to vector<3x64xf32>
    %145 = arith.maximumf %143, %144 : vector<3x64xf32>
    %146 = vector.extract_strided_slice %145 {offsets = [0, 0], sizes = [3, 8], strides = [1, 1]} : vector<3x64xf32> to vector<3x8xf32>
    %c0_134 = arith.constant 0 : index
    %c340 = arith.constant 340 : index
    %147 = vector.load %arg22[%c0_134, %c340] : memref<3x628xf32, #tpu.memory_space<vmem>>, vector<3x8xf32>
    tpu.vector_store %arg22[%c0_134, %c340], %146 {strides = array<i32>} : memref<3x628xf32, #tpu.memory_space<vmem>>, vector<3x8xf32>,
    %148 = vector.extract_strided_slice %145 {offsets = [0, 8], sizes = [3, 8], strides = [1, 1]} : vector<3x64xf32> to vector<3x8xf32>
    %c0_135 = arith.constant 0 : index
    %c352 = arith.constant 352 : index
    %149 = vector.load %arg22[%c0_135, %c352] : memref<3x628xf32, #tpu.memory_space<vmem>>, vector<3x8xf32>
    tpu.vector_store %arg22[%c0_135, %c352], %148 {strides = array<i32>} : memref<3x628xf32, #tpu.memory_space<vmem>>, vector<3x8xf32>,
    %150 = vector.extract_strided_slice %145 {offsets = [0, 16], sizes = [3, 8], strides = [1, 1]} : vector<3x64xf32> to vector<3x8xf32>
    %c0_136 = arith.constant 0 : index
    %c364 = arith.constant 364 : index
    %151 = vector.load %arg22[%c0_136, %c364] : memref<3x628xf32, #tpu.memory_space<vmem>>, vector<3x8xf32>
    tpu.vector_store %arg22[%c0_136, %c364], %150 {strides = array<i32>} : memref<3x628xf32, #tpu.memory_space<vmem>>, vector<3x8xf32>,
    %152 = vector.extract_strided_slice %145 {offsets = [0, 24], sizes = [3, 8], strides = [1, 1]} : vector<3x64xf32> to vector<3x8xf32>
    %c0_137 = arith.constant 0 : index
    %c376 = arith.constant 376 : index
    %153 = vector.load %arg22[%c0_137, %c376] : memref<3x628xf32, #tpu.memory_space<vmem>>, vector<3x8xf32>
    tpu.vector_store %arg22[%c0_137, %c376], %152 {strides = array<i32>} : memref<3x628xf32, #tpu.memory_space<vmem>>, vector<3x8xf32>,
    %154 = vector.extract_strided_slice %145 {offsets = [0, 32], sizes = [3, 8], strides = [1, 1]} : vector<3x64xf32> to vector<3x8xf32>
    %c0_138 = arith.constant 0 : index
    %c388 = arith.constant 388 : index
    %155 = vector.load %arg22[%c0_138, %c388] : memref<3x628xf32, #tpu.memory_space<vmem>>, vector<3x8xf32>
    tpu.vector_store %arg22[%c0_138, %c388], %154 {strides = array<i32>} : memref<3x628xf32, #tpu.memory_space<vmem>>, vector<3x8xf32>,
    %156 = vector.extract_strided_slice %145 {offsets = [0, 40], sizes = [3, 8], strides = [1, 1]} : vector<3x64xf32> to vector<3x8xf32>
    %c0_139 = arith.constant 0 : index
    %c400 = arith.constant 400 : index
    %157 = vector.load %arg22[%c0_139, %c400] : memref<3x628xf32, #tpu.memory_space<vmem>>, vector<3x8xf32>
    tpu.vector_store %arg22[%c0_139, %c400], %156 {strides = array<i32>} : memref<3x628xf32, #tpu.memory_space<vmem>>, vector<3x8xf32>,
    %158 = vector.extract_strided_slice %145 {offsets = [0, 48], sizes = [3, 8], strides = [1, 1]} : vector<3x64xf32> to vector<3x8xf32>
    %c0_140 = arith.constant 0 : index
    %c412 = arith.constant 412 : index
    %159 = vector.load %arg22[%c0_140, %c412] : memref<3x628xf32, #tpu.memory_space<vmem>>, vector<3x8xf32>
    tpu.vector_store %arg22[%c0_140, %c412], %158 {strides = array<i32>} : memref<3x628xf32, #tpu.memory_space<vmem>>, vector<3x8xf32>,
    %160 = vector.extract_strided_slice %145 {offsets = [0, 56], sizes = [3, 8], strides = [1, 1]} : vector<3x64xf32> to vector<3x8xf32>
    %c0_141 = arith.constant 0 : index
    %c424 = arith.constant 424 : index
    %161 = vector.load %arg22[%c0_141, %c424] : memref<3x628xf32, #tpu.memory_space<vmem>>, vector<3x8xf32>
    tpu.vector_store %arg22[%c0_141, %c424], %160 {strides = array<i32>} : memref<3x628xf32, #tpu.memory_space<vmem>>, vector<3x8xf32>,
    %162 = vector.extract_strided_slice %88 {offsets = [0, 1200], sizes = [3, 400], strides = [1, 1]} : vector<3x1600xf32> to vector<3x400xf32>
    %163 = arith.truncf %162 : vector<3x400xf32> to vector<3x400xbf16>
    %cst_142 = arith.constant dense<0.000000e+00> : vector<3x64xf32>
    %164 = tpu.matmul %163, %89, %cst_142 {dimension_numbers = #tpu.dot_dimension_numbers<[1], [0], [0], [1], [0, 0, 1, 1], [], []>} : vector<3x400xbf16>, vector<400x64xbf16>, vector<3x64xf32> -> vector<3x64xf32>
    %165 = vector.broadcast %90 : vector<3x1xf32> to vector<3x64xf32>
    %166 = arith.addf %164, %165 : vector<3x64xf32>
    %cst_143 = arith.constant 0.000000e+00 : f32
    %167 = vector.broadcast %cst_143 : f32 to vector<3x64xf32>
    %168 = arith.maximumf %166, %167 : vector<3x64xf32>
    %169 = vector.extract_strided_slice %168 {offsets = [0, 0], sizes = [3, 8], strides = [1, 1]} : vector<3x64xf32> to vector<3x8xf32>
    %c0_144 = arith.constant 0 : index
    %c484 = arith.constant 484 : index
    %170 = vector.load %arg22[%c0_144, %c484] : memref<3x628xf32, #tpu.memory_space<vmem>>, vector<3x8xf32>
    tpu.vector_store %arg22[%c0_144, %c484], %169 {strides = array<i32>} : memref<3x628xf32, #tpu.memory_space<vmem>>, vector<3x8xf32>,
    %171 = vector.extract_strided_slice %168 {offsets = [0, 8], sizes = [3, 8], strides = [1, 1]} : vector<3x64xf32> to vector<3x8xf32>
    %c0_145 = arith.constant 0 : index
    %c496 = arith.constant 496 : index
    %172 = vector.load %arg22[%c0_145, %c496] : memref<3x628xf32, #tpu.memory_space<vmem>>, vector<3x8xf32>
    tpu.vector_store %arg22[%c0_145, %c496], %171 {strides = array<i32>} : memref<3x628xf32, #tpu.memory_space<vmem>>, vector<3x8xf32>,
    %173 = vector.extract_strided_slice %168 {offsets = [0, 16], sizes = [3, 8], strides = [1, 1]} : vector<3x64xf32> to vector<3x8xf32>
    %c0_146 = arith.constant 0 : index
    %c508 = arith.constant 508 : index
    %174 = vector.load %arg22[%c0_146, %c508] : memref<3x628xf32, #tpu.memory_space<vmem>>, vector<3x8xf32>
    tpu.vector_store %arg22[%c0_146, %c508], %173 {strides = array<i32>} : memref<3x628xf32, #tpu.memory_space<vmem>>, vector<3x8xf32>,
    %175 = vector.extract_strided_slice %168 {offsets = [0, 24], sizes = [3, 8], strides = [1, 1]} : vector<3x64xf32> to vector<3x8xf32>
    %c0_147 = arith.constant 0 : index
    %c520 = arith.constant 520 : index
    %176 = vector.load %arg22[%c0_147, %c520] : memref<3x628xf32, #tpu.memory_space<vmem>>, vector<3x8xf32>
    tpu.vector_store %arg22[%c0_147, %c520], %175 {strides = array<i32>} : memref<3x628xf32, #tpu.memory_space<vmem>>, vector<3x8xf32>,
    %177 = vector.extract_strided_slice %168 {offsets = [0, 32], sizes = [3, 8], strides = [1, 1]} : vector<3x64xf32> to vector<3x8xf32>
    %c0_148 = arith.constant 0 : index
    %c532 = arith.constant 532 : index
    %178 = vector.load %arg22[%c0_148, %c532] : memref<3x628xf32, #tpu.memory_space<vmem>>, vector<3x8xf32>
    tpu.vector_store %arg22[%c0_148, %c532], %177 {strides = array<i32>} : memref<3x628xf32, #tpu.memory_space<vmem>>, vector<3x8xf32>,
    %179 = vector.extract_strided_slice %168 {offsets = [0, 40], sizes = [3, 8], strides = [1, 1]} : vector<3x64xf32> to vector<3x8xf32>
    %c0_149 = arith.constant 0 : index
    %c544 = arith.constant 544 : index
    %180 = vector.load %arg22[%c0_149, %c544] : memref<3x628xf32, #tpu.memory_space<vmem>>, vector<3x8xf32>
    tpu.vector_store %arg22[%c0_149, %c544], %179 {strides = array<i32>} : memref<3x628xf32, #tpu.memory_space<vmem>>, vector<3x8xf32>,
    %181 = vector.extract_strided_slice %168 {offsets = [0, 48], sizes = [3, 8], strides = [1, 1]} : vector<3x64xf32> to vector<3x8xf32>
    %c0_150 = arith.constant 0 : index
    %c556 = arith.constant 556 : index
    %182 = vector.load %arg22[%c0_150, %c556] : memref<3x628xf32, #tpu.memory_space<vmem>>, vector<3x8xf32>
    tpu.vector_store %arg22[%c0_150, %c556], %181 {strides = array<i32>} : memref<3x628xf32, #tpu.memory_space<vmem>>, vector<3x8xf32>,
    %183 = vector.extract_strided_slice %168 {offsets = [0, 56], sizes = [3, 8], strides = [1, 1]} : vector<3x64xf32> to vector<3x8xf32>
    %c0_151 = arith.constant 0 : index
    %c568 = arith.constant 568 : index
    %184 = vector.load %arg22[%c0_151, %c568] : memref<3x628xf32, #tpu.memory_space<vmem>>, vector<3x8xf32>
    tpu.vector_store %arg22[%c0_151, %c568], %183 {strides = array<i32>} : memref<3x628xf32, #tpu.memory_space<vmem>>, vector<3x8xf32>,
    %c0_152 = arith.constant 0 : index
    %c0_153 = arith.constant 0 : index
    %185 = vector.load %arg22[%c0_152, %c0_153] : memref<3x628xf32, #tpu.memory_space<vmem>>, vector<3x576xf32>
    %c0_154 = arith.constant 0 : index
    %c0_155 = arith.constant 0 : index
    %186 = vector.load %arg18[%c0_154, %c0_155] : memref<75x576xf32, #tpu.memory_space<vmem>>, vector<3x576xf32>
    tpu.vector_store %arg18[%c0_154, %c0_155], %185 {strides = array<i32>} : memref<75x576xf32, #tpu.memory_space<vmem>>, vector<3x576xf32>,
    %c0_156 = arith.constant 0 : index
    %c1_157 = arith.constant 1 : index
    %187 = vector.load %arg22[%c0_156, %c1_157] : memref<3x628xf32, #tpu.memory_space<vmem>>, vector<3x576xf32>
    %c3_158 = arith.constant 3 : index
    %c0_159 = arith.constant 0 : index
    %188 = vector.load %arg18[%c3_158, %c0_159] : memref<75x576xf32, #tpu.memory_space<vmem>>, vector<3x576xf32>
    tpu.vector_store %arg18[%c3_158, %c0_159], %187 {strides = array<i32>} : memref<75x576xf32, #tpu.memory_space<vmem>>, vector<3x576xf32>,
    %c0_160 = arith.constant 0 : index
    %c2_161 = arith.constant 2 : index
    %189 = vector.load %arg22[%c0_160, %c2_161] : memref<3x628xf32, #tpu.memory_space<vmem>>, vector<3x576xf32>
    %c6 = arith.constant 6 : index
    %c0_162 = arith.constant 0 : index
    %190 = vector.load %arg18[%c6, %c0_162] : memref<75x576xf32, #tpu.memory_space<vmem>>, vector<3x576xf32>
    tpu.vector_store %arg18[%c6, %c0_162], %189 {strides = array<i32>} : memref<75x576xf32, #tpu.memory_space<vmem>>, vector<3x576xf32>,
    %c0_163 = arith.constant 0 : index
    %c3_164 = arith.constant 3 : index
    %191 = vector.load %arg22[%c0_163, %c3_164] : memref<3x628xf32, #tpu.memory_space<vmem>>, vector<3x576xf32>
    %c9 = arith.constant 9 : index
    %c0_165 = arith.constant 0 : index
    %192 = vector.load %arg18[%c9, %c0_165] : memref<75x576xf32, #tpu.memory_space<vmem>>, vector<3x576xf32>
    tpu.vector_store %arg18[%c9, %c0_165], %191 {strides = array<i32>} : memref<75x576xf32, #tpu.memory_space<vmem>>, vector<3x576xf32>,
    %c0_166 = arith.constant 0 : index
    %c4_167 = arith.constant 4 : index
    %193 = vector.load %arg22[%c0_166, %c4_167] : memref<3x628xf32, #tpu.memory_space<vmem>>, vector<3x576xf32>
    %c12_168 = arith.constant 12 : index
    %c0_169 = arith.constant 0 : index
    %194 = vector.load %arg18[%c12_168, %c0_169] : memref<75x576xf32, #tpu.memory_space<vmem>>, vector<3x576xf32>
    tpu.vector_store %arg18[%c12_168, %c0_169], %193 {strides = array<i32>} : memref<75x576xf32, #tpu.memory_space<vmem>>, vector<3x576xf32>,
    %c0_170 = arith.constant 0 : index
    %c12_171 = arith.constant 12 : index
    %195 = vector.load %arg22[%c0_170, %c12_171] : memref<3x628xf32, #tpu.memory_space<vmem>>, vector<3x576xf32>
    %c15 = arith.constant 15 : index
    %c0_172 = arith.constant 0 : index
    %196 = vector.load %arg18[%c15, %c0_172] : memref<75x576xf32, #tpu.memory_space<vmem>>, vector<3x576xf32>
    tpu.vector_store %arg18[%c15, %c0_172], %195 {strides = array<i32>} : memref<75x576xf32, #tpu.memory_space<vmem>>, vector<3x576xf32>,
    %c0_173 = arith.constant 0 : index
    %c13 = arith.constant 13 : index
    %197 = vector.load %arg22[%c0_173, %c13] : memref<3x628xf32, #tpu.memory_space<vmem>>, vector<3x576xf32>
    %c18 = arith.constant 18 : index
    %c0_174 = arith.constant 0 : index
    %198 = vector.load %arg18[%c18, %c0_174] : memref<75x576xf32, #tpu.memory_space<vmem>>, vector<3x576xf32>
    tpu.vector_store %arg18[%c18, %c0_174], %197 {strides = array<i32>} : memref<75x576xf32, #tpu.memory_space<vmem>>, vector<3x576xf32>,
    %c0_175 = arith.constant 0 : index
    %c14 = arith.constant 14 : index
    %199 = vector.load %arg22[%c0_175, %c14] : memref<3x628xf32, #tpu.memory_space<vmem>>, vector<3x576xf32>
    %c21_176 = arith.constant 21 : index
    %c0_177 = arith.constant 0 : index
    %200 = vector.load %arg18[%c21_176, %c0_177] : memref<75x576xf32, #tpu.memory_space<vmem>>, vector<3x576xf32>
    tpu.vector_store %arg18[%c21_176, %c0_177], %199 {strides = array<i32>} : memref<75x576xf32, #tpu.memory_space<vmem>>, vector<3x576xf32>,
    %c0_178 = arith.constant 0 : index
    %c15_179 = arith.constant 15 : index
    %201 = vector.load %arg22[%c0_178, %c15_179] : memref<3x628xf32, #tpu.memory_space<vmem>>, vector<3x576xf32>
    %c24_180 = arith.constant 24 : index
    %c0_181 = arith.constant 0 : index
    %202 = vector.load %arg18[%c24_180, %c0_181] : memref<75x576xf32, #tpu.memory_space<vmem>>, vector<3x576xf32>
    tpu.vector_store %arg18[%c24_180, %c0_181], %201 {strides = array<i32>} : memref<75x576xf32, #tpu.memory_space<vmem>>, vector<3x576xf32>,
    %c0_182 = arith.constant 0 : index
    %c16_183 = arith.constant 16 : index
    %203 = vector.load %arg22[%c0_182, %c16_183] : memref<3x628xf32, #tpu.memory_space<vmem>>, vector<3x576xf32>
    %c27 = arith.constant 27 : index
    %c0_184 = arith.constant 0 : index
    %204 = vector.load %arg18[%c27, %c0_184] : memref<75x576xf32, #tpu.memory_space<vmem>>, vector<3x576xf32>
    tpu.vector_store %arg18[%c27, %c0_184], %203 {strides = array<i32>} : memref<75x576xf32, #tpu.memory_space<vmem>>, vector<3x576xf32>,
    %c0_185 = arith.constant 0 : index
    %c24_186 = arith.constant 24 : index
    %205 = vector.load %arg22[%c0_185, %c24_186] : memref<3x628xf32, #tpu.memory_space<vmem>>, vector<3x576xf32>
    %c30 = arith.constant 30 : index
    %c0_187 = arith.constant 0 : index
    %206 = vector.load %arg18[%c30, %c0_187] : memref<75x576xf32, #tpu.memory_space<vmem>>, vector<3x576xf32>
    tpu.vector_store %arg18[%c30, %c0_187], %205 {strides = array<i32>} : memref<75x576xf32, #tpu.memory_space<vmem>>, vector<3x576xf32>,
    %c0_188 = arith.constant 0 : index
    %c25 = arith.constant 25 : index
    %207 = vector.load %arg22[%c0_188, %c25] : memref<3x628xf32, #tpu.memory_space<vmem>>, vector<3x576xf32>
    %c33 = arith.constant 33 : index
    %c0_189 = arith.constant 0 : index
    %208 = vector.load %arg18[%c33, %c0_189] : memref<75x576xf32, #tpu.memory_space<vmem>>, vector<3x576xf32>
    tpu.vector_store %arg18[%c33, %c0_189], %207 {strides = array<i32>} : memref<75x576xf32, #tpu.memory_space<vmem>>, vector<3x576xf32>,
    %c0_190 = arith.constant 0 : index
    %c26 = arith.constant 26 : index
    %209 = vector.load %arg22[%c0_190, %c26] : memref<3x628xf32, #tpu.memory_space<vmem>>, vector<3x576xf32>
    %c36_191 = arith.constant 36 : index
    %c0_192 = arith.constant 0 : index
    %210 = vector.load %arg18[%c36_191, %c0_192] : memref<75x576xf32, #tpu.memory_space<vmem>>, vector<3x576xf32>
    tpu.vector_store %arg18[%c36_191, %c0_192], %209 {strides = array<i32>} : memref<75x576xf32, #tpu.memory_space<vmem>>, vector<3x576xf32>,
    %c0_193 = arith.constant 0 : index
    %c27_194 = arith.constant 27 : index
    %211 = vector.load %arg22[%c0_193, %c27_194] : memref<3x628xf32, #tpu.memory_space<vmem>>, vector<3x576xf32>
    %c39 = arith.constant 39 : index
    %c0_195 = arith.constant 0 : index
    %212 = vector.load %arg18[%c39, %c0_195] : memref<75x576xf32, #tpu.memory_space<vmem>>, vector<3x576xf32>
    tpu.vector_store %arg18[%c39, %c0_195], %211 {strides = array<i32>} : memref<75x576xf32, #tpu.memory_space<vmem>>, vector<3x576xf32>,
    %c0_196 = arith.constant 0 : index
    %c28_197 = arith.constant 28 : index
    %213 = vector.load %arg22[%c0_196, %c28_197] : memref<3x628xf32, #tpu.memory_space<vmem>>, vector<3x576xf32>
    %c42_198 = arith.constant 42 : index
    %c0_199 = arith.constant 0 : index
    %214 = vector.load %arg18[%c42_198, %c0_199] : memref<75x576xf32, #tpu.memory_space<vmem>>, vector<3x576xf32>
    tpu.vector_store %arg18[%c42_198, %c0_199], %213 {strides = array<i32>} : memref<75x576xf32, #tpu.memory_space<vmem>>, vector<3x576xf32>,
    %c0_200 = arith.constant 0 : index
    %c36_201 = arith.constant 36 : index
    %215 = vector.load %arg22[%c0_200, %c36_201] : memref<3x628xf32, #tpu.memory_space<vmem>>, vector<3x576xf32>
    %c45 = arith.constant 45 : index
    %c0_202 = arith.constant 0 : index
    %216 = vector.load %arg18[%c45, %c0_202] : memref<75x576xf32, #tpu.memory_space<vmem>>, vector<3x576xf32>
    tpu.vector_store %arg18[%c45, %c0_202], %215 {strides = array<i32>} : memref<75x576xf32, #tpu.memory_space<vmem>>, vector<3x576xf32>,
    %c0_203 = arith.constant 0 : index
    %c37 = arith.constant 37 : index
    %217 = vector.load %arg22[%c0_203, %c37] : memref<3x628xf32, #tpu.memory_space<vmem>>, vector<3x576xf32>
    %c48_204 = arith.constant 48 : index
    %c0_205 = arith.constant 0 : index
    %218 = vector.load %arg18[%c48_204, %c0_205] : memref<75x576xf32, #tpu.memory_space<vmem>>, vector<3x576xf32>
    tpu.vector_store %arg18[%c48_204, %c0_205], %217 {strides = array<i32>} : memref<75x576xf32, #tpu.memory_space<vmem>>, vector<3x576xf32>,
    %c0_206 = arith.constant 0 : index
    %c38 = arith.constant 38 : index
    %219 = vector.load %arg22[%c0_206, %c38] : memref<3x628xf32, #tpu.memory_space<vmem>>, vector<3x576xf32>
    %c51 = arith.constant 51 : index
    %c0_207 = arith.constant 0 : index
    %220 = vector.load %arg18[%c51, %c0_207] : memref<75x576xf32, #tpu.memory_space<vmem>>, vector<3x576xf32>
    tpu.vector_store %arg18[%c51, %c0_207], %219 {strides = array<i32>} : memref<75x576xf32, #tpu.memory_space<vmem>>, vector<3x576xf32>,
    %c0_208 = arith.constant 0 : index
    %c39_209 = arith.constant 39 : index
    %221 = vector.load %arg22[%c0_208, %c39_209] : memref<3x628xf32, #tpu.memory_space<vmem>>, vector<3x576xf32>
    %c54 = arith.constant 54 : index
    %c0_210 = arith.constant 0 : index
    %222 = vector.load %arg18[%c54, %c0_210] : memref<75x576xf32, #tpu.memory_space<vmem>>, vector<3x576xf32>
    tpu.vector_store %arg18[%c54, %c0_210], %221 {strides = array<i32>} : memref<75x576xf32, #tpu.memory_space<vmem>>, vector<3x576xf32>,
    %c0_211 = arith.constant 0 : index
    %c40_212 = arith.constant 40 : index
    %223 = vector.load %arg22[%c0_211, %c40_212] : memref<3x628xf32, #tpu.memory_space<vmem>>, vector<3x576xf32>
    %c57 = arith.constant 57 : index
    %c0_213 = arith.constant 0 : index
    %224 = vector.load %arg18[%c57, %c0_213] : memref<75x576xf32, #tpu.memory_space<vmem>>, vector<3x576xf32>
    tpu.vector_store %arg18[%c57, %c0_213], %223 {strides = array<i32>} : memref<75x576xf32, #tpu.memory_space<vmem>>, vector<3x576xf32>,
    %c0_214 = arith.constant 0 : index
    %c48_215 = arith.constant 48 : index
    %225 = vector.load %arg22[%c0_214, %c48_215] : memref<3x628xf32, #tpu.memory_space<vmem>>, vector<3x576xf32>
    %c60_216 = arith.constant 60 : index
    %c0_217 = arith.constant 0 : index
    %226 = vector.load %arg18[%c60_216, %c0_217] : memref<75x576xf32, #tpu.memory_space<vmem>>, vector<3x576xf32>
    tpu.vector_store %arg18[%c60_216, %c0_217], %225 {strides = array<i32>} : memref<75x576xf32, #tpu.memory_space<vmem>>, vector<3x576xf32>,
    %c0_218 = arith.constant 0 : index
    %c49 = arith.constant 49 : index
    %227 = vector.load %arg22[%c0_218, %c49] : memref<3x628xf32, #tpu.memory_space<vmem>>, vector<3x576xf32>
    %c63_219 = arith.constant 63 : index
    %c0_220 = arith.constant 0 : index
    %228 = vector.load %arg18[%c63_219, %c0_220] : memref<75x576xf32, #tpu.memory_space<vmem>>, vector<3x576xf32>
    tpu.vector_store %arg18[%c63_219, %c0_220], %227 {strides = array<i32>} : memref<75x576xf32, #tpu.memory_space<vmem>>, vector<3x576xf32>,
    %c0_221 = arith.constant 0 : index
    %c50 = arith.constant 50 : index
    %229 = vector.load %arg22[%c0_221, %c50] : memref<3x628xf32, #tpu.memory_space<vmem>>, vector<3x576xf32>
    %c66 = arith.constant 66 : index
    %c0_222 = arith.constant 0 : index
    %230 = vector.load %arg18[%c66, %c0_222] : memref<75x576xf32, #tpu.memory_space<vmem>>, vector<3x576xf32>
    tpu.vector_store %arg18[%c66, %c0_222], %229 {strides = array<i32>} : memref<75x576xf32, #tpu.memory_space<vmem>>, vector<3x576xf32>,
    %c0_223 = arith.constant 0 : index
    %c51_224 = arith.constant 51 : index
    %231 = vector.load %arg22[%c0_223, %c51_224] : memref<3x628xf32, #tpu.memory_space<vmem>>, vector<3x576xf32>
    %c69 = arith.constant 69 : index
    %c0_225 = arith.constant 0 : index
    %232 = vector.load %arg18[%c69, %c0_225] : memref<75x576xf32, #tpu.memory_space<vmem>>, vector<3x576xf32>
    tpu.vector_store %arg18[%c69, %c0_225], %231 {strides = array<i32>} : memref<75x576xf32, #tpu.memory_space<vmem>>, vector<3x576xf32>,
    %c0_226 = arith.constant 0 : index
    %c52_227 = arith.constant 52 : index
    %233 = vector.load %arg22[%c0_226, %c52_227] : memref<3x628xf32, #tpu.memory_space<vmem>>, vector<3x576xf32>
    %c72_228 = arith.constant 72 : index
    %c0_229 = arith.constant 0 : index
    %234 = vector.load %arg18[%c72_228, %c0_229] : memref<75x576xf32, #tpu.memory_space<vmem>>, vector<3x576xf32>
    tpu.vector_store %arg18[%c72_228, %c0_229], %233 {strides = array<i32>} : memref<75x576xf32, #tpu.memory_space<vmem>>, vector<3x576xf32>,
    %c0_230 = arith.constant 0 : index
    %c0_231 = arith.constant 0 : index
    %235 = vector.load %arg5[%c0_230, %c0_231] : memref<6x75xbf16, #tpu.memory_space<vmem>>, vector<6x75xbf16>
    %c0_232 = arith.constant 0 : index
    %c0_233 = arith.constant 0 : index
    %236 = vector.load %arg18[%c0_232, %c0_233] : memref<75x576xf32, #tpu.memory_space<vmem>>, vector<75x576xf32>
    %237 = arith.truncf %236 : vector<75x576xf32> to vector<75x576xbf16>
    %cst_234 = arith.constant dense<0.000000e+00> : vector<6x576xf32>
    %238 = tpu.matmul %235, %237, %cst_234 {dimension_numbers = #tpu.dot_dimension_numbers<[1], [0], [0], [1], [0, 0, 1, 1], [], []>} : vector<6x75xbf16>, vector<75x576xbf16>, vector<6x576xf32> -> vector<6x576xf32>
    %cst_235 = arith.constant 0.000000e+00 : f32
    %239 = vector.broadcast %cst_235 : f32 to vector<6x13xf32>
    %c0_236 = arith.constant 0 : index
    %c576 = arith.constant 576 : index
    %240 = vector.load %arg19[%c0_236, %c576] : memref<6x589xf32, #tpu.memory_space<vmem>>, vector<6x13xf32>
    tpu.vector_store %arg19[%c0_236, %c576], %239 {strides = array<i32>} : memref<6x589xf32, #tpu.memory_space<vmem>>, vector<6x13xf32>,
    %c0_237 = arith.constant 0 : index
    %c0_238 = arith.constant 0 : index
    %241 = vector.load %arg19[%c0_237, %c0_238] : memref<6x589xf32, #tpu.memory_space<vmem>>, vector<6x576xf32>
    tpu.vector_store %arg19[%c0_237, %c0_238], %238 {strides = array<i32>} : memref<6x589xf32, #tpu.memory_space<vmem>>, vector<6x576xf32>,
    %c0_239 = arith.constant 0 : index
    %c0_240 = arith.constant 0 : index
    %242 = vector.load %arg19[%c0_239, %c0_240] : memref<6x589xf32, #tpu.memory_space<vmem>>, vector<6x576xf32>
    %c0_241 = arith.constant 0 : index
    %c1_242 = arith.constant 1 : index
    %243 = vector.load %arg19[%c0_241, %c1_242] : memref<6x589xf32, #tpu.memory_space<vmem>>, vector<6x576xf32>
    %244 = arith.maximumf %242, %243 : vector<6x576xf32>
    %c0_243 = arith.constant 0 : index
    %c12_244 = arith.constant 12 : index
    %245 = vector.load %arg19[%c0_243, %c12_244] : memref<6x589xf32, #tpu.memory_space<vmem>>, vector<6x576xf32>
    %c0_245 = arith.constant 0 : index
    %c13_246 = arith.constant 13 : index
    %246 = vector.load %arg19[%c0_245, %c13_246] : memref<6x589xf32, #tpu.memory_space<vmem>>, vector<6x576xf32>
    %247 = arith.maximumf %245, %246 : vector<6x576xf32>
    %248 = arith.maximumf %244, %247 : vector<6x576xf32>
    %c0_247 = arith.constant 0 : index
    %c0_248 = arith.constant 0 : index
    %249 = vector.load %arg7[%c0_247, %c0_248] : memref<144x16xbf16, #tpu.memory_space<vmem>>, vector<144x16xbf16>
    %c0_249 = arith.constant 0 : index
    %c0_250 = arith.constant 0 : index
    %250 = vector.load %arg6[%c0_249, %c0_250] : memref<6x1xf32, #tpu.memory_space<vmem>>, vector<6x1xf32>
    %cst_251 = arith.constant 0.000000e+00 : f32
    %251 = vector.broadcast %cst_251 : f32 to vector<6x292xf32>
    %c0_252 = arith.constant 0 : index
    %c0_253 = arith.constant 0 : index
    %252 = vector.load %arg23[%c0_252, %c0_253] : memref<6x292xf32, #tpu.memory_space<vmem>>, vector<6x292xf32>
    tpu.vector_store %arg23[%c0_252, %c0_253], %251 {strides = array<i32>} : memref<6x292xf32, #tpu.memory_space<vmem>>, vector<6x292xf32>,
    %253 = vector.extract_strided_slice %248 {offsets = [0, 0], sizes = [6, 144], strides = [1, 1]} : vector<6x576xf32> to vector<6x144xf32>
    %254 = arith.truncf %253 : vector<6x144xf32> to vector<6x144xbf16>
    %cst_254 = arith.constant dense<0.000000e+00> : vector<6x16xf32>
    %255 = tpu.matmul %254, %249, %cst_254 {dimension_numbers = #tpu.dot_dimension_numbers<[1], [0], [0], [1], [0, 0, 1, 1], [], []>} : vector<6x144xbf16>, vector<144x16xbf16>, vector<6x16xf32> -> vector<6x16xf32>
    %256 = vector.broadcast %250 : vector<6x1xf32> to vector<6x16xf32>
    %257 = arith.addf %255, %256 : vector<6x16xf32>
    %cst_255 = arith.constant 0.000000e+00 : f32
    %258 = vector.broadcast %cst_255 : f32 to vector<6x16xf32>
    %259 = arith.maximumf %257, %258 : vector<6x16xf32>
    %260 = vector.extract_strided_slice %259 {offsets = [0, 0], sizes = [6, 4], strides = [1, 1]} : vector<6x16xf32> to vector<6x4xf32>
    %c0_256 = arith.constant 0 : index
    %c36_257 = arith.constant 36 : index
    %261 = vector.load %arg23[%c0_256, %c36_257] : memref<6x292xf32, #tpu.memory_space<vmem>>, vector<6x4xf32>
    tpu.vector_store %arg23[%c0_256, %c36_257], %260 {strides = array<i32>} : memref<6x292xf32, #tpu.memory_space<vmem>>, vector<6x4xf32>,
    %262 = vector.extract_strided_slice %259 {offsets = [0, 4], sizes = [6, 4], strides = [1, 1]} : vector<6x16xf32> to vector<6x4xf32>
    %c0_258 = arith.constant 0 : index
    %c44_259 = arith.constant 44 : index
    %263 = vector.load %arg23[%c0_258, %c44_259] : memref<6x292xf32, #tpu.memory_space<vmem>>, vector<6x4xf32>
    tpu.vector_store %arg23[%c0_258, %c44_259], %262 {strides = array<i32>} : memref<6x292xf32, #tpu.memory_space<vmem>>, vector<6x4xf32>,
    %264 = vector.extract_strided_slice %259 {offsets = [0, 8], sizes = [6, 4], strides = [1, 1]} : vector<6x16xf32> to vector<6x4xf32>
    %c0_260 = arith.constant 0 : index
    %c52_261 = arith.constant 52 : index
    %265 = vector.load %arg23[%c0_260, %c52_261] : memref<6x292xf32, #tpu.memory_space<vmem>>, vector<6x4xf32>
    tpu.vector_store %arg23[%c0_260, %c52_261], %264 {strides = array<i32>} : memref<6x292xf32, #tpu.memory_space<vmem>>, vector<6x4xf32>,
    %266 = vector.extract_strided_slice %259 {offsets = [0, 12], sizes = [6, 4], strides = [1, 1]} : vector<6x16xf32> to vector<6x4xf32>
    %c0_262 = arith.constant 0 : index
    %c60_263 = arith.constant 60 : index
    %267 = vector.load %arg23[%c0_262, %c60_263] : memref<6x292xf32, #tpu.memory_space<vmem>>, vector<6x4xf32>
    tpu.vector_store %arg23[%c0_262, %c60_263], %266 {strides = array<i32>} : memref<6x292xf32, #tpu.memory_space<vmem>>, vector<6x4xf32>,
    %268 = vector.extract_strided_slice %248 {offsets = [0, 144], sizes = [6, 144], strides = [1, 1]} : vector<6x576xf32> to vector<6x144xf32>
    %269 = arith.truncf %268 : vector<6x144xf32> to vector<6x144xbf16>
    %cst_264 = arith.constant dense<0.000000e+00> : vector<6x16xf32>
    %270 = tpu.matmul %269, %249, %cst_264 {dimension_numbers = #tpu.dot_dimension_numbers<[1], [0], [0], [1], [0, 0, 1, 1], [], []>} : vector<6x144xbf16>, vector<144x16xbf16>, vector<6x16xf32> -> vector<6x16xf32>
    %271 = vector.broadcast %250 : vector<6x1xf32> to vector<6x16xf32>
    %272 = arith.addf %270, %271 : vector<6x16xf32>
    %cst_265 = arith.constant 0.000000e+00 : f32
    %273 = vector.broadcast %cst_265 : f32 to vector<6x16xf32>
    %274 = arith.maximumf %272, %273 : vector<6x16xf32>
    %275 = vector.extract_strided_slice %274 {offsets = [0, 0], sizes = [6, 4], strides = [1, 1]} : vector<6x16xf32> to vector<6x4xf32>
    %c0_266 = arith.constant 0 : index
    %c100_267 = arith.constant 100 : index
    %276 = vector.load %arg23[%c0_266, %c100_267] : memref<6x292xf32, #tpu.memory_space<vmem>>, vector<6x4xf32>
    tpu.vector_store %arg23[%c0_266, %c100_267], %275 {strides = array<i32>} : memref<6x292xf32, #tpu.memory_space<vmem>>, vector<6x4xf32>,
    %277 = vector.extract_strided_slice %274 {offsets = [0, 4], sizes = [6, 4], strides = [1, 1]} : vector<6x16xf32> to vector<6x4xf32>
    %c0_268 = arith.constant 0 : index
    %c108 = arith.constant 108 : index
    %278 = vector.load %arg23[%c0_268, %c108] : memref<6x292xf32, #tpu.memory_space<vmem>>, vector<6x4xf32>
    tpu.vector_store %arg23[%c0_268, %c108], %277 {strides = array<i32>} : memref<6x292xf32, #tpu.memory_space<vmem>>, vector<6x4xf32>,
    %279 = vector.extract_strided_slice %274 {offsets = [0, 8], sizes = [6, 4], strides = [1, 1]} : vector<6x16xf32> to vector<6x4xf32>
    %c0_269 = arith.constant 0 : index
    %c116 = arith.constant 116 : index
    %280 = vector.load %arg23[%c0_269, %c116] : memref<6x292xf32, #tpu.memory_space<vmem>>, vector<6x4xf32>
    tpu.vector_store %arg23[%c0_269, %c116], %279 {strides = array<i32>} : memref<6x292xf32, #tpu.memory_space<vmem>>, vector<6x4xf32>,
    %281 = vector.extract_strided_slice %274 {offsets = [0, 12], sizes = [6, 4], strides = [1, 1]} : vector<6x16xf32> to vector<6x4xf32>
    %c0_270 = arith.constant 0 : index
    %c124_271 = arith.constant 124 : index
    %282 = vector.load %arg23[%c0_270, %c124_271] : memref<6x292xf32, #tpu.memory_space<vmem>>, vector<6x4xf32>
    tpu.vector_store %arg23[%c0_270, %c124_271], %281 {strides = array<i32>} : memref<6x292xf32, #tpu.memory_space<vmem>>, vector<6x4xf32>,
    %283 = vector.extract_strided_slice %248 {offsets = [0, 288], sizes = [6, 144], strides = [1, 1]} : vector<6x576xf32> to vector<6x144xf32>
    %284 = arith.truncf %283 : vector<6x144xf32> to vector<6x144xbf16>
    %cst_272 = arith.constant dense<0.000000e+00> : vector<6x16xf32>
    %285 = tpu.matmul %284, %249, %cst_272 {dimension_numbers = #tpu.dot_dimension_numbers<[1], [0], [0], [1], [0, 0, 1, 1], [], []>} : vector<6x144xbf16>, vector<144x16xbf16>, vector<6x16xf32> -> vector<6x16xf32>
    %286 = vector.broadcast %250 : vector<6x1xf32> to vector<6x16xf32>
    %287 = arith.addf %285, %286 : vector<6x16xf32>
    %cst_273 = arith.constant 0.000000e+00 : f32
    %288 = vector.broadcast %cst_273 : f32 to vector<6x16xf32>
    %289 = arith.maximumf %287, %288 : vector<6x16xf32>
    %290 = vector.extract_strided_slice %289 {offsets = [0, 0], sizes = [6, 4], strides = [1, 1]} : vector<6x16xf32> to vector<6x4xf32>
    %c0_274 = arith.constant 0 : index
    %c164 = arith.constant 164 : index
    %291 = vector.load %arg23[%c0_274, %c164] : memref<6x292xf32, #tpu.memory_space<vmem>>, vector<6x4xf32>
    tpu.vector_store %arg23[%c0_274, %c164], %290 {strides = array<i32>} : memref<6x292xf32, #tpu.memory_space<vmem>>, vector<6x4xf32>,
    %292 = vector.extract_strided_slice %289 {offsets = [0, 4], sizes = [6, 4], strides = [1, 1]} : vector<6x16xf32> to vector<6x4xf32>
    %c0_275 = arith.constant 0 : index
    %c172 = arith.constant 172 : index
    %293 = vector.load %arg23[%c0_275, %c172] : memref<6x292xf32, #tpu.memory_space<vmem>>, vector<6x4xf32>
    tpu.vector_store %arg23[%c0_275, %c172], %292 {strides = array<i32>} : memref<6x292xf32, #tpu.memory_space<vmem>>, vector<6x4xf32>,
    %294 = vector.extract_strided_slice %289 {offsets = [0, 8], sizes = [6, 4], strides = [1, 1]} : vector<6x16xf32> to vector<6x4xf32>
    %c0_276 = arith.constant 0 : index
    %c180 = arith.constant 180 : index
    %295 = vector.load %arg23[%c0_276, %c180] : memref<6x292xf32, #tpu.memory_space<vmem>>, vector<6x4xf32>
    tpu.vector_store %arg23[%c0_276, %c180], %294 {strides = array<i32>} : memref<6x292xf32, #tpu.memory_space<vmem>>, vector<6x4xf32>,
    %296 = vector.extract_strided_slice %289 {offsets = [0, 12], sizes = [6, 4], strides = [1, 1]} : vector<6x16xf32> to vector<6x4xf32>
    %c0_277 = arith.constant 0 : index
    %c188 = arith.constant 188 : index
    %297 = vector.load %arg23[%c0_277, %c188] : memref<6x292xf32, #tpu.memory_space<vmem>>, vector<6x4xf32>
    tpu.vector_store %arg23[%c0_277, %c188], %296 {strides = array<i32>} : memref<6x292xf32, #tpu.memory_space<vmem>>, vector<6x4xf32>,
    %298 = vector.extract_strided_slice %248 {offsets = [0, 432], sizes = [6, 144], strides = [1, 1]} : vector<6x576xf32> to vector<6x144xf32>
    %299 = arith.truncf %298 : vector<6x144xf32> to vector<6x144xbf16>
    %cst_278 = arith.constant dense<0.000000e+00> : vector<6x16xf32>
    %300 = tpu.matmul %299, %249, %cst_278 {dimension_numbers = #tpu.dot_dimension_numbers<[1], [0], [0], [1], [0, 0, 1, 1], [], []>} : vector<6x144xbf16>, vector<144x16xbf16>, vector<6x16xf32> -> vector<6x16xf32>
    %301 = vector.broadcast %250 : vector<6x1xf32> to vector<6x16xf32>
    %302 = arith.addf %300, %301 : vector<6x16xf32>
    %cst_279 = arith.constant 0.000000e+00 : f32
    %303 = vector.broadcast %cst_279 : f32 to vector<6x16xf32>
    %304 = arith.maximumf %302, %303 : vector<6x16xf32>
    %305 = vector.extract_strided_slice %304 {offsets = [0, 0], sizes = [6, 4], strides = [1, 1]} : vector<6x16xf32> to vector<6x4xf32>
    %c0_280 = arith.constant 0 : index
    %c228 = arith.constant 228 : index
    %306 = vector.load %arg23[%c0_280, %c228] : memref<6x292xf32, #tpu.memory_space<vmem>>, vector<6x4xf32>
    tpu.vector_store %arg23[%c0_280, %c228], %305 {strides = array<i32>} : memref<6x292xf32, #tpu.memory_space<vmem>>, vector<6x4xf32>,
    %307 = vector.extract_strided_slice %304 {offsets = [0, 4], sizes = [6, 4], strides = [1, 1]} : vector<6x16xf32> to vector<6x4xf32>
    %c0_281 = arith.constant 0 : index
    %c236 = arith.constant 236 : index
    %308 = vector.load %arg23[%c0_281, %c236] : memref<6x292xf32, #tpu.memory_space<vmem>>, vector<6x4xf32>
    tpu.vector_store %arg23[%c0_281, %c236], %307 {strides = array<i32>} : memref<6x292xf32, #tpu.memory_space<vmem>>, vector<6x4xf32>,
    %309 = vector.extract_strided_slice %304 {offsets = [0, 8], sizes = [6, 4], strides = [1, 1]} : vector<6x16xf32> to vector<6x4xf32>
    %c0_282 = arith.constant 0 : index
    %c244_283 = arith.constant 244 : index
    %310 = vector.load %arg23[%c0_282, %c244_283] : memref<6x292xf32, #tpu.memory_space<vmem>>, vector<6x4xf32>
    tpu.vector_store %arg23[%c0_282, %c244_283], %309 {strides = array<i32>} : memref<6x292xf32, #tpu.memory_space<vmem>>, vector<6x4xf32>,
    %311 = vector.extract_strided_slice %304 {offsets = [0, 12], sizes = [6, 4], strides = [1, 1]} : vector<6x16xf32> to vector<6x4xf32>
    %c0_284 = arith.constant 0 : index
    %c252 = arith.constant 252 : index
    %312 = vector.load %arg23[%c0_284, %c252] : memref<6x292xf32, #tpu.memory_space<vmem>>, vector<6x4xf32>
    tpu.vector_store %arg23[%c0_284, %c252], %311 {strides = array<i32>} : memref<6x292xf32, #tpu.memory_space<vmem>>, vector<6x4xf32>,
    %c0_285 = arith.constant 0 : index
    %c0_286 = arith.constant 0 : index
    %313 = vector.load %arg23[%c0_285, %c0_286] : memref<6x292xf32, #tpu.memory_space<vmem>>, vector<6x256xf32>
    %c0_287 = arith.constant 0 : index
    %c0_288 = arith.constant 0 : index
    %314 = vector.load %arg20[%c0_287, %c0_288] : memref<150x256xf32, #tpu.memory_space<vmem>>, vector<6x256xf32>
    tpu.vector_store %arg20[%c0_287, %c0_288], %313 {strides = array<i32>} : memref<150x256xf32, #tpu.memory_space<vmem>>, vector<6x256xf32>,
    %c0_289 = arith.constant 0 : index
    %c1_290 = arith.constant 1 : index
    %315 = vector.load %arg23[%c0_289, %c1_290] : memref<6x292xf32, #tpu.memory_space<vmem>>, vector<6x256xf32>
    %c6_291 = arith.constant 6 : index
    %c0_292 = arith.constant 0 : index
    %316 = vector.load %arg20[%c6_291, %c0_292] : memref<150x256xf32, #tpu.memory_space<vmem>>, vector<6x256xf32>
    tpu.vector_store %arg20[%c6_291, %c0_292], %315 {strides = array<i32>} : memref<150x256xf32, #tpu.memory_space<vmem>>, vector<6x256xf32>,
    %c0_293 = arith.constant 0 : index
    %c2_294 = arith.constant 2 : index
    %317 = vector.load %arg23[%c0_293, %c2_294] : memref<6x292xf32, #tpu.memory_space<vmem>>, vector<6x256xf32>
    %c12_295 = arith.constant 12 : index
    %c0_296 = arith.constant 0 : index
    %318 = vector.load %arg20[%c12_295, %c0_296] : memref<150x256xf32, #tpu.memory_space<vmem>>, vector<6x256xf32>
    tpu.vector_store %arg20[%c12_295, %c0_296], %317 {strides = array<i32>} : memref<150x256xf32, #tpu.memory_space<vmem>>, vector<6x256xf32>,
    %c0_297 = arith.constant 0 : index
    %c3_298 = arith.constant 3 : index
    %319 = vector.load %arg23[%c0_297, %c3_298] : memref<6x292xf32, #tpu.memory_space<vmem>>, vector<6x256xf32>
    %c18_299 = arith.constant 18 : index
    %c0_300 = arith.constant 0 : index
    %320 = vector.load %arg20[%c18_299, %c0_300] : memref<150x256xf32, #tpu.memory_space<vmem>>, vector<6x256xf32>
    tpu.vector_store %arg20[%c18_299, %c0_300], %319 {strides = array<i32>} : memref<150x256xf32, #tpu.memory_space<vmem>>, vector<6x256xf32>,
    %c0_301 = arith.constant 0 : index
    %c4_302 = arith.constant 4 : index
    %321 = vector.load %arg23[%c0_301, %c4_302] : memref<6x292xf32, #tpu.memory_space<vmem>>, vector<6x256xf32>
    %c24_303 = arith.constant 24 : index
    %c0_304 = arith.constant 0 : index
    %322 = vector.load %arg20[%c24_303, %c0_304] : memref<150x256xf32, #tpu.memory_space<vmem>>, vector<6x256xf32>
    tpu.vector_store %arg20[%c24_303, %c0_304], %321 {strides = array<i32>} : memref<150x256xf32, #tpu.memory_space<vmem>>, vector<6x256xf32>,
    %c0_305 = arith.constant 0 : index
    %c8_306 = arith.constant 8 : index
    %323 = vector.load %arg23[%c0_305, %c8_306] : memref<6x292xf32, #tpu.memory_space<vmem>>, vector<6x256xf32>
    %c30_307 = arith.constant 30 : index
    %c0_308 = arith.constant 0 : index
    %324 = vector.load %arg20[%c30_307, %c0_308] : memref<150x256xf32, #tpu.memory_space<vmem>>, vector<6x256xf32>
    tpu.vector_store %arg20[%c30_307, %c0_308], %323 {strides = array<i32>} : memref<150x256xf32, #tpu.memory_space<vmem>>, vector<6x256xf32>,
    %c0_309 = arith.constant 0 : index
    %c9_310 = arith.constant 9 : index
    %325 = vector.load %arg23[%c0_309, %c9_310] : memref<6x292xf32, #tpu.memory_space<vmem>>, vector<6x256xf32>
    %c36_311 = arith.constant 36 : index
    %c0_312 = arith.constant 0 : index
    %326 = vector.load %arg20[%c36_311, %c0_312] : memref<150x256xf32, #tpu.memory_space<vmem>>, vector<6x256xf32>
    tpu.vector_store %arg20[%c36_311, %c0_312], %325 {strides = array<i32>} : memref<150x256xf32, #tpu.memory_space<vmem>>, vector<6x256xf32>,
    %c0_313 = arith.constant 0 : index
    %c10 = arith.constant 10 : index
    %327 = vector.load %arg23[%c0_313, %c10] : memref<6x292xf32, #tpu.memory_space<vmem>>, vector<6x256xf32>
    %c42_314 = arith.constant 42 : index
    %c0_315 = arith.constant 0 : index
    %328 = vector.load %arg20[%c42_314, %c0_315] : memref<150x256xf32, #tpu.memory_space<vmem>>, vector<6x256xf32>
    tpu.vector_store %arg20[%c42_314, %c0_315], %327 {strides = array<i32>} : memref<150x256xf32, #tpu.memory_space<vmem>>, vector<6x256xf32>,
    %c0_316 = arith.constant 0 : index
    %c11 = arith.constant 11 : index
    %329 = vector.load %arg23[%c0_316, %c11] : memref<6x292xf32, #tpu.memory_space<vmem>>, vector<6x256xf32>
    %c48_317 = arith.constant 48 : index
    %c0_318 = arith.constant 0 : index
    %330 = vector.load %arg20[%c48_317, %c0_318] : memref<150x256xf32, #tpu.memory_space<vmem>>, vector<6x256xf32>
    tpu.vector_store %arg20[%c48_317, %c0_318], %329 {strides = array<i32>} : memref<150x256xf32, #tpu.memory_space<vmem>>, vector<6x256xf32>,
    %c0_319 = arith.constant 0 : index
    %c12_320 = arith.constant 12 : index
    %331 = vector.load %arg23[%c0_319, %c12_320] : memref<6x292xf32, #tpu.memory_space<vmem>>, vector<6x256xf32>
    %c54_321 = arith.constant 54 : index
    %c0_322 = arith.constant 0 : index
    %332 = vector.load %arg20[%c54_321, %c0_322] : memref<150x256xf32, #tpu.memory_space<vmem>>, vector<6x256xf32>
    tpu.vector_store %arg20[%c54_321, %c0_322], %331 {strides = array<i32>} : memref<150x256xf32, #tpu.memory_space<vmem>>, vector<6x256xf32>,
    %c0_323 = arith.constant 0 : index
    %c16_324 = arith.constant 16 : index
    %333 = vector.load %arg23[%c0_323, %c16_324] : memref<6x292xf32, #tpu.memory_space<vmem>>, vector<6x256xf32>
    %c60_325 = arith.constant 60 : index
    %c0_326 = arith.constant 0 : index
    %334 = vector.load %arg20[%c60_325, %c0_326] : memref<150x256xf32, #tpu.memory_space<vmem>>, vector<6x256xf32>
    tpu.vector_store %arg20[%c60_325, %c0_326], %333 {strides = array<i32>} : memref<150x256xf32, #tpu.memory_space<vmem>>, vector<6x256xf32>,
    %c0_327 = arith.constant 0 : index
    %c17 = arith.constant 17 : index
    %335 = vector.load %arg23[%c0_327, %c17] : memref<6x292xf32, #tpu.memory_space<vmem>>, vector<6x256xf32>
    %c66_328 = arith.constant 66 : index
    %c0_329 = arith.constant 0 : index
    %336 = vector.load %arg20[%c66_328, %c0_329] : memref<150x256xf32, #tpu.memory_space<vmem>>, vector<6x256xf32>
    tpu.vector_store %arg20[%c66_328, %c0_329], %335 {strides = array<i32>} : memref<150x256xf32, #tpu.memory_space<vmem>>, vector<6x256xf32>,
    %c0_330 = arith.constant 0 : index
    %c18_331 = arith.constant 18 : index
    %337 = vector.load %arg23[%c0_330, %c18_331] : memref<6x292xf32, #tpu.memory_space<vmem>>, vector<6x256xf32>
    %c72_332 = arith.constant 72 : index
    %c0_333 = arith.constant 0 : index
    %338 = vector.load %arg20[%c72_332, %c0_333] : memref<150x256xf32, #tpu.memory_space<vmem>>, vector<6x256xf32>
    tpu.vector_store %arg20[%c72_332, %c0_333], %337 {strides = array<i32>} : memref<150x256xf32, #tpu.memory_space<vmem>>, vector<6x256xf32>,
    %c0_334 = arith.constant 0 : index
    %c19 = arith.constant 19 : index
    %339 = vector.load %arg23[%c0_334, %c19] : memref<6x292xf32, #tpu.memory_space<vmem>>, vector<6x256xf32>
    %c78 = arith.constant 78 : index
    %c0_335 = arith.constant 0 : index
    %340 = vector.load %arg20[%c78, %c0_335] : memref<150x256xf32, #tpu.memory_space<vmem>>, vector<6x256xf32>
    tpu.vector_store %arg20[%c78, %c0_335], %339 {strides = array<i32>} : memref<150x256xf32, #tpu.memory_space<vmem>>, vector<6x256xf32>,
    %c0_336 = arith.constant 0 : index
    %c20_337 = arith.constant 20 : index
    %341 = vector.load %arg23[%c0_336, %c20_337] : memref<6x292xf32, #tpu.memory_space<vmem>>, vector<6x256xf32>
    %c84_338 = arith.constant 84 : index
    %c0_339 = arith.constant 0 : index
    %342 = vector.load %arg20[%c84_338, %c0_339] : memref<150x256xf32, #tpu.memory_space<vmem>>, vector<6x256xf32>
    tpu.vector_store %arg20[%c84_338, %c0_339], %341 {strides = array<i32>} : memref<150x256xf32, #tpu.memory_space<vmem>>, vector<6x256xf32>,
    %c0_340 = arith.constant 0 : index
    %c24_341 = arith.constant 24 : index
    %343 = vector.load %arg23[%c0_340, %c24_341] : memref<6x292xf32, #tpu.memory_space<vmem>>, vector<6x256xf32>
    %c90 = arith.constant 90 : index
    %c0_342 = arith.constant 0 : index
    %344 = vector.load %arg20[%c90, %c0_342] : memref<150x256xf32, #tpu.memory_space<vmem>>, vector<6x256xf32>
    tpu.vector_store %arg20[%c90, %c0_342], %343 {strides = array<i32>} : memref<150x256xf32, #tpu.memory_space<vmem>>, vector<6x256xf32>,
    %c0_343 = arith.constant 0 : index
    %c25_344 = arith.constant 25 : index
    %345 = vector.load %arg23[%c0_343, %c25_344] : memref<6x292xf32, #tpu.memory_space<vmem>>, vector<6x256xf32>
    %c96_345 = arith.constant 96 : index
    %c0_346 = arith.constant 0 : index
    %346 = vector.load %arg20[%c96_345, %c0_346] : memref<150x256xf32, #tpu.memory_space<vmem>>, vector<6x256xf32>
    tpu.vector_store %arg20[%c96_345, %c0_346], %345 {strides = array<i32>} : memref<150x256xf32, #tpu.memory_space<vmem>>, vector<6x256xf32>,
    %c0_347 = arith.constant 0 : index
    %c26_348 = arith.constant 26 : index
    %347 = vector.load %arg23[%c0_347, %c26_348] : memref<6x292xf32, #tpu.memory_space<vmem>>, vector<6x256xf32>
    %c102 = arith.constant 102 : index
    %c0_349 = arith.constant 0 : index
    %348 = vector.load %arg20[%c102, %c0_349] : memref<150x256xf32, #tpu.memory_space<vmem>>, vector<6x256xf32>
    tpu.vector_store %arg20[%c102, %c0_349], %347 {strides = array<i32>} : memref<150x256xf32, #tpu.memory_space<vmem>>, vector<6x256xf32>,
    %c0_350 = arith.constant 0 : index
    %c27_351 = arith.constant 27 : index
    %349 = vector.load %arg23[%c0_350, %c27_351] : memref<6x292xf32, #tpu.memory_space<vmem>>, vector<6x256xf32>
    %c108_352 = arith.constant 108 : index
    %c0_353 = arith.constant 0 : index
    %350 = vector.load %arg20[%c108_352, %c0_353] : memref<150x256xf32, #tpu.memory_space<vmem>>, vector<6x256xf32>
    tpu.vector_store %arg20[%c108_352, %c0_353], %349 {strides = array<i32>} : memref<150x256xf32, #tpu.memory_space<vmem>>, vector<6x256xf32>,
    %c0_354 = arith.constant 0 : index
    %c28_355 = arith.constant 28 : index
    %351 = vector.load %arg23[%c0_354, %c28_355] : memref<6x292xf32, #tpu.memory_space<vmem>>, vector<6x256xf32>
    %c114 = arith.constant 114 : index
    %c0_356 = arith.constant 0 : index
    %352 = vector.load %arg20[%c114, %c0_356] : memref<150x256xf32, #tpu.memory_space<vmem>>, vector<6x256xf32>
    tpu.vector_store %arg20[%c114, %c0_356], %351 {strides = array<i32>} : memref<150x256xf32, #tpu.memory_space<vmem>>, vector<6x256xf32>,
    %c0_357 = arith.constant 0 : index
    %c32_358 = arith.constant 32 : index
    %353 = vector.load %arg23[%c0_357, %c32_358] : memref<6x292xf32, #tpu.memory_space<vmem>>, vector<6x256xf32>
    %c120 = arith.constant 120 : index
    %c0_359 = arith.constant 0 : index
    %354 = vector.load %arg20[%c120, %c0_359] : memref<150x256xf32, #tpu.memory_space<vmem>>, vector<6x256xf32>
    tpu.vector_store %arg20[%c120, %c0_359], %353 {strides = array<i32>} : memref<150x256xf32, #tpu.memory_space<vmem>>, vector<6x256xf32>,
    %c0_360 = arith.constant 0 : index
    %c33_361 = arith.constant 33 : index
    %355 = vector.load %arg23[%c0_360, %c33_361] : memref<6x292xf32, #tpu.memory_space<vmem>>, vector<6x256xf32>
    %c126 = arith.constant 126 : index
    %c0_362 = arith.constant 0 : index
    %356 = vector.load %arg20[%c126, %c0_362] : memref<150x256xf32, #tpu.memory_space<vmem>>, vector<6x256xf32>
    tpu.vector_store %arg20[%c126, %c0_362], %355 {strides = array<i32>} : memref<150x256xf32, #tpu.memory_space<vmem>>, vector<6x256xf32>,
    %c0_363 = arith.constant 0 : index
    %c34 = arith.constant 34 : index
    %357 = vector.load %arg23[%c0_363, %c34] : memref<6x292xf32, #tpu.memory_space<vmem>>, vector<6x256xf32>
    %c132 = arith.constant 132 : index
    %c0_364 = arith.constant 0 : index
    %358 = vector.load %arg20[%c132, %c0_364] : memref<150x256xf32, #tpu.memory_space<vmem>>, vector<6x256xf32>
    tpu.vector_store %arg20[%c132, %c0_364], %357 {strides = array<i32>} : memref<150x256xf32, #tpu.memory_space<vmem>>, vector<6x256xf32>,
    %c0_365 = arith.constant 0 : index
    %c35 = arith.constant 35 : index
    %359 = vector.load %arg23[%c0_365, %c35] : memref<6x292xf32, #tpu.memory_space<vmem>>, vector<6x256xf32>
    %c138 = arith.constant 138 : index
    %c0_366 = arith.constant 0 : index
    %360 = vector.load %arg20[%c138, %c0_366] : memref<150x256xf32, #tpu.memory_space<vmem>>, vector<6x256xf32>
    tpu.vector_store %arg20[%c138, %c0_366], %359 {strides = array<i32>} : memref<150x256xf32, #tpu.memory_space<vmem>>, vector<6x256xf32>,
    %c0_367 = arith.constant 0 : index
    %c36_368 = arith.constant 36 : index
    %361 = vector.load %arg23[%c0_367, %c36_368] : memref<6x292xf32, #tpu.memory_space<vmem>>, vector<6x256xf32>
    %c144 = arith.constant 144 : index
    %c0_369 = arith.constant 0 : index
    %362 = vector.load %arg20[%c144, %c0_369] : memref<150x256xf32, #tpu.memory_space<vmem>>, vector<6x256xf32>
    tpu.vector_store %arg20[%c144, %c0_369], %361 {strides = array<i32>} : memref<150x256xf32, #tpu.memory_space<vmem>>, vector<6x256xf32>,
    %c0_370 = arith.constant 0 : index
    %c0_371 = arith.constant 0 : index
    %363 = vector.load %arg8[%c0_370, %c0_371] : memref<16x150xbf16, #tpu.memory_space<vmem>>, vector<16x150xbf16>
    %c0_372 = arith.constant 0 : index
    %c0_373 = arith.constant 0 : index
    %364 = vector.load %arg20[%c0_372, %c0_373] : memref<150x256xf32, #tpu.memory_space<vmem>>, vector<150x256xf32>
    %365 = arith.truncf %364 : vector<150x256xf32> to vector<150x256xbf16>
    %cst_374 = arith.constant dense<0.000000e+00> : vector<16x256xf32>
    %366 = tpu.matmul %363, %365, %cst_374 {dimension_numbers = #tpu.dot_dimension_numbers<[1], [0], [0], [1], [0, 0, 1, 1], [], []>} : vector<16x150xbf16>, vector<150x256xbf16>, vector<16x256xf32> -> vector<16x256xf32>
    %cst_375 = arith.constant 0.000000e+00 : f32
    %367 = vector.broadcast %cst_375 : f32 to vector<16x9xf32>
    %c0_376 = arith.constant 0 : index
    %c256_377 = arith.constant 256 : index
    %368 = vector.load %arg21[%c0_376, %c256_377] : memref<16x265xf32, #tpu.memory_space<vmem>>, vector<16x9xf32>
    tpu.vector_store %arg21[%c0_376, %c256_377], %367 {strides = array<i32>} : memref<16x265xf32, #tpu.memory_space<vmem>>, vector<16x9xf32>,
    %c0_378 = arith.constant 0 : index
    %c0_379 = arith.constant 0 : index
    %369 = vector.load %arg21[%c0_378, %c0_379] : memref<16x265xf32, #tpu.memory_space<vmem>>, vector<16x256xf32>
    tpu.vector_store %arg21[%c0_378, %c0_379], %366 {strides = array<i32>} : memref<16x265xf32, #tpu.memory_space<vmem>>, vector<16x256xf32>,
    %c0_380 = arith.constant 0 : index
    %c0_381 = arith.constant 0 : index
    %370 = vector.load %arg21[%c0_380, %c0_381] : memref<16x265xf32, #tpu.memory_space<vmem>>, vector<16x256xf32>
    %c0_382 = arith.constant 0 : index
    %c1_383 = arith.constant 1 : index
    %371 = vector.load %arg21[%c0_382, %c1_383] : memref<16x265xf32, #tpu.memory_space<vmem>>, vector<16x256xf32>
    %372 = arith.maximumf %370, %371 : vector<16x256xf32>
    %c0_384 = arith.constant 0 : index
    %c8_385 = arith.constant 8 : index
    %373 = vector.load %arg21[%c0_384, %c8_385] : memref<16x265xf32, #tpu.memory_space<vmem>>, vector<16x256xf32>
    %c0_386 = arith.constant 0 : index
    %c9_387 = arith.constant 9 : index
    %374 = vector.load %arg21[%c0_386, %c9_387] : memref<16x265xf32, #tpu.memory_space<vmem>>, vector<16x256xf32>
    %375 = arith.maximumf %373, %374 : vector<16x256xf32>
    %376 = arith.maximumf %372, %375 : vector<16x256xf32>
    %377 = arith.truncf %376 : vector<16x256xf32> to vector<16x256xbf16>
    %c0_388 = arith.constant 0 : index
    %c0_389 = arith.constant 0 : index
    %378 = vector.load %arg10[%c0_388, %c0_389] : memref<256x16xbf16, #tpu.memory_space<vmem>>, vector<256x16xbf16>
    %cst_390 = arith.constant dense<0.000000e+00> : vector<16x16xf32>
    %379 = tpu.matmul %377, %378, %cst_390 {dimension_numbers = #tpu.dot_dimension_numbers<[1], [0], [0], [1], [0, 0, 1, 1], [], []>} : vector<16x256xbf16>, vector<256x16xbf16>, vector<16x16xf32> -> vector<16x16xf32>
    %c0_391 = arith.constant 0 : index
    %c0_392 = arith.constant 0 : index
    %380 = vector.load %arg9[%c0_391, %c0_392] : memref<16x1xf32, #tpu.memory_space<vmem>>, vector<16x1xf32>
    %381 = vector.broadcast %380 : vector<16x1xf32> to vector<16x16xf32>
    %382 = arith.addf %379, %381 : vector<16x16xf32>
    %cst_393 = arith.constant 0.000000e+00 : f32
    %383 = vector.broadcast %cst_393 : f32 to vector<16x16xf32>
    %384 = arith.maximumf %382, %383 : vector<16x16xf32>
    %385 = vector.extract_strided_slice %384 {offsets = [0, 0], sizes = [16, 4], strides = [1, 1]} : vector<16x16xf32> to vector<16x4xf32>
    %c0_394 = arith.constant 0 : index
    %c0_395 = arith.constant 0 : index
    %386 = vector.load %arg24[%c0_394, %c0_395] : memref<64x4xf32, #tpu.memory_space<vmem>>, vector<16x4xf32>
    tpu.vector_store %arg24[%c0_394, %c0_395], %385 {strides = array<i32>} : memref<64x4xf32, #tpu.memory_space<vmem>>, vector<16x4xf32>,
    %387 = vector.extract_strided_slice %384 {offsets = [0, 4], sizes = [16, 4], strides = [1, 1]} : vector<16x16xf32> to vector<16x4xf32>
    %c16_396 = arith.constant 16 : index
    %c0_397 = arith.constant 0 : index
    %388 = vector.load %arg24[%c16_396, %c0_397] : memref<64x4xf32, #tpu.memory_space<vmem>>, vector<16x4xf32>
    tpu.vector_store %arg24[%c16_396, %c0_397], %387 {strides = array<i32>} : memref<64x4xf32, #tpu.memory_space<vmem>>, vector<16x4xf32>,
    %389 = vector.extract_strided_slice %384 {offsets = [0, 8], sizes = [16, 4], strides = [1, 1]} : vector<16x16xf32> to vector<16x4xf32>
    %c32_398 = arith.constant 32 : index
    %c0_399 = arith.constant 0 : index
    %390 = vector.load %arg24[%c32_398, %c0_399] : memref<64x4xf32, #tpu.memory_space<vmem>>, vector<16x4xf32>
    tpu.vector_store %arg24[%c32_398, %c0_399], %389 {strides = array<i32>} : memref<64x4xf32, #tpu.memory_space<vmem>>, vector<16x4xf32>,
    %391 = vector.extract_strided_slice %384 {offsets = [0, 12], sizes = [16, 4], strides = [1, 1]} : vector<16x16xf32> to vector<16x4xf32>
    %c48_400 = arith.constant 48 : index
    %c0_401 = arith.constant 0 : index
    %392 = vector.load %arg24[%c48_400, %c0_401] : memref<64x4xf32, #tpu.memory_space<vmem>>, vector<16x4xf32>
    tpu.vector_store %arg24[%c48_400, %c0_401], %391 {strides = array<i32>} : memref<64x4xf32, #tpu.memory_space<vmem>>, vector<16x4xf32>,
    %c0_402 = arith.constant 0 : index
    %c0_403 = arith.constant 0 : index
    %393 = vector.load %arg11[%c0_402, %c0_403] : memref<64x64xbf16, #tpu.memory_space<vmem>>, vector<64x64xbf16>
    %c0_404 = arith.constant 0 : index
    %c0_405 = arith.constant 0 : index
    %394 = vector.load %arg24[%c0_404, %c0_405] : memref<64x4xf32, #tpu.memory_space<vmem>>, vector<64x4xf32>
    %395 = arith.truncf %394 : vector<64x4xf32> to vector<64x4xbf16>
    %cst_406 = arith.constant dense<0.000000e+00> : vector<64x4xf32>
    %396 = tpu.matmul %393, %395, %cst_406 {dimension_numbers = #tpu.dot_dimension_numbers<[1], [0], [0], [1], [0, 0, 1, 1], [], []>} : vector<64x64xbf16>, vector<64x4xbf16>, vector<64x4xf32> -> vector<64x4xf32>
    %c0_407 = arith.constant 0 : index
    %c0_408 = arith.constant 0 : index
    %397 = vector.load %arg12[%c0_407, %c0_408] : memref<64x1xf32, #tpu.memory_space<vmem>>, vector<64x1xf32>
    %398 = vector.broadcast %397 : vector<64x1xf32> to vector<64x4xf32>
    %399 = arith.addf %396, %398 : vector<64x4xf32>
    %cst_409 = arith.constant 0.000000e+00 : f32
    %400 = vector.broadcast %cst_409 : f32 to vector<64x4xf32>
    %401 = arith.maximumf %399, %400 : vector<64x4xf32>
    %c0_410 = arith.constant 0 : index
    %c0_411 = arith.constant 0 : index
    %402 = vector.load %arg13[%c0_410, %c0_411] : memref<8x64xbf16, #tpu.memory_space<vmem>>, vector<8x64xbf16>
    %403 = arith.truncf %401 : vector<64x4xf32> to vector<64x4xbf16>
    %cst_412 = arith.constant dense<0.000000e+00> : vector<8x4xf32>
    %404 = tpu.matmul %402, %403, %cst_412 {dimension_numbers = #tpu.dot_dimension_numbers<[1], [0], [0], [1], [0, 0, 1, 1], [], []>} : vector<8x64xbf16>, vector<64x4xbf16>, vector<8x4xf32> -> vector<8x4xf32>
    %c0_413 = arith.constant 0 : index
    %c0_414 = arith.constant 0 : index
    %405 = vector.load %arg14[%c0_413, %c0_414] : memref<8x1xf32, #tpu.memory_space<vmem>>, vector<8x1xf32>
    %406 = vector.broadcast %405 : vector<8x1xf32> to vector<8x4xf32>
    %407 = arith.addf %404, %406 : vector<8x4xf32>
    %408 = vector.extract_strided_slice %407 {offsets = [0, 0], sizes = [1, 4], strides = [1, 1]} : vector<8x4xf32> to vector<1x4xf32>
    %cst_415 = arith.constant 0.000000e+00 : f32
    %409 = vector.broadcast %cst_415 : f32 to vector<1x4xf32>
    %410 = arith.subf %409, %408 : vector<1x4xf32>
    %411 = math.exp %410 : vector<1x4xf32>
    %cst_416 = arith.constant 1.000000e+00 : f32
    %412 = vector.broadcast %cst_416 : f32 to vector<1x4xf32>
    %413 = arith.addf %412, %411 : vector<1x4xf32>
    %cst_417 = arith.constant 1.000000e+00 : f32
    %414 = vector.broadcast %cst_417 : f32 to vector<1x4xf32>
    %415 = arith.divf %414, %413 : vector<1x4xf32>
    %c0_418 = arith.constant 0 : index
    %c0_419 = arith.constant 0 : index
    %c0_420 = arith.constant 0 : index
    %416 = vector.load %arg15[%c0_418, %c0_419, %c0_420] : memref<1x1x4xf32, #tpu.memory_space<vmem>>, vector<1x1x4xf32>
    %417 = vector.shape_cast %416 : vector<1x1x4xf32> to vector<1x4xf32>
    %418 = vector.shape_cast %415 : vector<1x4xf32> to vector<1x1x4xf32>
    tpu.vector_store %arg15[%c0_418, %c0_419, %c0_420], %418 {strides = array<i32>} : memref<1x1x4xf32, #tpu.memory_space<vmem>>, vector<1x1x4xf32>,
    return
  }
  func.func @transform_0(%arg0: i32) -> (i32, i32, i32) {
    %c0_i32 = arith.constant 0 : i32
    %c0_i32_0 = arith.constant 0 : i32
    %c0_i32_1 = arith.constant 0 : i32
    return %arg0, %c0_i32, %c0_i32_0 : i32, i32, i32
  }
  func.func @transform_1(%arg0: i32) -> (i32, i32) {
    %c0_i32 = arith.constant 0 : i32
    %c0_i32_0 = arith.constant 0 : i32
    %c0_i32_1 = arith.constant 0 : i32
    return %c0_i32, %c0_i32_0 : i32, i32
  }
  func.func @transform_2(%arg0: i32) -> (i32, i32) {
    %c0_i32 = arith.constant 0 : i32
    %c0_i32_0 = arith.constant 0 : i32
    %c0_i32_1 = arith.constant 0 : i32
    return %c0_i32, %c0_i32_0 : i32, i32
  }
  func.func @transform_3(%arg0: i32) -> (i32, i32) {
    %c0_i32 = arith.constant 0 : i32
    %c0_i32_0 = arith.constant 0 : i32
    %c0_i32_1 = arith.constant 0 : i32
    return %c0_i32, %c0_i32_0 : i32, i32
  }
  func.func @transform_4(%arg0: i32) -> (i32, i32) {
    %c0_i32 = arith.constant 0 : i32
    %c0_i32_0 = arith.constant 0 : i32
    %c0_i32_1 = arith.constant 0 : i32
    return %c0_i32, %c0_i32_0 : i32, i32
  }
  func.func @transform_5(%arg0: i32) -> (i32, i32) {
    %c0_i32 = arith.constant 0 : i32
    %c0_i32_0 = arith.constant 0 : i32
    %c0_i32_1 = arith.constant 0 : i32
    return %c0_i32, %c0_i32_0 : i32, i32
  }
  func.func @transform_6(%arg0: i32) -> (i32, i32) {
    %c0_i32 = arith.constant 0 : i32
    %c0_i32_0 = arith.constant 0 : i32
    %c0_i32_1 = arith.constant 0 : i32
    return %c0_i32, %c0_i32_0 : i32, i32
  }
  func.func @transform_7(%arg0: i32) -> (i32, i32) {
    %c0_i32 = arith.constant 0 : i32
    %c0_i32_0 = arith.constant 0 : i32
    %c0_i32_1 = arith.constant 0 : i32
    return %c0_i32, %c0_i32_0 : i32, i32
  }
  func.func @transform_8(%arg0: i32) -> (i32, i32) {
    %c0_i32 = arith.constant 0 : i32
    %c0_i32_0 = arith.constant 0 : i32
    %c0_i32_1 = arith.constant 0 : i32
    return %c0_i32, %c0_i32_0 : i32, i32
  }
  func.func @transform_9(%arg0: i32) -> (i32, i32) {
    %c0_i32 = arith.constant 0 : i32
    %c0_i32_0 = arith.constant 0 : i32
    %c0_i32_1 = arith.constant 0 : i32
    return %c0_i32, %c0_i32_0 : i32, i32
  }
  func.func @transform_10(%arg0: i32) -> (i32, i32) {
    %c0_i32 = arith.constant 0 : i32
    %c0_i32_0 = arith.constant 0 : i32
    %c0_i32_1 = arith.constant 0 : i32
    return %c0_i32, %c0_i32_0 : i32, i32
  }
  func.func @transform_11(%arg0: i32) -> (i32, i32) {
    %c0_i32 = arith.constant 0 : i32
    %c0_i32_0 = arith.constant 0 : i32
    %c0_i32_1 = arith.constant 0 : i32
    return %c0_i32, %c0_i32_0 : i32, i32
  }
  func.func @transform_12(%arg0: i32) -> (i32, i32) {
    %c0_i32 = arith.constant 0 : i32
    %c0_i32_0 = arith.constant 0 : i32
    %c0_i32_1 = arith.constant 0 : i32
    return %c0_i32, %c0_i32_0 : i32, i32
  }
  func.func @transform_13(%arg0: i32) -> (i32, i32) {
    %c0_i32 = arith.constant 0 : i32
    %c0_i32_0 = arith.constant 0 : i32
    %c0_i32_1 = arith.constant 0 : i32
    return %c0_i32, %c0_i32_0 : i32, i32
  }
  func.func @transform_14(%arg0: i32) -> (i32, i32, i32) {
    %c0_i32 = arith.constant 0 : i32
    %c0_i32_0 = arith.constant 0 : i32
    %c0_i32_1 = arith.constant 0 : i32
    return %arg0, %c0_i32, %c0_i32_0 : i32, i32, i32
  }
}

</mosaic_0001>

<bundles_post_ra>
// kernel: cnn_forward.1
= control target key start
LH: loop header
LB: loop body
LE: loop exit
PB: predicated region body
PF: predicated region fallthrough
CT: control target
= control target key end

     0   :  { %s7798_s29 = smov 0   ;;  %s11458_s0 = inlined_call_operand.vmem [shape: f32[2,4,1684], index: 0, kind: input, shape index: {}]   ;;  %s11459_s1 = inlined_call_operand.vmem [shape: bf16[3,100], index: 1, kind: input, shape index: {}]   ;;  %s11460_s2 = inlined_call_operand.vmem [shape: f32[3,1], index: 2, kind: input, shape index: {}]   ;;  %s11461_s3 = inlined_call_operand.vmem [shape: bf16[400,64], index: 3, kind: input, shape index: {}]   ;;  %s11462_s4 = inlined_call_operand.vmem [shape: bf16[6,75], index: 4, kind: input, shape index: {}]   ;;  %s11463_s5 = inlined_call_operand.vmem [shape: f32[6,1], index: 5, kind: input, shape index: {}]   ;;  %s11464_s6 = inlined_call_operand.vmem [shape: bf16[144,16], index: 6, kind: input, shape index: {}]   ;;  %s11465_s7 = inlined_call_operand.vmem [shape: bf16[16,150], index: 7, kind: input, shape index: {}]   ;;  %s11466_s8 = inlined_call_operand.vmem [shape: f32[16,1], index: 8, kind: input, shape index: {}]   ;;  %s11467_s9 = inlined_call_operand.vmem [shape: bf16[256,16], index: 9, kind: input, shape index: {}]   ;;  %s11468_s10 = inlined_call_operand.vmem [shape: bf16[64,64], index: 10, kind: input, shape index: {}]   ;;  %s11469_s11 = inlined_call_operand.vmem [shape: f32[64,1], index: 11, kind: input, shape index: {}]   ;;  %s11470_s12 = inlined_call_operand.vmem [shape: bf16[8,64], index: 12, kind: input, shape index: {}]   ;;  %s11471_s13 = inlined_call_operand.vmem [shape: f32[8,1], index: 13, kind: input, shape index: {}]   ;;  %s11472_s14 = inlined_call_operand.vmem [shape: f32[2,1,4], index: 14, kind: output, shape index: {}]  }
   0x1   :  { %11604 = sst [smem:[#allocation171_spill]] %s11458_s0 }
   0x2   :  { %11605 = sst [smem:[#allocation172_spill]] %s11466_s8 }
   0x3   :  { %11606 = sst [smem:[#allocation173_spill]] %s11467_s9 }
   0x4   :  { %11607 = sst [smem:[#allocation174_spill]] %s11468_s10 }
   0x5   :  { %11608 = sst [smem:[#allocation175_spill]] %s11469_s11 }
   0x6   :  { %11609 = sst [smem:[#allocation176_spill]] %s11470_s12 }
   0x7   :  { %11610 = sst [smem:[#allocation177_spill]] %s11471_s13 }
   0x8   :  { %11611 = sst [smem:[#allocation178_spill]] %s11472_s14 }
   0x9 LB: > { %11612 = sst [smem:[#allocation11_spill]] %s7659_s29  ;;  %s7198_s30 = sadd.s32 4294967295, %s7659_s29   ;;  %s7659_s29 = sphi %s7798_s29, %s24_s29  }
   0xa   : > { %p7202_p0 = scmp.ge.s32.totalorder %s7659_s29, 1  ;;  %p412_p1 = scmp.lt.s32.totalorder %s7659_s29, 3 }
   0xc   : > { %p413_p2 = pnand %p7202_p0, %p412_p1 }
   0xe   : > { %416 = sbr.rel (%p413_p2) target bundleno = 4500 (0x1194), region = 76 }
  0x13   : > { %p456_p3 = scmp.lt.s32.totalorder %s7198_s30, 1  ;;  %s11614_s0 = sld [smem:[#allocation171_spill]]  ;;  %vm11587_vm0 = vcmask 1039360   ;;  %vm11584_vm1 = vcmask 1031168   ;;  %vm11570_vm2 = vcmask 1022976   ;;  %vm11517_vm3 = vcmask 1014784  }
  0x14   : > { %s11500_s19 = smov 127   ;;  %s11497_s20 = smov 126   ;;  %vm11511_vm4 = vcmask 883712   ;;  %vm11514_vm5 = vcmask 875520   ;;  %vm11526_vm6 = vcmask 867328   ;;  %vm11524_vm7 = vcmask 859136  }
  0x15   : > { %s12166_s30 = smov (!%p456_p3, %s7198_s30), 1  ;;  %s11495_s21 = smov 125   ;;  %vm11560_vm8 = vcmask 547840   ;;  %vm2234_vm9 = vcmask 539648   ;;  %vm11559_vm10 = vcmask 523264   ;;  %vm11522_vm11 = vcmask 850944  }
  0x16   : > { %11613 = sst [smem:[#allocation12_spill]] %s12166_s30  ;;  %s7519_s15 = smul.u32 56, %s12166_s30  ;;  %vm11516_vm12 = vcmask 719872   ;;  %vm2336_vm13 = vcmask 531456   ;;  %vm11518_vm14 = vcmask 711680   ;;  %vm2544_vm15 = vcmask 392192  }
  0x17   : > { %s11481_s22 = smov 124   ;;  %s11479_s23 = smov 108  }
  0x18   : > { %s11477_s24 = smov 107   ;;  %s11503_s25 = smov 106  }
  0x19   : > { %s7812_s18 = scalar_lea.vmem %s11614_s0, %s7519_s15  ;;  %s11487_s26 = smov 105  }
  0x1a   : > { %v7815_v0 = vld [vmem:[%s7812_s18 + $0x8] sm:$0xff]  ;;  %v7818_v1 = vld [vmem:[%s7812_s18 + $0x10] sm:$0xff]  ;;  %v7823_v2 = vld [vmem:[%s7812_s18] sm:$0xff]  ;;  %s11537_s27 = smov 67   ;;  %s11543_s28 = smov 66  }
  0x1b   : > { %481 = vst [vmem:[#allocation1 + $0x10] ss:$2 sm:$0xff] %v7815_v0  ;;  %v7826_v3 = vld [vmem:[%s7812_s18 + $0x18] sm:$0xff]  ;;  %v7831_v4 = vld [vmem:[%s7812_s18 + $0x28] sm:$0xff]  ;;  %v471_v5 = vld [vmem:[%s7812_s18 + $0x30] sm:$0xf] }
  0x1c   : > { %483 = vst [vmem:[#allocation1 + $0x20] ss:$2 sm:$0xff] %v7818_v1  ;;  %v7836_v10 = vld [vmem:[%s7812_s18 + $0x20] sm:$0xff]  ;;  %v535_v20 = vld [vmem:[%s7812_s18 + $0x30] sm:$0xf]  ;;  %s11483_s15 = smov 104  }
  0x1d   : > { %479 = vst [vmem:[#allocation1] ss:$2 sm:$0xff] %v7823_v2  ;;  %v639_v34 = vld [vmem:[%s7812_s18 + $0x30] sm:$0xf]  ;;  %s11535_s16 = smov 65   ;;  %s11533_s17 = smov 64  }
  0x1e   : > { %485 = vst [vmem:[#allocation1 + $0x30] ss:$2 sm:$0xff] %v7826_v3  ;;  %v741_v50 = vld [vmem:[%s7812_s18 + $0x30] sm:$0xf]  ;;  %s11813_s0 = smov 44   ;;  %s11820_s29 = smov 48  }
  0x1f   : > { %s11825_s14 = smov 47   ;;  %s11839_s30 = smov 67  }
  0x20   : > { %s11842_s12 = smov 66   ;;  %s11844_s13 = smov 65  }
  0x21   : > { %s11849_s10 = smov 64   ;;  %s11877_s11 = smov 86  }
  0x22   : > { %v488_v6 = vld.sshfl [vmem:[#allocation1 + $0x10] sm:$0xff pattern:$0x75316420]  ;;  %v489_v7 = vld.sshfl [vmem:[#allocation1 + $0x18] sm:$0xff pattern:$0x75316420] }
  0x23   : > { %495 = vst [vmem:[#allocation1 + $0x10] ss:$2 sm:$0xff] %v7831_v4  ;;  %v490_v8 = vld.sshfl [vmem:[#allocation1 + $0x20] sm:$0xff pattern:$0x75316420]  ;;  %s11879_s9 = smov 85  }
  0x24   : > { %517 = vst [vmem:[#allocation2 + $0x10] sm:$0xf] %v488_v6  ;;  %v491_v9 = vld.sshfl [vmem:[#allocation1 + $0x28] sm:$0xff pattern:$0x75316420]  ;;  %s11885_s8 = smov 84  }
  0x25   : > { %518 = vst [vmem:[#allocation2 + $0x18] sm:$0xf] %v489_v7  ;;  %v486_v11 = vld.sshfl [vmem:[#allocation1] sm:$0xff pattern:$0x75316420] }
  0x26   : > { %496 = vst [vmem:[#allocation1 + $0x20] ss:$2 sm:$0xff] %v471_v5  ;;  %v487_v12 = vld.sshfl [vmem:[#allocation1 + $0x8] sm:$0xff pattern:$0x75316420] }
  0x27   : > { %519 = vst [vmem:[#allocation2 + $0x20] sm:$0xf] %v490_v8  ;;  %v492_v25 = vld.sshfl [vmem:[#allocation1 + $0x30] sm:$0xff pattern:$0x75316420] }
  0x28   : > { %520 = vst [vmem:[#allocation2 + $0x28] sm:$0xf] %v491_v9  ;;  %v493_v26 = vld.sshfl [vmem:[#allocation1 + $0x38] sm:$0xff pattern:$0x75316420] }
  0x29   : > { %494 = vst [vmem:[#allocation1] ss:$2 sm:$0xff] %v7836_v10  ;;  %v844_v5 = vld [vmem:[%s7812_s18 + $0x30] sm:$0xf] }
  0x2a   : > { %v499_v13 = vld.sshfl [vmem:[#allocation1 + $0x10] sm:$0xff pattern:$0x75316420]  ;;  %v500_v14 = vld.sshfl [vmem:[#allocation1 + $0x18] sm:$0xff pattern:$0x75316420] }
  0x2b   : > { %546 = vst [vmem:[#allocation1 + $0x11] ss:$2 sm:$0xff] %v7815_v0 }
  0x2c   : > { %525 = vst [vmem:[#allocation2 + $0x50] sm:$0xf] %v499_v13 }
  0x2d   : > { %526 = vst [vmem:[#allocation2 + $0x58] sm:$0xf] %v500_v14  ;;  %v7840_v15 = vld.sshfl [vmem:[#allocation1 + $0x20] sm:$0xff pattern:$0x75316420] }
  0x2e   : > { %11615 = vst [vmem:[#allocation13_spill] sm:$0xff] %v7840_v15 }
  0x2f   : > { %548 = vst [vmem:[#allocation1 + $0x21] ss:$2 sm:$0xff] %v7818_v1 }
  0x30   : > { %515 = vst [vmem:[#allocation2] sm:$0xf] %v486_v11  ;;  %v497_v16 = vld.sshfl [vmem:[#allocation1] sm:$0xff pattern:$0x75316420] }
  0x31   : > { %v498_v17 = vld.sshfl [vmem:[#allocation1 + $0x8] sm:$0xff pattern:$0x75316420]  ;;  %516 = vst [vmem:[#allocation2 + $0x8] sm:$0xf] %v487_v12 }
  0x32   : > { %544 = vst [vmem:[#allocation1 + $0x1] ss:$2 sm:$0xff] %v7823_v2  ;;  %v554_v18 = vld.sshfl [vmem:[#allocation1 + $0x18] sm:$0xff pattern:$0x75316420] }
  0x33   : > { %v553_v19 = vld.sshfl [vmem:[#allocation1 + $0x10] sm:$0xff pattern:$0x75316420]  ;;  %573 = vrot.lane.b32.xlu1 %v554_v18, %s11500_s19  ;;  %523 = vst [vmem:[#allocation2 + $0x40] sm:$0xf] %v497_v16 }
  0x34   : > { %560 = vst [vmem:[#allocation1 + $0x11] ss:$2 sm:$0xff] %v7831_v4 }
  0x35   : > { %524 = vst [vmem:[#allocation2 + $0x48] sm:$0xf] %v498_v17 }
  0x36   : > { %v555_v21 = vld.sshfl [vmem:[#allocation1 + $0x20] sm:$0xff pattern:$0x75316420]  ;;  %v7847_v22 = vld.sshfl [vmem:[#allocation1 + $0x28] sm:$0xff pattern:$0x75316420] }
  0x37   : > { %11616 = vst [vmem:[#allocation14_spill] sm:$0xff] %v7847_v22  ;;  %575 = vrot.lane.b32.xlu2 %v555_v21, %s11500_s19 }
  0x38   : > { %561 = vst [vmem:[#allocation1 + $0x21] ss:$2 sm:$0xff] %v535_v20 }
  0x39   : > { %v7850_v23 = vld.sshfl [vmem:[#allocation1] sm:$0xff pattern:$0x75316420]  ;;  %v7852_v24 = vld.sshfl [vmem:[#allocation1 + $0x8] sm:$0xff pattern:$0x75316420] }
  0x3a   : > { %559 = vst [vmem:[#allocation1 + $0x1] ss:$2 sm:$0xff] %v7836_v10 }
  0x3b   : > { %v7855_v27 = vld.sshfl [vmem:[#allocation1 + $0x10] sm:$0xff pattern:$0x75316420]  ;;  %v7857_v28 = vld.sshfl [vmem:[#allocation1 + $0x18] sm:$0xff pattern:$0x75316420]  ;;  %571 = vrot.lane.b32.xlu1 %v553_v19, %s11500_s19 }
  0x3c   : > { %11617 = vst [vmem:[#allocation15_spill] sm:$0xff] %v7855_v27  ;;  %s11545_s19 = smov 84  }
  0x3d   : > { %11618 = vst [vmem:[#allocation16_spill] sm:$0xff] %v7857_v28 }
  0x3e   : > { %649 = vst [vmem:[#allocation1 + $0x10] ss:$2 sm:$0xff] %v7815_v0 }
  0x3f   : > { %v7861_v29 = vld.sshfl [vmem:[#allocation1 + $0x20] sm:$0xff pattern:$0x75316420]  ;;  %550 = vst [vmem:[#allocation1 + $0x31] ss:$2 sm:$0xff] %v7826_v3 }
  0x40   : > { %11619 = vst [vmem:[#allocation17_spill] sm:$0xff] %v7861_v29 }
  0x41   : > { %651 = vst [vmem:[#allocation1 + $0x20] ss:$2 sm:$0xff] %v7818_v1  ;;  %v7865_v30 = vld.sshfl [vmem:[#allocation1] sm:$0xff pattern:$0x75316420] }
  0x42   : > { %521 = vst [vmem:[#allocation2 + $0x30] sm:$0xf] %v492_v25  ;;  %v7867_v31 = vld.sshfl [vmem:[#allocation1 + $0x8] sm:$0xff pattern:$0x75316420] }
  0x43   : > { %11620 = vst [vmem:[#allocation18_spill] sm:$0xff] %v7865_v30  ;;  %v1664_v30 = vld [vmem:[%s7812_s18 + $0x30] sm:$0xf] }
  0x44   : > { %11621 = vst [vmem:[#allocation19_spill] sm:$0xff] %v7867_v31 }
  0x45   : > { %647 = vst [vmem:[#allocation1] ss:$2 sm:$0xff] %v7823_v2  ;;  %v657_v32 = vld.sshfl [vmem:[#allocation1 + $0x18] sm:$0xff pattern:$0x75316420] }
  0x46   : > { %v656_v33 = vld.sshfl [vmem:[#allocation1 + $0x10] sm:$0xff pattern:$0x75316420]  ;;  %676 = vrot.lane.b32.xlu0 %v657_v32, %s11497_s20  ;;  %v7876_v36 = vld.sshfl [vmem:[#allocation1 + $0x38] sm:$0xff pattern:$0x75316420] }
  0x47   : > { %674 = vrot.lane.b32.xlu2 %v656_v33, %s11497_s20  ;;  %663 = vst [vmem:[#allocation1 + $0x10] ss:$2 sm:$0xff] %v7831_v4  ;;  %v7874_v35 = vld.sshfl [vmem:[#allocation1 + $0x30] sm:$0xff pattern:$0x75316420] }
  0x48   : > { %11622 = vst [vmem:[#allocation20_spill] sm:$0xff] %v7874_v35  ;;  %v658_v37 = vld.sshfl [vmem:[#allocation1 + $0x20] sm:$0xff pattern:$0x75316420] }
  0x49   : > { %11623 = vst [vmem:[#allocation21_spill] sm:$0xff] %v7876_v36  ;;  %v7878_v38 = vld.sshfl [vmem:[#allocation1 + $0x28] sm:$0xff pattern:$0x75316420]  ;;  %678 = vrot.lane.b32.xlu1 %v658_v37, %s11497_s20  ;;  %s11547_s20 = smov 85  }
  0x4a   : > { %11624 = vst [vmem:[#allocation22_spill] sm:$0xff] %v7878_v38 }
  0x4b   : > { %664 = vst [vmem:[#allocation1 + $0x20] ss:$2 sm:$0xff] %v639_v34 }
  0x4c   : > { %653 = vst [vmem:[#allocation1 + $0x30] ss:$2 sm:$0xff] %v7826_v3  ;;  %v7882_v39 = vld.sshfl [vmem:[#allocation1] sm:$0xff pattern:$0x75316420] }
  0x4d   : > { %11625 = vst [vmem:[#allocation23_spill] sm:$0xff] %v7882_v39  ;;  %v7884_v40 = vld.sshfl [vmem:[#allocation1 + $0x8] sm:$0xff pattern:$0x75316420] }
  0x4e   : > { %662 = vst [vmem:[#allocation1] ss:$2 sm:$0xff] %v7836_v10  ;;  %v7887_v41 = vld.sshfl [vmem:[#allocation1 + $0x10] sm:$0xff pattern:$0x75316420] }
  0x4f   : > { %11626 = vst [vmem:[#allocation24_spill] sm:$0xff] %v7887_v41  ;;  %v7889_v42 = vld.sshfl [vmem:[#allocation1 + $0x18] sm:$0xff pattern:$0x75316420] }
  0x50   : > { %11627 = vst [vmem:[#allocation25_spill] sm:$0xff] %v7889_v42 }
  0x51   : > { %752 = vst [vmem:[#allocation1 + $0x11] ss:$2 sm:$0xff] %v7815_v0 }
  0x52   : > { %522 = vst [vmem:[#allocation2 + $0x38] sm:$0xf] %v493_v26  ;;  %v7892_v43 = vld.sshfl [vmem:[#allocation1 + $0x20] sm:$0xff pattern:$0x75316420] }
  0x53   : > { %11628 = vst [vmem:[#allocation26_spill] sm:$0xff] %v7892_v43  ;;  %v7895_v44 = vld.sshfl [vmem:[#allocation1 + $0x30] sm:$0xff pattern:$0x75316420] }
  0x54   : > { %754 = vst [vmem:[#allocation1 + $0x21] ss:$2 sm:$0xff] %v7818_v1  ;;  %v7902_v47 = vld.sshfl [vmem:[#allocation1 + $0x38] sm:$0xff pattern:$0x75316420] }
  0x55   : > { %11629 = vst [vmem:[#allocation27_spill] sm:$0xff] %v7895_v44  ;;  %v7897_v45 = vld.sshfl [vmem:[#allocation1] sm:$0xff pattern:$0x75316420]  ;;  %v946_v26 = vld [vmem:[%s7812_s18 + $0x30] sm:$0xf] }
  0x56   : > { %11630 = vst [vmem:[#allocation28_spill] sm:$0xff] %v7897_v45  ;;  %v7899_v46 = vld.sshfl [vmem:[#allocation1 + $0x8] sm:$0xff pattern:$0x75316420] }
  0x57   : > { %11631 = vst [vmem:[#allocation29_spill] sm:$0xff] %v7899_v46 }
  0x58   : > { %750 = vst [vmem:[#allocation1 + $0x1] ss:$2 sm:$0xff] %v7823_v2  ;;  %v759_v48 = vld.sshfl [vmem:[#allocation1 + $0x10] sm:$0xff pattern:$0x75316420] }
  0x59   : > { %11632 = vst [vmem:[#allocation30_spill] sm:$0xff] %v7902_v47  ;;  %v760_v49 = vld.sshfl [vmem:[#allocation1 + $0x18] sm:$0xff pattern:$0x75316420] }
  0x5a   : > { %766 = vst [vmem:[#allocation1 + $0x11] ss:$2 sm:$0xff] %v7831_v4  ;;  %779 = vrot.lane.b32.xlu2 %v760_v49, %s11495_s21 }
  0x5b   : > { %756 = vst [vmem:[#allocation1 + $0x31] ss:$2 sm:$0xff] %v7826_v3  ;;  %v761_v51 = vld.sshfl [vmem:[#allocation1 + $0x20] sm:$0xff pattern:$0x75316420] }
  0x5c   : > { %v7908_v52 = vld.sshfl [vmem:[#allocation1 + $0x28] sm:$0xff pattern:$0x75316420]  ;;  %781 = vrot.lane.b32.xlu0 %v761_v51, %s11495_s21 }
  0x5d   : > { %11633 = vst [vmem:[#allocation31_spill] sm:$0xff] %v7908_v52 }
  0x5e   : > { %767 = vst [vmem:[#allocation1 + $0x21] ss:$2 sm:$0xff] %v741_v50 }
  0x5f   : > { %v7911_v53 = vld.sshfl [vmem:[#allocation1] sm:$0xff pattern:$0x75316420]  ;;  %v7913_v54 = vld.sshfl [vmem:[#allocation1 + $0x8] sm:$0xff pattern:$0x75316420] }
  0x60   : > { %765 = vst [vmem:[#allocation1 + $0x1] ss:$2 sm:$0xff] %v7836_v10 }
  0x61   : > { %v7916_v55 = vld.sshfl [vmem:[#allocation1 + $0x10] sm:$0xff pattern:$0x75316420]  ;;  %v7918_v56 = vld.sshfl [vmem:[#allocation1 + $0x18] sm:$0xff pattern:$0x75316420] }
  0x62   : > { %11634 = vst [vmem:[#allocation32_spill] sm:$0xff] %v7916_v55  ;;  %v7921_v57 = vld.sshfl [vmem:[#allocation1 + $0x30] sm:$0xff pattern:$0x75316420] }
  0x63   : > { %11635 = vst [vmem:[#allocation33_spill] sm:$0xff] %v7918_v56  ;;  %v7923_v58 = vld.sshfl [vmem:[#allocation1 + $0x38] sm:$0xff pattern:$0x75316420] }
  0x64   : > { %854 = vst [vmem:[#allocation1 + $0x10] ss:$2 sm:$0xff] %v7815_v0  ;;  %777 = vrot.lane.b32.xlu0 %v759_v48, %s11495_s21  ;;  %s11549_s21 = smov 44  }
  0x65   : > { %11636 = vst [vmem:[#allocation34_spill] sm:$0xff] %v7921_v57  ;;  %v7925_v59 = vld.sshfl [vmem:[#allocation1 + $0x20] sm:$0xff pattern:$0x75316420] }
  0x66   : > { %11637 = vst [vmem:[#allocation35_spill] sm:$0xff] %v7923_v58  ;;  %v1459_v58 = vld [vmem:[%s7812_s18 + $0x30] sm:$0xf] }
  0x67   : > { %11638 = vst [vmem:[#allocation36_spill] sm:$0xff] %v7925_v59  ;;  %v7930_v60 = vld.sshfl [vmem:[#allocation1] sm:$0xff pattern:$0x75316420] }
  0x68   : > { %858 = vst [vmem:[#allocation1 + $0x30] ss:$2 sm:$0xff] %v7826_v3  ;;  %v7932_v61 = vld.sshfl [vmem:[#allocation1 + $0x8] sm:$0xff pattern:$0x75316420] }
  0x69   : > { %856 = vst [vmem:[#allocation1 + $0x20] ss:$2 sm:$0xff] %v7818_v1 }
  0x6a   : > { %11639 = vst [vmem:[#allocation37_spill] sm:$0xff] %v7930_v60 }
  0x6b   : > { %11640 = vst [vmem:[#allocation38_spill] sm:$0xff] %v7932_v61  ;;  %v862_v62 = vld.sshfl [vmem:[#allocation1 + $0x18] sm:$0xff pattern:$0x75316420] }
  0x6c   : > { %852 = vst [vmem:[#allocation1] ss:$2 sm:$0xff] %v7823_v2  ;;  %v861_v63 = vld.sshfl [vmem:[#allocation1 + $0x10] sm:$0xff pattern:$0x75316420]  ;;  %881 = vrot.lane.b32.xlu1 %v862_v62, %s11481_s22 }
  0x6d   : > { %868 = vst [vmem:[#allocation1 + $0x10] ss:$2 sm:$0xff] %v7831_v4 }
  0x6f   : > { %v7938_v6 = vld.sshfl [vmem:[#allocation1 + $0x30] sm:$0xff pattern:$0x75316420]  ;;  %v7940_v7 = vld.sshfl [vmem:[#allocation1 + $0x38] sm:$0xff pattern:$0x75316420] }
  0x70   : > { %11641 = vst [vmem:[#allocation39_spill] sm:$0xff] %v7938_v6  ;;  %v863_v8 = vld.sshfl [vmem:[#allocation1 + $0x20] sm:$0xff pattern:$0x75316420] }
  0x71   : > { %11642 = vst [vmem:[#allocation40_spill] sm:$0xff] %v7940_v7  ;;  %v7942_v9 = vld.sshfl [vmem:[#allocation1 + $0x28] sm:$0xff pattern:$0x75316420]  ;;  %883 = vrot.lane.b32.xlu2 %v863_v8, %s11481_s22 }
  0x72   : > { %11643 = vst [vmem:[#allocation41_spill] sm:$0xff] %v7942_v9 }
  0x73   : > { %869 = vst [vmem:[#allocation1 + $0x20] ss:$2 sm:$0xff] %v844_v5  ;;  %v860_v11 = vld.sshfl [vmem:[#allocation1 + $0x8] sm:$0xff pattern:$0x75316420] }
  0x74   : > { %961 = vst [vmem:[#allocation1 + $0x31] ss:$2 sm:$0xff] %v7826_v3  ;;  %v859_v12 = vld.sshfl [vmem:[#allocation1] sm:$0xff pattern:$0x75316420]  ;;  %879 = vrot.lane.b32.xlu1 %v861_v63, %s11481_s22 }
  0x75   : > { %867 = vst [vmem:[#allocation1] ss:$2 sm:$0xff] %v7836_v10  ;;  %v7947_v13 = vld.sshfl [vmem:[#allocation1 + $0x10] sm:$0xff pattern:$0x75316420] }
  0x76   : > { %11644 = vst [vmem:[#allocation42_spill] sm:$0xff] %v7947_v13  ;;  %v7949_v14 = vld.sshfl [vmem:[#allocation1 + $0x18] sm:$0xff pattern:$0x75316420] }
  0x77   : > { %11645 = vst [vmem:[#allocation43_spill] sm:$0xff] %v7949_v14 }
  0x78   : > { %957 = vst [vmem:[#allocation1 + $0x11] ss:$2 sm:$0xff] %v7815_v0 }
  0x7a   : > { %v7953_v16 = vld.sshfl [vmem:[#allocation1 + $0x20] sm:$0xff pattern:$0x75316420] }
  0x7b   : > { %11646 = vst [vmem:[#allocation44_spill] sm:$0xff] %v7953_v16  ;;  %v7956_v17 = vld.sshfl [vmem:[#allocation1 + $0x30] sm:$0xff pattern:$0x75316420] }
  0x7c   : > { %959 = vst [vmem:[#allocation1 + $0x21] ss:$2 sm:$0xff] %v7818_v1  ;;  %v7958_v18 = vld.sshfl [vmem:[#allocation1] sm:$0xff pattern:$0x75316420]  ;;  %877 = vrot.lane.b32.xlu1 %v860_v11, %s11481_s22 }
  0x7d   : > { %11647 = vst [vmem:[#allocation45_spill] sm:$0xff] %v7956_v17  ;;  %v7960_v19 = vld.sshfl [vmem:[#allocation1 + $0x8] sm:$0xff pattern:$0x75316420] }
  0x7e   : > { %11648 = vst [vmem:[#allocation46_spill] sm:$0xff] %v7958_v18  ;;  %v7963_v20 = vld.sshfl [vmem:[#allocation1 + $0x38] sm:$0xff pattern:$0x75316420] }
  0x7f   : > { %11649 = vst [vmem:[#allocation47_spill] sm:$0xff] %v7960_v19  ;;  %v965_v21 = vld.sshfl [vmem:[#allocation1 + $0x18] sm:$0xff pattern:$0x75316420] }
  0x80   : > { %955 = vst [vmem:[#allocation1 + $0x1] ss:$2 sm:$0xff] %v7823_v2  ;;  %v964_v25 = vld.sshfl [vmem:[#allocation1 + $0x10] sm:$0xff pattern:$0x75316420]  ;;  %984 = vrot.lane.b32.xlu0 %v965_v21, %s11479_s23 }
  0x81   : > { %11650 = vst [vmem:[#allocation48_spill] sm:$0xff] %v7963_v20  ;;  %982 = vrot.lane.b32.xlu2 %v964_v25, %s11479_s23 }
  0x82   : > { %971 = vst [vmem:[#allocation1 + $0x11] ss:$2 sm:$0xff] %v7831_v4 }
  0x83   : > { %1063 = vst [vmem:[#allocation1 + $0x30] ss:$2 sm:$0xff] %v7826_v3  ;;  %v966_v32 = vld.sshfl [vmem:[#allocation1 + $0x20] sm:$0xff pattern:$0x75316420] }
  0x84   : > { %v7971_v33 = vld.sshfl [vmem:[#allocation1 + $0x28] sm:$0xff pattern:$0x75316420]  ;;  %875 = vrot.lane.b32.xlu1 %v859_v12, %s11481_s22  ;;  %v1049_v12 = vld [vmem:[%s7812_s18 + $0x30] sm:$0xf]  ;;  %s11491_s22 = smov 87  }
  0x85   : > { %11651 = vst [vmem:[#allocation49_spill] sm:$0xff] %v7971_v33 }
  0x86   : > { %972 = vst [vmem:[#allocation1 + $0x21] ss:$2 sm:$0xff] %v946_v26 }
  0x87   : > { %v963_v34 = vld.sshfl [vmem:[#allocation1 + $0x8] sm:$0xff pattern:$0x75316420]  ;;  %v962_v37 = vld.sshfl [vmem:[#allocation1] sm:$0xff pattern:$0x75316420] }
  0x88   : > { %970 = vst [vmem:[#allocation1 + $0x1] ss:$2 sm:$0xff] %v7836_v10 }
  0x89   : > { %v7974_v48 = vld.sshfl [vmem:[#allocation1 + $0x10] sm:$0xff pattern:$0x75316420]  ;;  %v7976_v49 = vld.sshfl [vmem:[#allocation1 + $0x18] sm:$0xff pattern:$0x75316420]  ;;  %980 = vrot.lane.b32.xlu2 %v963_v34, %s11479_s23 }
  0x8a   : > { %11652 = vst [vmem:[#allocation50_spill] sm:$0xff] %v7974_v48  ;;  %v7980_v50 = vld.sshfl [vmem:[#allocation1 + $0x30] sm:$0xff pattern:$0x75316420] }
  0x8b   : > { %11653 = vst [vmem:[#allocation51_spill] sm:$0xff] %v7976_v49  ;;  %v7983_v51 = vld.sshfl [vmem:[#allocation1 + $0x38] sm:$0xff pattern:$0x75316420] }
  0x8c   : > { %1059 = vst [vmem:[#allocation1 + $0x10] ss:$2 sm:$0xff] %v7815_v0  ;;  %986 = vrot.lane.b32.xlu1 %v966_v32, %s11479_s23 }
  0x8d   : > { %11654 = vst [vmem:[#allocation52_spill] sm:$0xff] %v7980_v50  ;;  %v7985_v62 = vld.sshfl [vmem:[#allocation1 + $0x20] sm:$0xff pattern:$0x75316420] }
  0x8e   : > { %11655 = vst [vmem:[#allocation53_spill] sm:$0xff] %v7983_v51 }
  0x8f   : > { %11656 = vst [vmem:[#allocation54_spill] sm:$0xff] %v7985_v62  ;;  %v7989_v63 = vld.sshfl [vmem:[#allocation1] sm:$0xff pattern:$0x75316420]  ;;  %v1254_v62 = vld [vmem:[%s7812_s18 + $0x30] sm:$0xf] }
  0x90   : > { %1166 = vst [vmem:[#allocation1 + $0x31] ss:$2 sm:$0xff] %v7826_v3  ;;  %v7991_v5 = vld.sshfl [vmem:[#allocation1 + $0x8] sm:$0xff pattern:$0x75316420] }
  0x91   : > { %1061 = vst [vmem:[#allocation1 + $0x20] ss:$2 sm:$0xff] %v7818_v1  ;;  %978 = vrot.lane.b32.xlu2 %v962_v37, %s11479_s23  ;;  %s11552_s23 = smov 48  }
  0x92   : > { %11657 = vst [vmem:[#allocation55_spill] sm:$0xff] %v7989_v63 }
  0x93   : > { %11658 = vst [vmem:[#allocation56_spill] sm:$0xff] %v7991_v5  ;;  %v1066_v8 = vld.sshfl [vmem:[#allocation1 + $0x10] sm:$0xff pattern:$0x75316420] }
  0x94   : > { %1057 = vst [vmem:[#allocation1] ss:$2 sm:$0xff] %v7823_v2  ;;  %v1067_v11 = vld.sshfl [vmem:[#allocation1 + $0x18] sm:$0xff pattern:$0x75316420] }
  0x95   : > { %1073 = vst [vmem:[#allocation1 + $0x10] ss:$2 sm:$0xff] %v7831_v4 }
  0x97   : > { %v7998_v21 = vld.sshfl [vmem:[#allocation1 + $0x30] sm:$0xff pattern:$0x75316420]  ;;  %v8000_v25 = vld.sshfl [vmem:[#allocation1 + $0x38] sm:$0xff pattern:$0x75316420] }
  0x98   : > { %11659 = vst [vmem:[#allocation57_spill] sm:$0xff] %v7998_v21  ;;  %v1068_v26 = vld.sshfl [vmem:[#allocation1 + $0x20] sm:$0xff pattern:$0x75316420] }
  0x99   : > { %11660 = vst [vmem:[#allocation58_spill] sm:$0xff] %v8000_v25  ;;  %v8002_v34 = vld.sshfl [vmem:[#allocation1 + $0x28] sm:$0xff pattern:$0x75316420]  ;;  %1088 = vrot.lane.b32.xlu0 %v1068_v26, %s11477_s24  ;;  %1086 = vrot.lane.b32.xlu2 %v1067_v11, %s11477_s24  ;;  %v1151_v11 = vld [vmem:[%s7812_s18 + $0x30] sm:$0xf] }
  0x9a   : > { %11661 = vst [vmem:[#allocation59_spill] sm:$0xff] %v8002_v34 }
  0x9b   : > { %1074 = vst [vmem:[#allocation1 + $0x20] ss:$2 sm:$0xff] %v1049_v12  ;;  %v1065_v61 = vld.sshfl [vmem:[#allocation1 + $0x8] sm:$0xff pattern:$0x75316420] }
  0x9c   : > { %1268 = vst [vmem:[#allocation1 + $0x30] ss:$2 sm:$0xff] %v7826_v3  ;;  %v1064_v32 = vld.sshfl [vmem:[#allocation1] sm:$0xff pattern:$0x75316420] }
  0x9d   : > { %1072 = vst [vmem:[#allocation1] ss:$2 sm:$0xff] %v7836_v10  ;;  %v8007_v19 = vld.sshfl [vmem:[#allocation1 + $0x10] sm:$0xff pattern:$0x75316420] }
  0x9e   : > { %11662 = vst [vmem:[#allocation60_spill] sm:$0xff] %v8007_v19  ;;  %v8009_v37 = vld.sshfl [vmem:[#allocation1 + $0x18] sm:$0xff pattern:$0x75316420] }
  0x9f   : > { %11663 = vst [vmem:[#allocation61_spill] sm:$0xff] %v8009_v37  ;;  %v8094_v37 = vpop.permute.xlu2 %575 }
  0xa0   : > { %1162 = vst [vmem:[#allocation1 + $0x11] ss:$2 sm:$0xff] %v7815_v0 }
  0xa1   : > { %1084 = vrot.lane.b32.xlu0 %v1066_v8, %s11477_s24  ;;  %11680 = vst [vmem:[#allocation78_spill] sm:$0xff] %v8094_v37 }
  0xa2   : > { %v8013_v27 = vld.sshfl [vmem:[#allocation1 + $0x20] sm:$0xff pattern:$0x75316420] }
  0xa3   : > { %11664 = vst [vmem:[#allocation62_spill] sm:$0xff] %v8013_v27  ;;  %v8017_v12 = vld.sshfl [vmem:[#allocation1 + $0x30] sm:$0xff pattern:$0x75316420] }
  0xa4   : > { %1164 = vst [vmem:[#allocation1 + $0x21] ss:$2 sm:$0xff] %v7818_v1  ;;  %v8019_v26 = vld.sshfl [vmem:[#allocation1] sm:$0xff pattern:$0x75316420] }
  0xa5   : > { %11665 = vst [vmem:[#allocation63_spill] sm:$0xff] %v8019_v26  ;;  %v8021_v56 = vld.sshfl [vmem:[#allocation1 + $0x8] sm:$0xff pattern:$0x75316420]  ;;  %v574_v15 = vpop.permute.xlu1 %573 }
  0xa6   : > { %11666 = vst [vmem:[#allocation64_spill] sm:$0xff] %v8021_v56  ;;  %v8024_v46 = vld.sshfl [vmem:[#allocation1 + $0x38] sm:$0xff pattern:$0x75316420] }
  0xa7   : > { %1160 = vst [vmem:[#allocation1 + $0x1] ss:$2 sm:$0xff] %v7823_v2  ;;  %v1170_v29 = vld.sshfl [vmem:[#allocation1 + $0x18] sm:$0xff pattern:$0x75316420]  ;;  %v8108_v38 = vpop.permute.xlu2 %674 }
  0xa8   : > { %v1169_v31 = vld.sshfl [vmem:[#allocation1 + $0x10] sm:$0xff pattern:$0x75316420]  ;;  %1189 = vrot.lane.b32.xlu1 %v1170_v29, %s11503_s25  ;;  %1371 = vst [vmem:[#allocation1 + $0x31] ss:$2 sm:$0xff] %v7826_v3 }
  0xa9   : > { %1176 = vst [vmem:[#allocation1 + $0x11] ss:$2 sm:$0xff] %v7831_v4  ;;  %1082 = vrot.lane.b32.xlu0 %v1065_v61, %s11477_s24 }
  0xaa   : > { %11681 = vst [vmem:[#allocation79_spill] sm:$0xff] %v8108_v38 }
  0xab   : > { %v1171_v8 = vld.sshfl [vmem:[#allocation1 + $0x20] sm:$0xff pattern:$0x75316420]  ;;  %v8030_v5 = vld.sshfl [vmem:[#allocation1 + $0x28] sm:$0xff pattern:$0x75316420] }
  0xac   : > { %11667 = vst [vmem:[#allocation65_spill] sm:$0xff] %v8030_v5  ;;  %1191 = vrot.lane.b32.xlu2 %v1171_v8, %s11503_s25 }
  0xad   : > { %1177 = vst [vmem:[#allocation1 + $0x21] ss:$2 sm:$0xff] %v1151_v11  ;;  %v8122_v5 = vpop.permute.xlu1 %571 }
  0xae   : > { %v1168_v56 = vld.sshfl [vmem:[#allocation1 + $0x8] sm:$0xff pattern:$0x75316420]  ;;  %v8034_v55 = vld.sshfl [vmem:[#allocation1] sm:$0xff pattern:$0x75316420] }
  0xaf   : > { %1175 = vst [vmem:[#allocation1 + $0x1] ss:$2 sm:$0xff] %v7836_v10  ;;  %v8043_v13 = vld.sshfl [vmem:[#allocation1 + $0x30] sm:$0xff pattern:$0x75316420] }
  0xb0   : > { %v8037_v41 = vld.sshfl [vmem:[#allocation1 + $0x10] sm:$0xff pattern:$0x75316420]  ;;  %v8039_v29 = vld.sshfl [vmem:[#allocation1 + $0x18] sm:$0xff pattern:$0x75316420]  ;;  %1187 = vrot.lane.b32.xlu1 %v1169_v31, %s11503_s25 }
  0xb1   : > { %11668 = vst [vmem:[#allocation66_spill] sm:$0xff] %v8037_v41  ;;  %v8045_v59 = vld.sshfl [vmem:[#allocation1 + $0x38] sm:$0xff pattern:$0x75316420]  ;;  %1080 = vrot.lane.b32.xlu0 %v1064_v32, %s11477_s24  ;;  %s11493_s24 = smov 88  }
  0xb2   : > { %11669 = vst [vmem:[#allocation67_spill] sm:$0xff] %v8039_v29 }
  0xb3   : > { %1264 = vst [vmem:[#allocation1 + $0x10] ss:$2 sm:$0xff] %v7815_v0 }
  0xb4   : > { %11670 = vst [vmem:[#allocation68_spill] sm:$0xff] %v8043_v13  ;;  %v8047_v61 = vld.sshfl [vmem:[#allocation1 + $0x20] sm:$0xff pattern:$0x75316420] }
  0xb5   : > { %11671 = vst [vmem:[#allocation69_spill] sm:$0xff] %v8047_v61 }
  0xb6   : > { %1473 = vst [vmem:[#allocation1 + $0x30] ss:$2 sm:$0xff] %v7826_v3  ;;  %v8081_v19 = vld.sshfl [vmem:[#allocation1] sm:$0xff pattern:$0x75316420] }
  0xb7   : > { %1266 = vst [vmem:[#allocation1 + $0x20] ss:$2 sm:$0xff] %v7818_v1  ;;  %v8084_v48 = vld.sshfl [vmem:[#allocation1 + $0x8] sm:$0xff pattern:$0x75316420] }
  0xb8   : > { %1185 = vrot.lane.b32.xlu1 %v1168_v56, %s11503_s25  ;;  %11677 = vst [vmem:[#allocation75_spill] sm:$0xff] %v8081_v19  ;;  %v677_v57 = vpop.permute.xlu0 %676 }
  0xb9   : > { %11678 = vst [vmem:[#allocation76_spill] sm:$0xff] %v8084_v48 }
  0xba   : > { %v1271_v41 = vld.sshfl [vmem:[#allocation1 + $0x10] sm:$0xff pattern:$0x75316420]  ;;  %v1272_v42 = vld.sshfl [vmem:[#allocation1 + $0x18] sm:$0xff pattern:$0x75316420] }
  0xbb   : > { %1278 = vst [vmem:[#allocation1 + $0x10] ss:$2 sm:$0xff] %v7831_v4 }
  0xbc   : > { %1262 = vst [vmem:[#allocation1] ss:$2 sm:$0xff] %v7823_v2 }
  0xbd   : > { %v8053_v11 = vld.sshfl [vmem:[#allocation1 + $0x30] sm:$0xff pattern:$0x75316420]  ;;  %v8055_v8 = vld.sshfl [vmem:[#allocation1 + $0x38] sm:$0xff pattern:$0x75316420] }
  0xbe   : > { %11672 = vst [vmem:[#allocation70_spill] sm:$0xff] %v8053_v11  ;;  %v1273_v31 = vld.sshfl [vmem:[#allocation1 + $0x20] sm:$0xff pattern:$0x75316420] }
  0xbf   : > { %11673 = vst [vmem:[#allocation71_spill] sm:$0xff] %v8055_v8  ;;  %1293 = vrot.lane.b32.xlu2 %v1273_v31, %s11487_s26 }
  0xc0   : > { %1576 = vst [vmem:[#allocation1 + $0x31] ss:$2 sm:$0xff] %v7826_v3  ;;  %1291 = vrot.lane.b32.xlu1 %v1272_v42, %s11487_s26  ;;  %v8087_v42 = vld.sshfl [vmem:[#allocation1 + $0x28] sm:$0xff pattern:$0x75316420] }
  0xc1   : > { %11679 = vst [vmem:[#allocation77_spill] sm:$0xff] %v8087_v42 }
  0xc2   : > { %v8079_v49 = vld.sshfl [vmem:[#allocation1 + $0x18] sm:$0xff pattern:$0x75316420]  ;;  %1279 = vst [vmem:[#allocation1 + $0x20] ss:$2 sm:$0xff] %v1254_v62 }
  0xc3   : > { %11676 = vst [vmem:[#allocation74_spill] sm:$0xff] %v8079_v49  ;;  %v1270_v16 = vld.sshfl [vmem:[#allocation1 + $0x8] sm:$0xff pattern:$0x75316420] }
  0xc4   : > { %v1269_v14 = vld.sshfl [vmem:[#allocation1] sm:$0xff pattern:$0x75316420]  ;;  %11685 = vst [vmem:[#allocation83_spill] sm:$0xff] %v8122_v5 }
  0xc5   : > { %1277 = vst [vmem:[#allocation1] ss:$2 sm:$0xff] %v7836_v10 }
  0xc7   : > { %v8059_v43 = vld.sshfl [vmem:[#allocation1 + $0x30] sm:$0xff pattern:$0x75316420]  ;;  %v8061_v27 = vld.sshfl [vmem:[#allocation1 + $0x38] sm:$0xff pattern:$0x75316420]  ;;  %1289 = vrot.lane.b32.xlu2 %v1271_v41, %s11487_s26 }
  0xc8   : > { %11674 = vst [vmem:[#allocation72_spill] sm:$0xff] %v8059_v43  ;;  %v8077_v41 = vld.sshfl [vmem:[#allocation1 + $0x10] sm:$0xff pattern:$0x75316420]  ;;  %1285 = vrot.lane.b32.xlu1 %v1269_v14, %s11487_s26  ;;  %v597_v14 = vsel %vm11587_vm0, %v574_v15, %v8094_v37  ;;  %v596_v37 = vsel %vm11587_vm0, %v8122_v5, %v574_v15  ;;  %v699_v15 = vsel %vm11584_vm1, %v8108_v38, %v677_v57 }
  0xc9   : > { %1678 = vst [vmem:[#allocation1 + $0x30] ss:$2 sm:$0xff] %v7826_v3 }
  0xca   : > { %11675 = vst [vmem:[#allocation73_spill] sm:$0xff] %v8077_v41 }
  0xcb   : > { %1367 = vst [vmem:[#allocation1 + $0x11] ss:$2 sm:$0xff] %v7815_v0 }
  0xcc   : > { %622 = vst [vmem:[#allocation2 + $0x18] sm:$0xf0] %v597_v14  ;;  %v8115_v62 = vld.sshfl [vmem:[#allocation1] sm:$0xff pattern:$0x75316420]  ;;  %v780_v14 = vpop.permute.xlu2 %779 }
  0xcd   : > { %11683 = vst [vmem:[#allocation81_spill] sm:$0xff] %v8115_v62  ;;  %v8117_v22 = vld.sshfl [vmem:[#allocation1 + $0x8] sm:$0xff pattern:$0x75316420] }
  0xce   : > { %11684 = vst [vmem:[#allocation82_spill] sm:$0xff] %v8117_v22 }
  0xcf   : > { %1287 = vrot.lane.b32.xlu2 %v1270_v16, %s11487_s26  ;;  %v8112_v16 = vld.sshfl [vmem:[#allocation1 + $0x20] sm:$0xff pattern:$0x75316420]  ;;  %1365 = vst [vmem:[#allocation1 + $0x1] ss:$2 sm:$0xff] %v7823_v2  ;;  %s11531_s26 = smov 46  }
  0xd0   : > { %v8065_v56 = vld.sshfl [vmem:[#allocation1 + $0x30] sm:$0xff pattern:$0x75316420]  ;;  %v8067_v32 = vld.sshfl [vmem:[#allocation1 + $0x38] sm:$0xff pattern:$0x75316420] }
  0xd1   : > { %1781 = vst [vmem:[#allocation1 + $0x31] ss:$2 sm:$0xff] %v7826_v3 }
  0xd2   : > { %v1375_v49 = vld.sshfl [vmem:[#allocation1 + $0x18] sm:$0xff pattern:$0x75316420]  ;;  %v8099_v48 = vld.sshfl [vmem:[#allocation1 + $0x10] sm:$0xff pattern:$0x75316420] }
  0xd3   : > { %1381 = vst [vmem:[#allocation1 + $0x11] ss:$2 sm:$0xff] %v7831_v4 }
  0xd4   : > { %11682 = vst [vmem:[#allocation80_spill] sm:$0xff] %v8112_v16  ;;  %v1356_v16 = vld [vmem:[%s7812_s18 + $0x30] sm:$0xf] }
  0xd5   : > { %1369 = vst [vmem:[#allocation1 + $0x21] ss:$2 sm:$0xff] %v7818_v1 }
  0xd6   : > { %621 = vst [vmem:[#allocation2 + $0x10] sm:$0xf0] %v596_v37  ;;  %v1373_v36 = vld.sshfl [vmem:[#allocation1 + $0x8] sm:$0xff pattern:$0x75316420] }
  0xd7   : > { %724 = vst [vmem:[#allocation2 + $0x78] sm:$0xf] %v699_v15  ;;  %v8153_v15 = vpop.permute.xlu0 %781 }
  0xd8   : > { %v8072_v31 = vld.sshfl [vmem:[#allocation1 + $0x30] sm:$0xff pattern:$0x75316420]  ;;  %v8074_v28 = vld.sshfl [vmem:[#allocation1 + $0x38] sm:$0xff pattern:$0x75316420] }
  0xd9   : > { %1883 = vst [vmem:[#allocation1 + $0x30] ss:$2 sm:$0xff] %v7826_v3 }
  0xda   : > { %v8141_v35 = vld.sshfl [vmem:[#allocation1 + $0x10] sm:$0xff pattern:$0x75316420]  ;;  %11692 = vst [vmem:[#allocation90_spill] sm:$0xff] %v8153_v15 }
  0xdb   : > { %11689 = vst [vmem:[#allocation87_spill] sm:$0xff] %v8141_v35 }
  0xdc   : > { %v1376_v34 = vld.sshfl [vmem:[#allocation1 + $0x20] sm:$0xff pattern:$0x75316420]  ;;  %v8127_v9 = vld.sshfl [vmem:[#allocation1 + $0x28] sm:$0xff pattern:$0x75316420] }
  0xdd   : > { %11686 = vst [vmem:[#allocation84_spill] sm:$0xff] %v8127_v9 }
  0xde   : > { %1382 = vst [vmem:[#allocation1 + $0x21] ss:$2 sm:$0xff] %v1356_v16  ;;  %v8139_v16 = vpop.permute.xlu2 %883 }
  0xdf   : > { %11688 = vst [vmem:[#allocation86_spill] sm:$0xff] %v8139_v16 }
  0xe0   : > { %v8089_v61 = vld.sshfl [vmem:[#allocation1 + $0x30] sm:$0xff pattern:$0x75316420]  ;;  %v8091_v29 = vld.sshfl [vmem:[#allocation1 + $0x38] sm:$0xff pattern:$0x75316420] }
  0xe1   : > { %1986 = vst [vmem:[#allocation1 + $0x31] ss:$2 sm:$0xff] %v7826_v3 }
  0xe8   : > { %v8103_v41 = vld.sshfl [vmem:[#allocation1 + $0x30] sm:$0xff pattern:$0x75316420]  ;;  %v8105_v52 = vld.sshfl [vmem:[#allocation1 + $0x38] sm:$0xff pattern:$0x75316420] }
  0xe9   : > { %2088 = vst [vmem:[#allocation1 + $0x30] ss:$2 sm:$0xff] %v7826_v3 }
  0xf0   : > { %v2095_v33 = vld.sshfl [vmem:[#allocation1 + $0x30] sm:$0xff pattern:$0x75316420]  ;;  %v2096_v44 = vld.sshfl [vmem:[#allocation1 + $0x38] sm:$0xff pattern:$0x75316420] }
  0xf1   : > { %2191 = vst [vmem:[#allocation1 + $0x31] ss:$2 sm:$0xff] %v7826_v3  ;;  %2119 = vrot.lane.b32.xlu2 %v2096_v44, %s11537_s27  ;;  %v8132_v44 = vpop.permute.xlu1 %678 }
  0xf2   : > { %11687 = vst [vmem:[#allocation85_spill] sm:$0xff] %v8132_v44  ;;  %v700_v37 = vsel %vm11584_vm1, %v677_v57, %v8132_v44  ;;  %v803_v44 = vsel %vm11570_vm2, %v780_v14, %v8153_v15 }
  0xf3   : > { %725 = vst [vmem:[#allocation2 + $0x80] sm:$0xf] %v700_v37 }
  0xf4   : > { %828 = vst [vmem:[#allocation2 + $0x80] sm:$0xf0] %v803_v44 }
  0xf8   : > { %v2198_v22 = vld.sshfl [vmem:[#allocation1 + $0x30] sm:$0xff pattern:$0x75316420]  ;;  %v2199_v45 = vld.sshfl [vmem:[#allocation1 + $0x38] sm:$0xff pattern:$0x75316420] }
  0xf9   : > { %2220 = vrot.lane.b32.xlu0 %v2198_v22, %s11543_s28  ;;  %2222 = vrot.lane.b32.xlu1 %v2199_v45, %s11543_s28  ;;  %2293 = vst [vmem:[#allocation1 + $0x30] ss:$2 sm:$0xff] %v7826_v3  ;;  %v8143_v22 = vld.sshfl [vmem:[#allocation1 + $0x18] sm:$0xff pattern:$0x75316420]  ;;  %v882_v37 = vpop.permute.xlu1 %881 }
  0xfa   : > { %2117 = vrot.lane.b32.xlu2 %v2095_v33, %s11537_s27  ;;  %11690 = vst [vmem:[#allocation88_spill] sm:$0xff] %v8143_v22  ;;  %v8145_v45 = vld.sshfl [vmem:[#allocation1 + $0x20] sm:$0xff pattern:$0x75316420]  ;;  %v905_v35 = vsel %vm11517_vm3, %v882_v37, %v8139_v16 }
  0xfb   : > { %11691 = vst [vmem:[#allocation89_spill] sm:$0xff] %v8145_v45  ;;  %v1372_v33 = vld.sshfl [vmem:[#allocation1] sm:$0xff pattern:$0x75316420]  ;;  %v983_v45 = vpop.permute.xlu2 %982 }
  0xfc   : > { %1469 = vst [vmem:[#allocation1 + $0x10] ss:$2 sm:$0xff] %v7815_v0 }
  0xfd   : > { %1471 = vst [vmem:[#allocation1 + $0x20] ss:$2 sm:$0xff] %v7818_v1 }
  0xfe   : > { %1380 = vst [vmem:[#allocation1 + $0x1] ss:$2 sm:$0xff] %v7836_v10 }
  0xff   : > { %930 = vst [vmem:[#allocation2 + $0xe8] sm:$0xf] %v905_v35 }
 0x100   : > { %v2300_v60 = vld.sshfl [vmem:[#allocation1 + $0x30] sm:$0xff pattern:$0x75316420]  ;;  %v2301_v57 = vld.sshfl [vmem:[#allocation1 + $0x38] sm:$0xff pattern:$0x75316420] }
 0x101   : > { %1394 = vrot.lane.b32.xlu0 %v1375_v49, %s11483_s15  ;;  %1396 = vrot.lane.b32.xlu1 %v1376_v34, %s11483_s15  ;;  %2396 = vst [vmem:[#allocation1 + $0x31] ss:$2 sm:$0xff] %v7826_v3  ;;  %v880_v15 = vpop.permute.xlu1 %879 }
 0x102   : > { %1388 = vrot.lane.b32.xlu2 %v1372_v33, %s11483_s15  ;;  %v8164_v33 = vpop.permute.xlu0 %777  ;;  %v904_v44 = vsel %vm11517_vm3, %v880_v15, %v882_v37 }
 0x103   : > { %11693 = vst [vmem:[#allocation91_spill] sm:$0xff] %v8164_v33  ;;  %v802_v35 = vsel %vm11570_vm2, %v8164_v33, %v780_v14 }
 0x104   : > { %v8166_v22 = vld.sshfl [vmem:[#allocation1 + $0x28] sm:$0xff pattern:$0x75316420]  ;;  %827 = vst [vmem:[#allocation2 + $0x78] sm:$0xf0] %v802_v35 }
 0x105   : > { %11694 = vst [vmem:[#allocation92_spill] sm:$0xff] %v8166_v22  ;;  %v8172_v16 = vld.sshfl [vmem:[#allocation1] sm:$0xff pattern:$0x75316420] }
 0x106   : > { %v8175_v21 = vld.sshfl [vmem:[#allocation1 + $0x8] sm:$0xff pattern:$0x75316420]  ;;  %929 = vst [vmem:[#allocation2 + $0xe0] sm:$0xf] %v904_v44 }
 0x107   : > { %11695 = vst [vmem:[#allocation93_spill] sm:$0xff] %v8175_v21  ;;  %v1476_v22 = vld.sshfl [vmem:[#allocation1 + $0x10] sm:$0xff pattern:$0x75316420] }
 0x108   : > { %v2403_v49 = vld.sshfl [vmem:[#allocation1 + $0x30] sm:$0xff pattern:$0x75316420]  ;;  %v2404_v34 = vld.sshfl [vmem:[#allocation1 + $0x38] sm:$0xff pattern:$0x75316420] }
 0x109   : > { %1392 = vrot.lane.b32.xlu0 %v8099_v48, %s11483_s15  ;;  %2322 = vrot.lane.b32.xlu1 %v2300_v60, %s11535_s16  ;;  %2498 = vst [vmem:[#allocation1 + $0x30] ss:$2 sm:$0xff] %v7826_v3  ;;  %v981_v48 = vpop.permute.xlu2 %980  ;;  %v1478_v47 = vld.sshfl [vmem:[#allocation1 + $0x20] sm:$0xff pattern:$0x75316420]  ;;  %v878_v35 = vpop.permute.xlu1 %877 }
 0x10a   : > { %2427 = vrot.lane.b32.xlu2 %v2404_v34, %s11533_s17  ;;  %v1006_v60 = vsel %vm11511_vm4, %v981_v48, %v983_v45  ;;  %1467 = vst [vmem:[#allocation1] ss:$2 sm:$0xff] %v7823_v2  ;;  %v1477_v34 = vld.sshfl [vmem:[#allocation1 + $0x18] sm:$0xff pattern:$0x75316420]  ;;  %v903_v44 = vsel %vm11517_vm3, %v878_v35, %v880_v15  ;;  %v985_v15 = vpop.permute.xlu0 %984 }
 0x10b   : > { %1031 = vst [vmem:[#allocation2 + $0xd8] sm:$0xf0] %v1006_v60 }
 0x10c   : > { %1484 = vst [vmem:[#allocation1 + $0x20] ss:$2 sm:$0xff] %v1459_v58 }
 0x10d   : > { %1483 = vst [vmem:[#allocation1 + $0x10] ss:$2 sm:$0xff] %v7831_v4 }
 0x10e   : > { %928 = vst [vmem:[#allocation2 + $0xd8] sm:$0xf] %v903_v44 }
 0x110   : > { %v2506_v14 = vld.sshfl [vmem:[#allocation1 + $0x38] sm:$0xff pattern:$0x75316420]  ;;  %v2505_v37 = vld.sshfl [vmem:[#allocation1 + $0x30] sm:$0xff pattern:$0x75316420] }
 0x111   : > { %1390 = vrot.lane.b32.xlu0 %v1373_v36, %s11483_s15  ;;  %1494 = vrot.lane.b32.xlu1 %v1476_v22, %s11493_s24  ;;  %2605 = vst [vmem:[#allocation1 + $0x31] ss:$2 sm:$0xff] %v7826_v3  ;;  %v979_v60 = vpop.permute.xlu2 %978  ;;  %v1475_v21 = vld.sshfl [vmem:[#allocation1 + $0x8] sm:$0xff pattern:$0x75316420]  ;;  %s11556_s15 = smov 47  }
 0x112   : > { %2425 = vrot.lane.b32.xlu2 %v2403_v49, %s11533_s17  ;;  %v1005_v58 = vsel %vm11511_vm4, %v979_v60, %v981_v48  ;;  %v8186_v6 = vld.sshfl [vmem:[#allocation1] sm:$0xff pattern:$0x75316420]  ;;  %v876_v49 = vpop.permute.xlu1 %875 }
 0x113   : > { %1030 = vst [vmem:[#allocation2 + $0xd0] sm:$0xf0] %v1005_v58  ;;  %v8188_v36 = vld.sshfl [vmem:[#allocation1 + $0x20] sm:$0xff pattern:$0x75316420]  ;;  %v1007_v58 = vsel %vm11511_vm4, %v983_v45, %v985_v15 }
 0x114   : > { %11696 = vst [vmem:[#allocation94_spill] sm:$0xff] %v8188_v36  ;;  %v8194_v44 = vld.sshfl [vmem:[#allocation1 + $0x10] sm:$0xff pattern:$0x75316420] }
 0x115   : > { %1482 = vst [vmem:[#allocation1] ss:$2 sm:$0xff] %v7836_v10  ;;  %v8196_v48 = vld.sshfl [vmem:[#allocation1 + $0x18] sm:$0xff pattern:$0x75316420] }
 0x116   : > { %1574 = vst [vmem:[#allocation1 + $0x21] ss:$2 sm:$0xff] %v7818_v1  ;;  %v902_v1 = vsel %vm11517_vm3, %v876_v49, %v878_v35  ;;  %vm1721_vm3 = vcmask 703488  }
 0x117   : > { %11697 = vst [vmem:[#allocation95_spill] sm:$0xff] %v8194_v44  ;;  %v8207_v44 = vpop.permute.xlu0 %1088 }
 0x118   : > { %v2612_v22 = vld.sshfl [vmem:[#allocation1 + $0x30] sm:$0xff pattern:$0x75316420]  ;;  %11698 = vst [vmem:[#allocation96_spill] sm:$0xff] %v8196_v48 }
 0x119   : > { %2324 = vrot.lane.b32.xlu0 %v2301_v57, %s11535_s16  ;;  %2530 = vrot.lane.b32.xlu1 %v2506_v14, %s11552_s23  ;;  %v8199_v60 = vld.sshfl [vmem:[#allocation1 + $0x38] sm:$0xff pattern:$0x75316420]  ;;  %v1087_v36 = vpop.permute.xlu2 %1086  ;;  %1572 = vst [vmem:[#allocation1 + $0x11] ss:$2 sm:$0xff] %v7815_v0 }
 0x11a   : > { %1496 = vrot.lane.b32.xlu2 %v1477_v34, %s11493_s24  ;;  %1032 = vst [vmem:[#allocation2 + $0xe0] sm:$0xf0] %v1007_v58  ;;  %v8209_v45 = vpop.permute.xlu1 %986  ;;  %v1110_v58 = vsel %vm11514_vm5, %v1087_v36, %v8207_v44 }
 0x11b   : > { %927 = vst [vmem:[#allocation2 + $0xd0] sm:$0xf] %v902_v1  ;;  %v1008_v35 = vsel %vm11511_vm4, %v985_v15, %v8209_v45  ;;  %v1561_v15 = vld [vmem:[%s7812_s18 + $0x30] sm:$0xf]  ;;  %vm11569_vm4 = vcmask 375808  }
 0x11c   : > { %2711 = vst [vmem:[#allocation1 + $0x30] ss:$2 sm:$0xff] %v7826_v3  ;;  %v8223_v1 = vld.sshfl [vmem:[#allocation1 + $0x8] sm:$0xff pattern:$0x75316420] }
 0x11d   : > { %v1581_v57 = vld.sshfl [vmem:[#allocation1 + $0x20] sm:$0xff pattern:$0x75316420]  ;;  %11699 = vst [vmem:[#allocation97_spill] sm:$0xff] %v8207_v44 }
 0x11e   : > { %11700 = vst [vmem:[#allocation98_spill] sm:$0xff] %v8209_v45 }
 0x11f   : > { %1033 = vst [vmem:[#allocation2 + $0xe8] sm:$0xf0] %v1008_v35 }
 0x120   : > { %v1579_v14 = vld.sshfl [vmem:[#allocation1 + $0x10] sm:$0xff pattern:$0x75316420]  ;;  %v1580_v34 = vld.sshfl [vmem:[#allocation1 + $0x18] sm:$0xff pattern:$0x75316420] }
 0x121   : > { %1498 = vrot.lane.b32.xlu0 %v1478_v47, %s11493_s24  ;;  %1492 = vrot.lane.b32.xlu1 %v1475_v21, %s11493_s24  ;;  %v8214_v49 = vpop.permute.xlu2 %1191  ;;  %1586 = vst [vmem:[#allocation1 + $0x11] ss:$2 sm:$0xff] %v7831_v4  ;;  %v8217_v47 = vld.sshfl [vmem:[#allocation1] sm:$0xff pattern:$0x75316420] }
 0x122   : > { %1601 = vrot.lane.b32.xlu2 %v1581_v57, %s11491_s22  ;;  %11701 = vst [vmem:[#allocation99_spill] sm:$0xff] %v8214_v49  ;;  %v8219_v21 = vld.sshfl [vmem:[#allocation1 + $0x28] sm:$0xff pattern:$0x75316420] }
 0x123   : > { %11702 = vst [vmem:[#allocation100_spill] sm:$0xff] %v8219_v21  ;;  %v8225_v48 = vld.sshfl [vmem:[#allocation1 + $0x30] sm:$0xff pattern:$0x75316420] }
 0x124   : > { %11703 = vst [vmem:[#allocation101_spill] sm:$0xff] %v8223_v1  ;;  %v2719_v57 = vld.sshfl [vmem:[#allocation1 + $0x38] sm:$0xff pattern:$0x75316420]  ;;  %v1085_v1 = vpop.permute.xlu0 %1084 }
 0x125   : > { %2818 = vst [vmem:[#allocation1 + $0x31] ss:$2 sm:$0xff] %v7826_v3 }
 0x126   : > { %1135 = vst [vmem:[#allocation2 + $0x150] sm:$0xf] %v1110_v58  ;;  %v1109_v58 = vsel %vm11514_vm5, %v1085_v1, %v1087_v36 }
 0x127   : > { %1570 = vst [vmem:[#allocation1 + $0x1] ss:$2 sm:$0xff] %v7823_v2 }
 0x128   : > { %1587 = vst [vmem:[#allocation1 + $0x21] ss:$2 sm:$0xff] %v1561_v15  ;;  %v8232_v4 = vld.sshfl [vmem:[#allocation1 + $0x10] sm:$0xff pattern:$0x75316420] }
 0x129   : > { %2528 = vrot.lane.b32.xlu0 %v2505_v37, %s11552_s23  ;;  %2635 = vrot.lane.b32.xlu1 %v2612_v22, %s11556_s15  ;;  %11704 = vst [vmem:[#allocation102_spill] sm:$0xff] %v8232_v4  ;;  %v8234_v35 = vld.sshfl [vmem:[#allocation1 + $0x18] sm:$0xff pattern:$0x75316420]  ;;  %v8239_v45 = vpop.permute.xlu2 %1293  ;;  %v8242_v15 = vld [vmem:[%s7812_s18 + $0x10] sm:$0xff] }
 0x12a   : > { %11705 = vst [vmem:[#allocation103_spill] sm:$0xff] %v8234_v35  ;;  %1597 = vrot.lane.b32.xlu2 %v1579_v14, %s11491_s22  ;;  %v8249_v35 = vld [vmem:[%s7812_s18 + $0x28] sm:$0xff]  ;;  %v1190_v14 = vpop.permute.xlu1 %1189 }
 0x12b   : > { %1674 = vst [vmem:[#allocation1 + $0x10] ss:$2 sm:$0xff] %v7815_v0 }
 0x12c   : > { %11706 = vst [vmem:[#allocation104_spill] sm:$0xff] %v8239_v45  ;;  %v2825_v4 = vld.sshfl [vmem:[#allocation1 + $0x30] sm:$0xff pattern:$0x75316420] }
 0x12d   : > { %1134 = vst [vmem:[#allocation2 + $0x148] sm:$0xf] %v1109_v58  ;;  %v2826_v36 = vld.sshfl [vmem:[#allocation1 + $0x38] sm:$0xff pattern:$0x75316420]  ;;  %v1083_v58 = vpop.permute.xlu0 %1082 }
 0x12e   : > { %v1577_v37 = vld.sshfl [vmem:[#allocation1] sm:$0xff pattern:$0x75316420]  ;;  %v1578_v44 = vld.sshfl [vmem:[#allocation1 + $0x8] sm:$0xff pattern:$0x75316420] }
 0x12f   : > { %v8244_v22 = vld.sshfl [vmem:[#allocation1 + $0x20] sm:$0xff pattern:$0x75316420]  ;;  %1585 = vst [vmem:[#allocation1 + $0x1] ss:$2 sm:$0xff] %v7836_v10  ;;  %v1108_v10 = vsel %vm11514_vm5, %v1083_v58, %v1085_v1 }
 0x130   : > { %11707 = vst [vmem:[#allocation105_spill] sm:$0xff] %v8244_v22 }
 0x131   : > { %1676 = vst [vmem:[#allocation1 + $0x20] ss:$2 sm:$0xff] %v8242_v15  ;;  %1490 = vrot.lane.b32.xlu0 %v8186_v6, %s11493_s24  ;;  %1599 = vrot.lane.b32.xlu1 %v1580_v34, %s11491_s22  ;;  %v1213_v6 = vsel %vm11526_vm6, %v1190_v14, %v8214_v49  ;;  %v1290_v34 = vpop.permute.xlu2 %1289  ;;  %s11554_s24 = smov 86  }
 0x132   : > { %v1682_v0 = vld.sshfl [vmem:[#allocation1 + $0x18] sm:$0xff pattern:$0x75316420]  ;;  %2743 = vrot.lane.b32.xlu2 %v2719_v57, %s11531_s26  ;;  %v8255_v22 = vld.sshfl [vmem:[#allocation1 + $0x10] sm:$0xff pattern:$0x75316420] }
 0x133   : > { %2924 = vst [vmem:[#allocation1 + $0x30] ss:$2 sm:$0xff] %v7826_v3  ;;  %v1188_v3 = vpop.permute.xlu1 %1187 }
 0x134   : > { %1133 = vst [vmem:[#allocation2 + $0x140] sm:$0xf] %v1108_v10  ;;  %v1212_v10 = vsel %vm11526_vm6, %v1188_v3, %v1190_v14 }
 0x135   : > { %1238 = vst [vmem:[#allocation2 + $0x150] sm:$0xf0] %v1213_v6  ;;  %v1081_v1 = vpop.permute.xlu0 %1080 }
 0x136   : > { %1688 = vst [vmem:[#allocation1 + $0x10] ss:$2 sm:$0xff] %v8249_v35  ;;  %v8263_v33 = vld.sshfl [vmem:[#allocation1] sm:$0xff pattern:$0x75316420]  ;;  %v1107_v6 = vsel %vm11514_vm5, %v1081_v1, %v1083_v58  ;;  %vm11551_vm5 = vcmask 384000  }
 0x137   : > { %11708 = vst [vmem:[#allocation106_spill] sm:$0xff] %v8263_v33  ;;  %v8265_v57 = vld.sshfl [vmem:[#allocation1 + $0x8] sm:$0xff pattern:$0x75316420] }
 0x138   : > { %11709 = vst [vmem:[#allocation107_spill] sm:$0xff] %v8265_v57  ;;  %v1683_v21 = vld.sshfl [vmem:[#allocation1 + $0x20] sm:$0xff pattern:$0x75316420]  ;;  %v8277_v57 = vld [vmem:[%s7812_s18 + $0x8] sm:$0xff] }
 0x139   : > { %v8267_v9 = vld.sshfl [vmem:[#allocation1 + $0x28] sm:$0xff pattern:$0x75316420]  ;;  %1672 = vst [vmem:[#allocation1] ss:$2 sm:$0xff] %v7823_v2  ;;  %2637 = vrot.lane.b32.xlu0 %v8199_v60, %s11556_s15  ;;  %1593 = vrot.lane.b32.xlu1 %v1577_v37, %s11491_s22  ;;  %v1288_v60 = vpop.permute.xlu2 %1287  ;;  %v8285_v37 = vld [vmem:[%s7812_s18 + $0x20] sm:$0xff] }
 0x13a   : > { %11710 = vst [vmem:[#allocation108_spill] sm:$0xff] %v8267_v9  ;;  %1595 = vrot.lane.b32.xlu2 %v1578_v44, %s11491_s22  ;;  %v1313_v44 = vsel %vm11524_vm7, %v1288_v60, %v1290_v34  ;;  %s11539_s22 = smov 45   ;;  %v2931_v17 = vld.sshfl [vmem:[#allocation1 + $0x30] sm:$0xff pattern:$0x75316420] }
 0x13b   : > { %1689 = vst [vmem:[#allocation1 + $0x20] ss:$2 sm:$0xff] %v1664_v30  ;;  %v8294_v1 = vpop.permute.xlu1 %1185 }
 0x13c   : > { %1237 = vst [vmem:[#allocation2 + $0x148] sm:$0xf0] %v1212_v10  ;;  %v1211_v10 = vsel %vm11526_vm6, %v8294_v1, %v1188_v3 }
 0x13d   : > { %1132 = vst [vmem:[#allocation2 + $0x138] sm:$0xf] %v1107_v6  ;;  %v8279_v2 = vld.sshfl [vmem:[#allocation1 + $0x10] sm:$0xff pattern:$0x75316420] }
 0x13e   : > { %11711 = vst [vmem:[#allocation109_spill] sm:$0xff] %v8279_v2  ;;  %v8281_v49 = vld.sshfl [vmem:[#allocation1 + $0x18] sm:$0xff pattern:$0x75316420] }
 0x13f   : > { %11712 = vst [vmem:[#allocation110_spill] sm:$0xff] %v8281_v49 }
 0x140   : > { %1777 = vst [vmem:[#allocation1 + $0x11] ss:$2 sm:$0xff] %v8277_v57  ;;  %v1680_v30 = vld.sshfl [vmem:[#allocation1 + $0x8] sm:$0xff pattern:$0x75316420] }
 0x141   : > { %v8288_v14 = vld.sshfl [vmem:[#allocation1] sm:$0xff pattern:$0x75316420]  ;;  %1338 = vst [vmem:[#allocation2 + $0x1a8] sm:$0xf] %v1313_v44  ;;  %2848 = vrot.lane.b32.xlu0 %v2825_v4, %s11539_s22  ;;  %2850 = vrot.lane.b32.xlu1 %v2826_v36, %s11539_s22 }
 0x142   : > { %v8290_v58 = vld.sshfl [vmem:[#allocation1 + $0x20] sm:$0xff pattern:$0x75316420]  ;;  %2741 = vrot.lane.b32.xlu2 %v8225_v48, %s11531_s26  ;;  %1687 = vst [vmem:[#allocation1] ss:$2 sm:$0xff] %v8285_v37 }
 0x143   : > { %11713 = vst [vmem:[#allocation111_spill] sm:$0xff] %v8290_v58  ;;  %v2932_v4 = vld.sshfl [vmem:[#allocation1 + $0x38] sm:$0xff pattern:$0x75316420]  ;;  %v8304_v58 = vld [vmem:[%s7812_s18] sm:$0xff]  ;;  %v1292_v42 = vpop.permute.xlu1 %1291 }
 0x144   : > { %1779 = vst [vmem:[#allocation1 + $0x21] ss:$2 sm:$0xff] %v8242_v15  ;;  %v1766_v36 = vld [vmem:[%s7812_s18 + $0x30] sm:$0xf]  ;;  %v1314_v50 = vsel %vm11524_vm7, %v1290_v34, %v1292_v42 }
 0x145   : > { %1236 = vst [vmem:[#allocation2 + $0x140] sm:$0xf0] %v1211_v10 }
 0x146   : > { %1339 = vst [vmem:[#allocation2 + $0x1b0] sm:$0xf] %v1314_v50 }
 0x147   : > { %v1784_v6 = vld.sshfl [vmem:[#allocation1 + $0x10] sm:$0xff pattern:$0x75316420]  ;;  %v1785_v44 = vld.sshfl [vmem:[#allocation1 + $0x18] sm:$0xff pattern:$0x75316420] }
 0x148   : > { %1791 = vst [vmem:[#allocation1 + $0x11] ss:$2 sm:$0xff] %v8249_v35 }
 0x149   : > { %1701 = vrot.lane.b32.xlu0 %v1682_v0, %s11554_s24  ;;  %1703 = vrot.lane.b32.xlu1 %v1683_v21, %s11554_s24  ;;  %v8313_v48 = vld.sshfl [vmem:[#allocation1] sm:$0xff pattern:$0x75316420]  ;;  %v8315_v3 = vld.sshfl [vmem:[#allocation1 + $0x8] sm:$0xff pattern:$0x75316420]  ;;  %v1315_v0 = vsel %vm11524_vm7, %v1292_v42, %v8239_v45 }
 0x14a   : > { %11715 = vst [vmem:[#allocation113_spill] sm:$0xff] %v8315_v3  ;;  %2956 = vrot.lane.b32.xlu2 %v2932_v4, %s11549_s21 }
 0x14b   : > { %v8307_v2 = vld.sshfl [vmem:[#allocation1 + $0x20] sm:$0xff pattern:$0x75316420]  ;;  %v8309_v49 = vld.sshfl [vmem:[#allocation1 + $0x28] sm:$0xff pattern:$0x75316420]  ;;  %v8319_v10 = vpop.permute.xlu2 %2119 }
 0x14c   : > { %11714 = vst [vmem:[#allocation112_spill] sm:$0xff] %v8309_v49 }
 0x14d   : > { %1775 = vst [vmem:[#allocation1 + $0x1] ss:$2 sm:$0xff] %v8304_v58 }
 0x14e   : > { %1792 = vst [vmem:[#allocation1 + $0x21] ss:$2 sm:$0xff] %v1766_v36 }
 0x14f   : > { %v8324_v26 = vld.sshfl [vmem:[#allocation1 + $0x10] sm:$0xff pattern:$0x75316420]  ;;  %v8326_v21 = vld.sshfl [vmem:[#allocation1 + $0x18] sm:$0xff pattern:$0x75316420] }
 0x150   : > { %11716 = vst [vmem:[#allocation114_spill] sm:$0xff] %v8324_v26 }
 0x151   : > { %11717 = vst [vmem:[#allocation115_spill] sm:$0xff] %v8326_v21  ;;  %1699 = vrot.lane.b32.xlu0 %v8255_v22, %s11554_s24  ;;  %2954 = vrot.lane.b32.xlu1 %v2931_v17, %s11549_s21  ;;  %v1286_v17 = vpop.permute.xlu1 %1285 }
 0x152   : > { %1340 = vst [vmem:[#allocation2 + $0x1b8] sm:$0xf] %v1315_v0  ;;  %1804 = vrot.lane.b32.xlu2 %v1785_v44, %s11547_s20  ;;  %v1312_v36 = vsel %vm11524_vm7, %v1286_v17, %v1288_v60  ;;  %v1869_v44 = vld [vmem:[%s7812_s18 + $0x30] sm:$0xf]  ;;  %vm11567_vm7 = vcmask 687104  }
 0x153   : > { %1879 = vst [vmem:[#allocation1 + $0x10] ss:$2 sm:$0xff] %v8277_v57 }
 0x154   : > { %v1783_v4 = vld.sshfl [vmem:[#allocation1 + $0x8] sm:$0xff pattern:$0x75316420]  ;;  %v1782_v34 = vld.sshfl [vmem:[#allocation1] sm:$0xff pattern:$0x75316420]  ;;  %v8337_v50 = vpop.permute.xlu2 %2117 }
 0x155   : > { %v8333_v42 = vld.sshfl [vmem:[#allocation1 + $0x20] sm:$0xff pattern:$0x75316420]  ;;  %1790 = vst [vmem:[#allocation1 + $0x1] ss:$2 sm:$0xff] %v8285_v37  ;;  %v2138_v22 = vsel %vm11560_vm8, %v8337_v50, %v8319_v10 }
 0x156   : > { %11718 = vst [vmem:[#allocation116_spill] sm:$0xff] %v8333_v42 }
 0x157   : > { %1881 = vst [vmem:[#allocation1 + $0x20] ss:$2 sm:$0xff] %v8242_v15 }
 0x158   : > { %11719 = vst [vmem:[#allocation117_spill] sm:$0xff] %v8337_v50  ;;  %v2074_v50 = vld [vmem:[%s7812_s18 + $0x30] sm:$0xf] }
 0x159   : > { %2163 = vst [vmem:[#allocation2 + $0x370] sm:$0xf] %v2138_v22  ;;  %1697 = vrot.lane.b32.xlu0 %v1680_v30, %s11554_s24  ;;  %1802 = vrot.lane.b32.xlu1 %v1784_v6, %s11547_s20 }
 0x15a   : > { %v1886_v0 = vld.sshfl [vmem:[#allocation1 + $0x10] sm:$0xff pattern:$0x75316420]  ;;  %v8343_v3 = vld.sshfl [vmem:[#allocation1 + $0x18] sm:$0xff pattern:$0x75316420]  ;;  %1709 = vrot.lane.b32.xlu2 %v8067_v32, %s11554_s24 }
 0x15b   : > { %1337 = vst [vmem:[#allocation2 + $0x1a0] sm:$0xf] %v1312_v36 }
 0x15c   : > { %1893 = vst [vmem:[#allocation1 + $0x10] ss:$2 sm:$0xff] %v8249_v35  ;;  %v8349_v26 = vld.sshfl [vmem:[#allocation1] sm:$0xff pattern:$0x75316420]  ;;  %v8357_v17 = vpop.permute.xlu2 %1388 }
 0x15d   : > { %v8355_v60 = vld.sshfl [vmem:[#allocation1 + $0x8] sm:$0xff pattern:$0x75316420] }
 0x15e   : > { %v1888_v22 = vld.sshfl [vmem:[#allocation1 + $0x20] sm:$0xff pattern:$0x75316420]  ;;  %v8353_v45 = vld.sshfl [vmem:[#allocation1 + $0x28] sm:$0xff pattern:$0x75316420] }
 0x15f   : > { %11720 = vst [vmem:[#allocation118_spill] sm:$0xff] %v8353_v45 }
 0x160   : > { %11721 = vst [vmem:[#allocation119_spill] sm:$0xff] %v8355_v60 }
 0x161   : > { %1894 = vst [vmem:[#allocation1 + $0x20] ss:$2 sm:$0xff] %v1869_v44  ;;  %1695 = vrot.lane.b32.xlu0 %v8288_v14, %s11554_s24  ;;  %1800 = vrot.lane.b32.xlu1 %v1783_v4, %s11547_s20  ;;  %v1971_v4 = vld [vmem:[%s7812_s18 + $0x30] sm:$0xf] }
 0x162   : > { %1877 = vst [vmem:[#allocation1] ss:$2 sm:$0xff] %v8304_v58  ;;  %1908 = vrot.lane.b32.xlu2 %v1888_v22, %s11545_s19 }
 0x163   : > { %v8360_v30 = vld.sshfl [vmem:[#allocation1 + $0x10] sm:$0xff pattern:$0x75316420]  ;;  %v8362_v6 = vld.sshfl [vmem:[#allocation1 + $0x18] sm:$0xff pattern:$0x75316420] }
 0x164   : > { %11722 = vst [vmem:[#allocation120_spill] sm:$0xff] %v8360_v30  ;;  %v8371_v60 = vpop.permute.xlu2 %2427 }
 0x165   : > { %11723 = vst [vmem:[#allocation121_spill] sm:$0xff] %v8362_v6 }
 0x166   : > { %1982 = vst [vmem:[#allocation1 + $0x11] ss:$2 sm:$0xff] %v8277_v57 }
 0x168   : > { %v8369_v32 = vld.sshfl [vmem:[#allocation1 + $0x20] sm:$0xff pattern:$0x75316420] }
 0x169   : > { %11724 = vst [vmem:[#allocation122_spill] sm:$0xff] %v8369_v32  ;;  %v1885_v36 = vld.sshfl [vmem:[#allocation1 + $0x8] sm:$0xff pattern:$0x75316420]  ;;  %1806 = vrot.lane.b32.xlu0 %v8307_v2, %s11547_s20  ;;  %1798 = vrot.lane.b32.xlu1 %v1782_v34, %s11547_s20 }
 0x16a   : > { %v1884_v44 = vld.sshfl [vmem:[#allocation1] sm:$0xff pattern:$0x75316420]  ;;  %1984 = vst [vmem:[#allocation1 + $0x21] ss:$2 sm:$0xff] %v8242_v15  ;;  %1904 = vrot.lane.b32.xlu2 %v1886_v0, %s11545_s19 }
 0x16b   : > { %1892 = vst [vmem:[#allocation1] ss:$2 sm:$0xff] %v8285_v37  ;;  %v8381_v22 = vpop.permute.xlu0 %2220  ;;  %v8383_v6 = vpop.permute.xlu1 %2222 }
 0x16c   : > { %11725 = vst [vmem:[#allocation123_spill] sm:$0xff] %v8381_v22  ;;  %v2241_v2 = vsel %vm2234_vm9, %v8381_v22, %v8383_v6  ;;  %v8392_v34 = vpop.permute.xlu2 %2425 }
 0x16d   : > { %v1990_v30 = vld.sshfl [vmem:[#allocation1 + $0x18] sm:$0xff pattern:$0x75316420]  ;;  %v1989_v14 = vld.sshfl [vmem:[#allocation1 + $0x10] sm:$0xff pattern:$0x75316420]  ;;  %v2446_v0 = vsel %vm11559_vm10, %v8392_v34, %v8371_v60 }
 0x16e   : > { %1996 = vst [vmem:[#allocation1 + $0x11] ss:$2 sm:$0xff] %v8249_v35 }
 0x16f   : > { %11727 = vst [vmem:[#allocation125_spill] sm:$0xff] %v8392_v34 }
 0x170   : > { %2266 = vst [vmem:[#allocation2 + $0x370] sm:$0xf0] %v2241_v2 }
 0x171   : > { %v1991_v21 = vld.sshfl [vmem:[#allocation1 + $0x20] sm:$0xff pattern:$0x75316420]  ;;  %v8398_v20 = vld.sshfl [vmem:[#allocation1 + $0x28] sm:$0xff pattern:$0x75316420]  ;;  %1711 = vrot.lane.b32.xlu0 %v8313_v48, %s11554_s24  ;;  %1183 = vrot.lane.b32.xlu1 %v8034_v55, %s11503_s25 }
 0x172   : > { %v8385_v32 = vld.sshfl [vmem:[#allocation1] sm:$0xff pattern:$0x75316420]  ;;  %v8387_v42 = vld.sshfl [vmem:[#allocation1 + $0x8] sm:$0xff pattern:$0x75316420]  ;;  %1902 = vrot.lane.b32.xlu2 %v1885_v36, %s11545_s19 }
 0x173   : > { %11726 = vst [vmem:[#allocation124_spill] sm:$0xff] %v8387_v42  ;;  %v1395_v2 = vpop.permute.xlu0 %1394  ;;  %v8410_v22 = vpop.permute.xlu1 %1396  ;;  %s11541_s25 = smov 68  }
 0x174   : > { %1980 = vst [vmem:[#allocation1 + $0x1] ss:$2 sm:$0xff] %v8304_v58 }
 0x175   : > { %11728 = vst [vmem:[#allocation126_spill] sm:$0xff] %v8398_v20  ;;  %v8400_v9 = vld.sshfl [vmem:[#allocation1 + $0x10] sm:$0xff pattern:$0x75316420] }
 0x176   : > { %2471 = vst [vmem:[#allocation2 + $0x3d8] sm:$0xf0] %v2446_v0  ;;  %v8402_v42 = vld.sshfl [vmem:[#allocation1 + $0x18] sm:$0xff pattern:$0x75316420] }
 0x177   : > { %1997 = vst [vmem:[#allocation1 + $0x21] ss:$2 sm:$0xff] %v1971_v4 }
 0x178   : > { %11729 = vst [vmem:[#allocation127_spill] sm:$0xff] %v8400_v9  ;;  %v1418_v9 = vsel %vm11522_vm11, %v1395_v2, %v8410_v22 }
 0x179   : > { %11730 = vst [vmem:[#allocation128_spill] sm:$0xff] %v8402_v42  ;;  %v8416_v42 = vpop.permute.xlu2 %1496  ;;  %2009 = vrot.lane.b32.xlu0 %v1990_v30, %s11541_s25  ;;  %1906 = vrot.lane.b32.xlu1 %v8343_v3, %s11545_s19 }
 0x17a   : > { %2084 = vst [vmem:[#allocation1 + $0x10] ss:$2 sm:$0xff] %v8277_v57  ;;  %1900 = vrot.lane.b32.xlu2 %v1884_v44, %s11545_s19 }
 0x17b   : > { %11731 = vst [vmem:[#allocation129_spill] sm:$0xff] %v8410_v22  ;;  %v1988_v0 = vld.sshfl [vmem:[#allocation1 + $0x8] sm:$0xff pattern:$0x75316420]  ;;  %v1393_v22 = vpop.permute.xlu0 %1392  ;;  %v8427_v20 = vpop.permute.xlu1 %2322 }
 0x17c   : > { %v8412_v4 = vld.sshfl [vmem:[#allocation1] sm:$0xff pattern:$0x75316420]  ;;  %1443 = vst [vmem:[#allocation2 + $0x1b8] sm:$0xf0] %v1418_v9  ;;  %v1417_v34 = vsel %vm11522_vm11, %v1393_v22, %v1395_v2 }
 0x17d   : > { %1995 = vst [vmem:[#allocation1 + $0x1] ss:$2 sm:$0xff] %v8285_v37 }
 0x17e   : > { %v8419_v55 = vld.sshfl [vmem:[#allocation1 + $0x20] sm:$0xff pattern:$0x75316420]  ;;  %11733 = vst [vmem:[#allocation131_spill] sm:$0xff] %v8427_v20 }
 0x17f   : > { %11732 = vst [vmem:[#allocation130_spill] sm:$0xff] %v8419_v55 }
 0x180   : > { %2086 = vst [vmem:[#allocation1 + $0x20] ss:$2 sm:$0xff] %v8242_v15 }
 0x181   : > { %v2091_v48 = vld.sshfl [vmem:[#allocation1 + $0x10] sm:$0xff pattern:$0x75316420]  ;;  %v2092_v36 = vld.sshfl [vmem:[#allocation1 + $0x18] sm:$0xff pattern:$0x75316420]  ;;  %v8434_v5 = vpop.permute.xlu2 %1601  ;;  %2007 = vrot.lane.b32.xlu0 %v1989_v14, %s11541_s25  ;;  %2011 = vrot.lane.b32.xlu1 %v1991_v21, %s11541_s25 }
 0x182   : > { %2098 = vst [vmem:[#allocation1 + $0x10] ss:$2 sm:$0xff] %v8249_v35  ;;  %2111 = vrot.lane.b32.xlu2 %v2092_v36, %s11537_s27 }
 0x183   : > { %11735 = vst [vmem:[#allocation133_spill] sm:$0xff] %v8434_v5  ;;  %v1391_v2 = vpop.permute.xlu0 %1390 }
 0x184   : > { %v8429_v9 = vld.sshfl [vmem:[#allocation1] sm:$0xff pattern:$0x75316420]  ;;  %v8431_v55 = vld.sshfl [vmem:[#allocation1 + $0x8] sm:$0xff pattern:$0x75316420] }
 0x185   : > { %11734 = vst [vmem:[#allocation132_spill] sm:$0xff] %v8431_v55 }
 0x186   : > { %2082 = vst [vmem:[#allocation1] ss:$2 sm:$0xff] %v8304_v58 }
 0x187   : > { %1442 = vst [vmem:[#allocation2 + $0x1b0] sm:$0xf0] %v1417_v34  ;;  %v8438_v3 = vld.sshfl [vmem:[#allocation1 + $0x20] sm:$0xff pattern:$0x75316420]  ;;  %v1495_v34 = vpop.permute.xlu1 %1494 }
 0x188   : > { %v8440_v30 = vld.sshfl [vmem:[#allocation1 + $0x28] sm:$0xff pattern:$0x75316420]  ;;  %v1519_v14 = vsel %vm11516_vm12, %v1495_v34, %v8416_v42 }
 0x189   : > { %2099 = vst [vmem:[#allocation1 + $0x20] ss:$2 sm:$0xff] %v2074_v50  ;;  %v8442_v44 = vld.sshfl [vmem:[#allocation1 + $0x10] sm:$0xff pattern:$0x75316420]  ;;  %v1415_v50 = vsel %vm11522_vm11, %v8357_v17, %v1391_v2  ;;  %2005 = vrot.lane.b32.xlu0 %v1988_v0, %s11541_s25  ;;  %2109 = vrot.lane.b32.xlu1 %v2091_v48, %s11537_s27 }
 0x18a   : > { %11736 = vst [vmem:[#allocation134_spill] sm:$0xff] %v8442_v44  ;;  %v8444_v19 = vld.sshfl [vmem:[#allocation1 + $0x18] sm:$0xff pattern:$0x75316420]  ;;  %v1416_v44 = vsel %vm11522_vm11, %v1391_v2, %v1393_v22  ;;  %v2176_v0 = vld [vmem:[%s7812_s18 + $0x30] sm:$0xf] }
 0x18b   : > { %11737 = vst [vmem:[#allocation135_spill] sm:$0xff] %v8444_v19  ;;  %v8457_v19 = vpop.permute.xlu2 %1597  ;;  %v8466_v22 = vpop.permute.xlu0 %2324  ;;  %vm1824_vm11 = vcmask 695296  }
 0x18c   : > { %2187 = vst [vmem:[#allocation1 + $0x11] ss:$2 sm:$0xff] %v8277_v57 }
 0x18d   : > { %v2090_v55 = vld.sshfl [vmem:[#allocation1 + $0x8] sm:$0xff pattern:$0x75316420]  ;;  %v8450_v13 = vld.sshfl [vmem:[#allocation1] sm:$0xff pattern:$0x75316420] }
 0x18e   : > { %2097 = vst [vmem:[#allocation1] ss:$2 sm:$0xff] %v8285_v37 }
 0x18f   : > { %1440 = vst [vmem:[#allocation2 + $0x1a0] sm:$0xf0] %v1415_v50  ;;  %v8468_v2 = vpop.permute.xlu1 %2530 }
 0x190   : > { %1441 = vst [vmem:[#allocation2 + $0x1a8] sm:$0xf0] %v1416_v44  ;;  %v8460_v21 = vld.sshfl [vmem:[#allocation1 + $0x20] sm:$0xff pattern:$0x75316420] }
 0x191   : > { %11738 = vst [vmem:[#allocation136_spill] sm:$0xff] %v8460_v21  ;;  %2003 = vrot.lane.b32.xlu0 %v8412_v4, %s11541_s25  ;;  %2107 = vrot.lane.b32.xlu1 %v2090_v55, %s11537_s27 }
 0x192   : > { %1544 = vst [vmem:[#allocation2 + $0x218] sm:$0xf] %v1519_v14  ;;  %v2343_v14 = vsel %vm2336_vm13, %v8427_v20, %v8466_v22 }
 0x193   : > { %2189 = vst [vmem:[#allocation1 + $0x21] ss:$2 sm:$0xff] %v8242_v15  ;;  %v2194_v36 = vld.sshfl [vmem:[#allocation1 + $0x10] sm:$0xff pattern:$0x75316420]  ;;  %v8477_v21 = vpop.permute.xlu2 %2743 }
 0x194   : > { %v2195_v17 = vld.sshfl [vmem:[#allocation1 + $0x18] sm:$0xff pattern:$0x75316420]  ;;  %11740 = vst [vmem:[#allocation138_spill] sm:$0xff] %v8477_v21 }
 0x195   : > { %2201 = vst [vmem:[#allocation1 + $0x11] ss:$2 sm:$0xff] %v8249_v35  ;;  %v8470_v44 = vld.sshfl [vmem:[#allocation1] sm:$0xff pattern:$0x75316420] }
 0x196   : > { %v8472_v50 = vld.sshfl [vmem:[#allocation1 + $0x8] sm:$0xff pattern:$0x75316420]  ;;  %2368 = vst [vmem:[#allocation2 + $0x3d8] sm:$0xf] %v2343_v14  ;;  %v8492_v14 = vpop.permute.xlu0 %1498 }
 0x197   : > { %11739 = vst [vmem:[#allocation137_spill] sm:$0xff] %v8472_v50  ;;  %v1493_v51 = vpop.permute.xlu1 %1492 }
 0x198   : > { %2185 = vst [vmem:[#allocation1 + $0x1] ss:$2 sm:$0xff] %v8304_v58  ;;  %v1518_v4 = vsel %vm11516_vm12, %v1493_v51, %v1495_v34 }
 0x199   : > { %11743 = vst [vmem:[#allocation141_spill] sm:$0xff] %v8492_v14  ;;  %2113 = vrot.lane.b32.xlu0 %v8438_v3, %s11537_s27  ;;  %2214 = vrot.lane.b32.xlu1 %v2195_v17, %s11543_s28 }
 0x19a   : > { %v2196_v48 = vld.sshfl [vmem:[#allocation1 + $0x20] sm:$0xff pattern:$0x75316420]  ;;  %v8481_v25 = vld.sshfl [vmem:[#allocation1 + $0x28] sm:$0xff pattern:$0x75316420] }
 0x19b   : > { %2216 = vrot.lane.b32.xlu2 %v2196_v48, %s11543_s28  ;;  %2202 = vst [vmem:[#allocation1 + $0x21] ss:$2 sm:$0xff] %v2176_v0  ;;  %v1520_v0 = vsel %vm11516_vm12, %v8416_v42, %v8492_v14  ;;  %v1596_v48 = vpop.permute.xlu2 %1595 }
 0x19c   : > { %v8487_v50 = vld.sshfl [vmem:[#allocation1 + $0x10] sm:$0xff pattern:$0x75316420]  ;;  %v8489_v20 = vld.sshfl [vmem:[#allocation1 + $0x18] sm:$0xff pattern:$0x75316420]  ;;  %v1621_v55 = vsel %vm11518_vm14, %v1596_v48, %v8457_v19 }
 0x19d   : > { %11741 = vst [vmem:[#allocation139_spill] sm:$0xff] %v8487_v50 }
 0x19e   : > { %11742 = vst [vmem:[#allocation140_spill] sm:$0xff] %v8489_v20 }
 0x19f   : > { %2289 = vst [vmem:[#allocation1 + $0x10] ss:$2 sm:$0xff] %v8277_v57  ;;  %v2193_v33 = vld.sshfl [vmem:[#allocation1 + $0x8] sm:$0xff pattern:$0x75316420] }
 0x1a0   : > { %v2192_v38 = vld.sshfl [vmem:[#allocation1] sm:$0xff pattern:$0x75316420]  ;;  %1545 = vst [vmem:[#allocation2 + $0x220] sm:$0xf] %v1520_v0  ;;  %v8511_v0 = vpop.permute.xlu0 %2528 }
 0x1a1   : > { %2200 = vst [vmem:[#allocation1 + $0x1] ss:$2 sm:$0xff] %v8285_v37  ;;  %v2551_v14 = vsel %vm2544_vm15, %v8511_v0, %v8468_v2  ;;  %2105 = vrot.lane.b32.xlu0 %v8450_v13, %s11537_s27  ;;  %2208 = vrot.lane.b32.xlu1 %v2192_v38, %s11543_s28 }
 0x1a2   : > { %1543 = vst [vmem:[#allocation2 + $0x210] sm:$0xf] %v1518_v4  ;;  %v8501_v50 = vld.sshfl [vmem:[#allocation1 + $0x20] sm:$0xff pattern:$0x75316420]  ;;  %v8513_v4 = vpop.permute.xlu1 %2635 }
 0x1a3   : > { %1646 = vst [vmem:[#allocation2 + $0x210] sm:$0xf0] %v1621_v55  ;;  %2212 = vrot.lane.b32.xlu2 %v2194_v36, %s11543_s28  ;;  %v8520_v3 = vpop.permute.xlu2 %2741 }
 0x1a4   : > { %11744 = vst [vmem:[#allocation142_spill] sm:$0xff] %v8501_v50  ;;  %v2764_v17 = vsel %vm11569_vm4, %v8520_v3, %v8477_v21  ;;  %v2279_v50 = vld [vmem:[%s7812_s18 + $0x30] sm:$0xf] }
 0x1a5   : > { %2291 = vst [vmem:[#allocation1 + $0x20] ss:$2 sm:$0xff] %v8242_v15 }
 0x1a6   : > { %v2297_v42 = vld.sshfl [vmem:[#allocation1 + $0x18] sm:$0xff pattern:$0x75316420]  ;;  %v8508_v34 = vld.sshfl [vmem:[#allocation1 + $0x10] sm:$0xff pattern:$0x75316420] }
 0x1a7   : > { %2303 = vst [vmem:[#allocation1 + $0x10] ss:$2 sm:$0xff] %v8249_v35 }
 0x1a8   : > { %v2203_v55 = vld.sshfl [vmem:[#allocation1] sm:$0xff pattern:$0x75316420]  ;;  %v8515_v36 = vld.sshfl [vmem:[#allocation1 + $0x8] sm:$0xff pattern:$0x75316420] }
 0x1a9   : > { %11745 = vst [vmem:[#allocation143_spill] sm:$0xff] %v8515_v36  ;;  %v1491_v36 = vpop.permute.xlu0 %1490  ;;  %2121 = vrot.lane.b32.xlu0 %v8470_v44, %s11537_s27 }
 0x1aa   : > { %2287 = vst [vmem:[#allocation1] ss:$2 sm:$0xff] %v8304_v58  ;;  %v1600_v18 = vpop.permute.xlu1 %1599  ;;  %v1517_v21 = vsel %vm11516_vm12, %v1491_v36, %v1493_v51  ;;  %vm2864_vm12 = vcmask 367616  }
 0x1ab   : > { %2577 = vst [vmem:[#allocation2 + $0x440] sm:$0xf] %v2551_v14  ;;  %2210 = vrot.lane.b32.xlu2 %v2193_v33, %s11543_s28  ;;  %v1623_v7 = vsel %vm11518_vm14, %v1600_v18, %v8434_v5  ;;  %v8540_v33 = vpop.permute.xlu2 %2956 }
 0x1ac   : > { %2790 = vst [vmem:[#allocation2 + $0x4a8] sm:$0xf] %v2764_v17  ;;  %v2298_v20 = vld.sshfl [vmem:[#allocation1 + $0x20] sm:$0xff pattern:$0x75316420]  ;;  %v1622_v17 = vsel %vm11518_vm14, %v8457_v19, %v1600_v18 }
 0x1ad   : > { %v8527_v63 = vld.sshfl [vmem:[#allocation1 + $0x28] sm:$0xff pattern:$0x75316420]  ;;  %11746 = vst [vmem:[#allocation144_spill] sm:$0xff] %v8540_v33  ;;  %2318 = vrot.lane.b32.xlu1 %v2298_v20, %s11535_s16  ;;  %v2381_v20 = vld [vmem:[%s7812_s18 + $0x30] sm:$0xf] }
 0x1ae   : > { %2304 = vst [vmem:[#allocation1 + $0x20] ss:$2 sm:$0xff] %v2279_v50  ;;  %v8543_v13 = vld.sshfl [vmem:[#allocation1 + $0x10] sm:$0xff pattern:$0x75316420] }
 0x1af   : > { %1542 = vst [vmem:[#allocation2 + $0x208] sm:$0xf] %v1517_v21  ;;  %v8545_v38 = vld.sshfl [vmem:[#allocation1 + $0x18] sm:$0xff pattern:$0x75316420] }
 0x1b0   : > { %11747 = vst [vmem:[#allocation145_spill] sm:$0xff] %v8543_v13 }
 0x1b1   : > { %v8533_v14 = vld.sshfl [vmem:[#allocation1 + $0x8] sm:$0xff pattern:$0x75316420]  ;;  %v2294_v8 = vld.sshfl [vmem:[#allocation1] sm:$0xff pattern:$0x75316420]  ;;  %v8555_v18 = vpop.permute.xlu0 %2637  ;;  %2316 = vrot.lane.b32.xlu0 %v2297_v42, %s11535_s16 }
 0x1b2   : > { %2302 = vst [vmem:[#allocation1] ss:$2 sm:$0xff] %v8285_v37  ;;  %v1594_v19 = vpop.permute.xlu1 %1593  ;;  %v2658_v21 = vsel %vm11551_vm5, %v8513_v4, %v8555_v18 }
 0x1b3   : > { %1647 = vst [vmem:[#allocation2 + $0x218] sm:$0xf0] %v1622_v17  ;;  %2224 = vrot.lane.b32.xlu2 %v2203_v55, %s11543_s28  ;;  %v1620_v55 = vsel %vm11518_vm14, %v1594_v19, %v1596_v48  ;;  %v8563_v36 = vpop.permute.xlu2 %1804  ;;  %vm11565_vm14 = vcmask 359424  }
 0x1b4   : > { %11748 = vst [vmem:[#allocation146_spill] sm:$0xff] %v8545_v38 }
 0x1b5   : > { %1648 = vst [vmem:[#allocation2 + $0x220] sm:$0xf0] %v1623_v7  ;;  %v8547_v50 = vld.sshfl [vmem:[#allocation1 + $0x20] sm:$0xff pattern:$0x75316420] }
 0x1b6   : > { %11749 = vst [vmem:[#allocation147_spill] sm:$0xff] %v8547_v50 }
 0x1b7   : > { %2394 = vst [vmem:[#allocation1 + $0x21] ss:$2 sm:$0xff] %v8242_v15 }
 0x1b8   : > { %2392 = vst [vmem:[#allocation1 + $0x11] ss:$2 sm:$0xff] %v8277_v57 }
 0x1b9   : > { %v2305_v51 = vld.sshfl [vmem:[#allocation1] sm:$0xff pattern:$0x75316420]  ;;  %v8557_v7 = vld.sshfl [vmem:[#allocation1 + $0x8] sm:$0xff pattern:$0x75316420]  ;;  %v8573_v48 = vpop.permute.xlu0 %2848  ;;  %2314 = vrot.lane.b32.xlu0 %v8508_v34, %s11535_s16 }
 0x1ba   : > { %11750 = vst [vmem:[#allocation148_spill] sm:$0xff] %v8557_v7  ;;  %2326 = vrot.lane.b32.xlu1 %v2305_v51, %s11535_s16  ;;  %v8575_v19 = vpop.permute.xlu1 %2850 }
 0x1bb   : > { %2390 = vst [vmem:[#allocation1 + $0x1] ss:$2 sm:$0xff] %v8304_v58  ;;  %2310 = vrot.lane.b32.xlu2 %v2294_v8, %s11535_s16  ;;  %v2871_v8 = vsel %vm2864_vm12, %v8573_v48, %v8575_v19  ;;  %v8582_v13 = vpop.permute.xlu2 %1709 }
 0x1bc   : > { %2684 = vst [vmem:[#allocation2 + $0x440] sm:$0xf0] %v2658_v21 }
 0x1bd   : > { %1645 = vst [vmem:[#allocation2 + $0x208] sm:$0xf0] %v1620_v55 }
 0x1be   : > { %v2401_v44 = vld.sshfl [vmem:[#allocation1 + $0x20] sm:$0xff pattern:$0x75316420]  ;;  %v8567_v17 = vld.sshfl [vmem:[#allocation1 + $0x28] sm:$0xff pattern:$0x75316420] }
 0x1bf   : > { %v2400_v5 = vld.sshfl [vmem:[#allocation1 + $0x18] sm:$0xff pattern:$0x75316420]  ;;  %v2399_v7 = vld.sshfl [vmem:[#allocation1 + $0x10] sm:$0xff pattern:$0x75316420] }
 0x1c0   : > { %2407 = vst [vmem:[#allocation1 + $0x21] ss:$2 sm:$0xff] %v2381_v20 }
 0x1c1   : > { %2406 = vst [vmem:[#allocation1 + $0x11] ss:$2 sm:$0xff] %v8249_v35  ;;  %v1702_v50 = vpop.permute.xlu0 %1701  ;;  %2312 = vrot.lane.b32.xlu0 %v8533_v14, %s11535_s16 }
 0x1c2   : > { %11751 = vst [vmem:[#allocation149_spill] sm:$0xff] %v8573_v48  ;;  %v2398_v21 = vld.sshfl [vmem:[#allocation1 + $0x8] sm:$0xff pattern:$0x75316420]  ;;  %2417 = vrot.lane.b32.xlu1 %v2399_v7, %s11533_s17  ;;  %v8596_v38 = vpop.permute.xlu1 %1703 }
 0x1c3   : > { %11752 = vst [vmem:[#allocation150_spill] sm:$0xff] %v8575_v19  ;;  %v8577_v55 = vld.sshfl [vmem:[#allocation1] sm:$0xff pattern:$0x75316420]  ;;  %2419 = vrot.lane.b32.xlu2 %v2400_v5, %s11533_s17  ;;  %v8603_v34 = vpop.permute.xlu2 %1908 }
 0x1c4   : > { %2405 = vst [vmem:[#allocation1 + $0x1] ss:$2 sm:$0xff] %v8285_v37 }
 0x1c5   : > { %2897 = vst [vmem:[#allocation2 + $0x4a8] sm:$0xf0] %v2871_v8  ;;  %v1725_v8 = vsel %vm1721_vm3, %v1702_v50, %v8596_v38 }
 0x1c6   : > { %11756 = vst [vmem:[#allocation154_spill] sm:$0xff] %v8596_v38 }
 0x1c7   : > { %v8586_v42 = vld.sshfl [vmem:[#allocation1 + $0x20] sm:$0xff pattern:$0x75316420]  ;;  %11757 = vst [vmem:[#allocation155_spill] sm:$0xff] %v8603_v34 }
 0x1c8   : > { %11753 = vst [vmem:[#allocation151_spill] sm:$0xff] %v8586_v42  ;;  %v8592_v51 = vld.sshfl [vmem:[#allocation1 + $0x10] sm:$0xff pattern:$0x75316420] }
 0x1c9   : > { %2496 = vst [vmem:[#allocation1 + $0x20] ss:$2 sm:$0xff] %v8242_v15  ;;  %v8594_v20 = vld.sshfl [vmem:[#allocation1 + $0x18] sm:$0xff pattern:$0x75316420]  ;;  %2421 = vrot.lane.b32.xlu0 %v2401_v44, %s11533_s17 }
 0x1ca   : > { %11754 = vst [vmem:[#allocation152_spill] sm:$0xff] %v8592_v51  ;;  %v8609_v51 = vld [vmem:[%s7812_s18 + $0x30] sm:$0xff]  ;;  %2415 = vrot.lane.b32.xlu1 %v2398_v21, %s11533_s17  ;;  %v8620_v48 = vpop.permute.xlu1 %2954 }
 0x1cb   : > { %11755 = vst [vmem:[#allocation153_spill] sm:$0xff] %v8594_v20  ;;  %v8599_v5 = vld.sshfl [vmem:[#allocation1] sm:$0xff pattern:$0x75316420]  ;;  %v2977_v14 = vsel %vm11565_vm14, %v8620_v48, %v8540_v33 }
 0x1cc   : > { %2494 = vst [vmem:[#allocation1 + $0x10] ss:$2 sm:$0xff] %v8277_v57  ;;  %v8605_v7 = vld.sshfl [vmem:[#allocation1 + $0x8] sm:$0xff pattern:$0x75316420] }
 0x1cd   : > { %11758 = vst [vmem:[#allocation156_spill] sm:$0xff] %v8605_v7  ;;  %v1700_v7 = vpop.permute.xlu0 %1699 }
 0x1ce   : > { %1750 = vst [vmem:[#allocation2 + $0x288] sm:$0xf] %v1725_v8  ;;  %v1724_v45 = vsel %vm1721_vm3, %v1700_v7, %v1702_v50 }
 0x1cf   : > { %2492 = vst [vmem:[#allocation1] ss:$2 sm:$0xff] %v8304_v58 }
 0x1d0   : > { %v2503_v20 = vld.sshfl [vmem:[#allocation1 + $0x20] sm:$0xff pattern:$0x75316420]  ;;  %v8611_v42 = vld.sshfl [vmem:[#allocation1 + $0x28] sm:$0xff pattern:$0x75316420] }
 0x1d1   : > { %2524 = vrot.lane.b32.xlu2 %v2503_v20, %s11552_s23  ;;  %2509 = vst [vmem:[#allocation1 + $0x20] ss:$2 sm:$0xff] %v8609_v51  ;;  %v8627_v20 = vpop.permute.xlu2 %1904  ;;  %2413 = vrot.lane.b32.xlu0 %v8577_v55, %s11533_s17 }
 0x1d2   : > { %11759 = vst [vmem:[#allocation157_spill] sm:$0xff] %v8620_v48  ;;  %v1803_v33 = vpop.permute.xlu1 %1802 }
 0x1d3   : > { %v8618_v38 = vld.sshfl [vmem:[#allocation1 + $0x10] sm:$0xff pattern:$0x75316420]  ;;  %v2502_v8 = vld.sshfl [vmem:[#allocation1 + $0x18] sm:$0xff pattern:$0x75316420]  ;;  %v1827_v44 = vsel %vm1824_vm11, %v1803_v33, %v8563_v36 }
 0x1d4   : > { %2508 = vst [vmem:[#allocation1 + $0x10] ss:$2 sm:$0xff] %v8249_v35  ;;  %2522 = vrot.lane.b32.xlu1 %v2502_v8, %s11552_s23 }
 0x1d5   : > { %1749 = vst [vmem:[#allocation2 + $0x280] sm:$0xf] %v1724_v45 }
 0x1d6   : > { %v2499_v62 = vld.sshfl [vmem:[#allocation1] sm:$0xff pattern:$0x75316420]  ;;  %3003 = vst [vmem:[#allocation2 + $0x510] sm:$0xf] %v2977_v14  ;;  %v1698_v14 = vpop.permute.xlu0 %1697 }
 0x1d7   : > { %v2500_v21 = vld.sshfl [vmem:[#allocation1 + $0x8] sm:$0xff pattern:$0x75316420]  ;;  %1852 = vst [vmem:[#allocation2 + $0x280] sm:$0xf0] %v1827_v44 }
 0x1d8   : > { %2507 = vst [vmem:[#allocation1] ss:$2 sm:$0xff] %v8285_v37  ;;  %v8630_v19 = vld.sshfl [vmem:[#allocation1 + $0x20] sm:$0xff pattern:$0x75316420] }
 0x1d9   : > { %11760 = vst [vmem:[#allocation158_spill] sm:$0xff] %v8630_v19  ;;  %v8632_v49 = vld.sshfl [vmem:[#allocation1 + $0x28] sm:$0xff pattern:$0x75316420]  ;;  %2518 = vrot.lane.b32.xlu2 %v2500_v21, %s11552_s23  ;;  %v1903_v48 = vpop.permute.xlu2 %1902  ;;  %2429 = vrot.lane.b32.xlu0 %v8599_v5, %s11533_s17 }
 0x1da   : > { %11761 = vst [vmem:[#allocation159_spill] sm:$0xff] %v8632_v49  ;;  %v1723_v49 = vsel %vm1721_vm3, %v1698_v14, %v1700_v7  ;;  %v1928_v8 = vsel %vm11567_vm7, %v1903_v48, %v8627_v20 }
 0x1db   : > { %2603 = vst [vmem:[#allocation1 + $0x21] ss:$2 sm:$0xff] %v8242_v15  ;;  %v8638_v50 = vld.sshfl [vmem:[#allocation1 + $0x10] sm:$0xff pattern:$0x75316420] }
 0x1dc   : > { %11762 = vst [vmem:[#allocation160_spill] sm:$0xff] %v8638_v50  ;;  %v8640_v45 = vld.sshfl [vmem:[#allocation1 + $0x18] sm:$0xff pattern:$0x75316420] }
 0x1dd   : > { %11763 = vst [vmem:[#allocation161_spill] sm:$0xff] %v8640_v45 }
 0x1de   : > { %2601 = vst [vmem:[#allocation1 + $0x11] ss:$2 sm:$0xff] %v8277_v57  ;;  %v1696_v43 = vpop.permute.xlu0 %1695 }
 0x1df   : > { %1748 = vst [vmem:[#allocation2 + $0x278] sm:$0xf] %v1723_v49  ;;  %v2510_v21 = vld.sshfl [vmem:[#allocation1] sm:$0xff pattern:$0x75316420]  ;;  %v1722_v39 = vsel %vm1721_vm3, %v1696_v43, %v1698_v14 }
 0x1e0   : > { %v8646_v19 = vld.sshfl [vmem:[#allocation1 + $0x8] sm:$0xff pattern:$0x75316420]  ;;  %1953 = vst [vmem:[#allocation2 + $0x2e0] sm:$0xf] %v1928_v8 }
 0x1e1   : > { %11764 = vst [vmem:[#allocation162_spill] sm:$0xff] %v8646_v19  ;;  %2516 = vrot.lane.b32.xlu2 %v2499_v62, %s11552_s23  ;;  %v1801_v19 = vpop.permute.xlu1 %1800  ;;  %v1901_v11 = vpop.permute.xlu2 %1900  ;;  %2520 = vrot.lane.b32.xlu0 %v8618_v38, %s11552_s23 }
 0x1e2   : > { %2599 = vst [vmem:[#allocation1 + $0x1] ss:$2 sm:$0xff] %v8304_v58  ;;  %v2611_v50 = vld.sshfl [vmem:[#allocation1 + $0x28] sm:$0xff pattern:$0x75316420]  ;;  %v1826_v44 = vsel %vm1824_vm11, %v1801_v19, %v1803_v33  ;;  %v1927_v62 = vsel %vm11567_vm7, %v1901_v11, %v1903_v48 }
 0x1e3   : > { %v8654_v49 = vld.sshfl [vmem:[#allocation1 + $0x20] sm:$0xff pattern:$0x75316420]  ;;  %1747 = vst [vmem:[#allocation2 + $0x270] sm:$0xf] %v1722_v39 }
 0x1e4   : > { %2616 = vst [vmem:[#allocation1 + $0x21] ss:$2 sm:$0xff] %v8609_v51 }
 0x1e5   : > { %v2608_v7 = vld.sshfl [vmem:[#allocation1 + $0x10] sm:$0xff pattern:$0x75316420]  ;;  %v2609_v45 = vld.sshfl [vmem:[#allocation1 + $0x18] sm:$0xff pattern:$0x75316420] }
 0x1e6   : > { %2627 = vrot.lane.b32.xlu1 %v2608_v7, %s11556_s15  ;;  %2615 = vst [vmem:[#allocation1 + $0x11] ss:$2 sm:$0xff] %v8249_v35  ;;  %v8674_v39 = vpop.permute.xlu0 %1806 }
 0x1e7   : > { %1851 = vst [vmem:[#allocation2 + $0x278] sm:$0xf0] %v1826_v44  ;;  %v1828_v48 = vsel %vm1824_vm11, %v8563_v36, %v8674_v39 }
 0x1e8   : > { %1952 = vst [vmem:[#allocation2 + $0x2d8] sm:$0xf] %v1927_v62 }
 0x1e9   : > { %v8662_v55 = vld.sshfl [vmem:[#allocation1] sm:$0xff pattern:$0x75316420]  ;;  %v8664_v8 = vld.sshfl [vmem:[#allocation1 + $0x8] sm:$0xff pattern:$0x75316420]  ;;  %2532 = vrot.lane.b32.xlu2 %v2510_v21, %s11552_s23  ;;  %v1799_v11 = vpop.permute.xlu1 %1798  ;;  %v8688_v62 = vpop.permute.xlu2 %2111  ;;  %2526 = vrot.lane.b32.xlu0 %v8611_v42, %s11552_s23 }
 0x1ea   : > { %2614 = vst [vmem:[#allocation1 + $0x1] ss:$2 sm:$0xff] %v8285_v37  ;;  %v1825_v14 = vsel %vm1824_vm11, %v1799_v11, %v1801_v19 }
 0x1eb   : > { %v8670_v43 = vld.sshfl [vmem:[#allocation1 + $0x20] sm:$0xff pattern:$0x75316420]  ;;  %v8672_v33 = vld.sshfl [vmem:[#allocation1 + $0x28] sm:$0xff pattern:$0x75316420] }
 0x1ec   : > { %11765 = vst [vmem:[#allocation163_spill] sm:$0xff] %v8672_v33 }
 0x1ed   : > { %11766 = vst [vmem:[#allocation164_spill] sm:$0xff] %v8674_v39  ;;  %v8682_v5 = vld.sshfl [vmem:[#allocation1 + $0x10] sm:$0xff pattern:$0x75316420] }
 0x1ee   : > { %2633 = vrot.lane.b32.xlu1 %v2611_v50, %s11556_s15  ;;  %2709 = vst [vmem:[#allocation1 + $0x20] ss:$2 sm:$0xff] %v8242_v15  ;;  %v8684_v21 = vld.sshfl [vmem:[#allocation1 + $0x18] sm:$0xff pattern:$0x75316420]  ;;  %v8695_v15 = vpop.permute.xlu0 %1711 }
 0x1ef   : > { %11767 = vst [vmem:[#allocation165_spill] sm:$0xff] %v8682_v5  ;;  %v1729_v19 = vsel %vm1721_vm3, %v8582_v13, %v8695_v15 }
 0x1f0   : > { %1853 = vst [vmem:[#allocation2 + $0x288] sm:$0xf0] %v1828_v48 }
 0x1f1   : > { %1850 = vst [vmem:[#allocation2 + $0x270] sm:$0xf0] %v1825_v14  ;;  %v8686_v7 = vld.sshfl [vmem:[#allocation1 + $0x8] sm:$0xff pattern:$0x75316420]  ;;  %2629 = vrot.lane.b32.xlu2 %v2609_v45, %s11556_s15  ;;  %v1184_v36 = vpop.permute.xlu1 %1183  ;;  %2631 = vrot.lane.b32.xlu0 %v8654_v49, %s11556_s15 }
 0x1f2   : > { %11768 = vst [vmem:[#allocation166_spill] sm:$0xff] %v8686_v7  ;;  %v2617_v44 = vld.sshfl [vmem:[#allocation1] sm:$0xff pattern:$0x75316420]  ;;  %v1210_v50 = vsel %vm11526_vm6, %v1184_v36, %v8294_v1  ;;  %vm11568_vm6 = vcmask 556032  }
 0x1f3   : > { %2707 = vst [vmem:[#allocation1 + $0x10] ss:$2 sm:$0xff] %v8277_v57 }
 0x1f4   : > { %2705 = vst [vmem:[#allocation1] ss:$2 sm:$0xff] %v8304_v58 }
 0x1f5   : > { %11769 = vst [vmem:[#allocation167_spill] sm:$0xff] %v8695_v15  ;;  %v2716_v11 = vld.sshfl [vmem:[#allocation1 + $0x20] sm:$0xff pattern:$0x75316420]  ;;  %v8707_v33 = vpop.permute.xlu2 %2216 }
 0x1f6   : > { %2639 = vrot.lane.b32.xlu1 %v2617_v44, %s11556_s15  ;;  %1754 = vst [vmem:[#allocation2 + $0x2a8] sm:$0xf] %v1729_v19  ;;  %v2717_v44 = vld.sshfl [vmem:[#allocation1 + $0x28] sm:$0xff pattern:$0x75316420]  ;;  %v2010_v1 = vpop.permute.xlu0 %2009 }
 0x1f7   : > { %1235 = vst [vmem:[#allocation2 + $0x138] sm:$0xf0] %v1210_v50 }
 0x1f8   : > { %2722 = vst [vmem:[#allocation1 + $0x20] ss:$2 sm:$0xff] %v8609_v51 }
 0x1f9   : > { %2737 = vrot.lane.b32.xlu2 %v2716_v11, %s11531_s26  ;;  %v1907_v36 = vpop.permute.xlu1 %1906  ;;  %2625 = vrot.lane.b32.xlu0 %v8664_v8, %s11556_s15 }
 0x1fa   : > { %v2715_v38 = vld.sshfl [vmem:[#allocation1 + $0x18] sm:$0xff pattern:$0x75316420]  ;;  %v2714_v48 = vld.sshfl [vmem:[#allocation1 + $0x10] sm:$0xff pattern:$0x75316420]  ;;  %v1930_v42 = vsel %vm11567_vm7, %v1907_v36, %v8603_v34 }
 0x1fb   : > { %v2713_v45 = vld.sshfl [vmem:[#allocation1 + $0x8] sm:$0xff pattern:$0x75316420]  ;;  %2721 = vst [vmem:[#allocation1 + $0x10] ss:$2 sm:$0xff] %v8249_v35  ;;  %v1929_v35 = vsel %vm11567_vm7, %v8627_v20, %v1907_v36 }
 0x1fc   : > { %v2712_v14 = vld.sshfl [vmem:[#allocation1] sm:$0xff pattern:$0x75316420]  ;;  %1954 = vst [vmem:[#allocation2 + $0x2e8] sm:$0xf] %v1929_v35  ;;  %v8733_v35 = vld [vmem:[%s7812_s18 + $0x10] sm:$0xff] }
 0x1fd   : > { %2720 = vst [vmem:[#allocation1] ss:$2 sm:$0xff] %v8285_v37  ;;  %v8723_v11 = vpop.permute.xlu2 %2212 }
 0x1fe   : > { %2735 = vrot.lane.b32.xlu1 %v2715_v38, %s11531_s26  ;;  %1955 = vst [vmem:[#allocation2 + $0x2f0] sm:$0xf] %v1930_v42  ;;  %v2008_v15 = vpop.permute.xlu0 %2007 }
 0x1ff   : > { %v8725_v38 = vld.sshfl [vmem:[#allocation1 + $0x20] sm:$0xff pattern:$0x75316420]  ;;  %v8727_v20 = vld.sshfl [vmem:[#allocation1 + $0x28] sm:$0xff pattern:$0x75316420] }
 0x200   : > { %11771 = vst [vmem:[#allocation169_spill] sm:$0xff] %v8727_v20 }
 0x201   : > { %2733 = vrot.lane.b32.xlu2 %v2714_v48, %s11531_s26  ;;  %v8730_v36 = vpop.permute.xlu1 %2011  ;;  %v2032_v48 = vsel %vm11568_vm6, %v2008_v15, %v2010_v1  ;;  %2816 = vst [vmem:[#allocation1 + $0x21] ss:$2 sm:$0xff] %v8733_v35  ;;  %2623 = vrot.lane.b32.xlu0 %v8662_v55, %s11556_s15 }
 0x202   : > { %11772 = vst [vmem:[#allocation170_spill] sm:$0xff] %v8730_v36  ;;  %v8735_v49 = vld.sshfl [vmem:[#allocation1 + $0x10] sm:$0xff pattern:$0x75316420]  ;;  %v2033_v42 = vsel %vm11568_vm6, %v2010_v1, %v8730_v36 }
 0x203   : > { %v8742_v20 = vld.sshfl [vmem:[#allocation1 + $0x18] sm:$0xff pattern:$0x75316420]  ;;  %2057 = vst [vmem:[#allocation2 + $0x2e8] sm:$0xf0] %v2032_v48 }
 0x204   : > { %v8719_v19 = vld.sshfl [vmem:[#allocation1] sm:$0xff pattern:$0x75316420]  ;;  %v8721_v50 = vld.sshfl [vmem:[#allocation1 + $0x8] sm:$0xff pattern:$0x75316420] }
 0x205   : > { %11770 = vst [vmem:[#allocation168_spill] sm:$0xff] %v8721_v50 }
 0x206   : > { %2731 = vrot.lane.b32.xlu1 %v2713_v45, %s11531_s26  ;;  %2812 = vst [vmem:[#allocation1 + $0x1] ss:$2 sm:$0xff] %v8304_v58  ;;  %v2211_v45 = vpop.permute.xlu2 %2210  ;;  %v2006_v50 = vpop.permute.xlu0 %2005 }
 0x207   : > { %2058 = vst [vmem:[#allocation2 + $0x2f0] sm:$0xf0] %v2033_v42  ;;  %v2236_v36 = vsel %vm2234_vm9, %v2211_v45, %v8723_v11  ;;  %v2031_v7 = vsel %vm11568_vm6, %v2006_v50, %v2008_v15 }
 0x208   : > { %2814 = vst [vmem:[#allocation1 + $0x11] ss:$2 sm:$0xff] %v8277_v57  ;;  %v2802_v57 = vld [vmem:[%s7812_s18 + $0x28] sm:$0xff] }
 0x209   : > { %1814 = vrot.lane.b32.xlu2 %v8349_v26, %s11547_s20  ;;  %v2110_v1 = vpop.permute.xlu1 %2109  ;;  %2261 = vst [vmem:[#allocation2 + $0x348] sm:$0xf0] %v2236_v36  ;;  %1914 = vrot.lane.b32.xlu0 %v8091_v29, %s11545_s19 }
 0x20a   : > { %v2134_v48 = vsel %vm11560_vm8, %v2110_v1, %v8688_v62  ;;  %2056 = vst [vmem:[#allocation2 + $0x2e0] sm:$0xf0] %v2031_v7 }
 0x20b   : > { %2159 = vst [vmem:[#allocation2 + $0x350] sm:$0xf] %v2134_v48 }
 0x20d   : > { %v2819_v15 = vld.sshfl [vmem:[#allocation1] sm:$0xff pattern:$0x75316420] }
 0x20e   : > { %2729 = vrot.lane.b32.xlu1 %v2712_v14, %s11531_s26  ;;  %v2820_v14 = vld.sshfl [vmem:[#allocation1 + $0x8] sm:$0xff pattern:$0x75316420]  ;;  %v8761_v42 = vpop.permute.xlu2 %2224  ;;  %v2004_v5 = vpop.permute.xlu0 %2003 }
 0x20f   : > { %v8756_v8 = vld.sshfl [vmem:[#allocation1 + $0x10] sm:$0xff pattern:$0x75316420]  ;;  %v2822_v26 = vld.sshfl [vmem:[#allocation1 + $0x18] sm:$0xff pattern:$0x75316420]  ;;  %v2242_v36 = vsel %vm2234_vm9, %v8383_v6, %v8761_v42  ;;  %v2030_v48 = vsel %vm11568_vm6, %v2004_v5, %v2006_v50 }
 0x210   : > { %2828 = vst [vmem:[#allocation1 + $0x11] ss:$2 sm:$0xff] %v2802_v57 }
 0x211   : > { %2739 = vrot.lane.b32.xlu2 %v2717_v44, %s11531_s26  ;;  %v2108_v7 = vpop.permute.xlu1 %2107  ;;  %2827 = vst [vmem:[#allocation1 + $0x1] ss:$2 sm:$0xff] %v8285_v37  ;;  %v2905_v44 = vld [vmem:[%s7812_s18 + $0x8] sm:$0xff]  ;;  %2745 = vrot.lane.b32.xlu0 %v8719_v19, %s11531_s26  ;;  %s11773_s26 = smov 127  }
 0x212   : > { %v2133_v55 = vsel %vm11560_vm8, %v2108_v7, %v2110_v1  ;;  %2267 = vst [vmem:[#allocation2 + $0x378] sm:$0xf0] %v2242_v36 }
 0x213   : > { %2055 = vst [vmem:[#allocation2 + $0x2d8] sm:$0xf0] %v2030_v48  ;;  %v2824_v48 = vld.sshfl [vmem:[#allocation1 + $0x28] sm:$0xff pattern:$0x75316420] }
 0x214   : > { %2158 = vst [vmem:[#allocation2 + $0x348] sm:$0xf] %v2133_v55 }
 0x216   : > { %1812 = vrot.lane.b32.xlu1 %v8074_v28, %s11547_s20  ;;  %v2823_v28 = vld.sshfl [vmem:[#allocation1 + $0x20] sm:$0xff pattern:$0x75316420]  ;;  %v8780_v37 = vpop.permute.xlu2 %2310  ;;  %v8784_v50 = vpop.permute.xlu0 %2113 }
 0x217   : > { %v8772_v39 = vld.sshfl [vmem:[#allocation1 + $0x10] sm:$0xff pattern:$0x75316420]  ;;  %v8774_v34 = vld.sshfl [vmem:[#allocation1 + $0x18] sm:$0xff pattern:$0x75316420]  ;;  %v2135_v36 = vsel %vm11560_vm8, %v8688_v62, %v8784_v50 }
 0x218   : > { %2920 = vst [vmem:[#allocation1 + $0x10] ss:$2 sm:$0xff] %v2905_v44  ;;  %v2830_v6 = vld.sshfl [vmem:[#allocation1] sm:$0xff pattern:$0x75316420] }
 0x219   : > { %2017 = vrot.lane.b32.xlu2 %v8105_v52, %s11541_s25  ;;  %v8782_v5 = vld.sshfl [vmem:[#allocation1 + $0x8] sm:$0xff pattern:$0x75316420]  ;;  %v2215_v1 = vpop.permute.xlu1 %2214  ;;  %2160 = vst [vmem:[#allocation2 + $0x358] sm:$0xf] %v2135_v36  ;;  %2842 = vrot.lane.b32.xlu0 %v2822_v26, %s11539_s22 }
 0x21a   : > { %2918 = vst [vmem:[#allocation1] ss:$2 sm:$0xff] %v8304_v58  ;;  %v2237_v29 = vsel %vm2234_vm9, %v8723_v11, %v2215_v1  ;;  %v2238_v52 = vsel %vm2234_vm9, %v2215_v1, %v8707_v33 }
 0x21b   : > { %2262 = vst [vmem:[#allocation2 + $0x350] sm:$0xf0] %v2237_v29 }
 0x21c   : > { %2263 = vst [vmem:[#allocation2 + $0x358] sm:$0xf0] %v2238_v52 }
 0x21d   : > { %2829 = vst [vmem:[#allocation1 + $0x21] ss:$2 sm:$0xff] %v8609_v51 }
 0x21e   : > { %2844 = vrot.lane.b32.xlu1 %v2823_v28, %s11539_s22  ;;  %v8799_v58 = vpop.permute.xlu2 %2419  ;;  %v2106_v62 = vpop.permute.xlu0 %2105 }
 0x21f   : > { %v2132_v55 = vsel %vm11560_vm8, %v2106_v62, %v2108_v7  ;;  %v2927_v28 = vld.sshfl [vmem:[#allocation1 + $0x10] sm:$0xff pattern:$0x75316420]  ;;  %v2928_v1 = vld.sshfl [vmem:[#allocation1 + $0x18] sm:$0xff pattern:$0x75316420] }
 0x220   : > { %2157 = vst [vmem:[#allocation2 + $0x340] sm:$0xf] %v2132_v55 }
 0x221   : > { %2838 = vrot.lane.b32.xlu2 %v2820_v14, %s11539_s22  ;;  %v2209_v11 = vpop.permute.xlu1 %2208  ;;  %2934 = vst [vmem:[#allocation1 + $0x10] ss:$2 sm:$0xff] %v2802_v57  ;;  %v2925_v26 = vld.sshfl [vmem:[#allocation1] sm:$0xff pattern:$0x75316420]  ;;  %2019 = vrot.lane.b32.xlu0 %v8429_v9, %s11541_s25 }
 0x222   : > { %v2235_v44 = vsel %vm2234_vm9, %v2209_v11, %v2211_v45  ;;  %v2926_v52 = vld.sshfl [vmem:[#allocation1 + $0x8] sm:$0xff pattern:$0x75316420] }
 0x223   : > { %2260 = vst [vmem:[#allocation2 + $0x340] sm:$0xf0] %v2235_v44 }
 0x224   : > { %v8807_v19 = vld.sshfl [vmem:[#allocation1 + $0x20] sm:$0xff pattern:$0x75316420]  ;;  %v8809_v14 = vld.sshfl [vmem:[#allocation1 + $0x28] sm:$0xff pattern:$0x75316420] }
 0x225   : > { %2922 = vst [vmem:[#allocation1 + $0x20] ss:$2 sm:$0xff] %v8733_v35 }
 0x226   : > { %1916 = vrot.lane.b32.xlu1 %v8385_v32, %s11545_s19  ;;  %v8811_v36 = vpop.permute.xlu0 %2121 }
 0x227   : > { %v2139_v45 = vsel %vm11560_vm8, %v8319_v10, %v8811_v36 }
 0x228   : > { %2164 = vst [vmem:[#allocation2 + $0x378] sm:$0xf] %v2139_v45 }
 0x229   : > { %2836 = vrot.lane.b32.xlu2 %v2819_v15, %s11539_s22  ;;  %v8814_v32 = vpop.permute.xlu1 %2318  ;;  %2840 = vrot.lane.b32.xlu0 %v8756_v8, %s11539_s22 }
 0x22b   : > { %v8820_v57 = vpop.permute.xlu2 %2524 }
 0x22c   : > { %v2929_v9 = vld.sshfl [vmem:[#allocation1 + $0x20] sm:$0xff pattern:$0x75316420]  ;;  %v2930_v62 = vld.sshfl [vmem:[#allocation1 + $0x28] sm:$0xff pattern:$0x75316420] }
 0x22d   : > { %2935 = vst [vmem:[#allocation1 + $0x20] ss:$2 sm:$0xff] %v8609_v51 }
 0x22e   : > { %2946 = vrot.lane.b32.xlu1 %v2927_v28, %s11549_s21  ;;  %v2317_v15 = vpop.permute.xlu0 %2316 }
 0x22f   : > { %v2340_v35 = vsel %vm2336_vm13, %v2317_v15, %v8814_v32 }
 0x230   : > { %2365 = vst [vmem:[#allocation2 + $0x3c0] sm:$0xf] %v2340_v35 }
 0x231   : > { %2852 = vrot.lane.b32.xlu2 %v2830_v6, %s11539_s22  ;;  %v8826_v7 = vpop.permute.xlu1 %2326  ;;  %v2908_v6 = vld [vmem:[%s7812_s18 + $0x20] sm:$0xff]  ;;  %2846 = vrot.lane.b32.xlu0 %v2824_v48, %s11539_s22  ;;  %s11774_s18 = smov 126   ;;  %s11778_s22 = smov 88  }
 0x232   : > { %v2344_v10 = vsel %vm2336_vm13, %v8466_v22, %v8826_v7  ;;  %2933 = vst [vmem:[#allocation1] ss:$2 sm:$0xff] %v2908_v6 }
 0x233   : > { %v8833_v29 = vpop.permute.xlu2 %2518  ;;  %2369 = vst [vmem:[#allocation2 + $0x3e0] sm:$0xf] %v2344_v10 }
 0x234   : > { %v2940_v6 = vld.sshfl [vmem:[#allocation1 + $0x20] sm:$0xff pattern:$0x75316420] }
 0x236   : > { %2942 = vrot.lane.b32.xlu1 %v2925_v26, %s11549_s21  ;;  %v2315_v11 = vpop.permute.xlu0 %2314 }
 0x237   : > { %v2339_v55 = vsel %vm2336_vm13, %v2315_v11, %v2317_v15 }
 0x238   : > { %2364 = vst [vmem:[#allocation2 + $0x3b8] sm:$0xf] %v2339_v55 }
 0x239   : > { %2944 = vrot.lane.b32.xlu2 %v2926_v52, %s11549_s21  ;;  %v2418_v22 = vpop.permute.xlu1 %2417  ;;  %2948 = vrot.lane.b32.xlu0 %v2928_v1, %s11549_s21 }
 0x23a   : > { %v2442_v44 = vsel %vm11559_vm10, %v2418_v22, %v8799_v58 }
 0x23b   : > { %v2517_v28 = vpop.permute.xlu2 %2516  ;;  %2467 = vst [vmem:[#allocation2 + $0x3b8] sm:$0xf0] %v2442_v44 }
 0x23c   : > { %v2545_v51 = vsel %vm2544_vm15, %v2517_v28, %v8833_v29 }
 0x23d   : > { %2571 = vst [vmem:[#allocation2 + $0x410] sm:$0xf] %v2545_v51 }
 0x23e   : > { %569 = vrot.lane.b32.xlu1 %v7852_v24, %s11773_s26  ;;  %v2313_v8 = vpop.permute.xlu0 %2312 }
 0x23f   : > { %v2337_v24 = vsel %vm2336_vm13, %v8780_v37, %v2313_v8  ;;  %v2338_v45 = vsel %vm2336_vm13, %v2313_v8, %v2315_v11 }
 0x240   : > { %2362 = vst [vmem:[#allocation2 + $0x3a8] sm:$0xf] %v2337_v24 }
 0x241   : > { %672 = vrot.lane.b32.xlu2 %v7884_v40, %s11774_s18  ;;  %v2416_v26 = vpop.permute.xlu1 %2415  ;;  %2363 = vst [vmem:[#allocation2 + $0x3b0] sm:$0xf] %v2338_v45  ;;  %2950 = vrot.lane.b32.xlu0 %v2929_v9, %s11549_s21 }
 0x242   : > { %v2441_v35 = vsel %vm11559_vm10, %v2416_v26, %v2418_v22  ;;  %v2936_v22 = vld.sshfl [vmem:[#allocation1] sm:$0xff pattern:$0x75316420] }
 0x243   : > { %v8855_v15 = vpop.permute.xlu2 %2532  ;;  %2466 = vst [vmem:[#allocation2 + $0x3b0] sm:$0xf0] %v2441_v35 }
 0x244   : > { %v2552_v48 = vsel %vm2544_vm15, %v8468_v2, %v8855_v15 }
 0x245   : > { %2578 = vst [vmem:[#allocation2 + $0x448] sm:$0xf] %v2552_v48 }
 0x246   : > { %1707 = vrot.lane.b32.xlu1 %v8065_v56, %s11554_s24  ;;  %v8864_v40 = vpop.permute.xlu0 %2421 }
 0x247   : > { %v2443_v56 = vsel %vm11559_vm10, %v8799_v58, %v8864_v40 }
 0x248   : > { %2468 = vst [vmem:[#allocation2 + $0x3c0] sm:$0xf0] %v2443_v56  ;;  %v2939_v56 = vld.sshfl [vmem:[#allocation1 + $0x18] sm:$0xff pattern:$0x75316420] }
 0x249   : > { %1810 = vrot.lane.b32.xlu2 %v8072_v31, %s11547_s20  ;;  %v2523_v37 = vpop.permute.xlu1 %2522  ;;  %2952 = vrot.lane.b32.xlu0 %v2930_v62, %s11549_s21 }
 0x24a   : > { %v2548_v2 = vsel %vm2544_vm15, %v2523_v37, %v8820_v57 }
 0x24b   : > { %v2630_v10 = vpop.permute.xlu2 %2629  ;;  %2574 = vst [vmem:[#allocation2 + $0x428] sm:$0xf] %v2548_v2 }
 0x24e   : > { %2015 = vrot.lane.b32.xlu1 %v8103_v41, %s11541_s25  ;;  %v2414_v31 = vpop.permute.xlu0 %2413  ;;  %s11779_s25 = smov 87  }
 0x24f   : > { %v2440_v41 = vsel %vm11559_vm10, %v2414_v31, %v2416_v26  ;;  %v2938_v26 = vld.sshfl [vmem:[#allocation1 + $0x10] sm:$0xff pattern:$0x75316420] }
 0x250   : > { %2465 = vst [vmem:[#allocation2 + $0x3a8] sm:$0xf0] %v2440_v41 }
 0x251   : > { %2115 = vrot.lane.b32.xlu2 %v8440_v30, %s11537_s27  ;;  %2958 = vrot.lane.b32.xlu0 %v2936_v22, %s11549_s21  ;;  %s11777_s27 = smov 104  }
 0x253   : > { %v2738_v1 = vpop.permute.xlu2 %2737 }
 0x256   : > { %2320 = vrot.lane.b32.xlu1 %v8527_v63, %s11535_s16  ;;  %v8886_v30 = vpop.permute.xlu0 %2429  ;;  %s11776_s16 = smov 105  }
 0x257   : > { %v2447_v63 = vsel %vm11559_vm10, %v8371_v60, %v8886_v30 }
 0x258   : > { %v8879_v58 = vpop.permute.xlu1 %2627  ;;  %2472 = vst [vmem:[#allocation2 + $0x3e0] sm:$0xf0] %v2447_v63 }
 0x259   : > { %v2654_v52 = vsel %vm11551_vm5, %v8879_v58, %v2630_v10  ;;  %2423 = vrot.lane.b32.xlu2 %v8567_v17, %s11533_s17  ;;  %s11775_s17 = smov 125  }
 0x25a   : > { %2680 = vst [vmem:[#allocation2 + $0x420] sm:$0xf0] %v2654_v52  ;;  %775 = vrot.lane.b32.xlu0 %v7913_v54, %s11775_s17 }
 0x25b   : > { %v2734_v9 = vpop.permute.xlu2 %2733 }
 0x25e   : > { %2966 = vrot.lane.b32.xlu1 %v2940_v6, %s11549_s21  ;;  %v2521_v17 = vpop.permute.xlu0 %2520  ;;  %v11783_v6 = vld [vmem:[#allocation112_spill] sm:$0xff] }
 0x25f   : > { %v2546_v60 = vsel %vm2544_vm15, %v8833_v29, %v2521_v17  ;;  %v2547_v62 = vsel %vm2544_vm15, %v2521_v17, %v2523_v37  ;;  %v11786_v17 = vld [vmem:[#allocation118_spill] sm:$0xff] }
 0x260   : > { %v2634_v11 = vpop.permute.xlu1 %2633  ;;  %2572 = vst [vmem:[#allocation2 + $0x418] sm:$0xf] %v2546_v60 }
 0x261   : > { %v2657_v55 = vsel %vm11551_vm5, %v2634_v11, %v8513_v4  ;;  %567 = vrot.lane.b32.xlu2 %v7850_v23, %s11773_s26  ;;  %2573 = vst [vmem:[#allocation2 + $0x420] sm:$0xf] %v2547_v62  ;;  %v11788_v62 = vld [vmem:[#allocation40_spill] sm:$0xff] }
 0x262   : > { %2683 = vst [vmem:[#allocation2 + $0x438] sm:$0xf0] %v2657_v55  ;;  %1912 = vrot.lane.b32.xlu0 %v8089_v61, %s11545_s19  ;;  %v11785_v55 = vld [vmem:[#allocation81_spill] sm:$0xff] }
 0x263   : > { %v8902_v44 = vpop.permute.xlu2 %1814 }
 0x266   : > { %773 = vrot.lane.b32.xlu1 %v7911_v53, %s11775_s17  ;;  %v2527_v23 = vpop.permute.xlu0 %2526 }
 0x267   : > { %v2549_v53 = vsel %vm2544_vm15, %v8820_v57, %v2527_v23  ;;  %v2550_v29 = vsel %vm2544_vm15, %v2527_v23, %v8511_v0 }
 0x268   : > { %v8904_v28 = vpop.permute.xlu1 %2639  ;;  %2575 = vst [vmem:[#allocation2 + $0x430] sm:$0xf] %v2549_v53 }
 0x269   : > { %v2659_v4 = vsel %vm11551_vm5, %v8555_v18, %v8904_v28  ;;  %1299 = vrot.lane.b32.xlu2 %v8024_v46, %s11776_s16  ;;  %2576 = vst [vmem:[#allocation2 + $0x438] sm:$0xf] %v2550_v29 }
 0x26a   : > { %2685 = vst [vmem:[#allocation2 + $0x448] sm:$0xf0] %v2659_v4  ;;  %2218 = vrot.lane.b32.xlu0 %v8481_v25, %s11543_s28  ;;  %v11780_v25 = vld [vmem:[#allocation70_spill] sm:$0xff]  ;;  %s11787_s28 = smov 124  }
 0x26b   : > { %v2740_v51 = vpop.permute.xlu2 %2739  ;;  %v11789_v4 = vld [vmem:[#allocation138_spill] sm:$0xff] }
 0x26c   : > { %v2762_v18 = vsel %vm11569_vm4, %v2738_v1, %v2740_v51  ;;  %v2763_v54 = vsel %vm11569_vm4, %v2740_v51, %v8520_v3 }
 0x26d   : > { %2788 = vst [vmem:[#allocation2 + $0x498] sm:$0xf] %v2762_v18  ;;  %v11790_v18 = vld [vmem:[#allocation71_spill] sm:$0xff] }
 0x26e   : > { %1402 = vrot.lane.b32.xlu1 %v8045_v59, %s11777_s27  ;;  %2789 = vst [vmem:[#allocation2 + $0x4a0] sm:$0xf] %v2763_v54  ;;  %v2632_v0 = vpop.permute.xlu0 %2631  ;;  %v11791_v54 = vld [vmem:[#allocation46_spill] sm:$0xff] }
 0x26f   : > { %v2655_v3 = vsel %vm11551_vm5, %v2630_v10, %v2632_v0  ;;  %v2656_v57 = vsel %vm11551_vm5, %v2632_v0, %v2634_v11  ;;  %v11784_v11 = vld [vmem:[#allocation150_spill] sm:$0xff] }
 0x270   : > { %v2736_v8 = vpop.permute.xlu1 %2735  ;;  %2681 = vst [vmem:[#allocation2 + $0x428] sm:$0xf0] %v2655_v3 }
 0x271   : > { %v2760_v46 = vsel %vm11569_vm4, %v2734_v9, %v2736_v8  ;;  %v2761_v59 = vsel %vm11569_vm4, %v2736_v8, %v2738_v1  ;;  %1404 = vrot.lane.b32.xlu2 %v8172_v16, %s11777_s27  ;;  %2682 = vst [vmem:[#allocation2 + $0x430] sm:$0xf0] %v2656_v57  ;;  %v11794_v57 = vld [vmem:[#allocation79_spill] sm:$0xff] }
 0x272   : > { %2786 = vst [vmem:[#allocation2 + $0x488] sm:$0xf] %v2760_v46  ;;  %2964 = vrot.lane.b32.xlu0 %v2939_v56, %s11549_s21  ;;  %v11793_v46 = vld [vmem:[#allocation55_spill] sm:$0xff] }
 0x273   : > { %2787 = vst [vmem:[#allocation2 + $0x490] sm:$0xf] %v2761_v59  ;;  %v8932_v24 = vpop.permute.xlu2 %2017 }
 0x276   : > { %1506 = vrot.lane.b32.xlu1 %v8217_v47, %s11778_s22  ;;  %v2626_v16 = vpop.permute.xlu0 %2625 }
 0x277   : > { %v2653_v47 = vsel %vm11551_vm5, %v2626_v16, %v8879_v58  ;;  %v11781_v58 = vld [vmem:[#allocation23_spill] sm:$0xff] }
 0x278   : > { %v2732_v45 = vpop.permute.xlu1 %2731  ;;  %2679 = vst [vmem:[#allocation2 + $0x418] sm:$0xf0] %v2653_v47 }
 0x279   : > { %v2759_v61 = vsel %vm11569_vm4, %v2732_v45, %v2734_v9  ;;  %1607 = vrot.lane.b32.xlu2 %v8061_v27, %s11779_s25 }
 0x27a   : > { %2785 = vst [vmem:[#allocation2 + $0x480] sm:$0xf] %v2759_v61  ;;  %670 = vrot.lane.b32.xlu0 %v11781_v58, %s11774_s18 }
 0x27b   : > { %v8942_v35 = vpop.permute.xlu2 %2838 }
 0x27e   : > { %2962 = vrot.lane.b32.xlu1 %v2938_v26, %s11549_s21  ;;  %v2624_v27 = vpop.permute.xlu0 %2623  ;;  %v11795_v26 = vld [vmem:[#allocation106_spill] sm:$0xff]  ;;  %s11798_s21 = smov 106  }
 0x27f   : > { %v2652_v10 = vsel %vm11551_vm5, %v2624_v27, %v2626_v16  ;;  %v11797_v16 = vld [vmem:[#allocation53_spill] sm:$0xff]  ;;  %vm3275_vm5 = vcmask 1041408  }
 0x280   : > { %v2730_v48 = vpop.permute.xlu1 %2729  ;;  %2678 = vst [vmem:[#allocation2 + $0x410] sm:$0xf0] %v2652_v10 }
 0x281   : > { %v2758_v37 = vsel %vm11569_vm4, %v2730_v48, %v2732_v45  ;;  %1297 = vrot.lane.b32.xlu2 %v8017_v12, %s11776_s16  ;;  %v11782_v12 = vld [vmem:[#allocation72_spill] sm:$0xff]  ;;  %v11799_v48 = vld [vmem:[#allocation58_spill] sm:$0xff] }
 0x282   : > { %2784 = vst [vmem:[#allocation2 + $0x478] sm:$0xf] %v2758_v37  ;;  %1301 = vrot.lane.b32.xlu0 %v11785_v55, %s11776_s16 }
 0x283   : > { %v2837_v2 = vpop.permute.xlu2 %2836 }
 0x284   : > { %v2865_v41 = vsel %vm2864_vm12, %v2837_v2, %v8942_v35 }
 0x285   : > { %2891 = vst [vmem:[#allocation2 + $0x478] sm:$0xf0] %v2865_v41 }
 0x286   : > { %1502 = vrot.lane.b32.xlu1 %v11780_v25, %s11778_s22  ;;  %v8959_v52 = vpop.permute.xlu0 %1914 }
 0x288   : > { %v1813_v31 = vpop.permute.xlu1 %1812 }
 0x289   : > { %v1832_v1 = vsel %vm1824_vm11, %v1813_v31, %v8902_v44  ;;  %1605 = vrot.lane.b32.xlu2 %v11782_v12, %s11779_s25  ;;  %v11801_v12 = vld [vmem:[#allocation75_spill] sm:$0xff] }
 0x28a   : > { %1857 = vst [vmem:[#allocation2 + $0x2a8] sm:$0xf0] %v1832_v1  ;;  %1504 = vrot.lane.b32.xlu0 %v11790_v18, %s11778_s22  ;;  %v11800_v1 = vld [vmem:[#allocation68_spill] sm:$0xff] }
 0x28b   : > { %v8963_v63 = vpop.permute.xlu2 %2852 }
 0x28c   : > { %v2872_v22 = vsel %vm2864_vm12, %v11784_v11, %v8963_v63 }
 0x28d   : > { %2898 = vst [vmem:[#allocation2 + $0x4b0] sm:$0xf0] %v2872_v22 }
 0x28e   : > { %1808 = vrot.lane.b32.xlu1 %v11783_v6, %s11547_s20  ;;  %v8974_v60 = vpop.permute.xlu0 %2745  ;;  %s11796_s20 = smov 107  }
 0x28f   : > { %v2765_v23 = vsel %vm11569_vm4, %v11789_v4, %v8974_v60 }
 0x290   : > { %v8965_v9 = vpop.permute.xlu1 %2844  ;;  %2791 = vst [vmem:[#allocation2 + $0x4b0] sm:$0xf] %v2765_v23 }
 0x291   : > { %1910 = vrot.lane.b32.xlu2 %v11786_v17, %s11545_s19  ;;  %s11792_s19 = smov 108  }
 0x292   : > { %1609 = vrot.lane.b32.xlu0 %v11795_v26, %s11779_s25  ;;  %v3142_v26 = vld [vmem:[#allocation2 + $0x418] sm:$0xff] }
 0x293   : > { %v2945_v53 = vpop.permute.xlu2 %2944 }
 0x296   : > { %889 = vrot.lane.b32.xlu1 %v11788_v62, %s11787_s28  ;;  %v2843_v8 = vpop.permute.xlu0 %2842  ;;  %v11803_v62 = vld [vmem:[#allocation117_spill] sm:$0xff] }
 0x297   : > { %v2868_v59 = vsel %vm2864_vm12, %v2843_v8, %v8965_v9 }
 0x298   : > { %v8981_v29 = vpop.permute.xlu1 %1916  ;;  %2894 = vst [vmem:[#allocation2 + $0x490] sm:$0xf0] %v2868_v59  ;;  %v3141_v59 = vld [vmem:[#allocation2 + $0x410] sm:$0xff] }
 0x299   : > { %v1934_v51 = vsel %vm11567_vm7, %v8959_v52, %v8981_v29  ;;  %891 = vrot.lane.b32.xlu2 %v11791_v54, %s11787_s28 }
 0x29a   : > { %1959 = vst [vmem:[#allocation2 + $0x310] sm:$0xf] %v1934_v51  ;;  %1400 = vrot.lane.b32.xlu0 %v11800_v1, %s11777_s27  ;;  %v3115_v1 = vld [vmem:[#allocation2 + $0x340] sm:$0xff] }
 0x29b   : > { %v8994_v0 = vpop.permute.xlu2 %672 }
 0x29c   : > { %v698_v45 = vsel %vm11584_vm1, %v8994_v0, %v11794_v57 }
 0x29d   : > { %723 = vst [vmem:[#allocation2 + $0x70] sm:$0xf] %v698_v45  ;;  %v11807_v45 = vld [vmem:[#allocation149_spill] sm:$0xff] }
 0x29e   : > { %994 = vrot.lane.b32.xlu1 %v11793_v46, %s11792_s19  ;;  %v9007_v47 = vpop.permute.xlu0 %2019 }
 0x29f   : > { %v2037_v56 = vsel %vm11568_vm6, %v8932_v24, %v9007_v47 }
 0x2a0   : > { %v8996_v3 = vpop.permute.xlu1 %2946  ;;  %2062 = vst [vmem:[#allocation2 + $0x310] sm:$0xf0] %v2037_v56 }
 0x2a1   : > { %v2972_v61 = vsel %vm11565_vm14, %v2945_v53, %v8996_v3  ;;  %1094 = vrot.lane.b32.xlu2 %v11797_v16, %s11796_s20 }
 0x2a2   : > { %2998 = vst [vmem:[#allocation2 + $0x4e8] sm:$0xf] %v2972_v61 }
 0x2a3   : > { %v9014_v37 = vpop.permute.xlu2 %1810 }
 0x2a4   : > { %v1831_v27 = vsel %vm1824_vm11, %v9014_v37, %v1813_v31  ;;  %v11802_v31 = vld [vmem:[#allocation158_spill] sm:$0xff] }
 0x2a5   : > { %1856 = vst [vmem:[#allocation2 + $0x2a0] sm:$0xf0] %v1831_v27 }
 0x2a6   : > { %1197 = vrot.lane.b32.xlu1 %v11799_v48, %s11798_s21  ;;  %v2841_v6 = vpop.permute.xlu0 %2840 }
 0x2a7   : > { %v2866_v11 = vsel %vm2864_vm12, %v8942_v35, %v2841_v6  ;;  %v2867_v22 = vsel %vm2864_vm12, %v2841_v6, %v2843_v8  ;;  %v11805_v35 = vld [vmem:[#allocation108_spill] sm:$0xff] }
 0x2a8   : > { %v2943_v25 = vpop.permute.xlu1 %2942  ;;  %2892 = vst [vmem:[#allocation2 + $0x480] sm:$0xf0] %v2866_v11  ;;  %1705 = vrot.lane.b32.xlu0 %v11805_v35, %s11554_s24  ;;  %s11809_s24 = smov 68   ;;  %v3103_v11 = vld [vmem:[#allocation2 + $0x2e0] sm:$0xff] }
 0x2a9   : > { %v2971_v10 = vsel %vm11565_vm14, %v2943_v25, %v2945_v53  ;;  %v3168_v2 = vld [vmem:[#allocation2 + $0x4e8] sm:$0xf]  ;;  %1199 = vrot.lane.b32.xlu2 %v11801_v12, %s11798_s21  ;;  %2893 = vst [vmem:[#allocation2 + $0x488] sm:$0xf0] %v2867_v22  ;;  %v11804_v53 = vld [vmem:[#allocation83_spill] sm:$0xff]  ;;  %v11808_v25 = vld [vmem:[#allocation125_spill] sm:$0xff] }
 0x2aa   : > { %2997 = vst [vmem:[#allocation2 + $0x4e0] sm:$0xf] %v2971_v10  ;;  %v3259_v41 = vpack.c.bf16 %v3168_v2, %v3168_v2  ;;  %v3128_v2 = vld [vmem:[#allocation2 + $0x3a8] sm:$0xff]  ;;  %v2937_v35 = vld.sshfl [vmem:[#allocation1 + $0x8] sm:$0xff pattern:$0x75316420] }
 0x2ab   : > { %v2116_v55 = vpop.permute.xlu2 %2115  ;;  %v3232_v12 = vpack.c.bf16 %v3128_v2, %v3115_v1 }
 0x2ac   : > { %v3280_v58 = vsel %vm3275_vm5, %v3259_v41, 0  ;;  %v2136_v17 = vsel %vm11560_vm8, %v8784_v50, %v2116_v55  ;;  %v2137_v4 = vsel %vm11560_vm8, %v2116_v55, %v11803_v62  ;;  %v3154_v50 = vld [vmem:[#allocation2 + $0x478] sm:$0xff]  ;;  %vm11829_vm8 = vcmask 850944  }
 0x2ad   : > { %3329 = vmatpush.bf16.msra.mxu1 %v3280_v58  ;;  %2161 = vst [vmem:[#allocation2 + $0x360] sm:$0xf] %v2136_v17  ;;  %v3245_v56 = vpack.c.bf16 %v3154_v50, %v3141_v59  ;;  %v3116_v58 = vld [vmem:[#allocation2 + $0x348] sm:$0xff]  ;;  %v3090_v17 = vld [vmem:[#allocation2 + $0x278] sm:$0xff] }
 0x2ae   : > { %2540 = vrot.lane.b32.xlu1 %v11802_v31, %s11552_s23  ;;  %2162 = vst [vmem:[#allocation2 + $0x368] sm:$0xf] %v2137_v4  ;;  %v2847_v46 = vpop.permute.xlu0 %2846  ;;  %s11806_s23 = smov 46   ;;  %v3102_v31 = vld [vmem:[#allocation2 + $0x2d8] sm:$0xff] }
 0x2af   : > { %v2869_v57 = vsel %vm2864_vm12, %v8965_v9, %v2847_v46  ;;  %v2870_v61 = vsel %vm2864_vm12, %v2847_v46, %v11807_v45  ;;  %v3155_v16 = vld [vmem:[#allocation2 + $0x480] sm:$0xff]  ;;  %v3129_v9 = vld [vmem:[#allocation2 + $0x3b0] sm:$0xff]  ;;  %v11812_v46 = vld [vmem:[#allocation48_spill] sm:$0xff] }
 0x2b0   : > { %v570_v23 = vpop.permute.xlu1 %569  ;;  %2895 = vst [vmem:[#allocation2 + $0x498] sm:$0xf0] %v2869_v57  ;;  %v3246_v27 = vpack.c.bf16 %v3155_v16, %v3142_v26  ;;  %v3233_v6 = vpack.c.bf16 %v3129_v9, %v3116_v58  ;;  %v3050_v59 = vld [vmem:[#allocation2 + $0x138] sm:$0xff]  ;;  %v3051_v57 = vld [vmem:[#allocation2 + $0x140] sm:$0xff]  ;;  %v11815_v9 = vld [vmem:[#allocation131_spill] sm:$0xff] }
 0x2b1   : > { %v595_v51 = vsel %vm11587_vm0, %v570_v23, %v11804_v53  ;;  %v3167_v18 = vld [vmem:[#allocation2 + $0x4e0] sm:$0xf]  ;;  %2645 = vrot.lane.b32.xlu2 %v8684_v21, %s11556_s15  ;;  %2896 = vst [vmem:[#allocation2 + $0x4a0] sm:$0xf0] %v2870_v61  ;;  %s11811_s15 = smov 45   ;;  %v3220_v53 = vpack.c.bf16 %v3103_v11, %v3090_v17  ;;  %v3037_v61 = vld [vmem:[#allocation2 + $0xd0] sm:$0xff] }
 0x2b2   : > { %v3258_v54 = vpack.c.bf16 %v3167_v18, %v3167_v18  ;;  %620 = vst [vmem:[#allocation2 + $0x8] sm:$0xf0] %v595_v51  ;;  %3330 = vmatpush.bf16.msra.mxu1 %v3246_v27  ;;  %v3076_v18 = vld [vmem:[#allocation2 + $0x208] sm:$0xff]  ;;  %v3193_v27 = vpack.c.bf16 %v3050_v59, %v3037_v61  ;;  %v3130_v11 = vld [vmem:[#allocation2 + $0x3b8] sm:$0xff]  ;;  %v3131_v61 = vld [vmem:[#allocation2 + $0x3c0] sm:$0xff] }
 0x2b3   : > { %v2424_v48 = vpop.permute.xlu2 %2423  ;;  %v3156_v58 = vld [vmem:[#allocation2 + $0x488] sm:$0xff] }
 0x2b4   : > { %v3277_v8 = vsel %vm3275_vm5, %v3258_v54, 0  ;;  %v2444_v21 = vsel %vm11559_vm10, %v8864_v40, %v2424_v48  ;;  %v2445_v10 = vsel %vm11559_vm10, %v2424_v48, %v11808_v25  ;;  %v11810_v40 = vld [vmem:[#allocation126_spill] sm:$0xff]  ;;  %v3077_v54 = vld [vmem:[#allocation2 + $0x210] sm:$0xff]  ;;  %v3038_v48 = vld [vmem:[#allocation2 + $0xd8] sm:$0xff]  ;;  %vm11828_vm10 = vcmask 859136  }
 0x2b5   : > { %3316 = vmatpush.bf16.msra.mxu0 %v3277_v8  ;;  %2469 = vst [vmem:[#allocation2 + $0x3c8] sm:$0xf0] %v2444_v21  ;;  %2013 = vrot.lane.b32.xlu0 %v11810_v40, %s11809_s24  ;;  %v3064_v8 = vld [vmem:[#allocation2 + $0x1a8] sm:$0xff]  ;;  %v3194_v25 = vpack.c.bf16 %v3051_v57, %v3038_v48  ;;  %v3143_v40 = vld [vmem:[#allocation2 + $0x420] sm:$0xff] }
 0x2b6   : > { %2751 = vrot.lane.b32.xlu1 %v8742_v20, %s11806_s23  ;;  %2470 = vst [vmem:[#allocation2 + $0x3d0] sm:$0xf0] %v2445_v10  ;;  %v2949_v22 = vpop.permute.xlu0 %2948  ;;  %3331 = vmatpush.bf16.msra.mxu1 %v3233_v6  ;;  %v11817_v6 = vld [vmem:[#allocation52_spill] sm:$0xff] }
 0x2b7   : > { %v2973_v55 = vsel %vm11565_vm14, %v8996_v3, %v2949_v22  ;;  %v3063_v3 = vld [vmem:[#allocation2 + $0x1a0] sm:$0xff] }
 0x2b8   : > { %v9050_v20 = vpop.permute.xlu1 %1707  ;;  %2999 = vst [vmem:[#allocation2 + $0x4f0] sm:$0xf] %v2973_v55  ;;  %v3206_v50 = vpack.c.bf16 %v3076_v18, %v3063_v3  ;;  %v11819_v55 = vld [vmem:[#allocation157_spill] sm:$0xff]  ;;  %v3157_v3 = vld [vmem:[#allocation2 + $0x490] sm:$0xff] }
 0x2b9   : > { %v1728_v41 = vsel %vm1721_vm3, %v9050_v20, %v8582_v13  ;;  %3317 = vmatpush.bf16.msra.mxu0 %v3245_v56  ;;  %2753 = vrot.lane.b32.xlu2 %v8725_v38, %s11806_s23  ;;  %v3089_v13 = vld [vmem:[#allocation2 + $0x270] sm:$0xff] }
 0x2ba   : > { %1753 = vst [vmem:[#allocation2 + $0x2a0] sm:$0xf] %v1728_v41  ;;  %v3219_v4 = vpack.c.bf16 %v3102_v31, %v3089_v13  ;;  %3332 = vmatpush.bf16.msra.mxu1 %v3220_v53  ;;  %v3247_v31 = vpack.c.bf16 %v3156_v58, %v3143_v40  ;;  %v3117_v53 = vld [vmem:[#allocation2 + $0x350] sm:$0xff]  ;;  %v3039_v58 = vld [vmem:[#allocation2 + $0xe0] sm:$0xff] }
 0x2bb   : > { %v568_v62 = vpop.permute.xlu2 %567  ;;  %v3173_v40 = vld [vmem:[#allocation2 + $0x510] sm:$0xf] }
 0x2bc   : > { %v594_v51 = vsel %vm11587_vm0, %v568_v62, %v570_v23  ;;  %v3207_v23 = vpack.c.bf16 %v3077_v54, %v3064_v8  ;;  %v3234_v54 = vpack.c.bf16 %v3130_v11, %v3117_v53  ;;  %v11821_v8 = vld [vmem:[#allocation161_spill] sm:$0xff] }
 0x2bd   : > { %3318 = vmatpush.bf16.msra.mxu0 %v3232_v12  ;;  %619 = vst [vmem:[#allocation2] sm:$0xf0] %v594_v51  ;;  %992 = vrot.lane.b32.xlu0 %v11812_v46, %s11792_s19  ;;  %v11816_v12 = vld [vmem:[#allocation63_spill] sm:$0xff]  ;;  %v3144_v46 = vld [vmem:[#allocation2 + $0x428] sm:$0xff] }
 0x2be   : > { %2860 = vrot.lane.b32.xlu1 %v8807_v19, %s11811_s15  ;;  %v2951_v45 = vpop.permute.xlu0 %2950  ;;  %3333 = vmatpush.bf16.msra.mxu1 %v3207_v23  ;;  %v11822_v23 = vld [vmem:[#allocation84_spill] sm:$0xff]  ;;  %v3248_v57 = vpack.c.bf16 %v3157_v3, %v3144_v46 }
 0x2bf   : > { %v2974_v26 = vsel %vm11565_vm14, %v2949_v22, %v2951_v45  ;;  %v3169_v16 = vld [vmem:[#allocation2 + $0x4f0] sm:$0xf]  ;;  %v11818_v22 = vld [vmem:[#allocation77_spill] sm:$0xff] }
 0x2c0   : > { %v9064_v38 = vpop.permute.xlu1 %2015  ;;  %3000 = vst [vmem:[#allocation2 + $0x4f8] sm:$0xf] %v2974_v26  ;;  %v3260_v21 = vpack.c.bf16 %v3169_v16, %v3169_v16  ;;  %v11823_v26 = vld [vmem:[#allocation100_spill] sm:$0xff] }
 0x2c1   : > { %v2036_v19 = vsel %vm11568_vm6, %v9064_v38, %v8932_v24  ;;  %3319 = vmatpush.bf16.msra.mxu0 %v3219_v4  ;;  %2960 = vrot.lane.b32.xlu2 %v2937_v35, %s11813_s0  ;;  %v11814_v24 = vld [vmem:[#allocation45_spill] sm:$0xff]  ;;  %v3104_v35 = vld [vmem:[#allocation2 + $0x2e8] sm:$0xff]  ;;  %v11824_v16 = vld [vmem:[#allocation144_spill] sm:$0xff] }
 0x2c2   : > { %2061 = vst [vmem:[#allocation2 + $0x308] sm:$0xf0] %v2036_v19  ;;  %v3283_v1 = vsel %vm3275_vm5, %v3260_v21, 0  ;;  %3334 = vmatpush.bf16.msra.mxu1 %v3194_v25  ;;  %v3065_v21 = vld [vmem:[#allocation2 + $0x1b0] sm:$0xff]  ;;  %v3118_v25 = vld [vmem:[#allocation2 + $0x358] sm:$0xff] }
 0x2c3   : > { %v9075_v56 = vpop.permute.xlu2 %1299  ;;  %3342 = vmatpush.bf16.msra.mxu2 %v3283_v1  ;;  %v3105_v1 = vld [vmem:[#allocation2 + $0x2f0] sm:$0xff] }
 0x2c5   : > { %3320 = vmatpush.bf16.msra.mxu0 %v3206_v50  ;;  %1096 = vrot.lane.b32.xlu0 %v11816_v12, %s11796_s20  ;;  %v3091_v50 = vld [vmem:[#allocation2 + $0x280] sm:$0xff]  ;;  %v3092_v12 = vld [vmem:[#allocation2 + $0x288] sm:$0xff] }
 0x2c6   : > { %990 = vrot.lane.b32.xlu1 %v11814_v24, %s11792_s19  ;;  %v3221_v59 = vpack.c.bf16 %v3104_v35, %v3091_v50  ;;  %v3078_v24 = vld [vmem:[#allocation2 + $0x218] sm:$0xff]  ;;  %v3053_v50 = vld [vmem:[#allocation2 + $0x150] sm:$0xff] }
 0x2c7   : > { %3343 = vmatpush.bf16.msra.mxu2 %v3247_v31  ;;  %v3170_v62 = vld [vmem:[#allocation2 + $0x4f8] sm:$0xf] }
 0x2c8   : > { %v2321_v10 = vpop.permute.xlu1 %2320  ;;  %v3261_v51 = vpack.c.bf16 %v3170_v62, %v3170_v62 }
 0x2c9   : > { %v2341_v2 = vsel %vm2336_vm13, %v8814_v32, %v2321_v10  ;;  %v2342_v41 = vsel %vm2336_vm13, %v2321_v10, %v11815_v9  ;;  %3321 = vmatpush.bf16.msra.mxu0 %v3193_v27  ;;  %1092 = vrot.lane.b32.xlu2 %v11817_v6, %s11796_s20  ;;  %v2953_v32 = vpop.permute.xlu0 %2952  ;;  %v3235_v9 = vpack.c.bf16 %v3131_v61, %v3118_v25  ;;  %v11826_v6 = vld [vmem:[#allocation160_spill] sm:$0xff]  ;;  %v3147_v61 = vld [vmem:[#allocation2 + $0x440] sm:$0xff] }
 0x2ca   : > { %2366 = vst [vmem:[#allocation2 + $0x3c8] sm:$0xf] %v2341_v2  ;;  %v2975_v13 = vsel %vm11565_vm14, %v2951_v45, %v2953_v32  ;;  %v2976_v17 = vsel %vm11565_vm14, %v2953_v32, %v11819_v55  ;;  %v3286_v19 = vsel %vm3275_vm5, %v3261_v51, 0  ;;  %v3208_v2 = vpack.c.bf16 %v3078_v24, %v3065_v21  ;;  %v3079_v55 = vld [vmem:[#allocation2 + $0x220] sm:$0xff]  ;;  %v3014_v21 = vld [vmem:[#allocation2 + $0x18] sm:$0xff] }
 0x2cb   : > { %2367 = vst [vmem:[#allocation2 + $0x3d0] sm:$0xf] %v2342_v41  ;;  %v9091_v4 = vpop.permute.xlu2 %1404  ;;  %3344 = vmatpush.bf16.msra.mxu2 %v3234_v54  ;;  %3355 = vmatpush.bf16.msra.mxu3 %v3286_v19  ;;  %v3052_v41 = vld [vmem:[#allocation2 + $0x148] sm:$0xff]  ;;  %v3222_v32 = vpack.c.bf16 %v3105_v1, %v3092_v12  ;;  %v3066_v54 = vld [vmem:[#allocation2 + $0x1b8] sm:$0xff]  ;;  %v3027_v25 = vld [vmem:[#allocation2 + $0x80] sm:$0xff] }
 0x2cc   : > { %3001 = vst [vmem:[#allocation2 + $0x500] sm:$0xf] %v2975_v13  ;;  %v3195_v31 = vpack.c.bf16 %v3052_v41, %v3039_v58  ;;  %v3026_v13 = vld [vmem:[#allocation2 + $0x78] sm:$0xff] }
 0x2cd   : > { %3002 = vst [vmem:[#allocation2 + $0x508] sm:$0xf] %v2976_v17  ;;  %2538 = vrot.lane.b32.xlu0 %v11821_v8, %s11820_s29  ;;  %v11827_v17 = vld [vmem:[#allocation91_spill] sm:$0xff]  ;;  %v3134_v1 = vld [vmem:[#allocation2 + $0x3d8] sm:$0xff] }
 0x2ce   : > { %1295 = vrot.lane.b32.xlu1 %v11818_v22, %s11776_s16  ;;  %v3013_v22 = vld [vmem:[#allocation2 + $0x10] sm:$0xff] }
 0x2cf   : > { %3345 = vmatpush.bf16.msra.mxu2 %v3221_v59  ;;  %3356 = vmatpush.bf16.msra.mxu3 %v3248_v57  ;;  %v3182_v3 = vpack.c.bf16 %v3026_v13, %v3013_v22  ;;  %v3040_v57 = vld [vmem:[#allocation2 + $0xe8] sm:$0xff]  ;;  %v3159_v22 = vld [vmem:[#allocation2 + $0x4a0] sm:$0xff]  ;;  %v11832_v13 = vld [vmem:[#allocation39_spill] sm:$0xff] }
 0x2d0   : > { %v9093_v18 = vpop.permute.xlu1 %2966  ;;  %v3196_v24 = vpack.c.bf16 %v3053_v50, %v3040_v57 }
 0x2d1   : > { %1398 = vrot.lane.b32.xlu2 %v11822_v23, %s11777_s27  ;;  %v9100_v45 = vpop.permute.xlu0 %2958  ;;  %v3160_v23 = vld [vmem:[#allocation2 + $0x4a8] sm:$0xff] }
 0x2d2   : > { %v2978_v48 = vsel %vm11565_vm14, %v11824_v16, %v9100_v45 }
 0x2d3   : > { %v9107_v27 = vpop.permute.xlu2 %1607  ;;  %3004 = vst [vmem:[#allocation2 + $0x518] sm:$0xf] %v2978_v48  ;;  %3346 = vmatpush.bf16.msra.mxu2 %v3208_v2  ;;  %3357 = vmatpush.bf16.msra.mxu3 %v3235_v9  ;;  %v3251_v48 = vpack.c.bf16 %v3160_v23, %v3147_v61  ;;  %v11830_v2 = vld [vmem:[#allocation18_spill] sm:$0xff]  ;;  %v3095_v23 = vld [vmem:[#allocation2 + $0x2a0] sm:$0xff] }
 0x2d4   : > { %v3172_v59 = vld [vmem:[#allocation2 + $0x508] sm:$0xf]  ;;  %v3135_v61 = vld [vmem:[#allocation2 + $0x3e0] sm:$0xff] }
 0x2d5   : > { %2647 = vrot.lane.b32.xlu0 %v8670_v43, %s11825_s14  ;;  %v3264_v43 = vpack.c.bf16 %v3173_v40, %v3173_v40 }
 0x2d6   : > { %1603 = vrot.lane.b32.xlu1 %v11823_v26, %s11779_s25 }
 0x2d7   : > { %3347 = vmatpush.bf16.msra.mxu2 %v3195_v31  ;;  %3358 = vmatpush.bf16.msra.mxu3 %v3222_v32  ;;  %v3295_v46 = vsel %vm3275_vm5, %v3264_v43, 0  ;;  %v3183_v31 = vpack.c.bf16 %v3027_v25, %v3014_v21  ;;  %v3121_v32 = vld [vmem:[#allocation2 + $0x370] sm:$0xff] }
 0x2d8   : > { %v774_v10 = vpop.permute.xlu1 %773 }
 0x2d9   : > { %2536 = vrot.lane.b32.xlu2 %v11826_v6, %s11820_s29  ;;  %v776_v11 = vpop.permute.xlu0 %775 }
 0x2da   : > { %v801_v62 = vsel %vm11570_vm2, %v776_v11, %v11827_v17  ;;  %v800_v53 = vsel %vm11570_vm2, %v774_v10, %v776_v11  ;;  %v3174_v26 = vld [vmem:[#allocation2 + $0x518] sm:$0xf]  ;;  %v3263_v10 = vpack.c.bf16 %v3172_v59, %v3172_v59  ;;  %v3238_v11 = vpack.c.bf16 %v3134_v1, %v3121_v32  ;;  %v3096_v1 = vld [vmem:[#allocation2 + $0x2a8] sm:$0xff] }
 0x2db   : > { %v9118_v51 = vpop.permute.xlu2 %1297  ;;  %826 = vst [vmem:[#allocation2 + $0x70] sm:$0xf0] %v801_v62  ;;  %3348 = vmatpush.bf16.msra.mxu2 %v3182_v3  ;;  %v3265_v12 = vpack.c.bf16 %v3174_v26, %v3174_v26  ;;  %v3146_v17 = vld [vmem:[#allocation2 + $0x438] sm:$0xff]  ;;  %v3161_v62 = vld [vmem:[#allocation2 + $0x4b0] sm:$0xff] }
 0x2dc   : > { %v1318_v19 = vsel %vm11828_vm10, %v9118_v51, %v9075_v56  ;;  %825 = vst [vmem:[#allocation2 + $0x68] sm:$0xf0] %v800_v53  ;;  %v3250_v43 = vpack.c.bf16 %v3159_v22, %v3146_v17  ;;  %v11833_v53 = vld [vmem:[#allocation30_spill] sm:$0xff]  ;;  %v11834_v3 = vld [vmem:[#allocation35_spill] sm:$0xff] }
 0x2dd   : > { %1343 = vst [vmem:[#allocation2 + $0x1d0] sm:$0xf] %v1318_v19  ;;  %2858 = vrot.lane.b32.xlu0 %v8774_v34, %s11811_s15  ;;  %v3012_v34 = vld [vmem:[#allocation2 + $0x8] sm:$0xff]  ;;  %v11836_v26 = vld [vmem:[#allocation155_spill] sm:$0xff] }
 0x2de   : > { %2749 = vrot.lane.b32.xlu1 %v8735_v49, %s11806_s23  ;;  %v3209_v49 = vpack.c.bf16 %v3079_v55, %v3066_v54  ;;  %v3298_v55 = vsel %vm3275_vm5, %v3265_v12, 0  ;;  %v3148_v19 = vld [vmem:[#allocation2 + $0x448] sm:$0xff] }
 0x2df   : > { %3394 = vmatpush.bf16.msrb.mxu2 %v3295_v46  ;;  %v3252_v46 = vpack.c.bf16 %v3161_v62, %v3148_v19  ;;  %v11845_v62 = vld [vmem:[#allocation146_spill] sm:$0xff]  ;;  %v11846_v19 = vld [vmem:[#allocation164_spill] sm:$0xff] }
 0x2e0   : > { %v9123_v35 = vpop.permute.xlu1 %1402  ;;  %3359 = vmatpush.bf16.msra.mxu3 %v3209_v49 }
 0x2e1   : > { %v1422_v8 = vsel %vm11829_vm8, %v9123_v35, %v9091_v4  ;;  %2856 = vrot.lane.b32.xlu2 %v8772_v39, %s11811_s15  ;;  %v1913_v16 = vpop.permute.xlu0 %1912  ;;  %vm11831_vm8 = vcmask 711680  }
 0x2e2   : > { %1447 = vst [vmem:[#allocation2 + $0x1d8] sm:$0xf0] %v1422_v8  ;;  %v1933_v9 = vsel %vm11567_vm7, %v1913_v16, %v8959_v52  ;;  %v3025_v41 = vld [vmem:[#allocation2 + $0x70] sm:$0xff]  ;;  %v3292_v52 = vsel %vm3275_vm5, %v3263_v10, 0 }
 0x2e3   : > { %v9137_v58 = vpop.permute.xlu2 %1605  ;;  %1958 = vst [vmem:[#allocation2 + $0x308] sm:$0xf] %v1933_v9  ;;  %3395 = vmatpush.bf16.msrb.mxu2 %v3251_v48  ;;  %v3181_v39 = vpack.c.bf16 %v3025_v41, %v3012_v34  ;;  %v11835_v8 = vld [vmem:[#allocation123_spill] sm:$0xff]  ;;  %v11838_v34 = vld [vmem:[#allocation37_spill] sm:$0xff] }
 0x2e4   : > { %3360 = vmatpush.bf16.msra.mxu3 %v3196_v24  ;;  %v1626_v40 = vsel %vm11831_vm8, %v9137_v58, %v9107_v27  ;;  %v3109_v9 = vld [vmem:[#allocation2 + $0x310] sm:$0xff]  ;;  %vm11851_vm8 = vcmask 1014784  }
 0x2e5   : > { %1651 = vst [vmem:[#allocation2 + $0x238] sm:$0xf0] %v1626_v40  ;;  %3335 = vmatpush.bf16.msra.mxu1 %v3181_v39  ;;  %887 = vrot.lane.b32.xlu0 %v11832_v13, %s11787_s28  ;;  %v3226_v12 = vpack.c.bf16 %v3109_v9, %v3096_v1  ;;  %v11841_v13 = vld [vmem:[#allocation92_spill] sm:$0xff] }
 0x2e6   : > { %583 = vrot.lane.b32.xlu1 %v11830_v2, %s11773_s26  ;;  %v11837_v2 = vld [vmem:[#allocation57_spill] sm:$0xff] }
 0x2e7   : > { %3396 = vmatpush.bf16.msrb.mxu2 %v3238_v11 }
 0x2e8   : > { %v9142_v6 = vpop.permute.xlu1 %1506  ;;  %3361 = vmatpush.bf16.msra.mxu3 %v3183_v31 }
 0x2e9   : > { %3381 = vmatpush.bf16.msrb.mxu1 %v3292_v52  ;;  %684 = vrot.lane.b32.xlu2 %v11833_v53, %s11774_s18  ;;  %v2219_v54 = vpop.permute.xlu0 %2218  ;;  %v3133_v52 = vld [vmem:[#allocation2 + $0x3d0] sm:$0xff] }
 0x2ea   : > { %v2239_v49 = vsel %vm2234_vm9, %v8707_v33, %v2219_v54  ;;  %v2240_v50 = vsel %vm2234_vm9, %v2219_v54, %v11835_v8  ;;  %v3108_v59 = vld [vmem:[#allocation2 + $0x308] sm:$0xff]  ;;  %v3122_v33 = vld [vmem:[#allocation2 + $0x378] sm:$0xff]  ;;  %v3171_v8 = vld [vmem:[#allocation2 + $0x500] sm:$0xf] }
 0x2eb   : > { %v1911_v57 = vpop.permute.xlu2 %1910  ;;  %2264 = vst [vmem:[#allocation2 + $0x360] sm:$0xf0] %v2239_v49  ;;  %v3225_v24 = vpack.c.bf16 %v3108_v59, %v3095_v23  ;;  %v3239_v10 = vpack.c.bf16 %v3135_v61, %v3122_v33  ;;  %v3262_v23 = vpack.c.bf16 %v3171_v8, %v3171_v8  ;;  %v11850_v59 = vld [vmem:[#allocation151_spill] sm:$0xff]  ;;  %v11863_v8 = vld [vmem:[#allocation65_spill] sm:$0xff] }
 0x2ec   : > { %3407 = vmatpush.bf16.msrb.mxu3 %v3298_v55  ;;  %v1931_v48 = vsel %vm11567_vm7, %v11836_v26, %v1911_v57  ;;  %v1932_v21 = vsel %vm11567_vm7, %v1911_v57, %v1913_v16  ;;  %2265 = vst [vmem:[#allocation2 + $0x368] sm:$0xf0] %v2240_v50  ;;  %v11840_v16 = vld [vmem:[#allocation136_spill] sm:$0xff]  ;;  %v11847_v50 = vld [vmem:[#allocation165_spill] sm:$0xff]  ;;  %vm11920_vm7 = vcmask 1014784  }
 0x2ed   : > { %3382 = vmatpush.bf16.msrb.mxu1 %v3250_v43  ;;  %3397 = vmatpush.bf16.msrb.mxu2 %v3225_v24  ;;  %1956 = vst [vmem:[#allocation2 + $0x2f8] sm:$0xf] %v1931_v48  ;;  %v11843_v55 = vld [vmem:[#allocation140_spill] sm:$0xff]  ;;  %v3289_v33 = vsel %vm3275_vm5, %v3262_v23, 0 }
 0x2ee   : > { %787 = vrot.lane.b32.xlu1 %v11834_v3, %s11775_s17  ;;  %1957 = vst [vmem:[#allocation2 + $0x300] sm:$0xf] %v1932_v21  ;;  %1195 = vrot.lane.b32.xlu0 %v11837_v2, %s11798_s21  ;;  %v3145_v2 = vld [vmem:[#allocation2 + $0x430] sm:$0xff] }
 0x2f0   : > { %v9159_v25 = vpop.permute.xlu1 %2962  ;;  %3408 = vmatpush.bf16.msrb.mxu3 %v3252_v46  ;;  %v11848_v46 = vld [vmem:[#allocation147_spill] sm:$0xff] }
 0x2f1   : > { %789 = vrot.lane.b32.xlu2 %v11838_v34, %s11775_s17  ;;  %v2965_v41 = vpop.permute.xlu0 %2964  ;;  %v11853_v34 = vld [vmem:[#allocation20_spill] sm:$0xff] }
 0x2f2   : > { %v2982_v39 = vsel %vm11565_vm14, %v2965_v41, %v9093_v18  ;;  %v2981_v40 = vsel %vm11565_vm14, %v9159_v25, %v2965_v41  ;;  %v3119_v1 = vld [vmem:[#allocation2 + $0x360] sm:$0xff] }
 0x2f3   : > { %v9171_v31 = vpop.permute.xlu2 %891  ;;  %3008 = vst [vmem:[#allocation2 + $0x538] sm:$0xf] %v2982_v39  ;;  %v3120_v32 = vld [vmem:[#allocation2 + $0x368] sm:$0xff] }
 0x2f4   : > { %3409 = vmatpush.bf16.msrb.mxu3 %v3239_v10  ;;  %v3237_v22 = vpack.c.bf16 %v3133_v52, %v3120_v32  ;;  %3007 = vst [vmem:[#allocation2 + $0x530] sm:$0xf] %v2981_v40  ;;  %v3158_v10 = vld [vmem:[#allocation2 + $0x498] sm:$0xff]  ;;  %v3132_v32 = vld [vmem:[#allocation2 + $0x3c8] sm:$0xff] }
 0x2f5   : > { %v3249_v9 = vpack.c.bf16 %v3158_v10, %v3145_v2  ;;  %v11869_v2 = vld [vmem:[#allocation154_spill] sm:$0xff] }
 0x2f6   : > { %2129 = vrot.lane.b32.xlu1 %v11840_v16, %s11839_s30  ;;  %3383 = vmatpush.bf16.msrb.mxu1 %v3237_v22  ;;  %v11854_v16 = vld [vmem:[#allocation34_spill] sm:$0xff]  ;;  %v3236_v22 = vpack.c.bf16 %v3132_v32, %v3119_v1 }
 0x2f7   : > { %1500 = vrot.lane.b32.xlu0 %v11841_v13, %s11778_s22  ;;  %v11857_v13 = vld [vmem:[#allocation28_spill] sm:$0xff]  ;;  %v11872_v32 = vld [vmem:[#allocation166_spill] sm:$0xff] }
 0x2f8   : > { %v9173_v11 = vpop.permute.xlu1 %1502  ;;  %3410 = vmatpush.bf16.msrb.mxu3 %v3226_v12 }
 0x2f9   : > { %2230 = vrot.lane.b32.xlu2 %v11843_v55, %s11842_s12  ;;  %v671_v17 = vpop.permute.xlu0 %670  ;;  %v11858_v55 = vld [vmem:[#allocation41_spill] sm:$0xff] }
 0x2fa   : > { %v697_v43 = vsel %vm11584_vm1, %v671_v17, %v8994_v0 }
 0x2fb   : > { %v9183_v53 = vpop.permute.xlu2 %1094  ;;  %722 = vst [vmem:[#allocation2 + $0x68] sm:$0xf] %v697_v43 }
 0x2fe   : > { %2332 = vrot.lane.b32.xlu1 %v11845_v62, %s11844_s13  ;;  %v11859_v62 = vld [vmem:[#allocation59_spill] sm:$0xff] }
 0x2ff   : > { %2643 = vrot.lane.b32.xlu0 %v11847_v50, %s11825_s14 }
 0x300   : > { %v1809_v54 = vpop.permute.xlu1 %1808 }
 0x301   : > { %v1829_v3 = vsel %vm1824_vm11, %v11846_v19, %v1809_v54  ;;  %v1830_v49 = vsel %vm1824_vm11, %v1809_v54, %v9014_v37  ;;  %2334 = vrot.lane.b32.xlu2 %v11848_v46, %s11844_s13  ;;  %v9193_v0 = vpop.permute.xlu0 %1301  ;;  %v3011_v37 = vld [vmem:[#allocation2] sm:$0xff]  ;;  %v11864_v46 = vld [vmem:[#allocation139_spill] sm:$0xff] }
 0x302   : > { %1854 = vst [vmem:[#allocation2 + $0x290] sm:$0xf0] %v1829_v3  ;;  %v1319_v57 = vsel %vm11828_vm10, %v9075_v56, %v9193_v0  ;;  %v3024_v24 = vld [vmem:[#allocation2 + $0x68] sm:$0xff]  ;;  %v11852_v56 = vld [vmem:[#allocation21_spill] sm:$0xff]  ;;  %vm11855_vm10 = vcmask 719872  }
 0x303   : > { %1855 = vst [vmem:[#allocation2 + $0x298] sm:$0xf0] %v1830_v49  ;;  %v9200_v61 = vpop.permute.xlu2 %1199  ;;  %v3180_v26 = vpack.c.bf16 %v3024_v24, %v3011_v37  ;;  %v11862_v49 = vld [vmem:[#allocation135_spill] sm:$0xff] }
 0x304   : > { %1344 = vst [vmem:[#allocation2 + $0x1d8] sm:$0xf] %v1319_v57 }
 0x305   : > { %3322 = vmatpush.bf16.msra.mxu0 %v3180_v26 }
 0x306   : > { %2437 = vrot.lane.b32.xlu1 %v11850_v59, %s11849_s10 }
 0x307   : > { %581 = vrot.lane.b32.xlu0 %v11852_v56, %s11773_s26  ;;  %v11868_v56 = vld [vmem:[#allocation162_spill] sm:$0xff] }
 0x308   : > { %v9202_v48 = vpop.permute.xlu1 %889 }
 0x309   : > { %v909_v21 = vsel %vm11851_vm8, %v9202_v48, %v9171_v31  ;;  %3368 = vmatpush.bf16.msrb.mxu0 %v3289_v33  ;;  %579 = vrot.lane.b32.xlu2 %v11853_v34, %s11773_s26  ;;  %v1505_v41 = vpop.permute.xlu0 %1504  ;;  %vm11856_vm8 = vmmov %vm11855_vm10  ;;  %v11866_v33 = vld [vmem:[#allocation142_spill] sm:$0xff] }
 0x30a   : > { %934 = vst [vmem:[#allocation2 + $0x108] sm:$0xf] %v909_v21  ;;  %v1523_v39 = vsel %vm11855_vm10, %v9173_v11, %v1505_v41  ;;  %v1524_v12 = vsel %vm11856_vm8, %v1505_v41, %v9142_v6  ;;  %vm11860_vm10 = vcmask 711680   ;;  %vm11861_vm8 = vcmask 867328  }
 0x30b   : > { %v9218_v40 = vpop.permute.xlu2 %2645  ;;  %1548 = vst [vmem:[#allocation2 + $0x238] sm:$0xf] %v1523_v39  ;;  %v3070_v23 = vld [vmem:[#allocation2 + $0x1d8] sm:$0xff] }
 0x30c   : > { %1549 = vst [vmem:[#allocation2 + $0x240] sm:$0xf] %v1524_v12 }
 0x30d   : > { %3369 = vmatpush.bf16.msrb.mxu0 %v3249_v9 }
 0x30e   : > { %785 = vrot.lane.b32.xlu1 %v11854_v16, %s11775_s17 }
 0x30f   : > { %686 = vrot.lane.b32.xlu0 %v11857_v13, %s11774_s18  ;;  %v11873_v13 = vld [vmem:[#allocation170_spill] sm:$0xff] }
 0x310   : > { %v9220_v52 = vpop.permute.xlu1 %994 }
 0x311   : > { %3370 = vmatpush.bf16.msrb.mxu0 %v3236_v22  ;;  %885 = vrot.lane.b32.xlu2 %v11858_v55, %s11787_s28  ;;  %v9226_v17 = vpop.permute.xlu0 %1609 }
 0x312   : > { %v1627_v43 = vsel %vm11860_vm10, %v9107_v27, %v9226_v17  ;;  %vm11865_vm10 = vcmask 850944   ;;  %v3082_v34 = vld [vmem:[#allocation2 + $0x238] sm:$0xff] }
 0x313   : > { %v9233_v54 = vpop.permute.xlu2 %2753  ;;  %1652 = vst [vmem:[#allocation2 + $0x240] sm:$0xf0] %v1627_v43 }
 0x316   : > { %1090 = vrot.lane.b32.xlu1 %v11859_v62, %s11796_s20 }
 0x317   : > { %2127 = vrot.lane.b32.xlu0 %v11862_v49, %s11839_s30  ;;  %v11874_v49 = vld [vmem:[#allocation129_spill] sm:$0xff] }
 0x318   : > { %v9235_v19 = vpop.permute.xlu1 %1197 }
 0x319   : > { %v1217_v3 = vsel %vm11861_vm8, %v9235_v19, %v9200_v61  ;;  %1193 = vrot.lane.b32.xlu2 %v11863_v8, %s11798_s21  ;;  %v1401_v50 = vpop.permute.xlu0 %1400  ;;  %vm11870_vm8 = vcmask 875520  }
 0x31a   : > { %1242 = vst [vmem:[#allocation2 + $0x170] sm:$0xf0] %v1217_v3  ;;  %v1421_v27 = vsel %vm11865_vm10, %v1401_v50, %v9123_v35  ;;  %v3083_v59 = vld [vmem:[#allocation2 + $0x240] sm:$0xff] }
 0x31b   : > { %v2961_v57 = vpop.permute.xlu2 %2960  ;;  %1446 = vst [vmem:[#allocation2 + $0x1d0] sm:$0xf0] %v1421_v27  ;;  %v3213_v37 = vpack.c.bf16 %v3083_v59, %v3070_v23  ;;  %v11867_v35 = vld [vmem:[#allocation145_spill] sm:$0xff]  ;;  %v11878_v27 = vld [vmem:[#allocation110_spill] sm:$0xff] }
 0x31c   : > { %v2979_v26 = vsel %vm11565_vm14, %v9100_v45, %v2961_v57  ;;  %v2980_v21 = vsel %vm11565_vm14, %v2961_v57, %v9159_v25  ;;  %vm11881_vm14 = vcmask 883712  }
 0x31d   : > { %3005 = vst [vmem:[#allocation2 + $0x520] sm:$0xf] %v2979_v26  ;;  %3411 = vmatpush.bf16.msrb.mxu3 %v3213_v37 }
 0x31e   : > { %2228 = vrot.lane.b32.xlu1 %v11864_v46, %s11842_s12  ;;  %3006 = vst [vmem:[#allocation2 + $0x528] sm:$0xf] %v2980_v21 }
 0x31f   : > { %2232 = vrot.lane.b32.xlu0 %v11866_v33, %s11842_s12 }
 0x320   : > { %v9248_v24 = vpop.permute.xlu1 %2540 }
 0x321   : > { %2330 = vrot.lane.b32.xlu2 %v11867_v35, %s11844_s13  ;;  %v1706_v10 = vpop.permute.xlu0 %1705 }
 0x322   : > { %v1726_v9 = vsel %vm1721_vm3, %v11869_v2, %v1706_v10  ;;  %v1727_v45 = vsel %vm1721_vm3, %v1706_v10, %v9050_v20  ;;  %v3069_v25 = vld [vmem:[#allocation2 + $0x1d0] sm:$0xff]  ;;  %v11871_v20 = vld [vmem:[#allocation153_spill] sm:$0xff] }
 0x323   : > { %v9264_v41 = vpop.permute.xlu2 %1092  ;;  %1751 = vst [vmem:[#allocation2 + $0x290] sm:$0xf] %v1726_v9  ;;  %v3212_v1 = vpack.c.bf16 %v3082_v34, %v3069_v25  ;;  %v11883_v2 = vld [vmem:[#allocation49_spill] sm:$0xff]  ;;  %v11884_v9 = vld [vmem:[#allocation116_spill] sm:$0xff]  ;;  %v11886_v25 = vld [vmem:[#allocation122_spill] sm:$0xff] }
 0x324   : > { %v1113_v39 = vsel %vm11870_vm8, %v9264_v41, %v9183_v53  ;;  %1752 = vst [vmem:[#allocation2 + $0x298] sm:$0xf] %v1727_v45  ;;  %vm11875_vm8 = vmmov %vm11865_vm10 }
 0x325   : > { %3398 = vmatpush.bf16.msrb.mxu2 %v3212_v1  ;;  %1138 = vst [vmem:[#allocation2 + $0x168] sm:$0xf] %v1113_v39 }
 0x326   : > { %2534 = vrot.lane.b32.xlu1 %v11868_v56, %s11820_s29 }
 0x327   : > { %2435 = vrot.lane.b32.xlu0 %v11871_v20, %s11849_s10 }
 0x328   : > { %v9266_v16 = vpop.permute.xlu1 %2751 }
 0x329   : > { %v2769_v12 = vsel %vm11569_vm4, %v9266_v16, %v9233_v54  ;;  %2641 = vrot.lane.b32.xlu2 %v11872_v32, %s11825_s14  ;;  %v2014_v22 = vpop.permute.xlu0 %2013 }
 0x32a   : > { %2795 = vst [vmem:[#allocation2 + $0x4d0] sm:$0xf] %v2769_v12  ;;  %v2034_v55 = vsel %vm11568_vm6, %v11873_v13, %v2014_v22  ;;  %v2035_v62 = vsel %vm11568_vm6, %v2014_v22, %v9064_v38  ;;  %v11880_v38 = vld [vmem:[#allocation115_spill] sm:$0xff]  ;;  %v11888_v12 = vld [vmem:[#allocation104_spill] sm:$0xff]  ;;  %v11891_v22 = vld [vmem:[#allocation134_spill] sm:$0xff] }
 0x32b   : > { %v1399_v43 = vpop.permute.xlu2 %1398  ;;  %2059 = vst [vmem:[#allocation2 + $0x2f8] sm:$0xf0] %v2034_v55  ;;  %v3093_v57 = vld [vmem:[#allocation2 + $0x290] sm:$0xff]  ;;  %v3094_v21 = vld [vmem:[#allocation2 + $0x298] sm:$0xff]  ;;  %vm11921_vm6 = vmmov %vm11920_vm7 }
 0x32c   : > { %v1419_v8 = vsel %vm11865_vm10, %v11874_v49, %v1399_v43  ;;  %v1420_v46 = vsel %vm11875_vm8, %v1399_v43, %v1401_v50  ;;  %2060 = vst [vmem:[#allocation2 + $0x300] sm:$0xf0] %v2035_v62  ;;  %vm11882_vm10 = vmmov %vm11881_vm14  ;;  %vm11889_vm8 = vcmask 859136   ;;  %v11892_v13 = vld [vmem:[#allocation128_spill] sm:$0xff] }
 0x32d   : > { %1444 = vst [vmem:[#allocation2 + $0x1c0] sm:$0xf0] %v1419_v8 }
 0x32e   : > { %2854 = vrot.lane.b32.xlu1 %v8782_v5, %s11811_s15  ;;  %1445 = vst [vmem:[#allocation2 + $0x1c8] sm:$0xf0] %v1420_v46  ;;  %v11876_v5 = vld [vmem:[#allocation27_spill] sm:$0xff] }
 0x32f   : > { %682 = vrot.lane.b32.xlu0 %v11876_v5, %s11774_s18 }
 0x330   : > { %v9284_v3 = vpop.permute.xlu1 %2860 }
 0x331   : > { %1717 = vrot.lane.b32.xlu2 %v11878_v27, %s11877_s11  ;;  %v993_v23 = vpop.permute.xlu0 %992  ;;  %v11894_v27 = vld [vmem:[#allocation133_spill] sm:$0xff] }
 0x332   : > { %v1012_v59 = vsel %vm11881_vm14, %v993_v23, %v9220_v52  ;;  %v3106_v37 = vld [vmem:[#allocation2 + $0x2f8] sm:$0xff]  ;;  %vm11887_vm14 = vcmask 875520  }
 0x333   : > { %v9297_v26 = vpop.permute.xlu2 %2536  ;;  %1037 = vst [vmem:[#allocation2 + $0x108] sm:$0xf0] %v1012_v59  ;;  %v3223_v50 = vpack.c.bf16 %v3106_v37, %v3093_v57  ;;  %v3107_v33 = vld [vmem:[#allocation2 + $0x300] sm:$0xff]  ;;  %v11897_v59 = vld [vmem:[#allocation152_spill] sm:$0xff]  ;;  %v11898_v57 = vld [vmem:[#allocation22_spill] sm:$0xff] }
 0x334   : > { %v3224_v10 = vpack.c.bf16 %v3107_v33, %v3094_v21  ;;  %v11899_v37 = vld [vmem:[#allocation13_spill] sm:$0xff] }
 0x335   : > { %3371 = vmatpush.bf16.msrb.mxu0 %v3223_v50  ;;  %v11900_v21 = vld [vmem:[#allocation109_spill] sm:$0xff] }
 0x336   : > { %1820 = vrot.lane.b32.xlu1 %v11880_v38, %s11879_s9  ;;  %3384 = vmatpush.bf16.msrb.mxu1 %v3224_v10 }
 0x337   : > { %988 = vrot.lane.b32.xlu0 %v11883_v2, %s11792_s19  ;;  %v11902_v2 = vld [vmem:[#allocation168_spill] sm:$0xff] }
 0x338   : > { %v9299_v35 = vpop.permute.xlu1 %990 }
 0x339   : > { %v1011_v56 = vsel %vm11882_vm10, %v9299_v35, %v993_v23  ;;  %1822 = vrot.lane.b32.xlu2 %v11884_v9, %s11879_s9  ;;  %v9307_v45 = vpop.permute.xlu0 %1096  ;;  %vm11890_vm10 = vmmov %vm11889_vm8  ;;  %v11903_v9 = vld [vmem:[#allocation114_spill] sm:$0xff] }
 0x33a   : > { %1036 = vst [vmem:[#allocation2 + $0x100] sm:$0xf0] %v1011_v56  ;;  %v1114_v34 = vsel %vm11887_vm14, %v9183_v53, %v9307_v45  ;;  %v11893_v53 = vld [vmem:[#allocation14_spill] sm:$0xff]  ;;  %vm11895_vm14 = vcmask 711680  }
 0x33b   : > { %v9314_v1 = vpop.permute.xlu2 %2856  ;;  %1139 = vst [vmem:[#allocation2 + $0x170] sm:$0xf] %v1114_v34  ;;  %v3044_v49 = vld [vmem:[#allocation2 + $0x108] sm:$0xff]  ;;  %v11904_v34 = vld [vmem:[#allocation127_spill] sm:$0xff] }
 0x33e   : > { %1924 = vrot.lane.b32.xlu1 %v11886_v25, %s11885_s8 }
 0x33f   : > { %2125 = vrot.lane.b32.xlu0 %v11891_v22, %s11839_s30  ;;  %v11906_v22 = vld [vmem:[#allocation137_spill] sm:$0xff] }
 0x340   : > { %v1296_v39 = vpop.permute.xlu1 %1295 }
 0x341   : > { %v1316_v20 = vsel %vm11889_vm8, %v11888_v12, %v1296_v39  ;;  %v1317_v32 = vsel %vm11890_vm10, %v1296_v39, %v9118_v51  ;;  %2025 = vrot.lane.b32.xlu2 %v11892_v13, %s11809_s24  ;;  %v2539_v55 = vpop.permute.xlu0 %2538  ;;  %vm11896_vm8 = vmmov %vm11895_vm14  ;;  %vm527_vm10 = vcmask 519168  }
 0x342   : > { %1341 = vst [vmem:[#allocation2 + $0x1c0] sm:$0xf] %v1316_v20  ;;  %v2555_v62 = vsel %vm2544_vm15, %v9297_v26, %v2539_v55  ;;  %v2556_v43 = vsel %vm2544_vm15, %v2539_v55, %v9248_v24  ;;  %v3057_v51 = vld [vmem:[#allocation2 + $0x170] sm:$0xff]  ;;  %v11907_v55 = vld [vmem:[#allocation148_spill] sm:$0xff] }
 0x343   : > { %1342 = vst [vmem:[#allocation2 + $0x1c8] sm:$0xf] %v1317_v32  ;;  %v9330_v8 = vpop.permute.xlu2 %684  ;;  %v3200_v46 = vpack.c.bf16 %v3057_v51, %v3044_v49  ;;  %v11905_v32 = vld [vmem:[#allocation111_spill] sm:$0xff]  ;;  %v11909_v51 = vld [vmem:[#allocation121_spill] sm:$0xff] }
 0x344   : > { %2581 = vst [vmem:[#allocation2 + $0x460] sm:$0xf] %v2555_v62 }
 0x345   : > { %2582 = vst [vmem:[#allocation2 + $0x468] sm:$0xf] %v2556_v43  ;;  %3412 = vmatpush.bf16.msrb.mxu3 %v3200_v46  ;;  %v11910_v46 = vld [vmem:[#allocation156_spill] sm:$0xff] }
 0x346   : > { %577 = vrot.lane.b32.xlu1 %v11893_v53, %s11773_s26  ;;  %528 = vst.msk [vmem:[#allocation2 + $0x60] sm:$0xf] %vm527_vm10, %v11899_v37 }
 0x347   : > { %2433 = vrot.lane.b32.xlu0 %v11897_v59, %s11849_s10  ;;  %v11913_v59 = vld [vmem:[#allocation130_spill] sm:$0xff] }
 0x348   : > { %v1604_v5 = vpop.permute.xlu1 %1603 }
 0x349   : > { %v1624_v23 = vsel %vm11895_vm14, %v11894_v27, %v1604_v5  ;;  %v1625_v38 = vsel %vm11896_vm8, %v1604_v5, %v9137_v58  ;;  %680 = vrot.lane.b32.xlu2 %v11898_v57, %s11774_s18  ;;  %v9342_v50 = vpop.permute.xlu0 %2647  ;;  %vm11901_vm14 = vcmask 384000   ;;  %vm11908_vm8 = vcmask 1014784   ;;  %v11914_v57 = vld [vmem:[#allocation88_spill] sm:$0xff] }
 0x34a   : > { %1649 = vst [vmem:[#allocation2 + $0x228] sm:$0xf0] %v1624_v23  ;;  %v2663_v58 = vsel %vm11901_vm14, %v9218_v40, %v9342_v50  ;;  %vm11912_vm14 = vcmask 867328  }
 0x34b   : > { %1650 = vst [vmem:[#allocation2 + $0x230] sm:$0xf0] %v1625_v38  ;;  %v9349_v33 = vpop.permute.xlu2 %789 }
 0x34c   : > { %2689 = vst [vmem:[#allocation2 + $0x468] sm:$0xf0] %v2663_v58  ;;  %v11916_v58 = vld [vmem:[#allocation141_spill] sm:$0xff] }
 0x34e   : > { %1715 = vrot.lane.b32.xlu1 %v11900_v21, %s11877_s11  ;;  %v11915_v21 = vld [vmem:[#allocation96_spill] sm:$0xff] }
 0x34f   : > { %2747 = vrot.lane.b32.xlu0 %v11902_v2, %s11806_s23 }
 0x350   : > { %v9351_v10 = vpop.permute.xlu1 %2749 }
 0x351   : > { %v2768_v56 = vsel %vm11569_vm4, %v9351_v10, %v9266_v16  ;;  %1818 = vrot.lane.b32.xlu2 %v11903_v9, %s11879_s9  ;;  %v2859_v25 = vpop.permute.xlu0 %2858 }
 0x352   : > { %2794 = vst [vmem:[#allocation2 + $0x4c8] sm:$0xf] %v2768_v56  ;;  %v2875_v39 = vsel %vm2864_vm12, %v9314_v1, %v2859_v25  ;;  %v2876_v12 = vsel %vm2864_vm12, %v2859_v25, %v9284_v3 }
 0x353   : > { %v9366_v20 = vpop.permute.xlu2 %2230  ;;  %2901 = vst [vmem:[#allocation2 + $0x4c8] sm:$0xf0] %v2875_v39 }
 0x354   : > { %2902 = vst [vmem:[#allocation2 + $0x4d0] sm:$0xf0] %v2876_v12  ;;  %v11919_v12 = vld [vmem:[#allocation86_spill] sm:$0xff] }
 0x356   : > { %2023 = vrot.lane.b32.xlu1 %v11904_v34, %s11809_s24 }
 0x357   : > { %1719 = vrot.lane.b32.xlu0 %v11905_v32, %s11877_s11 }
 0x358   : > { %v9368_v16 = vpop.permute.xlu1 %583 }
 0x359   : > { %2123 = vrot.lane.b32.xlu2 %v11906_v22, %s11839_s30  ;;  %v888_v13 = vpop.permute.xlu0 %887  ;;  %s7692_s30 = smov 52  }
 0x35a   : > { %v908_v53 = vsel %vm11908_vm8, %v888_v13, %v9202_v48  ;;  %v11911_v48 = vld [vmem:[#allocation80_spill] sm:$0xff]  ;;  %vm11917_vm8 = vcmask 719872  }
 0x35b   : > { %v2335_v62 = vpop.permute.xlu2 %2334  ;;  %933 = vst [vmem:[#allocation2 + $0x100] sm:$0xf] %v908_v53  ;;  %v11922_v53 = vld [vmem:[#allocation31_spill] sm:$0xff] }
 0x35c   : > { %2374 = vst.msk [vmem:[#allocation2 + $0x408] sm:$0xf] %vm527_vm10, %v2335_v62 }
 0x35e   : > { %2328 = vrot.lane.b32.xlu1 %v11907_v55, %s11844_s13  ;;  %s7691_s13 = smov 56  }
 0x35f   : > { %1922 = vrot.lane.b32.xlu0 %v11909_v51, %s11885_s8 }
 0x360   : > { %v9378_v43 = vpop.permute.xlu1 %787 }
 0x361   : > { %v807_v49 = vsel %vm11570_vm2, %v9378_v43, %v9349_v33  ;;  %2431 = vrot.lane.b32.xlu2 %v11910_v46, %s11849_s10  ;;  %v1196_v5 = vpop.permute.xlu0 %1195  ;;  %v3067_v46 = vld [vmem:[#allocation2 + $0x1c0] sm:$0xff] }
 0x362   : > { %832 = vst [vmem:[#allocation2 + $0xa0] sm:$0xf0] %v807_v49  ;;  %v1216_v27 = vsel %vm11912_vm14, %v1196_v5, %v9235_v19  ;;  %vm11918_vm14 = vmmov %vm11917_vm8  ;;  %v3043_v2 = vld [vmem:[#allocation2 + $0x100] sm:$0xff] }
 0x363   : > { %v9392_v23 = vpop.permute.xlu2 %579  ;;  %1241 = vst [vmem:[#allocation2 + $0x168] sm:$0xf0] %v1216_v27  ;;  %v11924_v49 = vld [vmem:[#allocation105_spill] sm:$0xff] }
 0x366   : > { %1309 = vrot.lane.b32.xlu1 %v11911_v48, %s11776_s16 }
 0x367   : > { %2027 = vrot.lane.b32.xlu0 %v11913_v59, %s11809_s24 }
 0x368   : > { %v9394_v38 = vpop.permute.xlu1 %2129 }
 0x369   : > { %2169 = vst.msk [vmem:[#allocation2 + $0x3a0] sm:$0xf] %vm527_vm10, %v9394_v38  ;;  %1410 = vrot.lane.b32.xlu2 %v11914_v57, %s11777_s27  ;;  %v1501_v37 = vpop.permute.xlu0 %1500  ;;  %v3068_v57 = vld [vmem:[#allocation2 + $0x1c8] sm:$0xff] }
 0x36a   : > { %v1521_v19 = vsel %vm11917_vm8, %v11916_v58, %v1501_v37  ;;  %v1522_v56 = vsel %vm11918_vm14, %v1501_v37, %v9173_v11  ;;  %v3056_v9 = vld [vmem:[#allocation2 + $0x168] sm:$0xff]  ;;  %v9415_v11 = vld [vmem:[%s11459_s1] sm:$0x3]  ;;  %vm11575_vm8 = vcmask 818176   ;;  %v11926_v58 = vld [vmem:[#allocation99_spill] sm:$0xff]  ;;  %vm11927_vm14 = vcmask 867328  }
 0x36b   : > { %v886_v25 = vpop.permute.xlu2 %885  ;;  %1546 = vst [vmem:[#allocation2 + $0x228] sm:$0xf] %v1521_v19  ;;  %v3199_v34 = vpack.c.bf16 %v3056_v9, %v3043_v2  ;;  %7207 = vmatmul.msk.bf16.vlgmr.msra.gmra.mxu3 %vm11575_vm8, %v9415_v11  ;;  %7206 = vmatmul.msk.bf16.vlgmr.msra.gmra.mxu2 %vm11575_vm8, %v9415_v11  ;;  %vm11928_vm4 = vmmov %vm11927_vm14  ;;  %v11930_v9 = vld [vmem:[#allocation73_spill] sm:$0xff] }
 0x36c   : > { %v906_v32 = vsel %vm11920_vm7, %v11919_v12, %v886_v25  ;;  %1547 = vst [vmem:[#allocation2 + $0x230] sm:$0xf] %v1522_v56  ;;  %v907_v55 = vsel %vm11921_vm6, %v886_v25, %v888_v13  ;;  %7205 = vmatmul.msk.bf16.vlgmr.msra.gmra.mxu1 %vm11575_vm8, %v9415_v11  ;;  %v11923_v13 = vld [vmem:[#allocation94_spill] sm:$0xff]  ;;  %7204 = vmatmul.msk.bf16.vlgmr.msra.gmra.mxu0 %vm11575_vm8, %v9415_v11  ;;  %vm631_vm6 = vcmask 523268   ;;  %vm11925_vm7 = vcmask 384000  }
 0x36d   : > { %3399 = vmatpush.bf16.msrb.mxu2 %v3199_v34  ;;  %931 = vst [vmem:[#allocation2 + $0xf0] sm:$0xf] %v906_v32  ;;  %v11931_v34 = vld [vmem:[#allocation95_spill] sm:$0xff] }
 0x36e   : > { %1512 = vrot.lane.b32.xlu1 %v11915_v21, %s11778_s22  ;;  %932 = vst [vmem:[#allocation2 + $0xf8] sm:$0xf] %v907_v55 }
 0x36f   : > { %783 = vrot.lane.b32.xlu0 %v11922_v53, %s11775_s17 }
 0x370   : > { %v2333_v39 = vpop.permute.xlu1 %2332 }
 0x371   : > { %v2348_v22 = vsel %vm2336_vm13, %v2333_v39, %v2335_v62  ;;  %1514 = vrot.lane.b32.xlu2 %v11923_v13, %s11778_s22  ;;  %v2644_v62 = vpop.permute.xlu0 %2643  ;;  %v11932_v13 = vld [vmem:[#allocation143_spill] sm:$0xff] }
 0x372   : > { %2373 = vst [vmem:[#allocation2 + $0x400] sm:$0xf] %v2348_v22  ;;  %v2662_v51 = vsel %vm11925_vm7, %v2644_v62, %v9218_v40  ;;  %v3080_v48 = vld [vmem:[#allocation2 + $0x228] sm:$0xff]  ;;  %v11929_v40 = vld [vmem:[#allocation120_spill] sm:$0xff] }
 0x373   : > { %v1194_v27 = vpop.permute.xlu2 %1193  ;;  %2688 = vst [vmem:[#allocation2 + $0x460] sm:$0xf0] %v2662_v51  ;;  %v3210_v59 = vpack.c.bf16 %v3080_v48, %v3067_v46  ;;  %v3081_v37 = vld [vmem:[#allocation2 + $0x230] sm:$0xff] }
 0x374   : > { %v1214_v19 = vsel %vm11927_vm14, %v11926_v58, %v1194_v27  ;;  %v1215_v56 = vsel %vm11928_vm4, %v1194_v27, %v1196_v5  ;;  %v3211_v2 = vpack.c.bf16 %v3081_v37, %v3068_v57  ;;  %v11934_v46 = vld [vmem:[#allocation119_spill] sm:$0xff]  ;;  %vm11935_vm4 = vmmov %vm11925_vm7  ;;  %vm11937_vm7 = vcmask 875520  }
 0x375   : > { %3372 = vmatpush.bf16.msrb.mxu0 %v3210_v59  ;;  %1239 = vst [vmem:[#allocation2 + $0x158] sm:$0xf0] %v1214_v19  ;;  %v11936_v59 = vld [vmem:[#allocation97_spill] sm:$0xff]  ;;  %vm11938_vm14 = vmmov %vm11937_vm7  ;;  %v3178_v19 = vld [vmem:[#allocation2 + $0x538] sm:$0xf] }
 0x376   : > { %1617 = vrot.lane.b32.xlu1 %v11924_v49, %s11779_s25  ;;  %3385 = vmatpush.bf16.msrb.mxu1 %v3211_v2  ;;  %1240 = vst [vmem:[#allocation2 + $0x160] sm:$0xf0] %v1215_v56  ;;  %v11933_v49 = vld [vmem:[#allocation102_spill] sm:$0xff]  ;;  %v11941_v2 = vld [vmem:[#allocation124_spill] sm:$0xff] }
 0x377   : > { %1920 = vrot.lane.b32.xlu0 %v11929_v40, %s11885_s8  ;;  %v11940_v56 = vld [vmem:[#allocation74_spill] sm:$0xff]  ;;  %v3269_v40 = vpack.c.bf16 %v3178_v19, %v3178_v19  ;;  %v11947_v19 = vld [vmem:[#allocation103_spill] sm:$0xff] }
 0x378   : > { %v9433_v21 = vpop.permute.xlu1 %2437 }
 0x379   : > { %2477 = vst.msk [vmem:[#allocation2 + $0x408] sm:$0xf0] %vm631_vm6, %v9433_v21  ;;  %1305 = vrot.lane.b32.xlu2 %v11930_v9, %s11776_s16  ;;  %v582_v25 = vpop.permute.xlu0 %581  ;;  %v11942_v9 = vld [vmem:[#allocation43_spill] sm:$0xff] }
 0x37a   : > { %v600_v5 = vsel %vm11587_vm0, %v9392_v23, %v582_v25  ;;  %v601_v12 = vsel %vm11587_vm0, %v582_v25, %v9368_v16 }
 0x37b   : > { %v9450_v32 = vpop.permute.xlu2 %2330  ;;  %625 = vst [vmem:[#allocation2 + $0x30] sm:$0xf0] %v600_v5 }
 0x37c   : > { %v2347_v55 = vsel %vm2336_vm13, %v9450_v32, %v2333_v39  ;;  %626 = vst [vmem:[#allocation2 + $0x38] sm:$0xf0] %v601_v12 }
 0x37d   : > { %2372 = vst [vmem:[#allocation2 + $0x3f8] sm:$0xf] %v2347_v55 }
 0x37e   : > { %1510 = vrot.lane.b32.xlu1 %v11931_v34, %s11778_s22 }
 0x37f   : > { %2226 = vrot.lane.b32.xlu0 %v11932_v13, %s11842_s12  ;;  %v3165_v13 = vld [vmem:[#allocation2 + $0x4d0] sm:$0xff]  ;;  %s11598_s12 = smov 116  }
 0x380   : > { %v9452_v22 = vpop.permute.xlu1 %785 }
 0x381   : > { %v806_v53 = vsel %vm11570_vm2, %v9452_v22, %v9378_v43  ;;  %1613 = vrot.lane.b32.xlu2 %v11933_v49, %s11779_s25  ;;  %v9463_v51 = vpop.permute.xlu0 %686  ;;  %vm11939_vm2 = vmmov %vm11935_vm4  ;;  %v3152_v49 = vld [vmem:[#allocation2 + $0x468] sm:$0xff] }
 0x382   : > { %831 = vst [vmem:[#allocation2 + $0x98] sm:$0xf0] %v806_v53  ;;  %v704_v39 = vsel %vm11584_vm1, %v9330_v8, %v9463_v51  ;;  %v3310_v53 = vsel %vm3275_vm5, %v3269_v40, 0 }
 0x383   : > { %v2642_v48 = vpop.permute.xlu2 %2641  ;;  %729 = vst [vmem:[#allocation2 + $0xa0] sm:$0xf] %v704_v39  ;;  %v11945_v39 = vld [vmem:[#allocation44_spill] sm:$0xff] }
 0x384   : > { %v2660_v27 = vsel %vm11935_vm4, %v8904_v28, %v2642_v48  ;;  %v2661_v58 = vsel %vm11939_vm2, %v2642_v48, %v2644_v62  ;;  %vm11943_vm2 = vcmask 547840   ;;  %v3018_v62 = vld [vmem:[#allocation2 + $0x38] sm:$0xff]  ;;  %vm11950_vm4 = vcmask 523264  }
 0x385   : > { %2686 = vst [vmem:[#allocation2 + $0x450] sm:$0xf0] %v2660_v27 }
 0x386   : > { %1816 = vrot.lane.b32.xlu1 %v11934_v46, %s11879_s9  ;;  %2687 = vst [vmem:[#allocation2 + $0x458] sm:$0xf0] %v2661_v58  ;;  %v3256_v46 = vpack.c.bf16 %v3165_v13, %v3152_v49  ;;  %v11954_v49 = vld [vmem:[#allocation85_spill] sm:$0xff]  ;;  %s7693_s9 = smov 76  }
 0x387   : > { %1307 = vrot.lane.b32.xlu0 %v11940_v56, %s11776_s16 }
 0x388   : > { %v1091_v43 = vpop.permute.xlu1 %1090 }
 0x389   : > { %v1111_v57 = vsel %vm11937_vm7, %v11936_v59, %v1091_v43  ;;  %v1112_v37 = vsel %vm11938_vm14, %v1091_v43, %v9264_v41  ;;  %1918 = vrot.lane.b32.xlu2 %v11941_v2, %s11885_s8  ;;  %v9481_v28 = vpop.permute.xlu0 %2127  ;;  %v11946_v43 = vld [vmem:[#allocation54_spill] sm:$0xff]  ;;  %v11949_v2 = vld [vmem:[#allocation67_spill] sm:$0xff]  ;;  %vm11959_vm7 = vcmask 883712  }
 0x38a   : > { %1136 = vst [vmem:[#allocation2 + $0x158] sm:$0xf] %v1111_v57  ;;  %v2143_v41 = vsel %vm11943_vm2, %v9481_v28, %v9394_v38  ;;  %v3031_v25 = vld [vmem:[#allocation2 + $0xa0] sm:$0xff]  ;;  %vm11960_vm14 = vmmov %vm11959_vm7 }
 0x38b   : > { %1137 = vst [vmem:[#allocation2 + $0x160] sm:$0xf] %v1112_v37  ;;  %v9488_v34 = vpop.permute.xlu2 %1717  ;;  %v3187_v5 = vpack.c.bf16 %v3031_v25, %v3018_v62  ;;  %v11944_v38 = vld [vmem:[#allocation89_spill] sm:$0xff]  ;;  %v11951_v62 = vld [vmem:[#allocation87_spill] sm:$0xff] }
 0x38c   : > { %2168 = vst [vmem:[#allocation2 + $0x398] sm:$0xf] %v2143_v41  ;;  %v11952_v25 = vld [vmem:[#allocation69_spill] sm:$0xff] }
 0x38d   : > { %3413 = vmatpush.bf16.msrb.mxu3 %v3187_v5 }
 0x38e   : > { %897 = vrot.lane.b32.xlu1 %v11942_v9, %s11787_s28 }
 0x38f   : > { %1412 = vrot.lane.b32.xlu0 %v11944_v38, %s11777_s27 }
 0x390   : > { %v9490_v12 = vpop.permute.xlu1 %2228  ;;  %7211 = vmatmul.msk.bf16.vlgmr.msrb.gmra.mxu3 %vm11575_vm8, %v9415_v11 }
 0x391   : > { %v2245_v55 = vsel %vm2234_vm9, %v9490_v12, %v9366_v20  ;;  %3459 = vmatpush.bf16.msra.mxu3 %v3310_v53  ;;  %899 = vrot.lane.b32.xlu2 %v11945_v39, %s11787_s28  ;;  %v2233_v48 = vpop.permute.xlu0 %2232 }
 0x392   : > { %2270 = vst [vmem:[#allocation2 + $0x390] sm:$0xf0] %v2245_v55  ;;  %v2246_v27 = vsel %vm2234_vm9, %v9366_v20, %v2233_v48  ;;  %v11948_v20 = vld [vmem:[#allocation61_spill] sm:$0xff] }
 0x393   : > { %2272 = vst.msk [vmem:[#allocation2 + $0x3a0] sm:$0xf0] %vm631_vm6, %v2233_v48  ;;  %v1823_v59 = vpop.permute.xlu2 %1822 }
 0x394   : > { %2271 = vst [vmem:[#allocation2 + $0x398] sm:$0xf0] %v2246_v27  ;;  %v11956_v27 = vld [vmem:[#allocation60_spill] sm:$0xff] }
 0x395   : > { %3460 = vmatpush.bf16.msra.mxu3 %v3256_v46  ;;  %1862 = vst.msk [vmem:[#allocation2 + $0x2d0] sm:$0xf0] %vm631_vm6, %v1823_v59 }
 0x396   : > { %1002 = vrot.lane.b32.xlu1 %v11946_v43, %s11792_s19  ;;  %v3177_v43 = vld [vmem:[#allocation2 + $0x530] sm:$0xf] }
 0x397   : > { %1615 = vrot.lane.b32.xlu0 %v11947_v19, %s11779_s25  ;;  %v11958_v19 = vld [vmem:[#allocation98_spill] sm:$0xff] }
 0x398   : > { %v2535_v57 = vpop.permute.xlu1 %2534 }
 0x399   : > { %v2553_v37 = vsel %vm2544_vm15, %v8855_v15, %v2535_v57  ;;  %v2554_v58 = vsel %vm2544_vm15, %v2535_v57, %v9297_v26  ;;  %1102 = vrot.lane.b32.xlu2 %v11948_v20, %s11796_s20  ;;  %v9516_v56 = vpop.permute.xlu0 %2435 }
 0x39a   : > { %2579 = vst [vmem:[#allocation2 + $0x450] sm:$0xf] %v2553_v37  ;;  %v2451_v15 = vsel %vm11950_vm4, %v9516_v56, %v9433_v21  ;;  %v11953_v21 = vld [vmem:[#allocation50_spill] sm:$0xff]  ;;  %v3268_v37 = vpack.c.bf16 %v3177_v43, %v3177_v43  ;;  %v3055_v43 = vld [vmem:[#allocation2 + $0x160] sm:$0xff]  ;;  %vm11964_vm4 = vmmov %vm11943_vm2 }
 0x39b   : > { %2580 = vst [vmem:[#allocation2 + $0x458] sm:$0xf] %v2554_v58  ;;  %v9523_v26 = vpop.permute.xlu2 %2025  ;;  %v3126_v53 = vld [vmem:[#allocation2 + $0x398] sm:$0xff]  ;;  %v11957_v58 = vld [vmem:[#allocation82_spill] sm:$0xff] }
 0x39c   : > { %2476 = vst [vmem:[#allocation2 + $0x400] sm:$0xf0] %v2451_v15 }
 0x39e   : > { %1205 = vrot.lane.b32.xlu1 %v11949_v2, %s11798_s21  ;;  %v3017_v2 = vld [vmem:[#allocation2 + $0x30] sm:$0xff] }
 0x39f   : > { %1408 = vrot.lane.b32.xlu0 %v11951_v62, %s11777_s27 }
 0x3a0   : > { %v2855_v40 = vpop.permute.xlu1 %2854 }
 0x3a1   : > { %v2873_v9 = vsel %vm2864_vm12, %v8963_v63, %v2855_v40  ;;  %v2874_v41 = vsel %vm2864_vm12, %v2855_v40, %v9314_v1  ;;  %1207 = vrot.lane.b32.xlu2 %v11952_v25, %s11798_s21  ;;  %v683_v5 = vpop.permute.xlu0 %682  ;;  %v3307_v25 = vsel %vm3275_vm5, %v3268_v37, 0  ;;  %v11965_v37 = vld [vmem:[#allocation78_spill] sm:$0xff] }
 0x3a2   : > { %2899 = vst [vmem:[#allocation2 + $0x4b8] sm:$0xf0] %v2873_v9  ;;  %v703_v55 = vsel %vm11584_vm1, %v683_v5, %v9330_v8  ;;  %v11955_v8 = vld [vmem:[#allocation113_spill] sm:$0xff] }
 0x3a3   : > { %2900 = vst [vmem:[#allocation2 + $0x4c0] sm:$0xf0] %v2874_v41  ;;  %v3139_v63 = vld [vmem:[#allocation2 + $0x400] sm:$0xff]  ;;  %v681_v13 = vpop.permute.xlu2 %680 }
 0x3a4   : > { %728 = vst [vmem:[#allocation2 + $0x98] sm:$0xf] %v703_v55  ;;  %v3243_v1 = vpack.c.bf16 %v3139_v63, %v3126_v53  ;;  %v701_v46 = vsel %vm11584_vm1, %v11954_v49, %v681_v13  ;;  %v702_v39 = vsel %vm11584_vm1, %v681_v13, %v683_v5  ;;  %v3151_v5 = vld [vmem:[#allocation2 + $0x460] sm:$0xff]  ;;  %v11963_v13 = vld [vmem:[#allocation107_spill] sm:$0xff]  ;;  %v3054_v49 = vld [vmem:[#allocation2 + $0x158] sm:$0xff] }
 0x3a5   : > { %726 = vst [vmem:[#allocation2 + $0x88] sm:$0xf] %v701_v46  ;;  %v11962_v53 = vld [vmem:[#allocation93_spill] sm:$0xff] }
 0x3a6   : > { %998 = vrot.lane.b32.xlu1 %v11953_v21, %s11792_s19  ;;  %3461 = vmatpush.bf16.msra.mxu3 %v3243_v1  ;;  %727 = vst [vmem:[#allocation2 + $0x90] sm:$0xf] %v702_v39  ;;  %v3164_v21 = vld [vmem:[#allocation2 + $0x4c8] sm:$0xff] }
 0x3a7   : > { %1713 = vrot.lane.b32.xlu0 %v11955_v8, %s11877_s11  ;;  %v3255_v55 = vpack.c.bf16 %v3164_v21, %v3151_v5  ;;  %s7694_s11 = smov 72  }
 0x3a8   : > { %v1821_v38 = vpop.permute.xlu1 %1820 }
 0x3a9   : > { %v1836_v48 = vsel %vm1824_vm11, %v1821_v38, %v1823_v59  ;;  %1100 = vrot.lane.b32.xlu2 %v11956_v27, %s11796_s20  ;;  %v989_v57 = vpop.permute.xlu0 %988 }
 0x3aa   : > { %1861 = vst [vmem:[#allocation2 + $0x2c8] sm:$0xf0] %v1836_v48  ;;  %v1009_v20 = vsel %vm11959_vm7, %v11958_v19, %v989_v57  ;;  %v1010_v59 = vsel %vm11960_vm14, %v989_v57, %v9299_v35  ;;  %v11961_v35 = vld [vmem:[#allocation132_spill] sm:$0xff]  ;;  %vm11966_vm7 = vmmov %vm11943_vm2  ;;  %vm11970_vm14 = vcmask 523264  }
 0x3ab   : > { %v3030_v15 = vld [vmem:[#allocation2 + $0x98] sm:$0xff]  ;;  %v9551_v40 = vpop.permute.xlu2 %1818  ;;  %1034 = vst [vmem:[#allocation2 + $0xf0] sm:$0xf0] %v1009_v20  ;;  %v11967_v20 = vld [vmem:[#allocation51_spill] sm:$0xff] }
 0x3ac   : > { %v3186_v9 = vpack.c.bf16 %v3030_v15, %v3017_v2  ;;  %v1835_v62 = vsel %vm1824_vm11, %v9551_v40, %v1821_v38  ;;  %1035 = vst [vmem:[#allocation2 + $0xf8] sm:$0xf0] %v1010_v59  ;;  %v11969_v2 = vld [vmem:[#allocation25_spill] sm:$0xff] }
 0x3ad   : > { %1860 = vst [vmem:[#allocation2 + $0x2c0] sm:$0xf0] %v1835_v62 }
 0x3ae   : > { %1303 = vrot.lane.b32.xlu1 %v11957_v58, %s11776_s16  ;;  %3400 = vmatpush.bf16.msrb.mxu2 %v3186_v9  ;;  %s7690_s16 = smov 60  }
 0x3af   : > { %2021 = vrot.lane.b32.xlu0 %v11961_v35, %s11809_s24  ;;  %v11973_v35 = vld [vmem:[#allocation62_spill] sm:$0xff] }
 0x3b0   : > { %v9553_v41 = vpop.permute.xlu1 %1924 }
 0x3b1   : > { %1964 = vst.msk [vmem:[#allocation2 + $0x338] sm:$0xf] %vm527_vm10, %v9553_v41  ;;  %1406 = vrot.lane.b32.xlu2 %v11962_v53, %s11777_s27  ;;  %7210 = vmatmul.msk.bf16.vlgmr.msrb.gmra.mxu2 %vm11575_vm8, %v9415_v11  ;;  %v2126_v63 = vpop.permute.xlu0 %2125 }
 0x3b2   : > { %3446 = vmatpush.bf16.msra.mxu2 %v3307_v25  ;;  %v2142_v1 = vsel %vm11943_vm2, %v2126_v63, %v9481_v28  ;;  %v3041_v38 = vld [vmem:[#allocation2 + $0xf0] sm:$0xff]  ;;  %vm11971_vm2 = vmmov %vm11970_vm14 }
 0x3b3   : > { %v2124_v46 = vpop.permute.xlu2 %2123  ;;  %2167 = vst [vmem:[#allocation2 + $0x390] sm:$0xf] %v2142_v1  ;;  %v3197_v39 = vpack.c.bf16 %v3054_v49, %v3041_v38  ;;  %v3042_v48 = vld [vmem:[#allocation2 + $0xf8] sm:$0xff] }
 0x3b4   : > { %v2140_v27 = vsel %vm11964_vm4, %v8811_v36, %v2124_v46  ;;  %v3198_v57 = vpack.c.bf16 %v3055_v43, %v3042_v48  ;;  %v2141_v28 = vsel %vm11966_vm7, %v2124_v46, %v2126_v63  ;;  %v11968_v36 = vld [vmem:[#allocation16_spill] sm:$0xff]  ;;  %vm11972_vm4 = vmmov %vm11971_vm2  ;;  %vm11976_vm7 = vcmask 375808  }
 0x3b5   : > { %2165 = vst [vmem:[#allocation2 + $0x380] sm:$0xf] %v2140_v27  ;;  %3373 = vmatpush.bf16.msrb.mxu0 %v3197_v39  ;;  %v2941_v39 = vld.sshfl [vmem:[#allocation1 + $0x28] sm:$0xff pattern:$0x75316420]  ;;  %v11980_v48 = vld [vmem:[#allocation24_spill] sm:$0xff] }
 0x3b6   : > { %1611 = vrot.lane.b32.xlu1 %v11963_v13, %s11779_s25  ;;  %3447 = vmatpush.bf16.msra.mxu2 %v3255_v55  ;;  %2166 = vst [vmem:[#allocation2 + $0x388] sm:$0xf] %v2141_v28  ;;  %v11975_v55 = vld [vmem:[#allocation36_spill] sm:$0xff]  ;;  %s7700_s25 = smov 114  }
 0x3b7   : > { %3386 = vmatpush.bf16.msrb.mxu1 %v3198_v57  ;;  %1000 = vrot.lane.b32.xlu0 %v11967_v20, %s11792_s19  ;;  %v11983_v28 = vld [vmem:[#allocation56_spill] sm:$0xff] }
 0x3b8   : > { %v578_v8 = vpop.permute.xlu1 %577 }
 0x3b9   : > { %v598_v58 = vsel %vm11587_vm0, %v11965_v37, %v578_v8  ;;  %v599_v19 = vsel %vm11587_vm0, %v578_v8, %v9392_v23  ;;  %589 = vrot.lane.b32.xlu2 %v11968_v36, %s11773_s26  ;;  %v2434_v59 = vpop.permute.xlu0 %2433  ;;  %v11985_v36 = vld [vmem:[#allocation101_spill] sm:$0xff] }
 0x3ba   : > { %623 = vst [vmem:[#allocation2 + $0x20] sm:$0xf0] %v598_v58  ;;  %v2450_v23 = vsel %vm11970_vm14, %v2434_v59, %v9516_v56  ;;  %v11974_v56 = vld [vmem:[#allocation26_spill] sm:$0xff]  ;;  %vm11977_vm14 = vmmov %vm11976_vm7  ;;  %v3125_v63 = vld [vmem:[#allocation2 + $0x390] sm:$0xff] }
 0x3bb   : > { %624 = vst [vmem:[#allocation2 + $0x28] sm:$0xf0] %v599_v19  ;;  %v2432_v15 = vpop.permute.xlu2 %2431  ;;  %v11981_v58 = vld [vmem:[#allocation66_spill] sm:$0xff] }
 0x3bc   : > { %2475 = vst [vmem:[#allocation2 + $0x3f8] sm:$0xf0] %v2450_v23  ;;  %v2448_v62 = vsel %vm11971_vm2, %v8886_v30, %v2432_v15  ;;  %v2449_v25 = vsel %vm11972_vm4, %v2432_v15, %v2434_v59  ;;  %vm11978_vm2 = vcmask 556032   ;;  %vm11984_vm4 = vcmask 687104   ;;  %v11986_v59 = vld [vmem:[#allocation64_spill] sm:$0xff]  ;;  %v11987_v23 = vld [vmem:[#allocation19_spill] sm:$0xff] }
 0x3bd   : > { %2473 = vst [vmem:[#allocation2 + $0x3e8] sm:$0xf0] %v2448_v62 }
 0x3be   : > { %692 = vrot.lane.b32.xlu1 %v11969_v2, %s11774_s18  ;;  %2474 = vst [vmem:[#allocation2 + $0x3f0] sm:$0xf0] %v2449_v25 }
 0x3bf   : > { %1104 = vrot.lane.b32.xlu0 %v11973_v35, %s11796_s20  ;;  %v11991_v35 = vld [vmem:[#allocation29_spill] sm:$0xff] }
 0x3c0   : > { %v9585_v9 = vpop.permute.xlu1 %1715 }
 0x3c1   : > { %v1732_v5 = vsel %vm1721_vm3, %v9585_v9, %v9488_v34  ;;  %694 = vrot.lane.b32.xlu2 %v11974_v56, %s11774_s18  ;;  %v2748_v21 = vpop.permute.xlu0 %2747 }
 0x3c2   : > { %1757 = vst [vmem:[#allocation2 + $0x2c0] sm:$0xf] %v1732_v5  ;;  %v2766_v30 = vsel %vm11976_vm7, %v8974_v60, %v2748_v21  ;;  %v2767_v53 = vsel %vm11977_vm14, %v2748_v21, %v9351_v10  ;;  %v11979_v60 = vld [vmem:[#allocation42_spill] sm:$0xff]  ;;  %vm11989_vm7 = vcmask 719872   ;;  %v11990_v5 = vld [vmem:[#allocation17_spill] sm:$0xff]  ;;  %v11992_v21 = vld [vmem:[#allocation159_spill] sm:$0xff] }
 0x3c3   : > { %v3138_v13 = vld [vmem:[#allocation2 + $0x3f8] sm:$0xff]  ;;  %v9603_v1 = vpop.permute.xlu2 %1410  ;;  %2792 = vst [vmem:[#allocation2 + $0x4b8] sm:$0xf] %v2766_v30  ;;  %vm11994_vm14 = vcmask 1022976  }
 0x3c4   : > { %v3242_v38 = vpack.c.bf16 %v3138_v13, %v3125_v63  ;;  %2793 = vst [vmem:[#allocation2 + $0x4c0] sm:$0xf] %v2767_v53 }
 0x3c6   : > { %797 = vrot.lane.b32.xlu1 %v11975_v55, %s11775_s17  ;;  %3448 = vmatpush.bf16.msra.mxu2 %v3242_v38 }
 0x3c7   : > { %895 = vrot.lane.b32.xlu0 %v11979_v60, %s11787_s28  ;;  %v3175_v60 = vld [vmem:[#allocation2 + $0x520] sm:$0xf] }
 0x3c8   : > { %v9605_v49 = vpop.permute.xlu1 %2023 }
 0x3c9   : > { %v2040_v46 = vsel %vm11978_vm2, %v9605_v49, %v9523_v26  ;;  %2968 = vrot.lane.b32.xlu2 %v2941_v39, %s11813_s0  ;;  %v1720_v10 = vpop.permute.xlu0 %1719 }
 0x3ca   : > { %2065 = vst [vmem:[#allocation2 + $0x328] sm:$0xf0] %v2040_v46  ;;  %v1733_v43 = vsel %vm1721_vm3, %v9488_v34, %v1720_v10  ;;  %v11982_v34 = vld [vmem:[#allocation32_spill] sm:$0xff] }
 0x3cb   : > { %1759 = vst.msk [vmem:[#allocation2 + $0x2d0] sm:$0xf] %vm527_vm10, %v1720_v10  ;;  %v1515_v8 = vpop.permute.xlu2 %1514  ;;  %v11996_v10 = vld [vmem:[#allocation33_spill] sm:$0xff] }
 0x3cc   : > { %1758 = vst [vmem:[#allocation2 + $0x2c8] sm:$0xf] %v1733_v43 }
 0x3cd   : > { %1554 = vst.msk [vmem:[#allocation2 + $0x268] sm:$0xf] %vm527_vm10, %v1515_v8 }
 0x3ce   : > { %690 = vrot.lane.b32.xlu1 %v11980_v48, %s11774_s18  ;;  %v11997_v48 = vld [vmem:[#allocation163_spill] sm:$0xff] }
 0x3cf   : > { %1203 = vrot.lane.b32.xlu0 %v11981_v58, %s11798_s21 }
 0x3d0   : > { %v2329_v27 = vpop.permute.xlu1 %2328 }
 0x3d1   : > { %v2345_v57 = vsel %vm2336_vm13, %v8826_v7, %v2329_v27  ;;  %v2346_v37 = vsel %vm2336_vm13, %v2329_v27, %v9450_v32  ;;  %793 = vrot.lane.b32.xlu2 %v11982_v34, %s11775_s17  ;;  %v1923_v19 = vpop.permute.xlu0 %1922  ;;  %vm11988_vm13 = vmmov %vm11978_vm2  ;;  %v3015_v27 = vld [vmem:[#allocation2 + $0x20] sm:$0xff] }
 0x3d2   : > { %2370 = vst [vmem:[#allocation2 + $0x3e8] sm:$0xf] %v2345_v57  ;;  %v1938_v7 = vsel %vm11984_vm4, %v1923_v19, %v9553_v41  ;;  %vm11995_vm2 = vmmov %vm11994_vm14 }
 0x3d3   : > { %2371 = vst [vmem:[#allocation2 + $0x3f0] sm:$0xf] %v2346_v37  ;;  %v9631_v20 = vpop.permute.xlu2 %1305  ;;  %v3100_v53 = vld [vmem:[#allocation2 + $0x2c8] sm:$0xff] }
 0x3d4   : > { %1963 = vst [vmem:[#allocation2 + $0x330] sm:$0xf] %v1938_v7  ;;  %v3016_v7 = vld [vmem:[#allocation2 + $0x28] sm:$0xff] }
 0x3d6   : > { %996 = vrot.lane.b32.xlu1 %v11983_v28, %s11792_s19 }
 0x3d7   : > { %1508 = vrot.lane.b32.xlu0 %v11985_v36, %s11778_s22 }
 0x3d8   : > { %v9633_v32 = vpop.permute.xlu1 %1309 }
 0x3d9   : > { %1349 = vst.msk [vmem:[#allocation2 + $0x200] sm:$0xf] %vm527_vm10, %v9633_v32  ;;  %1098 = vrot.lane.b32.xlu2 %v11986_v59, %s11796_s20  ;;  %v2028_v2 = vpop.permute.xlu0 %2027  ;;  %s7686_s20 = smov 112  }
 0x3da   : > { %v2041_v41 = vsel %vm11988_vm13, %v9523_v26, %v2028_v2  ;;  %2067 = vst.msk [vmem:[#allocation2 + $0x338] sm:$0xf0] %vm631_vm6, %v2028_v2  ;;  %v11993_v26 = vld [vmem:[#allocation90_spill] sm:$0xff]  ;;  %vm11998_vm13 = vmmov %vm11984_vm4 }
 0x3db   : > { %v9646_v15 = vpop.permute.xlu2 %1613  ;;  %2066 = vst [vmem:[#allocation2 + $0x330] sm:$0xf0] %v2041_v41 }
 0x3de   : > { %585 = vrot.lane.b32.xlu1 %v11987_v23, %s11773_s26 }
 0x3df   : > { %591 = vrot.lane.b32.xlu0 %v11990_v5, %s11773_s26  ;;  %v12001_v5 = vld [vmem:[#allocation15_spill] sm:$0xff] }
 0x3e0   : > { %v1513_v62 = vpop.permute.xlu1 %1512 }
 0x3e1   : > { %v1528_v25 = vsel %vm11989_vm7, %v1513_v62, %v1515_v8  ;;  %688 = vrot.lane.b32.xlu2 %v11991_v35, %s11774_s18  ;;  %v784_v56 = vpop.permute.xlu0 %783  ;;  %v3266_v8 = vpack.c.bf16 %v3175_v60, %v3175_v60  ;;  %vm11999_vm7 = vmmov %vm11984_vm4  ;;  %v3149_v35 = vld [vmem:[#allocation2 + $0x450] sm:$0xff] }
 0x3e2   : > { %1553 = vst [vmem:[#allocation2 + $0x260] sm:$0xf] %v1528_v25  ;;  %v804_v55 = vsel %vm11994_vm14, %v11993_v26, %v784_v56  ;;  %v805_v30 = vsel %vm11995_vm2, %v784_v56, %v9452_v22  ;;  %v3113_v63 = vld [vmem:[#allocation2 + $0x330] sm:$0xff]  ;;  %v3176_v22 = vld [vmem:[#allocation2 + $0x528] sm:$0xf]  ;;  %vm12000_vm14 = vcmask 719872  }
 0x3e3   : > { %v1919_v13 = vpop.permute.xlu2 %1918  ;;  %829 = vst [vmem:[#allocation2 + $0x88] sm:$0xf0] %v804_v55  ;;  %v3230_v38 = vpack.c.bf16 %v3113_v63, %v3100_v53  ;;  %v3267_v37 = vpack.c.bf16 %v3176_v22, %v3176_v22  ;;  %v3163_v25 = vld [vmem:[#allocation2 + $0x4c0] sm:$0xff]  ;;  %v3150_v56 = vld [vmem:[#allocation2 + $0x458] sm:$0xff] }
 0x3e4   : > { %v1935_v39 = vsel %vm11984_vm4, %v8981_v29, %v1919_v13  ;;  %830 = vst [vmem:[#allocation2 + $0x90] sm:$0xf0] %v805_v30  ;;  %v3254_v26 = vpack.c.bf16 %v3163_v25, %v3150_v56  ;;  %v3099_v53 = vld [vmem:[#allocation2 + $0x2c0] sm:$0xff]  ;;  %vm12007_vm4 = vcmask 850944  }
 0x3e5   : > { %3462 = vmatpush.bf16.msra.mxu3 %v3230_v38  ;;  %1960 = vst [vmem:[#allocation2 + $0x318] sm:$0xf] %v1935_v39  ;;  %v3304_v41 = vsel %vm3275_vm5, %v3267_v37, 0 }
 0x3e6   : > { %2542 = vrot.lane.b32.xlu1 %v11992_v21, %s11820_s29 }
 0x3e7   : > { %795 = vrot.lane.b32.xlu0 %v11996_v10, %s11775_s17 }
 0x3e8   : > { %v9659_v46 = vpop.permute.xlu1 %1617 }
 0x3e9   : > { %1657 = vst.msk [vmem:[#allocation2 + $0x268] sm:$0xf0] %vm631_vm6, %v9659_v46  ;;  %2649 = vrot.lane.b32.xlu2 %v11997_v48, %s11825_s14  ;;  %v1921_v43 = vpop.permute.xlu0 %1920  ;;  %s7699_s14 = smov 115  }
 0x3ea   : > { %v1937_v29 = vsel %vm11998_vm13, %v1921_v43, %v1923_v19  ;;  %v3028_v57 = vld [vmem:[#allocation2 + $0x88] sm:$0xff]  ;;  %v1936_v58 = vsel %vm11999_vm7, %v1919_v13, %v1921_v43  ;;  %v3162_v19 = vld [vmem:[#allocation2 + $0x4b8] sm:$0xff]  ;;  %vm12008_vm13 = vcmask 875520   ;;  %vm12010_vm7 = vcmask 711680  }
 0x3eb   : > { %v900_v34 = vpop.permute.xlu2 %899  ;;  %1962 = vst [vmem:[#allocation2 + $0x328] sm:$0xf] %v1937_v29  ;;  %v3184_v28 = vpack.c.bf16 %v3028_v57, %v3015_v27  ;;  %v3029_v36 = vld [vmem:[#allocation2 + $0x90] sm:$0xff]  ;;  %v3136_v43 = vld [vmem:[#allocation2 + $0x3e8] sm:$0xff] }
 0x3ec   : > { %v3185_v2 = vpack.c.bf16 %v3029_v36, %v3016_v7  ;;  %1961 = vst [vmem:[#allocation2 + $0x320] sm:$0xf] %v1936_v58 }
 0x3ed   : > { %3374 = vmatpush.bf16.msrb.mxu0 %v3184_v28  ;;  %939 = vst.msk [vmem:[#allocation2 + $0x130] sm:$0xf] %vm527_vm10, %v900_v34 }
 0x3ee   : > { %2862 = vrot.lane.b32.xlu1 %v8809_v14, %s11811_s15  ;;  %v3301_v14 = vsel %vm3275_vm5, %v3266_v8, 0  ;;  %3387 = vmatpush.bf16.msrb.mxu1 %v3185_v2  ;;  %v12009_v2 = vld [vmem:[#allocation38_spill] sm:$0xff]  ;;  %s7701_s15 = smov 113  }
 0x3ef   : > { %587 = vrot.lane.b32.xlu0 %v12001_v5, %s11773_s26 }
 0x3f0   : > { %v9673_v59 = vpop.permute.xlu1 %1510  ;;  %7208 = vmatmul.msk.bf16.vlgmr.msrb.gmra.mxu0 %vm11575_vm8, %v9415_v11 }
 0x3f1   : > { %v1527_v23 = vsel %vm12000_vm14, %v9673_v59, %v1513_v62  ;;  %3420 = vmatpush.bf16.msra.mxu0 %v3301_v14  ;;  %v3253_v62 = vpack.c.bf16 %v3162_v19, %v3149_v35  ;;  %7209 = vmatmul.msk.bf16.vlgmr.msrb.gmra.mxu1 %vm11575_vm8, %v9415_v11  ;;  %v2227_v21 = vpop.permute.xlu0 %2226  ;;  %vm12011_vm14 = vmmov %vm12010_vm7 }
 0x3f2   : > { %1552 = vst [vmem:[#allocation2 + $0x258] sm:$0xf] %v1527_v23  ;;  %3433 = vmatpush.bf16.msra.mxu1 %v3304_v41  ;;  %v2243_v55 = vsel %vm2234_vm9, %v8761_v42, %v2227_v21  ;;  %v2244_v30 = vsel %vm2234_vm9, %v2227_v21, %v9490_v12  ;;  %v3112_v63 = vld [vmem:[#allocation2 + $0x328] sm:$0xff]  ;;  %v12002_v42 = vld [vmem:[#allocation47_spill] sm:$0xff]  ;;  %vm12003_vm9 = vcmask 859136  }
 0x3f3   : > { %v9690_v13 = vpop.permute.xlu2 %1102  ;;  %2268 = vst [vmem:[#allocation2 + $0x380] sm:$0xf0] %v2243_v55  ;;  %v3229_v38 = vpack.c.bf16 %v3112_v63, %v3099_v53  ;;  %vm12004_vm2 = vmmov %vm12003_vm9 }
 0x3f4   : > { %2269 = vst [vmem:[#allocation2 + $0x388] sm:$0xf0] %v2244_v30 }
 0x3f5   : > { %3421 = vmatpush.bf16.msra.mxu0 %v3253_v62  ;;  %3449 = vmatpush.bf16.msra.mxu2 %v3229_v38  ;;  %v12014_v62 = vld [vmem:[#allocation169_spill] sm:$0xff]  ;;  %v12016_v38 = vld [vmem:[#allocation167_spill] sm:$0xff] }
 0x3f6   : > { %3434 = vmatpush.bf16.msra.mxu1 %v3254_v26 }
 0x3f7   : > { %893 = vrot.lane.b32.xlu0 %v12002_v42, %s11787_s28 }
 0x3f8   : > { %v1817_v39 = vpop.permute.xlu1 %1816 }
 0x3f9   : > { %v1833_v11 = vsel %vm1824_vm11, %v8902_v44, %v1817_v39  ;;  %v1834_v60 = vsel %vm1824_vm11, %v1817_v39, %v9551_v40  ;;  %v1308_v12 = vpop.permute.xlu0 %1307  ;;  %v3137_v40 = vld [vmem:[#allocation2 + $0x3f0] sm:$0xff]  ;;  %vm12005_vm11 = vcmask 1014784  }
 0x3fa   : > { %1858 = vst [vmem:[#allocation2 + $0x2b0] sm:$0xf0] %v1833_v11  ;;  %v1322_v10 = vsel %vm12003_vm9, %v9631_v20, %v1308_v12  ;;  %v1323_v22 = vsel %vm12004_vm2, %v1308_v12, %v9633_v32  ;;  %v3123_v48 = vld [vmem:[#allocation2 + $0x380] sm:$0xff]  ;;  %v12006_v32 = vld [vmem:[#allocation76_spill] sm:$0xff]  ;;  %vm12012_vm9 = vmmov %vm12007_vm4  ;;  %vm12013_vm2 = vcmask 867328  }
 0x3fb   : > { %1859 = vst [vmem:[#allocation2 + $0x2b8] sm:$0xf0] %v1834_v60  ;;  %v1208_v8 = vpop.permute.xlu2 %1207  ;;  %v3240_v44 = vpack.c.bf16 %v3136_v43, %v3123_v48  ;;  %v3124_v29 = vld [vmem:[#allocation2 + $0x388] sm:$0xff] }
 0x3fc   : > { %1347 = vst [vmem:[#allocation2 + $0x1f0] sm:$0xf] %v1322_v10  ;;  %v3241_v57 = vpack.c.bf16 %v3137_v40, %v3124_v29 }
 0x3fd   : > { %1348 = vst [vmem:[#allocation2 + $0x1f8] sm:$0xf] %v1323_v22  ;;  %3422 = vmatpush.bf16.msra.mxu0 %v3240_v44 }
 0x3fe   : > { %3435 = vmatpush.bf16.msra.mxu1 %v3241_v57  ;;  %1247 = vst.msk [vmem:[#allocation2 + $0x198] sm:$0xf0] %vm631_vm6, %v1208_v8 }
 0x3ff   : > { %1201 = vrot.lane.b32.xlu0 %v12006_v32, %s11798_s21  ;;  %s7688_s21 = smov 96  }
 0x400   : > { %v9702_v27 = vpop.permute.xlu1 %897 }
 0x401   : > { %v913_v37 = vsel %vm12005_vm11, %v9702_v27, %v900_v34  ;;  %v1413_v58 = vpop.permute.xlu0 %1412  ;;  %vm12015_vm11 = vmmov %vm12007_vm4 }
 0x402   : > { %938 = vst [vmem:[#allocation2 + $0x128] sm:$0xf] %v913_v37  ;;  %v1426_v28 = vsel %vm12007_vm4, %v9603_v1, %v1413_v58 }
 0x403   : > { %1452 = vst.msk [vmem:[#allocation2 + $0x200] sm:$0xf0] %vm631_vm6, %v1413_v58  ;;  %v9712_v7 = vpop.permute.xlu2 %1100 }
 0x404   : > { %1451 = vst [vmem:[#allocation2 + $0x1f8] sm:$0xf0] %v1426_v28  ;;  %v1117_v34 = vsel %vm12008_vm13, %v9712_v7, %v9690_v13  ;;  %vm12017_vm13 = vcmask 859136  }
 0x405   : > { %1142 = vst [vmem:[#allocation2 + $0x188] sm:$0xf] %v1117_v34 }
 0x407   : > { %791 = vrot.lane.b32.xlu0 %v12009_v2, %s11775_s17 }
 0x408   : > { %v1003_v36 = vpop.permute.xlu1 %1002 }
 0x409   : > { %1042 = vst.msk [vmem:[#allocation2 + $0x130] sm:$0xf0] %vm631_vm6, %v1003_v36  ;;  %v1616_v23 = vpop.permute.xlu0 %1615 }
 0x40a   : > { %v1630_v14 = vsel %vm12010_vm7, %v9646_v15, %v1616_v23  ;;  %v1631_v19 = vsel %vm12011_vm14, %v1616_v23, %v9659_v46  ;;  %vm12018_vm7 = vmmov %vm12017_vm13 }
 0x40b   : > { %v1407_v41 = vpop.permute.xlu2 %1406  ;;  %1655 = vst [vmem:[#allocation2 + $0x258] sm:$0xf0] %v1630_v14  ;;  %v3074_v55 = vld [vmem:[#allocation2 + $0x1f8] sm:$0xff] }
 0x40c   : > { %v1423_v5 = vsel %vm12012_vm9, %v9091_v4, %v1407_v41  ;;  %1656 = vst [vmem:[#allocation2 + $0x260] sm:$0xf0] %v1631_v19  ;;  %vm12021_vm9 = vcmask 711680   ;;  %v3350_v19 = vpop.f32.mrf.mxu2 }
 0x40d   : > { %1448 = vst [vmem:[#allocation2 + $0x1e0] sm:$0xf0] %v1423_v5 }
 0x40f   : > { %2755 = vrot.lane.b32.xlu0 %v12014_v62, %s11806_s23  ;;  %s7689_s23 = smov 80  }
 0x410   : > { %v9724_v25 = vpop.permute.xlu1 %1205 }
 0x411   : > { %v1221_v35 = vsel %vm12013_vm2, %v9724_v25, %v1208_v8  ;;  %v1409_v56 = vpop.permute.xlu0 %1408  ;;  %vm12022_vm2 = vmmov %vm12021_vm9 }
 0x412   : > { %1246 = vst [vmem:[#allocation2 + $0x190] sm:$0xf0] %v1221_v35  ;;  %v1425_v46 = vsel %vm12015_vm11, %v1409_v56, %v9603_v1  ;;  %v1424_v21 = vsel %vm12007_vm4, %v1407_v41, %v1409_v56  ;;  %v3086_v60 = vld [vmem:[#allocation2 + $0x258] sm:$0xff]  ;;  %vm12023_vm11 = vcmask 359424   ;;  %vm12024_vm4 = vcmask 883712  }
 0x413   : > { %v9735_v26 = vpop.permute.xlu2 %589  ;;  %1450 = vst [vmem:[#allocation2 + $0x1f0] sm:$0xf0] %v1425_v46  ;;  %v3087_v4 = vld [vmem:[#allocation2 + $0x260] sm:$0xff] }
 0x414   : > { %v3217_v53 = vpack.c.bf16 %v3087_v4, %v3074_v55  ;;  %1449 = vst [vmem:[#allocation2 + $0x1e8] sm:$0xf0] %v1424_v21  ;;  %v3352_v55 = vpop.f32.mrf.mxu2 }
 0x416   : > { %3463 = vmatpush.bf16.msra.mxu3 %v3217_v53 }
 0x418   : > { %v9737_v30 = vpop.permute.xlu1 %998 }
 0x419   : > { %v1714_v63 = vpop.permute.xlu0 %1713 }
 0x41a   : > { %v1730_v39 = vsel %vm1721_vm3, %v12016_v38, %v1714_v63  ;;  %v1731_v11 = vsel %vm1721_vm3, %v1714_v63, %v9585_v9  ;;  %v3073_v1 = vld [vmem:[#allocation2 + $0x1f0] sm:$0xff]  ;;  %vm12019_vm3 = vcmask 556032  }
 0x41b   : > { %v695_v42 = vpop.permute.xlu2 %694  ;;  %1755 = vst [vmem:[#allocation2 + $0x2b0] sm:$0xf] %v1730_v39  ;;  %v3216_v12 = vpack.c.bf16 %v3086_v60, %v3073_v1  ;;  %vm12020_vm14 = vmmov %vm12019_vm3 }
 0x41c   : > { %1756 = vst [vmem:[#allocation2 + $0x2b8] sm:$0xf] %v1731_v11 }
 0x41d   : > { %3450 = vmatpush.bf16.msra.mxu2 %v3216_v12  ;;  %734 = vst.msk [vmem:[#allocation2 + $0xc8] sm:$0xf] %vm527_vm10, %v695_v42 }
 0x420   : > { %v1304_v10 = vpop.permute.xlu1 %1303 }
 0x421   : > { %v1320_v22 = vsel %vm12017_vm13, %v9193_v0, %v1304_v10  ;;  %v1321_v48 = vsel %vm12018_vm7, %v1304_v10, %v9631_v20  ;;  %v2022_v43 = vpop.permute.xlu0 %2021  ;;  %vm12025_vm13 = vmmov %vm12024_vm4  ;;  %vm3504_vm7 = vcmask 1043456   ;;  %v3337_v10 = vpop.f32.mrf.mxu1 }
 0x422   : > { %1345 = vst [vmem:[#allocation2 + $0x1e0] sm:$0xf] %v1320_v22  ;;  %v2038_v9 = vsel %vm12019_vm3, %v9007_v47, %v2022_v43  ;;  %v2039_v8 = vsel %vm12020_vm14, %v2022_v43, %v9605_v49  ;;  %v3097_v37 = vld [vmem:[#allocation2 + $0x2b0] sm:$0xff]  ;;  %vm12026_vm3 = vcmask 875520   ;;  %v3324_v22 = vpop.f32.mrf.mxu0 }
 0x423   : > { %1346 = vst [vmem:[#allocation2 + $0x1e8] sm:$0xf] %v1321_v48  ;;  %v2969_v44 = vpop.permute.xlu2 %2968  ;;  %vm12027_vm14 = vmmov %vm12026_vm3 }
 0x424   : > { %2063 = vst [vmem:[#allocation2 + $0x318] sm:$0xf0] %v2038_v9  ;;  %v2983_v40 = vsel %vm12023_vm11, %v9093_v18, %v2969_v44  ;;  %v3363_v18 = vpop.f32.mrf.mxu3  ;;  %vm12030_vm11 = vcmask 867328  }
 0x425   : > { %2064 = vst [vmem:[#allocation2 + $0x320] sm:$0xf0] %v2039_v8  ;;  %v3499_v14 = vrot.slane %v3363_v18, 4 }
 0x426   : > { %3009 = vst.msk [vmem:[#allocation2 + $0x540] sm:$0xf] %vm527_vm10, %v2983_v40 }
 0x428   : > { %v1612_v29 = vpop.permute.xlu1 %1611 }
 0x429   : > { %v1628_v0 = vsel %vm12021_vm9, %v9226_v17, %v1612_v29  ;;  %v1629_v20 = vsel %vm12022_vm2, %v1612_v29, %v9646_v15  ;;  %v1001_v47 = vpop.permute.xlu0 %1000  ;;  %v3098_v15 = vld [vmem:[#allocation2 + $0x2b8] sm:$0xff]  ;;  %vm12028_vm9 = vmmov %vm12026_vm3  ;;  %vm12029_vm2 = vcmask 1014784   ;;  %v3071_v18 = vld [vmem:[#allocation2 + $0x1e0] sm:$0xff] }
 0x42a   : > { %1653 = vst [vmem:[#allocation2 + $0x248] sm:$0xf0] %v1628_v0  ;;  %v1015_v49 = vsel %vm12024_vm4, %v9737_v30, %v1001_v47  ;;  %v1016_v57 = vsel %vm12025_vm13, %v1001_v47, %v1003_v36  ;;  %v3506_v36 = vsel %vm3504_vm7, %v3350_v19, %v3499_v14  ;;  %vm12031_vm4 = vcmask 384000   ;;  %v3339_v47 = vpop.f32.mrf.mxu1  ;;  %v3072_v14 = vld [vmem:[#allocation2 + $0x1e8] sm:$0xff] }
 0x42b   : > { %1654 = vst [vmem:[#allocation2 + $0x250] sm:$0xf0] %v1629_v20  ;;  %v3110_v32 = vld [vmem:[#allocation2 + $0x318] sm:$0xff]  ;;  %v9762_v58 = vpop.permute.xlu2 %793 }
 0x42c   : > { %1040 = vst [vmem:[#allocation2 + $0x120] sm:$0xf0] %v1015_v49  ;;  %v3227_v17 = vpack.c.bf16 %v3110_v32, %v3097_v37  ;;  %v3111_v28 = vld [vmem:[#allocation2 + $0x320] sm:$0xff]  ;;  %v3365_v21 = vpop.f32.mrf.mxu3 }
 0x42d   : > { %1041 = vst [vmem:[#allocation2 + $0x128] sm:$0xf0] %v1016_v57  ;;  %v3228_v2 = vpack.c.bf16 %v3111_v28, %v3098_v15  ;;  %v3326_v57 = vpop.f32.mrf.mxu0  ;;  %v3179_v47 = vld [vmem:[#allocation2 + $0x540] sm:$0xf] }
 0x42e   : > { %3423 = vmatpush.bf16.msra.mxu0 %v3227_v17  ;;  %3518 = vst [vmem:[#allocation3 + $0x8] sm:$0x77] %v3506_v36  ;;  %v3270_v57 = vpack.c.bf16 %v3179_v47, %v3179_v47 }
 0x42f   : > { %3436 = vmatpush.bf16.msra.mxu1 %v3228_v2 }
 0x430   : > { %v693_v34 = vpop.permute.xlu1 %692 }
 0x431   : > { %v708_v23 = vsel %vm11584_vm1, %v693_v34, %v695_v42  ;;  %v1105_v41 = vpop.permute.xlu0 %1104 }
 0x432   : > { %733 = vst [vmem:[#allocation2 + $0xc0] sm:$0xf] %v708_v23  ;;  %v1118_v5 = vsel %vm12026_vm3, %v9690_v13, %v1105_v41  ;;  %vm12032_vm3 = vmmov %vm12025_vm13 }
 0x433   : > { %1144 = vst.msk [vmem:[#allocation2 + $0x198] sm:$0xf] %vm527_vm10, %v1105_v41  ;;  %v1099_v35 = vpop.permute.xlu2 %1098 }
 0x434   : > { %1143 = vst [vmem:[#allocation2 + $0x190] sm:$0xf] %v1118_v5  ;;  %v1115_v56 = vsel %vm12027_vm14, %v9307_v45, %v1099_v35  ;;  %v1116_v46 = vsel %vm12028_vm9, %v1099_v35, %v9712_v7  ;;  %v3048_v53 = vld [vmem:[#allocation2 + $0x128] sm:$0xff]  ;;  %v3415_v11 = vpop.f32.mrf.mxu3  ;;  %v3402_v12 = vpop.f32.mrf.mxu2  ;;  %vm12033_vm14 = vcmask 719872  }
 0x435   : > { %1140 = vst [vmem:[#allocation2 + $0x178] sm:$0xf] %v1115_v56  ;;  %v3501_v42 = vrot.slane %v3415_v11, 4  ;;  %vm12034_vm9 = vmmov %vm12033_vm14 }
 0x436   : > { %1141 = vst [vmem:[#allocation2 + $0x180] sm:$0xf] %v1116_v46 }
 0x437   : > { %v3508_v48 = vsel %vm3504_vm7, %v3402_v12, %v3501_v42 }
 0x438   : > { %v9769_v62 = vpop.permute.xlu1 %797  ;;  %3520 = vst [vmem:[#allocation3 + $0x18] sm:$0x77] %v3508_v48 }
 0x439   : > { %837 = vst.msk [vmem:[#allocation2 + $0xc8] sm:$0xf0] %vm631_vm6, %v9769_v62  ;;  %v9777_v13 = vpop.permute.xlu0 %895 }
 0x43a   : > { %v912_v4 = vsel %vm12029_vm2, %v9777_v13, %v9702_v27  ;;  %v3498_v27 = vrot.slane %v3337_v10, 4  ;;  %vm12035_vm2 = vcmask 1022976  }
 0x43b   : > { %v3061_v63 = vld [vmem:[#allocation2 + $0x190] sm:$0xff]  ;;  %v689_v38 = vpop.permute.xlu2 %688  ;;  %937 = vst [vmem:[#allocation2 + $0x120] sm:$0xf] %v912_v4 }
 0x43c   : > { %v3204_v45 = vpack.c.bf16 %v3061_v63, %v3048_v53  ;;  %v705_v7 = vsel %vm11584_vm1, %v9463_v51, %v689_v38  ;;  %v3505_v43 = vsel %vm3504_vm7, %v3324_v22, %v3498_v27  ;;  %v3417_v0 = vpop.f32.mrf.mxu3  ;;  %v3404_v49 = vpop.f32.mrf.mxu2 }
 0x43d   : > { %730 = vst [vmem:[#allocation2 + $0xa8] sm:$0xf] %v705_v7 }
 0x43e   : > { %3464 = vmatpush.bf16.msra.mxu3 %v3204_v45  ;;  %3517 = vst [vmem:[#allocation3] sm:$0x77] %v3505_v43 }
 0x440   : > { %v691_v39 = vpop.permute.xlu1 %690 }
 0x441   : > { %v707_v1 = vsel %vm11584_vm1, %v691_v39, %v693_v34  ;;  %v706_v60 = vsel %vm11584_vm1, %v689_v38, %v691_v39  ;;  %v9788_v51 = vpop.permute.xlu0 %1203 }
 0x442   : > { %732 = vst [vmem:[#allocation2 + $0xb8] sm:$0xf] %v707_v1  ;;  %v1220_v9 = vsel %vm12030_vm11, %v9788_v51, %v9724_v25  ;;  %v9800_v25 = vld [vmem:[#allocation3 + $0x18] sm:$0x77]  ;;  %vm12036_vm11 = vmmov %vm12035_vm2 }
 0x443   : > { %731 = vst [vmem:[#allocation2 + $0xb0] sm:$0xf] %v706_v60  ;;  %v2650_v8 = vpop.permute.xlu2 %2649  ;;  %3545 = vrot.lane.b32.xlu1 %v9800_v25, %s11773_s26 }
 0x444   : > { %1245 = vst [vmem:[#allocation2 + $0x188] sm:$0xf0] %v1220_v9  ;;  %v2664_v29 = vsel %vm12031_vm4, %v9342_v50, %v2650_v8 }
 0x445   : > { %2690 = vst.msk [vmem:[#allocation2 + $0x470] sm:$0xf0] %vm631_vm6, %v2664_v29  ;;  %v9810_v34 = vld [vmem:[#allocation3] sm:$0x77] }
 0x448   : > { %v997_v44 = vpop.permute.xlu1 %996 }
 0x449   : > { %v1013_v20 = vsel %vm12025_vm13, %v9220_v52, %v997_v44  ;;  %v1014_v40 = vsel %vm12032_vm3, %v997_v44, %v9737_v30  ;;  %v1509_v50 = vpop.permute.xlu0 %1508  ;;  %v3047_v30 = vld [vmem:[#allocation2 + $0x120] sm:$0xff]  ;;  %vm12041_vm13 = vmmov %vm12035_vm2 }
 0x44a   : > { %1038 = vst [vmem:[#allocation2 + $0x110] sm:$0xf0] %v1013_v20  ;;  %v1525_v37 = vsel %vm12033_vm14, %v9142_v6, %v1509_v50  ;;  %v1526_v52 = vsel %vm12034_vm9, %v1509_v50, %v9673_v59  ;;  %vm12042_vm3 = vmmov %vm12035_vm2  ;;  %vm12043_vm14 = vcmask 375808   ;;  %vm12044_vm9 = vcmask 883712  }
 0x44b   : > { %1039 = vst [vmem:[#allocation2 + $0x118] sm:$0xf0] %v1014_v40  ;;  %v3060_v32 = vld [vmem:[#allocation2 + $0x188] sm:$0xff]  ;;  %3539 = vrot.lane.b32.xlu1 %v9810_v34, %s11773_s26 }
 0x44c   : > { %1550 = vst [vmem:[#allocation2 + $0x248] sm:$0xf] %v1525_v37  ;;  %v3203_v17 = vpack.c.bf16 %v3060_v32, %v3047_v30 }
 0x44d   : > { %1551 = vst [vmem:[#allocation2 + $0x250] sm:$0xf] %v1526_v52 }
 0x44e   : > { %3451 = vmatpush.bf16.msra.mxu2 %v3203_v17  ;;  %v3313_v17 = vsel %vm3275_vm5, %v3270_v57, 0  ;;  %vm3484_vm5 = vcmask 690688   ;;  %v9924_v57 = vld [vmem:[%s11461_s3 + $0x78] sm:$0xff] }
 0x450   : > { %v586_v15 = vpop.permute.xlu1 %585 }
 0x451   : > { %v602_v28 = vsel %vm11587_vm0, %v9368_v16, %v586_v15  ;;  %v592_v6 = vpop.permute.xlu0 %591 }
 0x452   : > { %627 = vst [vmem:[#allocation2 + $0x40] sm:$0xf0] %v602_v28  ;;  %v605_v59 = vsel %vm11587_vm0, %v9735_v26, %v592_v6 }
 0x453   : > { %632 = vst.msk [vmem:[#allocation2 + $0x60] sm:$0xf0] %vm631_vm6, %v592_v6  ;;  %v3084_v2 = vld [vmem:[#allocation2 + $0x248] sm:$0xff]  ;;  %v3127_v6 = vld [vmem:[#allocation2 + $0x3a0] sm:$0xff] }
 0x454   : > { %630 = vst [vmem:[#allocation2 + $0x58] sm:$0xf0] %v605_v59  ;;  %v3214_v23 = vpack.c.bf16 %v3084_v2, %v3071_v18  ;;  %v3085_v19 = vld [vmem:[#allocation2 + $0x250] sm:$0xff]  ;;  %v3140_v59 = vld [vmem:[#allocation2 + $0x408] sm:$0xff]  ;;  %v3114_v2 = vld [vmem:[#allocation2 + $0x338] sm:$0xff] }
 0x455   : > { %v3215_v36 = vpack.c.bf16 %v3085_v19, %v3072_v14  ;;  %v3244_v18 = vpack.c.bf16 %v3140_v59, %v3127_v6  ;;  %v3075_v19 = vld [vmem:[#allocation2 + $0x200] sm:$0xff]  ;;  %v9996_v6 = vld [vmem:[%s11461_s3 + $0x58] sm:$0xff] }
 0x456   : > { %3424 = vmatpush.bf16.msra.mxu0 %v3214_v23  ;;  %v3101_v23 = vld [vmem:[#allocation2 + $0x2d0] sm:$0xff] }
 0x457   : > { %3437 = vmatpush.bf16.msra.mxu1 %v3215_v36  ;;  %v3231_v14 = vpack.c.bf16 %v3114_v2, %v3101_v23  ;;  %v10001_v59 = vld [vmem:[%s11461_s3 + $0x98] sm:$0xff]  ;;  %v10014_v2 = vld [vmem:[%s11461_s3 + $0x50] sm:$0xff] }
 0x458   : > { %v2543_v16 = vpop.permute.xlu1 %2542  ;;  %v10019_v23 = vld [vmem:[%s11461_s3 + $0x90] sm:$0xff] }
 0x459   : > { %v2557_v41 = vsel %vm2544_vm15, %v9248_v24, %v2543_v16  ;;  %v796_v5 = vpop.permute.xlu0 %795  ;;  %v3088_v16 = vld [vmem:[#allocation2 + $0x268] sm:$0xff] }
 0x45a   : > { %2583 = vst.msk [vmem:[#allocation2 + $0x470] sm:$0xf] %vm527_vm10, %v2557_v41  ;;  %v810_v35 = vsel %vm12035_vm2, %v9762_v58, %v796_v5  ;;  %v811_v56 = vsel %vm12036_vm11, %v796_v5, %v9769_v62  ;;  %v9830_v62 = vld [vmem:[#allocation3 + $0x8] sm:$0x77]  ;;  %v3218_v36 = vpack.c.bf16 %v3088_v16, %v3075_v19  ;;  %v3062_v41 = vld [vmem:[#allocation2 + $0x198] sm:$0xff]  ;;  %v10032_v19 = vld [vmem:[%s11461_s3 + $0x48] sm:$0xff] }
 0x45b   : > { %835 = vst [vmem:[#allocation2 + $0xb8] sm:$0xf0] %v810_v35  ;;  %v3022_v53 = vld [vmem:[#allocation2 + $0x58] sm:$0xff]  ;;  %3541 = vrot.lane.b32.xlu2 %v9830_v62, %s11773_s26  ;;  %v3049_v5 = vld [vmem:[#allocation2 + $0x130] sm:$0xff]  ;;  %v10037_v16 = vld [vmem:[%s11461_s3 + $0x88] sm:$0xff]  ;;  %vm11572_vm11 = vcmask 130048  }
 0x45c   : > { %836 = vst [vmem:[#allocation2 + $0xc0] sm:$0xf0] %v811_v56  ;;  %v3205_v35 = vpack.c.bf16 %v3062_v41, %v3049_v5  ;;  %v3023_v56 = vld [vmem:[#allocation2 + $0x60] sm:$0xff]  ;;  %v10050_v41 = vld [vmem:[%s11461_s3 + $0x40] sm:$0xff]  ;;  %vm12045_vm2 = vmmov %vm12044_vm9 }
 0x45d   : > { %v10055_v5 = vld [vmem:[%s11461_s3 + $0x80] sm:$0xff] }
 0x460   : > { %v2863_v46 = vpop.permute.xlu1 %2862 }
 0x461   : > { %v2877_v21 = vsel %vm2864_vm12, %v9284_v3, %v2863_v46  ;;  %v588_v24 = vpop.permute.xlu0 %587  ;;  %v9837_v3 = vld [vmem:[%s11459_s1] sm:$0x3]  ;;  %vm12037_vm12 = vcmask 1014784   ;;  %v3036_v46 = vld [vmem:[#allocation2 + $0xc8] sm:$0xff] }
 0x462   : > { %2903 = vst.msk [vmem:[#allocation2 + $0x4d8] sm:$0xf0] %vm631_vm6, %v2877_v21  ;;  %v603_v55 = vsel %vm11587_vm0, %v586_v15, %v588_v24  ;;  %v604_v4 = vsel %vm11587_vm0, %v588_v24, %v9735_v26  ;;  %vm12038_vm15 = vmmov %vm12037_vm12  ;;  %v3034_v11 = vld [vmem:[#allocation2 + $0xb8] sm:$0xff]  ;;  %vm12039_vm6 = vcmask 867328   ;;  %v3192_v21 = vpack.c.bf16 %v3036_v46, %v3023_v56 }
 0x463   : > { %628 = vst [vmem:[#allocation2 + $0x48] sm:$0xf0] %v603_v55  ;;  %v3035_v63 = vld [vmem:[#allocation2 + $0xc0] sm:$0xff]  ;;  %vm12040_vm4 = vmmov %vm12039_vm6 }
 0x464   : > { %629 = vst [vmem:[#allocation2 + $0x50] sm:$0xf0] %v604_v4  ;;  %v3191_v38 = vpack.c.bf16 %v3035_v63, %v3022_v53 }
 0x466   : > { %3465 = vmatpush.bf16.msra.mxu3 %v3191_v38 }
 0x469   : > { %7215 = vmatmul.msk.bf16.vlgmr.msra.gmra.mxu3 %vm11575_vm8, %v9837_v3  ;;  %v894_v26 = vpop.permute.xlu0 %893 }
 0x46a   : > { %v910_v45 = vsel %vm12037_vm12, %v9171_v31, %v894_v26  ;;  %v911_v39 = vsel %vm12038_vm15, %v894_v26, %v9777_v13  ;;  %v3020_v52 = vld [vmem:[#allocation2 + $0x48] sm:$0xff]  ;;  %vm12046_vm12 = vmmov %vm12045_vm2 }
 0x46b   : > { %935 = vst [vmem:[#allocation2 + $0x110] sm:$0xf] %v910_v45  ;;  %v3021_v7 = vld [vmem:[#allocation2 + $0x50] sm:$0xff]  ;;  %vm12047_vm15 = vmmov %vm12045_vm2 }
 0x46c   : > { %936 = vst [vmem:[#allocation2 + $0x118] sm:$0xf] %v911_v39  ;;  %v3190_v1 = vpack.c.bf16 %v3034_v11, %v3021_v7 }
 0x46d   : > { %v3376_v60 = vpop.f32.mrf.mxu0 }
 0x46e   : > { %v3389_v42 = vpop.f32.mrf.mxu1  ;;  %3452 = vmatpush.bf16.msra.mxu2 %v3190_v1 }
 0x46f   : > { %v3500_v12 = vrot.slane %v3389_v42, 4 }
 0x471   : > { %v3507_v10 = vsel %vm3504_vm7, %v3376_v60, %v3500_v12  ;;  %7214 = vmatmul.msk.bf16.vlgmr.msra.gmra.mxu2 %vm11575_vm8, %v9837_v3  ;;  %v1202_v27 = vpop.permute.xlu0 %1201 }
 0x472   : > { %3519 = vst [vmem:[#allocation3 + $0x10] sm:$0x77] %v3507_v10  ;;  %v1218_v31 = vsel %vm12039_vm6, %v9200_v61, %v1202_v27  ;;  %v1219_v13 = vsel %vm12040_vm4, %v1202_v27, %v9788_v51  ;;  %v3045_v61 = vld [vmem:[#allocation2 + $0x110] sm:$0xff]  ;;  %3884 = vmatpush.bf16.msrb.mxu2 %v9924_v57  ;;  %vm12048_vm6 = vmmov %vm12045_vm2 }
 0x473   : > { %1243 = vst [vmem:[#allocation2 + $0x178] sm:$0xf0] %v1218_v31  ;;  %v3046_v0 = vld [vmem:[#allocation2 + $0x118] sm:$0xff]  ;;  %vm12049_vm4 = vmmov %vm12045_vm2 }
 0x474   : > { %1244 = vst [vmem:[#allocation2 + $0x180] sm:$0xf0] %v1219_v13 }
 0x475   : > { %v3378_v22 = vpop.f32.mrf.mxu0 }
 0x476   : > { %v3391_v48 = vpop.f32.mrf.mxu1 }
 0x479   : > { %v9852_v43 = vld [vmem:[#allocation3 + $0x10] sm:$0x77]  ;;  %v792_v9 = vpop.permute.xlu0 %791 }
 0x47a   : > { %3543 = vrot.lane.b32.xlu0 %v9852_v43, %s11773_s26  ;;  %v808_v8 = vsel %vm12041_vm13, %v9349_v33, %v792_v9  ;;  %v809_v44 = vsel %vm12042_vm3, %v792_v9, %v9762_v58  ;;  %v3058_v29 = vld [vmem:[#allocation2 + $0x178] sm:$0xff]  ;;  %v3019_v33 = vld [vmem:[#allocation2 + $0x40] sm:$0xff]  ;;  %v11576_v9 = vmov 0.0   ;;  %vm11571_vm13 = vcmask 785408  }
 0x47b   : > { %833 = vst [vmem:[#allocation2 + $0xa8] sm:$0xf0] %v808_v8  ;;  %v3201_v51 = vpack.c.bf16 %v3058_v29, %v3045_v61  ;;  %v3059_v20 = vld [vmem:[#allocation2 + $0x180] sm:$0xff]  ;;  %vm11574_vm3 = vcmask 654336  }
 0x47c   : > { %834 = vst [vmem:[#allocation2 + $0xb0] sm:$0xf0] %v809_v44  ;;  %v3202_v40 = vpack.c.bf16 %v3059_v20, %v3046_v0 }
 0x47d   : > { %3425 = vmatpush.bf16.msra.mxu0 %v3201_v51  ;;  %3485 = vst.msk [vmem:[#allocation3 + $0x30] sm:$0x7] %vm3484_vm5, %v11576_v9  ;;  %vm3933_vm5 = vcmask 584192  }
 0x47e   : > { %3438 = vmatpush.bf16.msra.mxu1 %v3202_v40  ;;  %3691 = vst [vmem:[#allocation8] sm:$0x77] %v11576_v9 }
 0x47f   : > { %3692 = vst [vmem:[#allocation8 + $0x8] sm:$0x77] %v11576_v9 }
 0x480   : > { %5739 = vst [vmem:[#allocation9] sm:$0x3f] %v11576_v9 }
 0x481   : > { %v2756_v49 = vpop.permute.xlu0 %2755  ;;  %5740 = vst [vmem:[#allocation9 + $0x8] sm:$0x3f] %v11576_v9 }
 0x482   : > { %v2770_v50 = vsel %vm12043_vm14, %v9233_v54, %v2756_v49  ;;  %v3032_v37 = vld [vmem:[#allocation2 + $0xa8] sm:$0xff]  ;;  %v3153_v54 = vld [vmem:[#allocation2 + $0x470] sm:$0xff]  ;;  %vm3928_vm14 = vcmask 485792  }
 0x483   : > { %2796 = vst.msk [vmem:[#allocation2 + $0x4d8] sm:$0xf] %vm527_vm10, %v2770_v50  ;;  %v3188_v58 = vpack.c.bf16 %v3032_v37, %v3019_v33  ;;  %v3033_v30 = vld [vmem:[#allocation2 + $0xb0] sm:$0xff]  ;;  %vm3523_vm10 = vcmask 518144   ;;  %v9937_v33 = vld [vmem:[%s11461_s3 + $0x30] sm:$0xff] }
 0x484   : > { %v3189_v32 = vpack.c.bf16 %v3033_v30, %v3020_v52  ;;  %v9919_v49 = vld [vmem:[%s11461_s3 + $0x38] sm:$0xff]  ;;  %v9942_v37 = vld [vmem:[%s11461_s3 + $0x70] sm:$0xff]  ;;  %v9955_v52 = vld [vmem:[%s11461_s3 + $0x28] sm:$0xff] }
 0x485   : > { %3426 = vmatpush.bf16.msra.mxu0 %v3188_v58  ;;  %v9929_v50 = vld [vmem:[%s11461_s3 + $0xb8] sm:$0xff]  ;;  %v9947_v58 = vld [vmem:[%s11461_s3 + $0xb0] sm:$0xff]  ;;  %3885 = vmatpush.bf16.msrb.mxu2 %v9942_v37  ;;  %v9960_v30 = vld [vmem:[%s11461_s3 + $0x68] sm:$0xff] }
 0x486   : > { %3439 = vmatpush.bf16.msra.mxu1 %v3189_v32  ;;  %3897 = vmatpush.bf16.msrb.mxu3 %v9929_v50  ;;  %v9965_v32 = vld [vmem:[%s11461_s3 + $0xa8] sm:$0xff] }
 0x488   : > { %7212 = vmatmul.msk.bf16.vlgmr.msra.gmra.mxu0 %vm11575_vm8, %v9837_v3 }
 0x489   : > { %3472 = vmatpush.bf16.msrb.mxu0 %v3313_v17  ;;  %7213 = vmatmul.msk.bf16.vlgmr.msra.gmra.mxu1 %vm11575_vm8, %v9837_v3  ;;  %v9973_v17 = vld [vmem:[%s11461_s3 + $0x20] sm:$0xff] }
 0x48a   : > { %v3166_v15 = vld [vmem:[#allocation2 + $0x4d8] sm:$0xff]  ;;  %3871 = vmatpush.bf16.msrb.mxu1 %v9919_v49  ;;  %3898 = vmatpush.bf16.msrb.mxu3 %v9947_v58 }
 0x48b   : > { %v3257_v28 = vpack.c.bf16 %v3166_v15, %v3153_v54  ;;  %3886 = vmatpush.bf16.msrb.mxu2 %v9960_v30  ;;  %v9978_v54 = vld [vmem:[%s11461_s3 + $0x60] sm:$0xff] }
 0x48c   : > { %v9983_v15 = vld [vmem:[%s11461_s3 + $0xa0] sm:$0xff] }
 0x48d   : > { %3473 = vmatpush.bf16.msrb.mxu0 %v3257_v28  ;;  %v9991_v28 = vld [vmem:[%s11461_s3 + $0x18] sm:$0xff] }
 0x48e   : > { %3872 = vmatpush.bf16.msrb.mxu1 %v9937_v33  ;;  %3899 = vmatpush.bf16.msrb.mxu3 %v9965_v32 }
 0x48f   : > { %3887 = vmatpush.bf16.msrb.mxu2 %v9978_v54 }
 0x491   : > { %3474 = vmatpush.bf16.msrb.mxu0 %v3244_v18  ;;  %v10009_v18 = vld [vmem:[%s11461_s3 + $0x10] sm:$0xff] }
 0x492   : > { %3873 = vmatpush.bf16.msrb.mxu1 %v9955_v52  ;;  %3900 = vmatpush.bf16.msrb.mxu3 %v9983_v15 }
 0x493   : > { %3888 = vmatpush.bf16.msrb.mxu2 %v9996_v6 }
 0x495   : > { %3475 = vmatpush.bf16.msrb.mxu0 %v3231_v14  ;;  %v10027_v14 = vld [vmem:[%s11461_s3 + $0x8] sm:$0xff] }
 0x496   : > { %3874 = vmatpush.bf16.msrb.mxu1 %v9973_v17  ;;  %3901 = vmatpush.bf16.msrb.mxu3 %v10001_v59 }
 0x497   : > { %3889 = vmatpush.bf16.msrb.mxu2 %v10014_v2 }
 0x499   : > { %3476 = vmatpush.bf16.msrb.mxu0 %v3218_v36  ;;  %v10045_v36 = vld [vmem:[%s11461_s3] sm:$0xff] }
 0x49a   : > { %3875 = vmatpush.bf16.msrb.mxu1 %v9991_v28  ;;  %3902 = vmatpush.bf16.msrb.mxu3 %v10019_v23 }
 0x49b   : > { %3890 = vmatpush.bf16.msrb.mxu2 %v10032_v19 }
 0x49d   : > { %3477 = vmatpush.bf16.msrb.mxu0 %v3205_v35  ;;  %v10060_v35 = vld [vmem:[%s11461_s3 + $0xc0] sm:$0xff] }
 0x49e   : > { %3876 = vmatpush.bf16.msrb.mxu1 %v10009_v18  ;;  %3903 = vmatpush.bf16.msrb.mxu3 %v10037_v16 }
 0x49f   : > { %3891 = vmatpush.bf16.msrb.mxu2 %v10050_v41 }
 0x4a1   : > { %3478 = vmatpush.bf16.msrb.mxu0 %v3192_v21 }
 0x4a2   : > { %3877 = vmatpush.bf16.msrb.mxu1 %v10027_v14  ;;  %3904 = vmatpush.bf16.msrb.mxu3 %v10055_v5 }
 0x4a3   : > { %4017 = vmatpush.bf16.msra.mxu2 %v9924_v57 }
 0x4a4   : > { %7216 = vmatmul.msk.bf16.vlgmr.msrb.gmra.mxu0 %vm11575_vm8, %v9837_v3  ;;  %vm4198_vm8 = vcmask 846592  }
 0x4a5   : > { %3917 = vmatpush.bf16.msra.mxu0 %v10060_v35 }
 0x4a6   : > { %3878 = vmatpush.bf16.msrb.mxu1 %v10045_v36  ;;  %4030 = vmatpush.bf16.msra.mxu3 %v9929_v50 }
 0x4a7   : > { %4018 = vmatpush.bf16.msra.mxu2 %v9942_v37 }
 0x4a9   : > { %4050 = vmatpush.bf16.msrb.mxu0 %v10060_v35 }
 0x4aa   : > { %4004 = vmatpush.bf16.msra.mxu1 %v9919_v49  ;;  %4031 = vmatpush.bf16.msra.mxu3 %v9947_v58 }
 0x4ab   : > { %4019 = vmatpush.bf16.msra.mxu2 %v9960_v30 }
 0x4ae   : > { %4005 = vmatpush.bf16.msra.mxu1 %v9937_v33  ;;  %4032 = vmatpush.bf16.msra.mxu3 %v9965_v32 }
 0x4af   : > { %4020 = vmatpush.bf16.msra.mxu2 %v9978_v54 }
 0x4b2   : > { %4006 = vmatpush.bf16.msra.mxu1 %v9955_v52  ;;  %4033 = vmatpush.bf16.msra.mxu3 %v9983_v15 }
 0x4b3   : > { %4021 = vmatpush.bf16.msra.mxu2 %v9996_v6 }
 0x4b5   : > { %v9870_v24 = vpop.permute.xlu1 %3545  ;;  %v3542_v4 = vpop.permute.xlu2 %3541 }
 0x4b6   : > { %v3556_v55 = vrot.slane %v9870_v24, 4  ;;  %v3554_v45 = vrot.slane %v3542_v4, 4  ;;  %4007 = vmatpush.bf16.msra.mxu1 %v9973_v17  ;;  %4034 = vmatpush.bf16.msra.mxu3 %v10001_v59 }
 0x4b7   : > { %4022 = vmatpush.bf16.msra.mxu2 %v10014_v2 }
 0x4ba   : > { %4008 = vmatpush.bf16.msra.mxu1 %v9991_v28  ;;  %4035 = vmatpush.bf16.msra.mxu3 %v10019_v23 }
 0x4bb   : > { %4023 = vmatpush.bf16.msra.mxu2 %v10032_v19 }
 0x4bd   : > { %v3540_v53 = vpop.permute.xlu1 %3539 }
 0x4be   : > { %v3553_v39 = vrot.slane %v3540_v53, 4  ;;  %4009 = vmatpush.bf16.msra.mxu1 %v10009_v18  ;;  %4036 = vmatpush.bf16.msra.mxu3 %v10037_v16 }
 0x4bf   : > { %4024 = vmatpush.bf16.msra.mxu2 %v10050_v41 }
 0x4c0   : > { %v3560_v60 = vsel %vm3504_vm7, %v3553_v39, %v3554_v45 }
 0x4c1   : > { %v3561_v27 = vsel %vm11587_vm0, %v3540_v53, %v3560_v60 }
 0x4c2   : > { %v9886_v31 = vmax.f32 %v9810_v34, %v3561_v27  ;;  %4010 = vmatpush.bf16.msra.mxu1 %v10027_v14  ;;  %4037 = vmatpush.bf16.msra.mxu3 %v10055_v5 }
 0x4c6   : > { %4011 = vmatpush.bf16.msra.mxu1 %v10045_v36 }
 0x4ec   : > { %v3467_v63 = vpop.f32.mrf.mxu3  ;;  %v3544_v38 = vpop.permute.xlu0 %3543 }
 0x4ed   : > { %v3555_v26 = vrot.slane %v3544_v38, 4  ;;  %v3503_v1 = vrot.slane %v3467_v63, 4 }
 0x4ef   : > { %v3564_v7 = vsel %vm3504_vm7, %v3555_v26, %v3556_v55  ;;  %v3562_v48 = vsel %vm3504_vm7, %v3554_v45, %v3555_v26 }
 0x4f0   : > { %v3565_v11 = vsel %vm11587_vm0, %v3544_v38, %v3564_v7 }
 0x4f1   : > { %v9878_v3 = vmax.f32 %v9852_v43, %v3565_v11  ;;  %v3563_v43 = vsel %vm11587_vm0, %v3542_v4, %v3562_v48 }
 0x4f2   : > { %v9899_v34 = vmax.f32 %v9830_v62, %v3563_v43 }
 0x4f3   : > { %3597 = vrot.lane.b32.xlu1 %v9878_v3, %s11792_s19 }
 0x4f4   : > { %v3454_v42 = vpop.f32.mrf.mxu2  ;;  %v3469_v12 = vpop.f32.mrf.mxu3 }
 0x4f5   : > { %v3510_v10 = vsel %vm3504_vm7, %v3454_v42, %v3503_v1 }
 0x4f6   : > { %3522 = vst [vmem:[#allocation3 + $0x28] sm:$0x77] %v3510_v10 }
 0x4fb   : > { %3593 = vrot.lane.b32.xlu1 %v9886_v31, %s11792_s19 }
 0x4fc   : > { %v3456_v13 = vpop.f32.mrf.mxu2 }
 0x4fd   : > { %v9890_v22 = vld [vmem:[#allocation3 + $0x28] sm:$0x77] }
 0x4fe   : > { %3549 = vrot.lane.b32.xlu0 %v9890_v22, %s11773_s26 }
 0x505   : > { %v3428_v8 = vpop.f32.mrf.mxu0 }
 0x506   : > { %v3441_v44 = vpop.f32.mrf.mxu1  ;;  %3595 = vrot.lane.b32.xlu0 %v9899_v34, %s11792_s19 }
 0x507   : > { %v3502_v61 = vrot.slane %v3441_v44, 4 }
 0x509   : > { %v3509_v29 = vsel %vm3504_vm7, %v3428_v8, %v3502_v61 }
 0x50a   : > { %3521 = vst [vmem:[#allocation3 + $0x20] sm:$0x77] %v3509_v29 }
 0x50d   : > { %v3430_v51 = vpop.f32.mrf.mxu0 }
 0x50e   : > { %v3443_v0 = vpop.f32.mrf.mxu1 }
 0x511   : > { %v9907_v20 = vld [vmem:[#allocation3 + $0x20] sm:$0x77] }
 0x512   : > { %3547 = vrot.lane.b32.xlu2 %v9907_v20, %s11773_s26 }
 0x521   : > { %v3480_v62 = vpop.f32.mrf.mxu0 }
 0x522   : > { %3524 = vst.msk [vmem:[#allocation3 + $0x30] sm:$0x7] %vm3523_vm10, %v3480_v62 }
 0x529   : > { %v9912_v40 = vld [vmem:[#allocation3 + $0x30] sm:$0x7]  ;;  %v3482_v47 = vpop.f32.mrf.mxu0 }
 0x52a   : > { %3551 = vrot.lane.b32.xlu2 %v9912_v40, %s11773_s26 }
 0x565   : > { %v10070_v56 = vpop.permute.xlu1 %3597 }
 0x566   : > { %v3609_v7 = vrot.slane %v10070_v56, 4 }
 0x56c   : > { %v3548_v46 = vpop.permute.xlu2 %3547 }
 0x56d   : > { %v3557_v21 = vrot.slane %v3548_v46, 4 }
 0x56f   : > { %v3566_v4 = vsel %vm3504_vm7, %v3556_v55, %v3557_v21 }
 0x570   : > { %v3550_v53 = vpop.permute.xlu0 %3549  ;;  %v3567_v63 = vsel %vm11587_vm0, %v9870_v24, %v3566_v4 }
 0x571   : > { %v3558_v38 = vrot.slane %v3550_v53, 4  ;;  %v10081_v26 = vmax.f32 %v9800_v25, %v3567_v63  ;;  %v3594_v25 = vpop.permute.xlu1 %3593 }
 0x572   : > { %v3607_v11 = vrot.slane %v3594_v25, 4 }
 0x573   : > { %v3568_v45 = vsel %vm3504_vm7, %v3557_v21, %v3558_v38  ;;  %3599 = vrot.lane.b32.xlu2 %v10081_v26, %s11792_s19 }
 0x574   : > { %v3569_v55 = vsel %vm11587_vm0, %v3548_v46, %v3568_v45 }
 0x575   : > { %v10091_v39 = vmax.f32 %v9907_v20, %v3569_v55 }
 0x577   : > { %3601 = vrot.lane.b32.xlu0 %v10091_v39, %s11792_s19 }
 0x578   : > { %v3596_v24 = vpop.permute.xlu0 %3595 }
 0x579   : > { %v3608_v1 = vrot.slane %v3596_v24, 4 }
 0x57b   : > { %v3614_v60 = vsel %vm3504_vm7, %v3607_v11, %v3608_v1  ;;  %v3616_v42 = vsel %vm3504_vm7, %v3608_v1, %v3609_v7 }
 0x57c   : > { %v3615_v12 = vsel %vm12044_vm9, %v3594_v25, %v3614_v60  ;;  %v3617_v10 = vsel %vm12045_vm2, %v3596_v24, %v3616_v42  ;;  %vm3938_vm9 = vcmask 682592   ;;  %vm3943_vm2 = vcmask 780992  }
 0x57d   : > { %v3633_v27 = vmax.f32 %v9886_v31, %v3615_v12  ;;  %v3634_v13 = vmax.f32 %v9899_v34, %v3617_v10  ;;  %v7687_v12 = vmov 0  }
 0x57e   : > { %7605 = vset.pattern.permute.xlu1 %v7687_v12  ;;  %7616 = vset.pattern.permute.xlu2 %v7687_v12 }
 0x57f   : > { %3697 = vst [vmem:[#allocation1] ss:$2 sm:$0xff] %v3633_v27  ;;  %7647 = vset.pattern.permute.xlu0 %v7687_v12 }
 0x580   : > { %3699 = vst [vmem:[#allocation1 + $0x10] ss:$2 sm:$0xff] %v3634_v13 }
 0x584   : > { %v3552_v48 = vpop.permute.xlu2 %3551 }
 0x585   : > { %v3559_v43 = vrot.slane %v3552_v48, 4  ;;  %v10117_v31 = vmax.f32 %v9912_v40, %v3552_v48 }
 0x586   : > { %v3700_v34 = vld.sshfl [vmem:[#allocation1] sm:$0xff pattern:$0x75316420]  ;;  %v3701_v8 = vld.sshfl [vmem:[#allocation1 + $0x8] sm:$0xff pattern:$0x75316420] }
 0x587   : > { %v3570_v44 = vsel %vm3504_vm7, %v3558_v38, %v3559_v43  ;;  %3605 = vrot.lane.b32.xlu0 %v10117_v31, %s11792_s19  ;;  %v3708_v61 = vpack.c.bf16 %v3700_v34, %v3700_v34  ;;  %v3709_v29 = vpack.c.bf16 %v3701_v8, %v3701_v8  ;;  %3972 = vst [vmem:[#allocation1] ss:$2 sm:$0xff] %v3634_v13  ;;  %v3702_v51 = vld.sshfl [vmem:[#allocation1 + $0x10] sm:$0xff pattern:$0x75316420] }
 0x588   : > { %v3710_v0 = vpack.c.bf16 %v3702_v51, %v3702_v51  ;;  %v3703_v20 = vld.sshfl [vmem:[#allocation1 + $0x18] sm:$0xff pattern:$0x75316420]  ;;  %v3571_v62 = vsel %vm11587_vm0, %v3550_v53, %v3570_v44 }
 0x589   : > { %3879 = vmatmul.bf16.vlgmr.msrb.gmra.mxu1 %v3708_v61  ;;  %3892 = vmatmul.bf16.vlgmr.msrb.gmra.mxu2 %v3709_v29  ;;  %v3711_v40 = vpack.c.bf16 %v3703_v20, %v3703_v20  ;;  %v10127_v47 = vmax.f32 %v9890_v22, %v3571_v62 }
 0x58a   : > { %3905 = vmatmul.bf16.vlgmr.msrb.gmra.mxu3 %v3710_v0  ;;  %4149 = vmatpush.bf16.msrb.mxu1 %v9924_v57 }
 0x58b   : > { %7317 = vmatmul.msk.bf16.vlgmr.msra.gmra.mxu0 %vm11572_vm11, %v3711_v40  ;;  %3603 = vrot.lane.b32.xlu2 %v10127_v47, %s11792_s19 }
 0x58c   : > { %4136 = vmatpush.bf16.msra.mxu0 %v9919_v49  ;;  %4162 = vmatpush.bf16.msrb.mxu2 %v9929_v50 }
 0x58d   : > { %4182 = vmatpush.bf16.msrb.mxu3 %v10060_v35 }
 0x58e   : > { %v3977_v46 = vld.sshfl [vmem:[#allocation1 + $0x8] sm:$0xff pattern:$0x75316420]  ;;  %4150 = vmatpush.bf16.msrb.mxu1 %v9942_v37 }
 0x58f   : > { %3981 = vrot.lane.b32.xlu0 %v3977_v46, %s7686_s20 }
 0x590   : > { %4137 = vmatpush.bf16.msra.mxu0 %v9937_v33  ;;  %4163 = vmatpush.bf16.msrb.mxu2 %v9947_v58 }
 0x592   : > { %4151 = vmatpush.bf16.msrb.mxu1 %v9960_v30 }
 0x594   : > { %4138 = vmatpush.bf16.msra.mxu0 %v9955_v52  ;;  %4164 = vmatpush.bf16.msrb.mxu2 %v9965_v32 }
 0x596   : > { %4152 = vmatpush.bf16.msrb.mxu1 %v9978_v54 }
 0x598   : > { %4139 = vmatpush.bf16.msra.mxu0 %v9973_v17  ;;  %4165 = vmatpush.bf16.msrb.mxu2 %v9983_v15 }
 0x59a   : > { %4153 = vmatpush.bf16.msrb.mxu1 %v9996_v6 }
 0x59c   : > { %4140 = vmatpush.bf16.msra.mxu0 %v9991_v28  ;;  %4166 = vmatpush.bf16.msrb.mxu2 %v10001_v59 }
 0x59e   : > { %4154 = vmatpush.bf16.msrb.mxu1 %v10014_v2 }
 0x5a0   : > { %4141 = vmatpush.bf16.msra.mxu0 %v10009_v18  ;;  %4167 = vmatpush.bf16.msrb.mxu2 %v10019_v23 }
 0x5a2   : > { %4155 = vmatpush.bf16.msrb.mxu1 %v10032_v19 }
 0x5a4   : > { %4142 = vmatpush.bf16.msra.mxu0 %v10027_v14  ;;  %4168 = vmatpush.bf16.msrb.mxu2 %v10037_v16 }
 0x5a6   : > { %4156 = vmatpush.bf16.msrb.mxu1 %v10050_v41 }
 0x5a8   : > { %4143 = vmatpush.bf16.msra.mxu0 %v10045_v36  ;;  %4169 = vmatpush.bf16.msrb.mxu2 %v10055_v5 }
 0x5cd   : > { %v3600_v22 = vpop.permute.xlu2 %3599 }
 0x5ce   : > { %v3610_v21 = vrot.slane %v3600_v22, 4 }
 0x5d0   : > { %v3618_v4 = vsel %vm3504_vm7, %v3609_v7, %v3610_v21 }
 0x5d1   : > { %v3619_v53 = vsel %vm12046_vm12, %v10070_v56, %v3618_v4  ;;  %vm3948_vm12 = vcmask 879392  }
 0x5d2   : > { %v3635_v63 = vmax.f32 %v9878_v3, %v3619_v53 }
 0x5d4   : > { %3974 = vst [vmem:[#allocation1 + $0x10] ss:$2 sm:$0xff] %v3635_v63 }
 0x5db   : > { %v3978_v38 = vld.sshfl [vmem:[#allocation1 + $0x10] sm:$0xff pattern:$0x75316420]  ;;  %v3979_v42 = vld.sshfl [vmem:[#allocation1 + $0x18] sm:$0xff pattern:$0x75316420] }
 0x5dc   : > { %3983 = vrot.lane.b32.xlu2 %v3978_v38, %s7686_s20 }
 0x5e5   : > { %v3604_v45 = vpop.permute.xlu2 %3603 }
 0x5e6   : > { %v3612_v25 = vrot.slane %v3604_v45, 4 }
 0x5e9   : > { %v3602_v55 = vpop.permute.xlu0 %3601 }
 0x5ea   : > { %v3611_v24 = vrot.slane %v3602_v55, 4 }
 0x5ec   : > { %v3620_v11 = vsel %vm3504_vm7, %v3610_v21, %v3611_v24  ;;  %v3622_v1 = vsel %vm3504_vm7, %v3611_v24, %v3612_v25 }
 0x5ed   : > { %v3621_v60 = vsel %vm12047_vm15, %v3600_v22, %v3620_v11  ;;  %v3623_v7 = vsel %vm12048_vm6, %v3602_v55, %v3622_v1  ;;  %v3690_v55 = vld [vmem:[%s11460_s2] sm:$0x7]  ;;  %vm3961_vm15 = vcmask 1043424   ;;  %vm3962_vm6 = vcmask 30724  }
 0x5ee   : > { %v3636_v56 = vmax.f32 %v10081_v26, %v3621_v60  ;;  %v3637_v3 = vmax.f32 %v10091_v39, %v3623_v7 }
 0x5f0   : > { %3976 = vst [vmem:[#allocation1 + $0x20] ss:$2 sm:$0xff] %v3636_v56 }
 0x5f1   : > { %4099 = vst [vmem:[#allocation1] ss:$2 sm:$0xff] %v3636_v56 }
 0x5f2   : > { %4101 = vst [vmem:[#allocation1 + $0x10] ss:$2 sm:$0xff] %v3637_v3 }
 0x5f7   : > { %v3980_v10 = vld.sshfl [vmem:[#allocation1 + $0x20] sm:$0xff pattern:$0x75316420] }
 0x5f8   : > { %v4102_v27 = vld.sshfl [vmem:[#allocation1] sm:$0xff pattern:$0x75316420]  ;;  %v7590_v13 = vpack.i.bf16 %v3980_v10, %v3979_v42  ;;  %v4103_v48 = vld.sshfl [vmem:[#allocation1 + $0x8] sm:$0xff pattern:$0x75316420] }
 0x5f9   : > { %v3606_v43 = vpop.permute.xlu0 %3605  ;;  %v4110_v34 = vpack.c.bf16 %v4102_v27, %v4102_v27  ;;  %v4104_v8 = vld.sshfl [vmem:[#allocation1 + $0x10] sm:$0xff pattern:$0x75316420]  ;;  %4232 = vst [vmem:[#allocation1] ss:$2 sm:$0xff] %v3637_v3  ;;  %v4111_v4 = vpack.c.bf16 %v4103_v48, %v4103_v48 }
 0x5fa   : > { %v3613_v44 = vrot.slane %v3606_v43, 4  ;;  %v3639_v26 = vmax.f32 %v10117_v31, %v3606_v43  ;;  %7591 = vrot.lane.b32.xlu1 %v7590_v13, %s7686_s20  ;;  %v4112_v39 = vpack.c.bf16 %v4104_v8, %v4104_v8  ;;  %v4105_v51 = vld.sshfl [vmem:[#allocation1 + $0x18] sm:$0xff pattern:$0x75316420] }
 0x5fb   : > { %4118 = vrot.lane.b32.xlu0 %v4110_v34, %s7688_s21  ;;  %v4113_v20 = vpack.c.bf16 %v4105_v51, %v4105_v51 }
 0x5fc   : > { %v3624_v61 = vsel %vm3504_vm7, %v3612_v25, %v3613_v44  ;;  %4236 = vst [vmem:[#allocation1 + $0x20] ss:$2 sm:$0xff] %v3639_v26  ;;  %4122 = vrot.lane.b32.xlu2 %v4112_v39, %s7688_s21  ;;  %vm11586_vm7 = vcmask 916480  }
 0x5fd   : > { %v3625_v29 = vsel %vm12049_vm4, %v3604_v45, %v3624_v61  ;;  %vm3953_vm4 = vcmask 977792  }
 0x5fe   : > { %v3638_v0 = vmax.f32 %v10127_v47, %v3625_v29 }
 0x600   : > { %4234 = vst [vmem:[#allocation1 + $0x10] ss:$2 sm:$0xff] %v3638_v0  ;;  %v4237_v40 = vld.sshfl [vmem:[#allocation1 + $0x8] sm:$0xff pattern:$0x75316420] }
 0x601   : > { %v3982_v1 = vpop.permute.xlu0 %3981 }
 0x602   : > { %4124 = vrot.lane.b32.xlu1 %v4113_v20, %s7688_s21 }
 0x603   : > { %v4240_v62 = vld.sshfl [vmem:[#allocation1 + $0x20] sm:$0xff pattern:$0x75316420] }
 0x606   : > { %v10179_v31 = vpop.f32.mrf.mxu1 }
 0x607   : > { %v4239_v46 = vld.sshfl [vmem:[#allocation1 + $0x18] sm:$0xff pattern:$0x75316420]  ;;  %v4238_v22 = vld.sshfl [vmem:[#allocation1 + $0x10] sm:$0xff pattern:$0x75316420] }
 0x608   : > { %v10181_v21 = vpop.f32.mrf.mxu0  ;;  %v7600_v53 = vpack.i.bf16 %v4239_v46, %v4240_v62  ;;  %v7595_v63 = vpack.i.bf16 %v4238_v22, %v4237_v40 }
 0x60a   : > { %4120 = vrot.lane.b32.xlu1 %v4111_v4, %s7688_s21  ;;  %7601 = vrot.lane.b32.xlu0 %v7600_v53, %s7689_s23 }
 0x60b   : > { %7596 = vrot.lane.b32.xlu2 %v7595_v63, %s7689_s23 }
 0x60c   : > { %v3893_v47 = vpop.f32.mrf.mxu2 }
 0x60d   : > { %v10186_v38 = vpop.f32.mrf.mxu3 }
 0x60e   : > { %v3882_v45 = vpop.f32.mrf.mxu1 }
 0x610   : > { %v3921_v25 = vpop.f32.mrf.mxu0 }
 0x612   : > { %3714 = vperm.xlu1 %7605, %v3690_v55  }
 0x614   : > { %v3895_v24 = vpop.f32.mrf.mxu2 }
 0x615   : > { %v3908_v11 = vpop.f32.mrf.mxu3 }
 0x636   : > { %v3984_v60 = vpop.permute.xlu2 %3983 }
 0x637   : > { %v3990_v7 = vsel %vm11586_vm7, %v3982_v1, %v3984_v60 }
 0x638   : > { %v3997_v56 = vpack.c.bf16 %v3990_v7, %v3990_v7 }
 0x63a   : > { %4012 = vmatmul.bf16.vlgmr.msra.gmra.mxu1 %v3997_v56 }
 0x63b   : > { %4290 = vmatpush.bf16.msra.mxu1 %v9929_v50 }
 0x63f   : > { %4291 = vmatpush.bf16.msra.mxu1 %v9947_v58 }
 0x643   : > { %4292 = vmatpush.bf16.msra.mxu1 %v9965_v32 }
 0x647   : > { %4293 = vmatpush.bf16.msra.mxu1 %v9983_v15 }
 0x64b   : > { %4294 = vmatpush.bf16.msra.mxu1 %v10001_v59 }
 0x64f   : > { %4295 = vmatpush.bf16.msra.mxu1 %v10019_v23 }
 0x653   : > { %4296 = vmatpush.bf16.msra.mxu1 %v10037_v16 }
 0x656   : > { %v4123_v23 = vpop.permute.xlu2 %4122 }
 0x657   : > { %4297 = vmatpush.bf16.msra.mxu1 %v10055_v5 }
 0x66c   : > { %v7592_v3 = vpop.permute.xlu1 %7591 }
 0x66d   : > { %v7594_v42 = vunpack.i.h.bf16 %v7592_v3  ;;  %v7593_v12 = vunpack.i.l.bf16 %v7592_v3  ;;  %v4119_v59 = vpop.permute.xlu0 %4118 }
 0x66f   : > { %v4000_v10 = vpack.c.bf16 %v7594_v42, %v7594_v42  ;;  %v3991_v50 = vsel %vm11586_vm7, %v3984_v60, %v7593_v12  ;;  %v3992_v58 = vsel %vm11586_vm7, %v7593_v12, %v7594_v42 }
 0x670   : > { %v3998_v27 = vpack.c.bf16 %v3991_v50, %v3991_v50  ;;  %v3999_v32 = vpack.c.bf16 %v3992_v58, %v3992_v58 }
 0x671   : > { %7318 = vmatmul.msk.bf16.vlgmr.msrb.gmra.mxu0 %vm11572_vm11, %v4000_v10 }
 0x672   : > { %4025 = vmatmul.bf16.vlgmr.msra.gmra.mxu2 %v3998_v27  ;;  %4038 = vmatmul.bf16.vlgmr.msra.gmra.mxu3 %v3999_v32 }
 0x673   : > { %4277 = vmatpush.bf16.msrb.mxu0 %v9924_v57  ;;  %4264 = vmatpush.bf16.msra.mxu3 %v9919_v49 }
 0x674   : > { %v4125_v15 = vpop.permute.xlu1 %4124  ;;  %4310 = vmatpush.bf16.msra.mxu2 %v10060_v35 }
 0x675   : > { %v4129_v57 = vsel %vm11571_vm13, %v4123_v23, %v4125_v15 }
 0x677   : > { %4278 = vmatpush.bf16.msrb.mxu0 %v9942_v37  ;;  %4265 = vmatpush.bf16.msra.mxu3 %v9937_v33 }
 0x67b   : > { %4279 = vmatpush.bf16.msrb.mxu0 %v9960_v30  ;;  %4266 = vmatpush.bf16.msra.mxu3 %v9955_v52 }
 0x67c   : > { %v4121_v16 = vpop.permute.xlu1 %4120  ;;  %v7602_v33 = vpop.permute.xlu0 %7601 }
 0x67d   : > { %v4128_v5 = vsel %vm11571_vm13, %v4121_v16, %v4123_v23  ;;  %v4127_v49 = vsel %vm11571_vm13, %v4119_v59, %v4121_v16  ;;  %v7604_v52 = vunpack.i.h.bf16 %v7602_v33  ;;  %v7603_v30 = vunpack.i.l.bf16 %v7602_v33 }
 0x67e   : > { %4157 = vmatmul.bf16.vlgmr.msrb.gmra.mxu1 %v4128_v5  ;;  %vm4076_vm13 = vcmask 912192  }
 0x67f   : > { %4280 = vmatpush.bf16.msrb.mxu0 %v9978_v54  ;;  %4267 = vmatpush.bf16.msra.mxu3 %v9973_v17  ;;  %v7597_v54 = vpop.permute.xlu2 %7596 }
 0x680   : > { %v7599_v13 = vunpack.i.h.bf16 %v7597_v54  ;;  %v7598_v48 = vunpack.i.l.bf16 %v7597_v54 }
 0x681   : > { %4144 = vmatmul.bf16.vlgmr.msra.gmra.mxu0 %v4127_v49 }
 0x682   : > { %4170 = vmatmul.bf16.vlgmr.msrb.gmra.mxu2 %v4129_v57  ;;  %7319 = vmatmul.msk.bf16.vlgmr.msrb.gmra.mxu3 %vm11572_vm11, %v4125_v15  ;;  %v4251_v44 = vsel %vm11574_vm3, %v7599_v13, %v7604_v52 }
 0x683   : > { %4281 = vmatpush.bf16.msrb.mxu0 %v9996_v6  ;;  %4268 = vmatpush.bf16.msra.mxu3 %v9991_v28  ;;  %v4252_v28 = vsel %vm11574_vm3, %v7604_v52, %v7603_v30 }
 0x684   : > { %v10218_v37 = vpop.permute.xlu1 %3714  ;;  %v4259_v34 = vpack.c.bf16 %v4252_v28, %v4252_v28 }
 0x685   : > { %v3881_v17 = vadd.f32 %v10179_v31, %v10218_v37 }
 0x687   : > { %v3894_v35 = vadd.f32 %v3893_v47, %v3881_v17  ;;  %4282 = vmatpush.bf16.msrb.mxu0 %v10014_v2  ;;  %4269 = vmatpush.bf16.msra.mxu3 %v10009_v18  ;;  %v4250_v2 = vsel %vm11574_vm3, %v7598_v48, %v7599_v13  ;;  %v4258_v18 = vpack.c.bf16 %v4251_v44, %v4251_v44  ;;  %vm4193_vm3 = vcmask 748192  }
 0x688   : > { %v4257_v26 = vpack.c.bf16 %v4250_v2, %v4250_v2 }
 0x689   : > { %v3907_v6 = vadd.f32 %v10186_v38, %v3894_v35 }
 0x68b   : > { %v3920_v43 = vadd.f32 %v10181_v21, %v3907_v6  ;;  %4283 = vmatpush.bf16.msrb.mxu0 %v10032_v19  ;;  %4270 = vmatpush.bf16.msra.mxu3 %v10027_v14  ;;  %v4260_v19 = vpack.c.bf16 %v7603_v30, %v7603_v30 }
 0x68d   : > { %v3923_v8 = vmax.f32 %v3920_v43, 0.0 }
 0x68e   : > { %4298 = vmatmul.bf16.vlgmr.msra.gmra.mxu1 %v4259_v34 }
 0x68f   : > { %4284 = vmatpush.bf16.msrb.mxu0 %v10050_v41  ;;  %4271 = vmatpush.bf16.msra.mxu3 %v10045_v36 }
 0x690   : > { %3935 = vrot.lane.b32.xlu1 %v3923_v8, %s7690_s16  ;;  %3930 = vrot.lane.b32.xlu0 %v3923_v8, %s7691_s13  ;;  %s7702_s16 = smov 103   ;;  %s7703_s13 = smov 102  }
 0x691   : > { %3925 = vrot.lane.b32.xlu2 %v3923_v8, %s7692_s30  ;;  %s7704_s30 = smov 101  }
 0x692   : > { %4285 = vmatmul.bf16.vlgmr.msrb.gmra.mxu0 %v4258_v18  ;;  %4272 = vmatmul.bf16.vlgmr.msra.gmra.mxu3 %v4257_v26 }
 0x693   : > { %7320 = vmatmul.msk.bf16.vlgmr.msra.gmra.mxu2 %vm11572_vm11, %v4260_v19  ;;  %vm4081_vm11 = vcmask 1010592  }
 0x698   : > { %3945 = vrot.lane.b32.xlu1 %v3923_v8, %s11809_s24  ;;  %3955 = vrot.lane.b32.xlu0 %v3923_v8, %s7693_s9 }
 0x699   : > { %3940 = vrot.lane.b32.xlu2 %v3923_v8, %s11849_s10  ;;  %s11594_s10 = smov 92  }
 0x6a0   : > { %3965 = vrot.lane.b32.xlu0 %v3923_v8, %s7689_s23 }
 0x6a1   : > { %3950 = vrot.lane.b32.xlu2 %v3923_v8, %s7694_s11 }
 0x6b7   : > { %v4013_v14 = vpop.f32.mrf.mxu1 }
 0x6b8   : > { %v4014_v61 = vadd.f32 %v4013_v14, %v10218_v37 }
 0x6bf   : > { %v4015_v36 = vpop.f32.mrf.mxu1 }
 0x6eb   : > { %v3926_v41 = vpop.permute.xlu2 %3925 }
 0x6ec   : > { %3929 = vst.msk [vmem:[#allocation8] sm:$0x7] %vm3928_vm14, %v3926_v41  ;;  %vm11573_vm14 = vcmask 621568  }
 0x6ee   : > { %v4052_v39 = vpop.f32.mrf.mxu0 }
 0x6f3   : > { %v3941_v63 = vpop.permute.xlu2 %3940 }
 0x6f5   : > { %v4026_v29 = vpop.f32.mrf.mxu2  ;;  %v4039_v51 = vpop.f32.mrf.mxu3 }
 0x6f6   : > { %v4027_v0 = vadd.f32 %v4026_v29, %v4014_v61  ;;  %v4054_v20 = vpop.f32.mrf.mxu0 }
 0x6f8   : > { %v4040_v31 = vadd.f32 %v4039_v51, %v4027_v0 }
 0x6fa   : > { %v4053_v62 = vadd.f32 %v4052_v39, %v4040_v31 }
 0x6fb   : > { %v4158_v40 = vpop.f32.mrf.mxu1  ;;  %v3951_v3 = vpop.permute.xlu2 %3950 }
 0x6fc   : > { %v4056_v46 = vmax.f32 %v4053_v62, 0.0 }
 0x6fd   : > { %v4028_v22 = vpop.f32.mrf.mxu2  ;;  %v4041_v21 = vpop.f32.mrf.mxu3 }
 0x6fe   : > { %v4145_v4 = vpop.f32.mrf.mxu0  ;;  %4058 = vrot.lane.b32.xlu1 %v4056_v46, %s11809_s24  ;;  %4068 = vrot.lane.b32.xlu0 %v4056_v46, %s7693_s9  ;;  %s7696_s24 = smov 100  }
 0x6ff   : > { %4063 = vrot.lane.b32.xlu2 %v4056_v46, %s7694_s11  ;;  %v4146_v53 = vadd.f32 %v4145_v4, %v10218_v37  ;;  %s7705_s11 = smov 91  }
 0x701   : > { %v4159_v55 = vadd.f32 %v4158_v40, %v4146_v53 }
 0x702   : > { %v3936_v47 = vpop.permute.xlu1 %3935  ;;  %v3931_v38 = vpop.permute.xlu0 %3930 }
 0x703   : > { %3934 = vst.msk [vmem:[#allocation8] sm:$0x7] %vm3933_vm5, %v3931_v38  ;;  %v4160_v45 = vpop.f32.mrf.mxu1  ;;  %vm10246_vm5 = vmor %vm3962_vm6, %vm3961_vm15  ;;  %vm4066_vm15 = vcmask 715392   ;;  %vm4071_vm6 = vcmask 813792  }
 0x704   : > { %3939 = vst.msk [vmem:[#allocation8] sm:$0x7] %vm3938_vm9, %v3936_v47  ;;  %vm3968_vm9 = vcmask 124992  }
 0x705   : > { %v4171_v25 = vpop.f32.mrf.mxu2  ;;  %v4184_v24 = vpop.f32.mrf.mxu3  ;;  %3944 = vst.msk [vmem:[#allocation8] sm:$0x7] %vm3943_vm2, %v3941_v63  ;;  %vm4061_vm2 = vcmask 616992  }
 0x706   : > { %v4172_v11 = vadd.f32 %v4171_v25, %v4159_v55  ;;  %v4147_v1 = vpop.f32.mrf.mxu0  ;;  %4073 = vrot.lane.b32.xlu1 %v4056_v46, %s7689_s23  ;;  %4088 = vrot.lane.b32.xlu0 %v4056_v46, %s11594_s10 }
 0x707   : > { %4078 = vrot.lane.b32.xlu2 %v4056_v46, %s11885_s8 }
 0x708   : > { %v4185_v60 = vadd.f32 %v4184_v24, %v4172_v11 }
 0x70a   : > { %v3946_v7 = vpop.permute.xlu1 %3945  ;;  %v3956_v56 = vpop.permute.xlu0 %3955  ;;  %v4188_v50 = vmax.f32 %v4185_v60, 0.0 }
 0x70b   : > { %3949 = vst.msk [vmem:[#allocation8] sm:$0x7] %vm3948_vm12, %v3946_v7  ;;  %v3957_v12 = vrot.slane %v3956_v56, 4  ;;  %v4299_v10 = vpop.f32.mrf.mxu1 }
 0x70c   : > { %3954 = vst.msk [vmem:[#allocation8] sm:$0x7] %vm3953_vm4, %v3951_v3 }
 0x70d   : > { %v3959_v58 = vsel %vm11573_vm14, %v3957_v12, %v3956_v56  ;;  %v4173_v27 = vpop.f32.mrf.mxu2  ;;  %v4186_v32 = vpop.f32.mrf.mxu3  ;;  %vm4223_vm14 = vcmask 288992  }
 0x70e   : > { %3964 = vst.msk [vmem:[#allocation8] sm:$0x77] %vm10246_vm5, %v3959_v58  ;;  %4083 = vrot.lane.b32.xlu1 %v4056_v46, %s11778_s22  ;;  %4210 = vrot.lane.b32.xlu0 %v4188_v50, %s7696_s24 }
 0x70f   : > { %v4286_v15 = vpop.f32.mrf.mxu0  ;;  %4220 = vrot.lane.b32.xlu2 %v4188_v50, %s11792_s19 }
 0x712   : > { %v3966_v59 = vpop.permute.xlu0 %3965 }
 0x713   : > { %3969 = vst.msk [vmem:[#allocation8 + $0x4] sm:$0x7] %vm3968_vm9, %v3966_v59  ;;  %v4301_v23 = vpop.f32.mrf.mxu1 }
 0x715   : > { %v4273_v16 = vpop.f32.mrf.mxu3 }
 0x716   : > { %v4274_v5 = vadd.f32 %v4273_v16, %v10218_v37  ;;  %v4312_v49 = vpop.f32.mrf.mxu2  ;;  %4093 = vrot.lane.b32.xlu1 %v4056_v46, %s7688_s21  ;;  %4225 = vrot.lane.b32.xlu0 %v4188_v50, %s7686_s20 }
 0x717   : > { %v4288_v57 = vpop.f32.mrf.mxu0  ;;  %4190 = vrot.lane.b32.xlu2 %v4188_v50, %s11885_s8  ;;  %s11592_s8 = smov 120  }
 0x718   : > { %v4287_v33 = vadd.f32 %v4286_v15, %v4274_v5 }
 0x71a   : > { %v4300_v52 = vadd.f32 %v4299_v10, %v4287_v33 }
 0x71c   : > { %v4313_v54 = vadd.f32 %v4312_v49, %v4300_v52 }
 0x71d   : > { %v4275_v30 = vpop.f32.mrf.mxu3 }
 0x71e   : > { %v4314_v17 = vpop.f32.mrf.mxu2  ;;  %4215 = vrot.lane.b32.xlu1 %v4188_v50, %s11777_s27  ;;  %4195 = vrot.lane.b32.xlu0 %v4188_v50, %s11778_s22  ;;  %v10265_v37 = vmax.f32 %v4313_v54, 0.0 }
 0x71f   : > { %4205 = vrot.lane.b32.xlu2 %v4188_v50, %s7688_s21 }
 0x726   : > { %4200 = vrot.lane.b32.xlu1 %v4188_v50, %s11594_s10  ;;  %4322 = vrot.lane.b32.xlu0 %v10265_v37, %s11777_s27 }
 0x727   : > { %4318 = vrot.lane.b32.xlu2 %v10265_v37, %s7696_s24 }
 0x72e   : > { %4326 = vrot.lane.b32.xlu1 %v10265_v37, %s11792_s19  ;;  %4341 = vrot.lane.b32.xlu0 %v10265_v37, %s11592_s8  ;;  %s7716_s8 = smov 117  }
 0x72f   : > { %4336 = vrot.lane.b32.xlu2 %v10265_v37, %s11598_s12 }
 0x736   : > { %4332 = vrot.lane.b32.xlu1 %v10265_v37, %s7686_s20 }
 0x737   : > { %4346 = vrot.lane.b32.xlu2 %v10265_v37, %s11787_s28 }
 0x759   : > { %v4064_v35 = vpop.permute.xlu2 %4063 }
 0x761   : > { %v4079_v13 = vpop.permute.xlu2 %4078 }
 0x769   : > { %v4221_v34 = vpop.permute.xlu2 %4220 }
 0x770   : > { %v4059_v48 = vpop.permute.xlu1 %4058  ;;  %v4069_v6 = vpop.permute.xlu0 %4068 }
 0x771   : > { %4062 = vst.msk [vmem:[#allocation8 + $0x4] sm:$0x7] %vm4061_vm2, %v4059_v48  ;;  %v4191_v18 = vpop.permute.xlu2 %4190  ;;  %vm4086_vm2 = vcmask 59392  }
 0x772   : > { %4067 = vst.msk [vmem:[#allocation8 + $0x4] sm:$0x7] %vm4066_vm15, %v4064_v35  ;;  %vm4213_vm15 = vcmask 92192  }
 0x773   : > { %4072 = vst.msk [vmem:[#allocation8 + $0x4] sm:$0x7] %vm4071_vm6, %v4069_v6  ;;  %vm4091_vm6 = vcmask 157792  }
 0x778   : > { %v4074_v28 = vpop.permute.xlu1 %4073  ;;  %v4089_v43 = vpop.permute.xlu0 %4088 }
 0x779   : > { %4077 = vst.msk [vmem:[#allocation8 + $0x4] sm:$0x7] %vm4076_vm13, %v4074_v28  ;;  %v4206_v39 = vpop.permute.xlu2 %4205  ;;  %vm4096_vm13 = vcmask 256192  }
 0x77a   : > { %4082 = vst.msk [vmem:[#allocation8 + $0x4] sm:$0x7] %vm4081_vm11, %v4079_v13  ;;  %vm4218_vm11 = vcmask 190592  }
 0x780   : > { %v4084_v8 = vpop.permute.xlu1 %4083  ;;  %v4211_v44 = vpop.permute.xlu0 %4210 }
 0x781   : > { %v4353_v2 = vld [vmem:[#allocation8] sm:$0x77]  ;;  %4087 = vst.msk [vmem:[#allocation8 + $0x8] sm:$0x7] %vm4086_vm2, %v4084_v8  ;;  %vm4228_vm2 = vcmask 387392   ;;  %v4319_v40 = vpop.permute.xlu2 %4318 }
 0x782   : > { %4359 = vst [vmem:[#allocation1] ss:$2 sm:$0xff] %v4353_v2  ;;  %v4379_v26 = vld [vmem:[#allocation8] sm:$0x77] }
 0x783   : > { %4214 = vst.msk [vmem:[#allocation8 + $0xc] sm:$0x7] %vm4213_vm15, %v4211_v44  ;;  %v4425_v61 = vld [vmem:[#allocation8] sm:$0x77]  ;;  %vm4203_vm15 = vcmask 944992  }
 0x784   : > { %4092 = vst.msk [vmem:[#allocation8 + $0x8] sm:$0x7] %vm4091_vm6, %v4089_v43  ;;  %v4477_v46 = vld [vmem:[#allocation8] sm:$0x77]  ;;  %vm4208_vm6 = vcmask 1043392  }
 0x785   : > { %v4523_v38 = vld [vmem:[#allocation8] sm:$0x77] }
 0x786   : > { %v4565_v7 = vld [vmem:[#allocation8] sm:$0x77] }
 0x787   : > { %v4618_v50 = vld [vmem:[#allocation8] sm:$0x77] }
 0x788   : > { %v4094_v19 = vpop.permute.xlu1 %4093  ;;  %v4226_v14 = vpop.permute.xlu0 %4225  ;;  %v4665_v5 = vld [vmem:[#allocation8] sm:$0x77] }
 0x789   : > { %v4364_v36 = vld.sshfl [vmem:[#allocation1] sm:$0xff pattern:$0x75316420]  ;;  %v4365_v41 = vld.sshfl [vmem:[#allocation1 + $0x8] sm:$0xff pattern:$0x75316420]  ;;  %v4337_v42 = vpop.permute.xlu2 %4336 }
 0x78a   : > { %4385 = vst [vmem:[#allocation1] ss:$2 sm:$0xff] %v4379_v26  ;;  %v4712_v48 = vld [vmem:[#allocation8] sm:$0x77] }
 0x78b   : > { %4374 = vst [vmem:[#allocation4] sm:$0x7] %v4364_v36 }
 0x78c   : > { %4375 = vst [vmem:[#allocation4 + $0x8] sm:$0x7] %v4365_v41  ;;  %v4798_v41 = vld [vmem:[#allocation8] sm:$0x77] }
 0x78d   : > { %4097 = vst.msk [vmem:[#allocation8 + $0x8] sm:$0x7] %vm4096_vm13, %v4094_v19  ;;  %vm12057_vm13 = vcmask 1014784  }
 0x78e   : > { %4194 = vst.msk [vmem:[#allocation8 + $0x8] sm:$0x7] %vm4193_vm3, %v4191_v18  ;;  %vm4339_vm3 = vcmask 223392   ;;  %v4753_v18 = vld [vmem:[#allocation8] sm:$0x77] }
 0x790   : > { %v4216_v29 = vpop.permute.xlu1 %4215  ;;  %v4196_v51 = vpop.permute.xlu0 %4195 }
 0x791   : > { %v4390_v0 = vld.sshfl [vmem:[#allocation1] sm:$0xff pattern:$0x75316420]  ;;  %v4391_v20 = vld.sshfl [vmem:[#allocation1 + $0x8] sm:$0xff pattern:$0x75316420]  ;;  %v4347_v13 = vpop.permute.xlu2 %4346 }
 0x792   : > { %4431 = vst [vmem:[#allocation1] ss:$2 sm:$0xff] %v4425_v61  ;;  %v4396_v31 = vrot.slane %v4391_v20, 5  ;;  %v4395_v62 = vrot.slane %v4390_v0, 5 }
 0x793   : > { %4219 = vst.msk [vmem:[#allocation8 + $0xc] sm:$0x7] %vm4218_vm11, %v4216_v29  ;;  %vm11585_vm11 = vcmask 949248  }
 0x794   : > { %4224 = vst.msk [vmem:[#allocation8 + $0xc] sm:$0x7] %vm4223_vm14, %v4221_v34  ;;  %4402 = vrot.lane.b32.xlu1 %v4396_v31, %s11773_s26  ;;  %4400 = vrot.lane.b32.xlu0 %v4395_v62, %s11773_s26  ;;  %vm3693_vm14 = vcmask 944128   ;;  %v4848_v62 = vld [vmem:[#allocation8] sm:$0x77] }
 0x795   : > { %4199 = vst.msk [vmem:[#allocation8 + $0x8] sm:$0x7] %vm4198_vm8, %v4196_v51  ;;  %vm12052_vm8 = vcmask 883712  }
 0x796   : > { %4229 = vst.msk [vmem:[#allocation8 + $0xc] sm:$0x7] %vm4228_vm2, %v4226_v14  ;;  %vm4649_vm2 = vcmask 941056  }
 0x797   : > { %4321 = vst.msk [vmem:[#allocation8 + $0xc] sm:$0x7] %vm3948_vm12, %v4319_v40  ;;  %vm4344_vm12 = vcmask 321792  }
 0x798   : > { %v4201_v22 = vpop.permute.xlu1 %4200  ;;  %v4323_v53 = vpop.permute.xlu0 %4322  ;;  %3694 = vst.msk [vmem:[#allocation8 + $0x10] sm:$0x7] %vm3693_vm14, %v11576_v9  ;;  %vm4738_vm14 = vcmask 924672  }
 0x799   : > { %v4436_v21 = vld.sshfl [vmem:[#allocation1] sm:$0xff pattern:$0x75316420]  ;;  %v4437_v4 = vld.sshfl [vmem:[#allocation1 + $0x8] sm:$0xff pattern:$0x75316420] }
 0x79a   : > { %4483 = vst [vmem:[#allocation1] ss:$2 sm:$0xff] %v4477_v46  ;;  %v4441_v63 = vrot.slane %v4436_v21, 2  ;;  %v4442_v47 = vrot.slane %v4437_v4, 2 }
 0x79b   : > { %4204 = vst.msk [vmem:[#allocation8 + $0x8] sm:$0x7] %vm4203_vm15, %v4201_v22  ;;  %vm4423_vm15 = vcmask 521219  }
 0x79c   : > { %4209 = vst.msk [vmem:[#allocation8 + $0x8] sm:$0x7] %vm4208_vm6, %v4206_v39  ;;  %4446 = vrot.lane.b32.xlu2 %v4441_v63, %s11774_s18  ;;  %4448 = vrot.lane.b32.xlu0 %v4442_v47, %s11774_s18  ;;  %vm4696_vm6 = vcmask 932864  }
 0x79d   : > { %4325 = vst.msk [vmem:[#allocation8 + $0xc] sm:$0x7] %vm3953_vm4, %v4323_v53  ;;  %vm4349_vm4 = vcmask 420192  }
 0x7a0   : > { %v4327_v45 = vpop.permute.xlu1 %4326  ;;  %v4342_v54 = vpop.permute.xlu0 %4341 }
 0x7a1   : > { %v4488_v55 = vld.sshfl [vmem:[#allocation1] sm:$0xff pattern:$0x75316420]  ;;  %v4489_v25 = vld.sshfl [vmem:[#allocation1 + $0x8] sm:$0xff pattern:$0x75316420] }
 0x7a2   : > { %4530 = vst [vmem:[#allocation1 + $0x1] ss:$2 sm:$0xff] %v4523_v38  ;;  %v4328_v24 = vrot.slane %v4327_v45, 4  ;;  %v4493_v11 = vrot.slane %v4488_v55, 7  ;;  %v4494_v1 = vrot.slane %v4489_v25, 7 }
 0x7a3   : > { %v4894_v38 = vld [vmem:[#allocation8] sm:$0x77] }
 0x7a4   : > { %v4329_v60 = vsel %vm12052_vm8, %v4328_v24, %v4327_v45  ;;  %4498 = vrot.lane.b32.xlu1 %v4493_v11, %s11775_s17  ;;  %4500 = vrot.lane.b32.xlu2 %v4494_v1, %s11775_s17  ;;  %vm4563_vm8 = vcmask 522244  }
 0x7a5   : > { %4331 = vst.msk [vmem:[#allocation8 + $0xc] sm:$0x77] %vm10246_vm5, %v4329_v60  ;;  %vm4351_vm5 = vcmask 518592  }
 0x7a8   : > { %v4333_v56 = vpop.permute.xlu1 %4332 }
 0x7a9   : > { %v4535_v3 = vld.sshfl [vmem:[#allocation1] sm:$0xff pattern:$0x75316420]  ;;  %v4536_v12 = vld.sshfl [vmem:[#allocation1 + $0x8] sm:$0xff pattern:$0x75316420] }
 0x7aa   : > { %4571 = vst [vmem:[#allocation1] ss:$2 sm:$0xff] %v4565_v7  ;;  %4540 = vrot.lane.b32.xlu0 %v4535_v3, %s11787_s28  ;;  %v4936_v3 = vld [vmem:[#allocation8] sm:$0x77] }
 0x7ab   : > { %4335 = vst.msk [vmem:[#allocation8 + $0x10] sm:$0x7] %vm3968_vm9, %v4333_v56  ;;  %vm12055_vm9 = vcmask 1022976  }
 0x7ac   : > { %v4354_v10 = vld [vmem:[#allocation8 + $0x8] sm:$0x77]  ;;  %4542 = vrot.lane.b32.xlu1 %v4536_v12, %s11787_s28  ;;  %4340 = vst.msk [vmem:[#allocation8 + $0x10] sm:$0x7] %vm4339_vm3, %v4337_v42  ;;  %vm4469_vm3 = vcmask 523270  }
 0x7ad   : > { %4361 = vst [vmem:[#allocation1 + $0x10] ss:$2 sm:$0xff] %v4354_v10  ;;  %v4380_v32 = vld [vmem:[#allocation8 + $0x8] sm:$0x77] }
 0x7ae   : > { %v4426_v33 = vld [vmem:[#allocation8 + $0x8] sm:$0x77]  ;;  %4345 = vst.msk [vmem:[#allocation8 + $0x10] sm:$0x7] %vm4344_vm12, %v4342_v54  ;;  %vm11588_vm12 = vcmask 516096  }
 0x7af   : > { %4350 = vst.msk [vmem:[#allocation8 + $0x10] sm:$0x7] %vm4349_vm4, %v4347_v13  ;;  %v4478_v43 = vld [vmem:[#allocation8 + $0x8] sm:$0x77]  ;;  %vm4521_vm4 = vcmask 519169  }
 0x7b0   : > { %4352 = vst.msk [vmem:[#allocation8 + $0x10] sm:$0x7] %vm4351_vm5, %v10265_v37  ;;  %v4524_v19 = vld [vmem:[#allocation8 + $0x8] sm:$0x77]  ;;  %vm4610_vm5 = vcmask 523271  }
 0x7b1   : > { %v4576_v58 = vld.sshfl [vmem:[#allocation1] sm:$0xff pattern:$0x75316420]  ;;  %v4577_v27 = vld.sshfl [vmem:[#allocation1 + $0x8] sm:$0xff pattern:$0x75316420] }
 0x7b2   : > { %4624 = vst [vmem:[#allocation1] ss:$2 sm:$0xff] %v4618_v50  ;;  %v4581_v23 = vrot.slane %v4576_v58, 1  ;;  %v4582_v16 = vrot.slane %v4577_v27, 1  ;;  %v4566_v29 = vld [vmem:[#allocation8 + $0x8] sm:$0x77] }
 0x7b3   : > { %v4619_v22 = vld [vmem:[#allocation8 + $0x8] sm:$0x77] }
 0x7b4   : > { %v4366_v15 = vld.sshfl [vmem:[#allocation1 + $0x10] sm:$0xff pattern:$0x75316420]  ;;  %v4367_v59 = vld.sshfl [vmem:[#allocation1 + $0x18] sm:$0xff pattern:$0x75316420]  ;;  %4586 = vrot.lane.b32.xlu1 %v4581_v23, %s11598_s12  ;;  %4588 = vrot.lane.b32.xlu2 %v4582_v16, %s11598_s12 }
 0x7b5   : > { %4387 = vst [vmem:[#allocation1 + $0x10] ss:$2 sm:$0xff] %v4380_v32  ;;  %v4666_v25 = vld [vmem:[#allocation8 + $0x8] sm:$0x77]  ;;  %v4987_v23 = vld [vmem:[#allocation8] sm:$0x77] }
 0x7b6   : > { %4376 = vst [vmem:[#allocation4 + $0x10] sm:$0x7] %v4366_v15  ;;  %v4713_v50 = vld [vmem:[#allocation8 + $0x8] sm:$0x77] }
 0x7b7   : > { %4377 = vst [vmem:[#allocation4 + $0x18] sm:$0x7] %v4367_v59  ;;  %v4355_v2 = vld [vmem:[#allocation8 + $0x10] sm:$0x7] }
 0x7b8   : > { %4363 = vst [vmem:[#allocation1 + $0x20] ss:$2 sm:$0xff] %v4355_v2  ;;  %v4381_v31 = vld [vmem:[#allocation8 + $0x10] sm:$0x7] }
 0x7b9   : > { %v4629_v49 = vld.sshfl [vmem:[#allocation1] sm:$0xff pattern:$0x75316420]  ;;  %v4630_v57 = vld.sshfl [vmem:[#allocation1 + $0x8] sm:$0xff pattern:$0x75316420] }
 0x7ba   : > { %4671 = vst [vmem:[#allocation1] ss:$2 sm:$0xff] %v4665_v5  ;;  %v4634_v52 = vrot.slane %v4629_v49, 6  ;;  %v4635_v35 = vrot.slane %v4630_v57, 6  ;;  %v4427_v53 = vld [vmem:[#allocation8 + $0x10] sm:$0x7] }
 0x7bb   : > { %v4479_v1 = vld [vmem:[#allocation8 + $0x10] sm:$0x7]  ;;  %v4754_v49 = vld [vmem:[#allocation8 + $0x8] sm:$0x77] }
 0x7bc   : > { %v10299_v30 = vld.sshfl [vmem:[#allocation1 + $0x10] sm:$0xff pattern:$0x75316420]  ;;  %v10301_v17 = vld.sshfl [vmem:[#allocation1 + $0x18] sm:$0xff pattern:$0x75316420]  ;;  %4639 = vrot.lane.b32.xlu0 %v4634_v52, %s7699_s14  ;;  %4641 = vrot.lane.b32.xlu1 %v4635_v35, %s7699_s14 }
 0x7bd   : > { %4433 = vst [vmem:[#allocation1 + $0x10] ss:$2 sm:$0xff] %v4426_v33  ;;  %v4525_v32 = vld [vmem:[#allocation8 + $0x10] sm:$0x7] }
 0x7be   : > { %v4567_v54 = vld [vmem:[#allocation8 + $0x10] sm:$0x7] }
 0x7bf   : > { %v4368_v51 = vld.sshfl [vmem:[#allocation1 + $0x20] sm:$0xff pattern:$0x75316420] }
 0x7c0   : > { %4378 = vst.msk [vmem:[#allocation4 + $0x20] sm:$0x7] %vm3523_vm10, %v4368_v51  ;;  %v4849_v51 = vld [vmem:[#allocation8 + $0x8] sm:$0x77] }
 0x7c1   : > { %v10305_v6 = vld.sshfl [vmem:[#allocation1] sm:$0xff pattern:$0x75316420]  ;;  %v4677_v28 = vld.sshfl [vmem:[#allocation1 + $0x8] sm:$0xff pattern:$0x75316420] }
 0x7c2   : > { %4718 = vst [vmem:[#allocation1] ss:$2 sm:$0xff] %v4712_v48  ;;  %v4682_v34 = vrot.slane %v4677_v28, 3  ;;  %v4681_v56 = vrot.slane %v10305_v6, 3  ;;  %v5032_v48 = vld [vmem:[#allocation8] sm:$0x77] }
 0x7c3   : > { %4389 = vst [vmem:[#allocation1 + $0x20] ss:$2 sm:$0xff] %v4381_v31 }
 0x7c4   : > { %v10308_v8 = vld.sshfl [vmem:[#allocation1 + $0x10] sm:$0xff pattern:$0x75316420]  ;;  %v10310_v44 = vld.sshfl [vmem:[#allocation1 + $0x18] sm:$0xff pattern:$0x75316420]  ;;  %4688 = vrot.lane.b32.xlu0 %v4682_v34, %s7700_s25 }
 0x7c5   : > { %4485 = vst [vmem:[#allocation1 + $0x10] ss:$2 sm:$0xff] %v4478_v43  ;;  %v4799_v43 = vld [vmem:[#allocation8 + $0x8] sm:$0x77] }
 0x7c9   : > { %v4723_v37 = vld.sshfl [vmem:[#allocation1] sm:$0xff pattern:$0x75316420]  ;;  %v10313_v26 = vld.sshfl [vmem:[#allocation1 + $0x8] sm:$0xff pattern:$0x75316420] }
 0x7ca   : > { %4759 = vst [vmem:[#allocation1] ss:$2 sm:$0xff] %v4753_v18  ;;  %4728 = vrot.lane.b32.xlu1 %v4723_v37, %s7701_s15  ;;  %v4394_v63 = vld.sshfl [vmem:[#allocation1 + $0x20] sm:$0xff pattern:$0x75316420] }
 0x7cb   : > { %v4399_v47 = vrot.slane %v4394_v63, 5  ;;  %4435 = vst [vmem:[#allocation1 + $0x20] ss:$2 sm:$0xff] %v4427_v53  ;;  %v4620_v18 = vld [vmem:[#allocation8 + $0x10] sm:$0x7] }
 0x7cc   : > { %v10316_v14 = vld.sshfl [vmem:[#allocation1 + $0x10] sm:$0xff pattern:$0x75316420]  ;;  %v10318_v36 = vld.sshfl [vmem:[#allocation1 + $0x18] sm:$0xff pattern:$0x75316420] }
 0x7cd   : > { %4532 = vst [vmem:[#allocation1 + $0x11] ss:$2 sm:$0xff] %v4524_v19  ;;  %4408 = vrot.lane.b32.xlu2 %v4399_v47, %s11773_s26  ;;  %v5119_v47 = vld [vmem:[#allocation8] sm:$0x77] }
 0x7d1   : > { %v4764_v39 = vld.sshfl [vmem:[#allocation1] sm:$0xff pattern:$0x75316420]  ;;  %v10320_v61 = vld.sshfl [vmem:[#allocation1 + $0x8] sm:$0xff pattern:$0x75316420] }
 0x7d2   : > { %4804 = vst [vmem:[#allocation1] ss:$2 sm:$0xff] %v4798_v41  ;;  %v4440_v60 = vld.sshfl [vmem:[#allocation1 + $0x20] sm:$0xff pattern:$0x75316420]  ;;  %v4769_v59 = vrot.slane %v4764_v39, 5 }
 0x7d3   : > { %v4445_v7 = vrot.slane %v4440_v60, 2  ;;  %4487 = vst [vmem:[#allocation1 + $0x20] ss:$2 sm:$0xff] %v4479_v1  ;;  %v4770_v13 = vrot.slane %v10320_v61, 5  ;;  %v5078_v39 = vld [vmem:[#allocation8] sm:$0x77] }
 0x7d4   : > { %v10322_v0 = vld.sshfl [vmem:[#allocation1 + $0x10] sm:$0xff pattern:$0x75316420]  ;;  %v10324_v20 = vld.sshfl [vmem:[#allocation1 + $0x18] sm:$0xff pattern:$0x75316420] }
 0x7d5   : > { %4573 = vst [vmem:[#allocation1 + $0x10] ss:$2 sm:$0xff] %v4566_v29  ;;  %4454 = vrot.lane.b32.xlu0 %v4445_v7, %s11774_s18  ;;  %4686 = vrot.lane.b32.xlu2 %v4681_v56, %s7700_s25  ;;  %v4714_v56 = vld [vmem:[#allocation8 + $0x10] sm:$0x7] }
 0x7d9   : > { %v10327_v40 = vld.sshfl [vmem:[#allocation1] sm:$0xff pattern:$0x75316420]  ;;  %v10329_v46 = vld.sshfl [vmem:[#allocation1 + $0x8] sm:$0xff pattern:$0x75316420] }
 0x7da   : > { %4854 = vst [vmem:[#allocation1] ss:$2 sm:$0xff] %v4848_v62  ;;  %v4492_v42 = vld.sshfl [vmem:[#allocation1 + $0x20] sm:$0xff pattern:$0x75316420]  ;;  %v4814_v41 = vrot.slane %v10327_v40, 2 }
 0x7db   : > { %v4497_v15 = vrot.slane %v4492_v42, 7  ;;  %4534 = vst [vmem:[#allocation1 + $0x21] ss:$2 sm:$0xff] %v4525_v32  ;;  %v4667_v40 = vld [vmem:[#allocation8 + $0x10] sm:$0x7] }
 0x7dc   : > { %v4578_v21 = vld.sshfl [vmem:[#allocation1 + $0x10] sm:$0xff pattern:$0x75316420]  ;;  %v10331_v4 = vld.sshfl [vmem:[#allocation1 + $0x18] sm:$0xff pattern:$0x75316420] }
 0x7dd   : > { %4626 = vst [vmem:[#allocation1 + $0x10] ss:$2 sm:$0xff] %v4619_v22  ;;  %4506 = vrot.lane.b32.xlu1 %v4497_v15, %s11775_s17  ;;  %4774 = vrot.lane.b32.xlu0 %v4769_v59, %s7686_s20  ;;  %v4583_v52 = vrot.slane %v4578_v21, 1  ;;  %v4584_v19 = vrot.slane %v10331_v4, 1  ;;  %v4815_v21 = vrot.slane %v10329_v46, 2 }
 0x7de   : > { %4730 = vrot.lane.b32.xlu2 %v10313_v26, %s7701_s15  ;;  %v4895_v46 = vld [vmem:[#allocation8 + $0x8] sm:$0x77]  ;;  %v5165_v15 = vld [vmem:[#allocation8] sm:$0x77] }
 0x7e1   : > { %v10333_v45 = vld.sshfl [vmem:[#allocation1] sm:$0xff pattern:$0x75316420]  ;;  %v10335_v55 = vld.sshfl [vmem:[#allocation1 + $0x8] sm:$0xff pattern:$0x75316420] }
 0x7e2   : > { %4901 = vst [vmem:[#allocation1 + $0x1] ss:$2 sm:$0xff] %v4894_v38  ;;  %v4539_v35 = vld.sshfl [vmem:[#allocation1 + $0x20] sm:$0xff pattern:$0x75316420]  ;;  %v4864_v38 = vrot.slane %v10333_v45, 7 }
 0x7e3   : > { %4575 = vst [vmem:[#allocation1 + $0x20] ss:$2 sm:$0xff] %v4567_v54 }
 0x7e4   : > { %v4631_v24 = vld.sshfl [vmem:[#allocation1 + $0x10] sm:$0xff pattern:$0x75316420]  ;;  %v10338_v11 = vld.sshfl [vmem:[#allocation1 + $0x18] sm:$0xff pattern:$0x75316420] }
 0x7e5   : > { %4673 = vst [vmem:[#allocation1 + $0x10] ss:$2 sm:$0xff] %v4666_v25  ;;  %4776 = vrot.lane.b32.xlu1 %v4770_v13, %s7686_s20  ;;  %4590 = vrot.lane.b32.xlu0 %v4583_v52, %s11598_s12  ;;  %v4636_v37 = vrot.slane %v4631_v24, 6  ;;  %v4637_v32 = vrot.slane %v10338_v11, 6  ;;  %v4937_v11 = vld [vmem:[#allocation8 + $0x8] sm:$0x77] }
 0x7e6   : > { %4548 = vrot.lane.b32.xlu2 %v4539_v35, %s11787_s28 }
 0x7e9   : > { %v10341_v12 = vld.sshfl [vmem:[#allocation1] sm:$0xff pattern:$0x75316420]  ;;  %v10343_v10 = vld.sshfl [vmem:[#allocation1 + $0x8] sm:$0xff pattern:$0x75316420] }
 0x7ea   : > { %4942 = vst [vmem:[#allocation1] ss:$2 sm:$0xff] %v4936_v3  ;;  %v4580_v26 = vld.sshfl [vmem:[#allocation1 + $0x20] sm:$0xff pattern:$0x75316420] }
 0x7eb   : > { %4628 = vst [vmem:[#allocation1 + $0x20] ss:$2 sm:$0xff] %v4620_v18  ;;  %v4585_v4 = vrot.slane %v4580_v26, 1  ;;  %v4865_v18 = vrot.slane %v10335_v55, 7  ;;  %v5216_v26 = vld [vmem:[#allocation8] sm:$0x77] }
 0x7ec   : > { %v10347_v58 = vld.sshfl [vmem:[#allocation1 + $0x10] sm:$0xff pattern:$0x75316420]  ;;  %v10349_v27 = vld.sshfl [vmem:[#allocation1 + $0x18] sm:$0xff pattern:$0x75316420] }
 0x7ed   : > { %4720 = vst [vmem:[#allocation1 + $0x10] ss:$2 sm:$0xff] %v4713_v50  ;;  %4592 = vrot.lane.b32.xlu1 %v4584_v19, %s11598_s12  ;;  %4819 = vrot.lane.b32.xlu0 %v4814_v41, %s11777_s27  ;;  %v4684_v59 = vrot.slane %v10349_v27, 3  ;;  %v4755_v27 = vld [vmem:[#allocation8 + $0x10] sm:$0x7] }
 0x7ee   : > { %4643 = vrot.lane.b32.xlu2 %v4636_v37, %s7699_s14  ;;  %v4988_v55 = vld [vmem:[#allocation8 + $0x8] sm:$0x77] }
 0x7f1   : > { %v10351_v16 = vld.sshfl [vmem:[#allocation1] sm:$0xff pattern:$0x75316420]  ;;  %v10353_v5 = vld.sshfl [vmem:[#allocation1 + $0x8] sm:$0xff pattern:$0x75316420] }
 0x7f2   : > { %4993 = vst [vmem:[#allocation1] ss:$2 sm:$0xff] %v4987_v23  ;;  %v4633_v22 = vld.sshfl [vmem:[#allocation1 + $0x20] sm:$0xff pattern:$0x75316420] }
 0x7f3   : > { %4675 = vst [vmem:[#allocation1 + $0x20] ss:$2 sm:$0xff] %v4667_v40  ;;  %v4638_v50 = vrot.slane %v4633_v22, 6  ;;  %v4800_v40 = vld [vmem:[#allocation8 + $0x10] sm:$0x7] }
 0x7f4   : > { %v10359_v57 = vld.sshfl [vmem:[#allocation1 + $0x10] sm:$0xff pattern:$0x75316420]  ;;  %v10361_v33 = vld.sshfl [vmem:[#allocation1 + $0x18] sm:$0xff pattern:$0x75316420] }
 0x7f5   : > { %4761 = vst [vmem:[#allocation1 + $0x10] ss:$2 sm:$0xff] %v4754_v49  ;;  %4821 = vrot.lane.b32.xlu1 %v4815_v21, %s11777_s27  ;;  %4594 = vrot.lane.b32.xlu0 %v4585_v4, %s11598_s12 }
 0x7f6   : > { %4869 = vrot.lane.b32.xlu2 %v4864_v38, %s7702_s16  ;;  %v4447_v7 = vpop.permute.xlu2 %4446 }
 0x7f9   : > { %v10364_v6 = vld.sshfl [vmem:[#allocation1] sm:$0xff pattern:$0x75316420]  ;;  %v10366_v28 = vld.sshfl [vmem:[#allocation1 + $0x8] sm:$0xff pattern:$0x75316420] }
 0x7fa   : > { %5038 = vst [vmem:[#allocation1] ss:$2 sm:$0xff] %v5032_v48  ;;  %v4680_v3 = vld.sshfl [vmem:[#allocation1 + $0x20] sm:$0xff pattern:$0x75316420] }
 0x7fb   : > { %4722 = vst [vmem:[#allocation1 + $0x20] ss:$2 sm:$0xff] %v4714_v56 }
 0x7fc   : > { %v10371_v34 = vld.sshfl [vmem:[#allocation1 + $0x10] sm:$0xff pattern:$0x75316420]  ;;  %v10373_v2 = vld.sshfl [vmem:[#allocation1 + $0x18] sm:$0xff pattern:$0x75316420] }
 0x7fd   : > { %4806 = vst [vmem:[#allocation1 + $0x10] ss:$2 sm:$0xff] %v4799_v43  ;;  %4647 = vrot.lane.b32.xlu1 %v4638_v50, %s7699_s14  ;;  %4645 = vrot.lane.b32.xlu0 %v4637_v32, %s7699_s14  ;;  %v4683_v43 = vrot.slane %v10347_v58, 3  ;;  %s7706_s14 = smov 90  }
 0x7fe   : > { %4692 = vrot.lane.b32.xlu2 %v4684_v59, %s7700_s25  ;;  %v10422_v48 = vpop.permute.xlu2 %4500  ;;  %v5079_v59 = vld [vmem:[#allocation8 + $0x8] sm:$0x77] }
 0x801   : > { %v10377_v61 = vld.sshfl [vmem:[#allocation1] sm:$0xff pattern:$0x75316420]  ;;  %v10379_v29 = vld.sshfl [vmem:[#allocation1 + $0x8] sm:$0xff pattern:$0x75316420] }
 0x802   : > { %5084 = vst [vmem:[#allocation1] ss:$2 sm:$0xff] %v5078_v39  ;;  %v4727_v13 = vld.sshfl [vmem:[#allocation1 + $0x20] sm:$0xff pattern:$0x75316420] }
 0x803   : > { %4763 = vst [vmem:[#allocation1 + $0x20] ss:$2 sm:$0xff] %v4755_v27 }
 0x804   : > { %v10384_v31 = vld.sshfl [vmem:[#allocation1 + $0x10] sm:$0xff pattern:$0x75316420]  ;;  %v10386_v62 = vld.sshfl [vmem:[#allocation1 + $0x18] sm:$0xff pattern:$0x75316420] }
 0x805   : > { %4856 = vst [vmem:[#allocation1 + $0x10] ss:$2 sm:$0xff] %v4849_v51  ;;  %4690 = vrot.lane.b32.xlu1 %v4683_v43, %s7700_s25  ;;  %4871 = vrot.lane.b32.xlu0 %v4865_v18, %s7702_s16  ;;  %v4896_v43 = vld [vmem:[#allocation8 + $0x10] sm:$0x7]  ;;  %v4953_v18 = vrot.slane %v10353_v5, 1 }
 0x806   : > { %v10389_v53 = vpop.permute.xlu1 %4402  ;;  %v4401_v63 = vpop.permute.xlu0 %4400  ;;  %4913 = vrot.lane.b32.xlu2 %v10343_v10, %s7703_s13  ;;  %v5261_v10 = vld [vmem:[#allocation8] sm:$0x77]  ;;  %v5120_v5 = vld [vmem:[#allocation8 + $0x8] sm:$0x77] }
 0x807   : > { %12053 = vst [vmem:[#allocation70_spill] sm:$0xff] %v10389_v53  ;;  %v4410_v25 = vsel %vm11587_vm0, %v4401_v63, %v10389_v53  ;;  %v4685_v63 = vrot.slane %v4680_v3, 3  ;;  %v4850_v3 = vld [vmem:[#allocation8 + $0x10] sm:$0x7] }
 0x808   : > { %4419 = vst [vmem:[#allocation4] sm:$0x38] %v4410_v25 }
 0x809   : > { %v10394_v24 = vld.sshfl [vmem:[#allocation1] sm:$0xff pattern:$0x75316420]  ;;  %v10396_v1 = vld.sshfl [vmem:[#allocation1 + $0x8] sm:$0xff pattern:$0x75316420] }
 0x80a   : > { %5125 = vst [vmem:[#allocation1] ss:$2 sm:$0xff] %v5119_v47  ;;  %v10440_v22 = vld.sshfl [vmem:[#allocation1 + $0x20] sm:$0xff pattern:$0x75316420] }
 0x80b   : > { %4808 = vst [vmem:[#allocation1 + $0x20] ss:$2 sm:$0xff] %v4800_v40 }
 0x80c   : > { %v10401_v60 = vld.sshfl [vmem:[#allocation1 + $0x10] sm:$0xff pattern:$0x75316420]  ;;  %v10403_v45 = vld.sshfl [vmem:[#allocation1 + $0x18] sm:$0xff pattern:$0x75316420] }
 0x80d   : > { %4903 = vst [vmem:[#allocation1 + $0x11] ss:$2 sm:$0xff] %v4895_v46  ;;  %4911 = vrot.lane.b32.xlu1 %v10341_v12, %s7703_s13  ;;  %4732 = vrot.lane.b32.xlu0 %v10359_v57, %s7701_s15  ;;  %v5033_v46 = vld [vmem:[#allocation8 + $0x8] sm:$0x77]  ;;  %v4771_v12 = vrot.slane %v10371_v34, 5 }
 0x80e   : > { %v10406_v42 = vpop.permute.xlu0 %4448  ;;  %4694 = vrot.lane.b32.xlu2 %v4685_v63, %s7700_s25  ;;  %v5302_v57 = vld [vmem:[#allocation8] sm:$0x77]  ;;  %s7707_s25 = smov 89  }
 0x80f   : > { %12054 = vst [vmem:[#allocation23_spill] sm:$0xff] %v10406_v42  ;;  %v4456_v23 = vsel %vm11584_vm1, %v4447_v7, %v10406_v42  ;;  %vm4710_vm1 = vcmask 523269  }
 0x810   : > { %4465 = vst [vmem:[#allocation4] sm:$0xc0] %v4456_v23 }
 0x811   : > { %v10411_v49 = vld.sshfl [vmem:[#allocation1] sm:$0xff pattern:$0x75316420]  ;;  %v10413_v52 = vld.sshfl [vmem:[#allocation1 + $0x8] sm:$0xff pattern:$0x75316420] }
 0x812   : > { %5171 = vst [vmem:[#allocation1] ss:$2 sm:$0xff] %v5165_v15  ;;  %v10459_v50 = vld.sshfl [vmem:[#allocation1 + $0x20] sm:$0xff pattern:$0x75316420] }
 0x813   : > { %4471 = vst [vmem:[#allocation4 + $0x28] sm:$0x1] %v4456_v23  ;;  %v10470_v23 = vpop.permute.xlu2 %4588 }
 0x814   : > { %v10418_v54 = vld.sshfl [vmem:[#allocation1 + $0x10] sm:$0xff pattern:$0x75316420]  ;;  %v10420_v35 = vld.sshfl [vmem:[#allocation1 + $0x18] sm:$0xff pattern:$0x75316420] }
 0x815   : > { %4944 = vst [vmem:[#allocation1 + $0x10] ss:$2 sm:$0xff] %v4937_v11  ;;  %4734 = vrot.lane.b32.xlu1 %v10361_v33, %s7701_s15  ;;  %4736 = vrot.lane.b32.xlu0 %v4727_v13, %s7701_s15  ;;  %s7708_s15 = smov 79  }
 0x816   : > { %v4499_v37 = vpop.permute.xlu1 %4498  ;;  %4858 = vst [vmem:[#allocation1 + $0x20] ss:$2 sm:$0xff] %v4850_v3  ;;  %4778 = vrot.lane.b32.xlu2 %v4771_v12, %s7686_s20  ;;  %v5004_v3 = vrot.slane %v10366_v28, 6 }
 0x817   : > { %v4508_v19 = vsel %vm12055_vm9, %v4499_v37, %v10422_v48  ;;  %v4952_v37 = vrot.slane %v10351_v16, 1  ;;  %vm12061_vm9 = vcmask 850944  }
 0x818   : > { %4517 = vst [vmem:[#allocation4 + $0x28] sm:$0xe] %v4508_v19  ;;  %v5353_v19 = vld [vmem:[#allocation8] sm:$0x77] }
 0x819   : > { %v10428_v41 = vld.sshfl [vmem:[#allocation1] sm:$0xff pattern:$0x75316420]  ;;  %v10430_v39 = vld.sshfl [vmem:[#allocation1 + $0x8] sm:$0xff pattern:$0x75316420] }
 0x81a   : > { %5222 = vst [vmem:[#allocation1] ss:$2 sm:$0xff] %v5216_v26  ;;  %v5003_v26 = vrot.slane %v10364_v6, 6 }
 0x81c   : > { %v10436_v58 = vld.sshfl [vmem:[#allocation1 + $0x10] sm:$0xff pattern:$0x75316420]  ;;  %v10438_v51 = vld.sshfl [vmem:[#allocation1 + $0x18] sm:$0xff pattern:$0x75316420]  ;;  %v4541_v21 = vpop.permute.xlu0 %4540 }
 0x81d   : > { %4995 = vst [vmem:[#allocation1 + $0x10] ss:$2 sm:$0xff] %v4988_v55  ;;  %v10478_v13 = vld.sshfl [vmem:[#allocation1 + $0x20] sm:$0xff pattern:$0x75316420]  ;;  %4959 = vrot.lane.b32.xlu1 %v4953_v18, %s7704_s30  ;;  %4957 = vrot.lane.b32.xlu0 %v4952_v37, %s7704_s30  ;;  %v5048_v37 = vrot.slane %v10377_v61, 3 }
 0x81e   : > { %v10442_v4 = vpop.permute.xlu1 %4542  ;;  %4905 = vst [vmem:[#allocation1 + $0x21] ss:$2 sm:$0xff] %v4896_v43  ;;  %5008 = vrot.lane.b32.xlu2 %v5003_v26, %s7696_s24  ;;  %v4989_v18 = vld [vmem:[#allocation8 + $0x10] sm:$0x7]  ;;  %v4817_v26 = vrot.slane %v10386_v62, 2 }
 0x81f   : > { %12056 = vst [vmem:[#allocation72_spill] sm:$0xff] %v10442_v4  ;;  %v4550_v47 = vsel %vm12057_vm13, %v4541_v21, %v10442_v4  ;;  %vm4616_vm13 = vcmask 517120  }
 0x820   : > { %4559 = vst [vmem:[#allocation4 + $0x28] sm:$0x70] %v4550_v47 }
 0x821   : > { %v10446_v38 = vld.sshfl [vmem:[#allocation1] sm:$0xff pattern:$0x75316420]  ;;  %v10453_v25 = vld.sshfl [vmem:[#allocation1 + $0x8] sm:$0xff pattern:$0x75316420] }
 0x822   : > { %5268 = vst [vmem:[#allocation1 + $0x1] ss:$2 sm:$0xff] %v5261_v10  ;;  %v4938_v10 = vld [vmem:[#allocation8 + $0x10] sm:$0x7] }
 0x824   : > { %v10455_v7 = vld.sshfl [vmem:[#allocation1 + $0x10] sm:$0xff pattern:$0x75316420]  ;;  %v10457_v56 = vld.sshfl [vmem:[#allocation1 + $0x18] sm:$0xff pattern:$0x75316420] }
 0x825   : > { %5040 = vst [vmem:[#allocation1 + $0x10] ss:$2 sm:$0xff] %v5033_v46  ;;  %v4773_v46 = vrot.slane %v10440_v22, 5  ;;  %v10500_v12 = vld.sshfl [vmem:[#allocation1 + $0x20] sm:$0xff pattern:$0x75316420]  ;;  %5010 = vrot.lane.b32.xlu0 %v5004_v3, %s7696_s24 }
 0x826   : > { %v4587_v11 = vpop.permute.xlu1 %4586  ;;  %4946 = vst [vmem:[#allocation1 + $0x20] ss:$2 sm:$0xff] %v4938_v10 }
 0x827   : > { %v4597_v33 = vsel %vm11585_vm11, %v4587_v11, %v10470_v23  ;;  %4782 = vrot.lane.b32.xlu1 %v4773_v46, %s7686_s20  ;;  %v10506_v11 = vpop.permute.xlu2 %4408 }
 0x828   : > { %4606 = vst [vmem:[#allocation4 + $0x28] sm:$0x80] %v4597_v33 }
 0x829   : > { %v10466_v32 = vld.sshfl [vmem:[#allocation1] sm:$0xff pattern:$0x75316420]  ;;  %v10468_v15 = vld.sshfl [vmem:[#allocation1 + $0x8] sm:$0xff pattern:$0x75316420] }
 0x82a   : > { %5308 = vst [vmem:[#allocation1] ss:$2 sm:$0xff] %v5302_v57  ;;  %v4816_v57 = vrot.slane %v10384_v31, 2  ;;  %v5399_v31 = vld [vmem:[#allocation8] sm:$0x77] }
 0x82b   : > { %4612 = vst [vmem:[#allocation4 + $0x50] sm:$0x3] %v4597_v33 }
 0x82c   : > { %v10472_v27 = vld.sshfl [vmem:[#allocation1 + $0x10] sm:$0xff pattern:$0x75316420]  ;;  %v10474_v34 = vld.sshfl [vmem:[#allocation1 + $0x18] sm:$0xff pattern:$0x75316420]  ;;  %4823 = vrot.lane.b32.xlu2 %v4816_v57, %s11777_s27 }
 0x82d   : > { %5086 = vst [vmem:[#allocation1 + $0x10] ss:$2 sm:$0xff] %v5079_v59  ;;  %v5166_v59 = vld [vmem:[#allocation8 + $0x8] sm:$0x77]  ;;  %4825 = vrot.lane.b32.xlu0 %v4817_v26, %s11777_s27  ;;  %v5034_v57 = vld [vmem:[#allocation8 + $0x10] sm:$0x7] }
 0x82e   : > { %v4640_v55 = vpop.permute.xlu0 %4639  ;;  %v10490_v16 = vpop.permute.xlu1 %4641  ;;  %4424 = vst.msk [vmem:[#allocation4 + $0x20] sm:$0x38] %vm4423_vm15, %v10506_v11 }
 0x82f   : > { %v4650_v47 = vsel %vm4649_vm2, %v4640_v55, %v10490_v16  ;;  %v5049_v55 = vrot.slane %v10379_v29, 3  ;;  %5053 = vrot.lane.b32.xlu1 %v5048_v37, %s11594_s10  ;;  %v4687_v10 = vpop.permute.xlu2 %4686  ;;  %v5445_v29 = vld [vmem:[#allocation8] sm:$0x77] }
 0x830   : > { %4659 = vst [vmem:[#allocation4 + $0x50] sm:$0x1c] %v4650_v47  ;;  %v5217_v47 = vld [vmem:[#allocation8 + $0x8] sm:$0x77] }
 0x831   : > { %v10486_v40 = vld.sshfl [vmem:[#allocation1] sm:$0xff pattern:$0x75316420]  ;;  %v10488_v21 = vld.sshfl [vmem:[#allocation1 + $0x8] sm:$0xff pattern:$0x75316420] }
 0x832   : > { %5359 = vst [vmem:[#allocation1] ss:$2 sm:$0xff] %v5353_v19  ;;  %v10520_v19 = vld.sshfl [vmem:[#allocation1 + $0x20] sm:$0xff pattern:$0x75316420] }
 0x833   : > { %4997 = vst [vmem:[#allocation1 + $0x20] ss:$2 sm:$0xff] %v4989_v18  ;;  %v4818_v18 = vrot.slane %v10459_v50, 2 }
 0x834   : > { %v10492_v6 = vld.sshfl [vmem:[#allocation1 + $0x10] sm:$0xff pattern:$0x75316420]  ;;  %v10494_v63 = vld.sshfl [vmem:[#allocation1 + $0x18] sm:$0xff pattern:$0x75316420]  ;;  %5055 = vrot.lane.b32.xlu2 %v5049_v55, %s11594_s10 }
 0x835   : > { %5127 = vst [vmem:[#allocation1 + $0x10] ss:$2 sm:$0xff] %v5120_v5  ;;  %5096 = vrot.lane.b32.xlu0 %v10396_v1, %s7705_s11  ;;  %v5262_v55 = vld [vmem:[#allocation8 + $0x8] sm:$0x77]  ;;  %v4868_v1 = vrot.slane %v10478_v13, 7 }
 0x836   : > { %v10525_v5 = vpop.permute.xlu0 %4688 }
 0x837   : > { %v4697_v46 = vsel %vm4696_vm6, %v4687_v10, %v10525_v5 }
 0x838   : > { %4706 = vst [vmem:[#allocation4 + $0x50] sm:$0xe0] %v4697_v46  ;;  %v10550_v50 = vpop.permute.xlu2 %4730  ;;  %v5080_v46 = vld [vmem:[#allocation8 + $0x10] sm:$0x7] }
 0x839   : > { %v10508_v33 = vld.sshfl [vmem:[#allocation1 + $0x8] sm:$0xff pattern:$0x75316420]  ;;  %v10510_v22 = vld.sshfl [vmem:[#allocation1] sm:$0xff pattern:$0x75316420] }
 0x83a   : > { %5405 = vst [vmem:[#allocation1] ss:$2 sm:$0xff] %v5399_v31  ;;  %v10537_v31 = vld.sshfl [vmem:[#allocation1 + $0x20] sm:$0xff pattern:$0x75316420] }
 0x83b   : > { %5042 = vst [vmem:[#allocation1 + $0x20] ss:$2 sm:$0xff] %v5034_v57  ;;  %v4867_v57 = vrot.slane %v10403_v45, 7  ;;  %v5121_v45 = vld [vmem:[#allocation8 + $0x10] sm:$0x7] }
 0x83c   : > { %v10512_v28 = vld.sshfl [vmem:[#allocation1 + $0x10] sm:$0xff pattern:$0x75316420]  ;;  %v10514_v43 = vld.sshfl [vmem:[#allocation1 + $0x18] sm:$0xff pattern:$0x75316420]  ;;  %4827 = vrot.lane.b32.xlu2 %v4818_v18, %s11777_s27  ;;  %v4729_v26 = vpop.permute.xlu1 %4728 }
 0x83d   : > { %5173 = vst [vmem:[#allocation1 + $0x10] ss:$2 sm:$0xff] %v5166_v59  ;;  %v4866_v59 = vrot.slane %v10401_v60, 7  ;;  %v4739_v10 = vsel %vm4738_vm14, %v4729_v26, %v10550_v50  ;;  %4877 = vrot.lane.b32.xlu0 %v4868_v1, %s7702_s16 }
 0x83e   : > { %4748 = vst [vmem:[#allocation4 + $0x78] sm:$0x7] %v4739_v10 }
 0x83f   : > { %4873 = vrot.lane.b32.xlu1 %v4866_v59, %s7702_s16  ;;  %v5303_v59 = vld [vmem:[#allocation8 + $0x8] sm:$0x77] }
 0x841   : > { %v10534_v3 = vld.sshfl [vmem:[#allocation1] sm:$0xff pattern:$0x75316420]  ;;  %v10540_v37 = vld.sshfl [vmem:[#allocation1 + $0x8] sm:$0xff pattern:$0x75316420] }
 0x842   : > { %5451 = vst [vmem:[#allocation1] ss:$2 sm:$0xff] %v5445_v29  ;;  %v10555_v29 = vld.sshfl [vmem:[#allocation1 + $0x20] sm:$0xff pattern:$0x75316420] }
 0x843   : > { %5088 = vst [vmem:[#allocation1 + $0x20] ss:$2 sm:$0xff] %v5080_v46 }
 0x844   : > { %v10528_v61 = vld.sshfl [vmem:[#allocation1 + $0x10] sm:$0xff pattern:$0x75316420]  ;;  %v10530_v62 = vld.sshfl [vmem:[#allocation1 + $0x18] sm:$0xff pattern:$0x75316420]  ;;  %4875 = vrot.lane.b32.xlu2 %v4867_v57, %s7702_s16 }
 0x845   : > { %5224 = vst [vmem:[#allocation1 + $0x10] ss:$2 sm:$0xff] %v5217_v47  ;;  %4915 = vrot.lane.b32.xlu0 %v10418_v54, %s7703_s13  ;;  %v4955_v54 = vrot.slane %v10438_v51, 1 }
 0x847   : > { %4917 = vrot.lane.b32.xlu1 %v10420_v35, %s7703_s13  ;;  %v5354_v35 = vld [vmem:[#allocation8 + $0x8] sm:$0x77]  ;;  %v10578_v10 = vpop.permute.xlu0 %4454 }
 0x848   : > { %12059 = vst [vmem:[#allocation150_spill] sm:$0xff] %v10578_v10 }
 0x849   : > { %4470 = vst.msk [vmem:[#allocation4 + $0x20] sm:$0xc0] %vm4469_vm3, %v10578_v10 }
 0x84a   : > { %v10570_v13 = vld.sshfl [vmem:[#allocation1 + $0x20] sm:$0xff pattern:$0x75316420]  ;;  %4476 = vst.msk [vmem:[#allocation4 + $0x48] sm:$0x1] %vm11588_vm12, %v10578_v10 }
 0x84b   : > { %5129 = vst [vmem:[#allocation1 + $0x20] ss:$2 sm:$0xff] %v5121_v45  ;;  %v5167_v45 = vld [vmem:[#allocation8 + $0x10] sm:$0x7]  ;;  %v5446_v10 = vld [vmem:[#allocation8 + $0x8] sm:$0x77] }
 0x84c   : > { %v10546_v60 = vld.sshfl [vmem:[#allocation1 + $0x10] sm:$0xff pattern:$0x75316420]  ;;  %v10548_v47 = vld.sshfl [vmem:[#allocation1 + $0x18] sm:$0xff pattern:$0x75316420]  ;;  %5094 = vrot.lane.b32.xlu2 %v10394_v24, %s7705_s11 }
 0x84d   : > { %5270 = vst [vmem:[#allocation1 + $0x11] ss:$2 sm:$0xff] %v5262_v55  ;;  %v10566_v55 = vpop.permute.xlu2 %4548  ;;  %v5135_v24 = vrot.slane %v10411_v49, 5  ;;  %4963 = vrot.lane.b32.xlu0 %v4955_v54, %s7704_s30  ;;  %v5400_v49 = vld [vmem:[#allocation8 + $0x8] sm:$0x77] }
 0x84e   : > { %12058 = vst [vmem:[#allocation112_spill] sm:$0xff] %v10566_v55  ;;  %v5218_v54 = vld [vmem:[#allocation8 + $0x10] sm:$0x7] }
 0x84f   : > { %4564 = vst.msk [vmem:[#allocation4 + $0x48] sm:$0x70] %vm4563_vm8, %v10566_v55  ;;  %4919 = vrot.lane.b32.xlu1 %v10500_v12, %s7703_s13  ;;  %v4775_v9 = vpop.permute.xlu0 %4774 }
 0x854   : > { %v10562_v18 = vld.sshfl [vmem:[#allocation1 + $0x10] sm:$0xff pattern:$0x75316420]  ;;  %v10564_v26 = vld.sshfl [vmem:[#allocation1 + $0x18] sm:$0xff pattern:$0x75316420] }
 0x855   : > { %5310 = vst [vmem:[#allocation1 + $0x10] ss:$2 sm:$0xff] %v5303_v59  ;;  %v10584_v57 = vpop.permute.xlu2 %4643  ;;  %v10595_v59 = vld.sshfl [vmem:[#allocation1 + $0x20] sm:$0xff pattern:$0x75316420] }
 0x856   : > { %v4651_v12 = vsel %vm4649_vm2, %v10490_v16, %v10584_v57  ;;  %5175 = vst [vmem:[#allocation1 + $0x20] ss:$2 sm:$0xff] %v5167_v45  ;;  %v10601_v16 = vpop.permute.xlu1 %4506  ;;  %v4954_v45 = vrot.slane %v10436_v58, 1 }
 0x857   : > { %4660 = vst [vmem:[#allocation4 + $0x58] sm:$0x1c] %v4651_v12  ;;  %5140 = vrot.lane.b32.xlu1 %v5135_v24, %s7706_s14  ;;  %v5181_v24 = vrot.slane %v10428_v41, 2 }
 0x858   : > { %12060 = vst [vmem:[#allocation81_spill] sm:$0xff] %v10601_v16 }
 0x859   : > { %4522 = vst.msk [vmem:[#allocation4 + $0x48] sm:$0xe] %vm4521_vm4, %v10601_v16  ;;  %5186 = vrot.lane.b32.xlu0 %v5181_v24, %s7707_s25  ;;  %v4591_v16 = vpop.permute.xlu0 %4590  ;;  %v5263_v24 = vld [vmem:[#allocation8 + $0x10] sm:$0x7] }
 0x85a   : > { %v4598_v41 = vsel %vm11585_vm11, %v10470_v23, %v4591_v16 }
 0x85b   : > { %4607 = vst [vmem:[#allocation4 + $0x30] sm:$0x80] %v4598_v41 }
 0x85c   : > { %v10580_v46 = vld.sshfl [vmem:[#allocation1 + $0x10] sm:$0xff pattern:$0x75316420]  ;;  %v10582_v1 = vld.sshfl [vmem:[#allocation1 + $0x18] sm:$0xff pattern:$0x75316420] }
 0x85d   : > { %5361 = vst [vmem:[#allocation1 + $0x10] ss:$2 sm:$0xff] %v5354_v35  ;;  %v5136_v35 = vrot.slane %v10413_v52, 5  ;;  %v10607_v12 = vpop.permute.xlu2 %4869  ;;  %v5182_v52 = vrot.slane %v10430_v39, 2 }
 0x85e   : > { %4613 = vst [vmem:[#allocation4 + $0x58] sm:$0x3] %v4598_v41 }
 0x85f   : > { %5142 = vrot.lane.b32.xlu2 %v5136_v35, %s7706_s14  ;;  %v10614_v35 = vld.sshfl [vmem:[#allocation1 + $0x20] sm:$0xff pattern:$0x75316420]  ;;  %5188 = vrot.lane.b32.xlu1 %v5182_v52, %s7707_s25 }
 0x860   : > { %5226 = vst [vmem:[#allocation1 + $0x20] ss:$2 sm:$0xff] %v5218_v54  ;;  %v5005_v54 = vrot.slane %v10455_v7, 6  ;;  %v5007_v7 = vrot.slane %v10537_v31, 6 }
 0x864   : > { %v10603_v51 = vld.sshfl [vmem:[#allocation1 + $0x10] sm:$0xff pattern:$0x75316420]  ;;  %v10605_v4 = vld.sshfl [vmem:[#allocation1 + $0x18] sm:$0xff pattern:$0x75316420] }
 0x865   : > { %5407 = vst [vmem:[#allocation1 + $0x10] ss:$2 sm:$0xff] %v5400_v49  ;;  %v10619_v49 = vpop.permute.xlu1 %4776  ;;  %v10625_v58 = vpop.permute.xlu2 %4692 }
 0x866   : > { %v4784_v39 = vsel %vm11586_vm7, %v4775_v9, %v10619_v49  ;;  %v4956_v9 = vrot.slane %v10520_v19, 1  ;;  %v5304_v19 = vld [vmem:[#allocation8 + $0x10] sm:$0x7] }
 0x867   : > { %4961 = vrot.lane.b32.xlu2 %v4954_v45, %s7704_s30  ;;  %4793 = vst [vmem:[#allocation4 + $0x78] sm:$0x38] %v4784_v39  ;;  %v5233_v45 = vrot.slane %v10453_v25, 7  ;;  %v10634_v55 = vld.sshfl [vmem:[#allocation1 + $0x20] sm:$0xff pattern:$0x75316420]  ;;  %5012 = vrot.lane.b32.xlu1 %v5005_v54, %s7696_s24  ;;  %v4820_v39 = vpop.permute.xlu0 %4819 }
 0x868   : > { %5272 = vst [vmem:[#allocation1 + $0x21] ss:$2 sm:$0xff] %v5263_v24  ;;  %v5051_v25 = vrot.slane %v10474_v34, 3 }
 0x869   : > { %5239 = vrot.lane.b32.xlu0 %v5233_v45, %s11778_s22 }
 0x86c   : > { %v10627_v42 = vld.sshfl [vmem:[#allocation1 + $0x18] sm:$0xff pattern:$0x75316420]  ;;  %v10629_v52 = vld.sshfl [vmem:[#allocation1 + $0x10] sm:$0xff pattern:$0x75316420] }
 0x86d   : > { %5453 = vst [vmem:[#allocation1 + $0x10] ss:$2 sm:$0xff] %v5446_v10  ;;  %v4593_v23 = vpop.permute.xlu1 %4592  ;;  %v10640_v53 = vpop.permute.xlu2 %4913  ;;  %v5006_v10 = vrot.slane %v10457_v56, 6 }
 0x86e   : > { %v4599_v41 = vsel %vm11585_vm11, %v4591_v16, %v4593_v23 }
 0x86f   : > { %4965 = vrot.lane.b32.xlu2 %v4956_v9, %s7704_s30  ;;  %4608 = vst [vmem:[#allocation4 + $0x38] sm:$0x80] %v4599_v41  ;;  %v10645_v54 = vld.sshfl [vmem:[#allocation1 + $0x20] sm:$0xff pattern:$0x75316420]  ;;  %5059 = vrot.lane.b32.xlu1 %v5051_v25, %s11594_s10  ;;  %v4595_v24 = vpop.permute.xlu0 %4594  ;;  %v5050_v9 = vrot.slane %v10472_v27, 3 }
 0x870   : > { %4614 = vst [vmem:[#allocation4 + $0x60] sm:$0x3] %v4599_v41  ;;  %v4600_v31 = vsel %vm11585_vm11, %v4593_v23, %v4595_v24  ;;  %v5232_v41 = vrot.slane %v10446_v38, 7  ;;  %vm12062_vm11 = vcmask 850944  }
 0x871   : > { %5016 = vrot.lane.b32.xlu0 %v5007_v7, %s7696_s24  ;;  %5312 = vst [vmem:[#allocation1 + $0x20] ss:$2 sm:$0xff] %v5304_v19  ;;  %v5355_v19 = vld [vmem:[#allocation8 + $0x10] sm:$0x7] }
 0x872   : > { %4611 = vst.msk [vmem:[#allocation4 + $0x48] sm:$0x80] %vm4610_vm5, %v4595_v24 }
 0x873   : > { %4609 = vst [vmem:[#allocation4 + $0x40] sm:$0x80] %v4600_v31 }
 0x874   : > { %4615 = vst [vmem:[#allocation4 + $0x68] sm:$0x3] %v4600_v31 }
 0x875   : > { %v10650_v16 = vpop.permute.xlu1 %4821  ;;  %v4695_v56 = vpop.permute.xlu2 %4694  ;;  %4617 = vst.msk [vmem:[#allocation4 + $0x70] sm:$0x3] %vm4616_vm13, %v4595_v24 }
 0x876   : > { %v4829_v34 = vsel %vm12061_vm9, %v4820_v39, %v10650_v16  ;;  %v4700_v45 = vsel %vm4696_vm6, %v10625_v58, %v4695_v56  ;;  %vm4663_vm9 = vcmask 520194   ;;  %4711 = vst.msk [vmem:[#allocation4 + $0x70] sm:$0xe0] %vm4710_vm1, %v4695_v56 }
 0x877   : > { %5014 = vrot.lane.b32.xlu2 %v5006_v10, %s7696_s24  ;;  %4838 = vst [vmem:[#allocation4 + $0x78] sm:$0xc0] %v4829_v34  ;;  %5278 = vrot.lane.b32.xlu1 %v10466_v32, %s7689_s23  ;;  %v4646_v39 = vpop.permute.xlu0 %4645  ;;  %v5052_v10 = vrot.slane %v10555_v29, 3 }
 0x878   : > { %4843 = vst [vmem:[#allocation4 + $0xa0] sm:$0x1] %v4829_v34  ;;  %v4652_v38 = vsel %vm4649_vm2, %v10584_v57, %v4646_v39  ;;  %v10675_v7 = vld.sshfl [vmem:[#allocation1 + $0x20] sm:$0xff pattern:$0x75316420] }
 0x879   : > { %5057 = vrot.lane.b32.xlu0 %v5050_v9, %s11594_s10  ;;  %4709 = vst [vmem:[#allocation4 + $0x68] sm:$0xe0] %v4700_v45  ;;  %v5319_v9 = vrot.slane %v10488_v21, 1 }
 0x87a   : > { %4661 = vst [vmem:[#allocation4 + $0x60] sm:$0x1c] %v4652_v38 }
 0x87b   : > { %5363 = vst [vmem:[#allocation1 + $0x20] ss:$2 sm:$0xff] %v5355_v19 }
 0x87d   : > { %v4648_v23 = vpop.permute.xlu1 %4647  ;;  %v10670_v25 = vpop.permute.xlu2 %4778 }
 0x87e   : > { %4664 = vst.msk [vmem:[#allocation4 + $0x70] sm:$0x1c] %vm4663_vm9, %v4648_v23  ;;  %v4653_v27 = vsel %vm4649_vm2, %v4646_v39, %v4648_v23  ;;  %v4785_v32 = vsel %vm11586_vm7, %v10619_v49, %v10670_v25  ;;  %vm11591_vm2 = vcmask 842752   ;;  %v5447_v23 = vld [vmem:[#allocation8 + $0x10] sm:$0x7]  ;;  %v5138_v39 = vrot.slane %v10514_v43, 5 }
 0x87f   : > { %5237 = vrot.lane.b32.xlu2 %v5232_v41, %s11778_s22  ;;  %4662 = vst [vmem:[#allocation4 + $0x68] sm:$0x1c] %v4653_v27  ;;  %5061 = vrot.lane.b32.xlu1 %v5052_v10, %s11594_s10  ;;  %v10683_v24 = vpop.permute.xlu0 %4871  ;;  %v5137_v43 = vrot.slane %v10512_v28, 5  ;;  %v5183_v27 = vrot.slane %v10528_v61, 2  ;;  %v5185_v28 = vrot.slane %v10614_v35, 2  ;;  %v5139_v61 = vrot.slane %v10595_v59, 5 }
 0x880   : > { %4794 = vst [vmem:[#allocation4 + $0x80] sm:$0x38] %v4785_v32  ;;  %v4880_v29 = vsel %vm11591_vm2, %v10607_v12, %v10683_v24  ;;  %v5369_v32 = vrot.slane %v10510_v22, 6  ;;  %v5184_v22 = vrot.slane %v10530_v62, 2  ;;  %v5415_v59 = vrot.slane %v10534_v3, 3  ;;  %s11596_s10 = smov 109  }
 0x881   : > { %5100 = vrot.lane.b32.xlu0 %v10494_v63, %s7705_s11  ;;  %v5401_v63 = vld [vmem:[#allocation8 + $0x10] sm:$0x7]  ;;  %4889 = vst [vmem:[#allocation4 + $0xa0] sm:$0xe] %v4880_v29  ;;  %vm5063_vm7 = vcmask 752640  }
 0x882   : > { %v10695_v56 = vld.sshfl [vmem:[#allocation1 + $0x20] sm:$0xff pattern:$0x75316420] }
 0x883   : > { %5409 = vst [vmem:[#allocation1 + $0x20] ss:$2 sm:$0xff] %v5401_v63  ;;  %v5235_v63 = vrot.slane %v10548_v47, 7 }
 0x885   : > { %v4691_v57 = vpop.permute.xlu1 %4690  ;;  %v10692_v31 = vpop.permute.xlu2 %5008 }
 0x886   : > { %v4698_v49 = vsel %vm4696_vm6, %v10525_v5, %v4691_v57  ;;  %v4699_v34 = vsel %vm4696_vm6, %v4691_v57, %v10625_v58  ;;  %vm11589_vm6 = vcmask 834560  }
 0x887   : > { %5280 = vrot.lane.b32.xlu2 %v10468_v15, %s7689_s23  ;;  %4707 = vst [vmem:[#allocation4 + $0x58] sm:$0xe0] %v4698_v49  ;;  %v5318_v15 = vrot.slane %v10486_v40, 1  ;;  %5102 = vrot.lane.b32.xlu1 %v10570_v13, %s7705_s11  ;;  %v4733_v12 = vpop.permute.xlu0 %4732 }
 0x888   : > { %4708 = vst [vmem:[#allocation4 + $0x60] sm:$0xe0] %v4699_v34  ;;  %v4740_v40 = vsel %vm4738_vm14, %v10550_v50, %v4733_v12 }
 0x889   : > { %5323 = vrot.lane.b32.xlu0 %v5318_v15, %s7708_s15  ;;  %4749 = vst [vmem:[#allocation4 + $0x80] sm:$0x7] %v4740_v40  ;;  %v5416_v15 = vrot.slane %v10540_v37, 3  ;;  %v5457_v37 = vld.sshfl [vmem:[#allocation1 + $0x8] sm:$0xff pattern:$0x75316420] }
 0x88a   : > { %v10713_v41 = vld.sshfl [vmem:[#allocation1 + $0x20] sm:$0xff pattern:$0x75316420] }
 0x88b   : > { %5455 = vst [vmem:[#allocation1 + $0x20] ss:$2 sm:$0xff] %v5447_v23  ;;  %v5456_v40 = vld.sshfl [vmem:[#allocation1] sm:$0xff pattern:$0x75316420] }
 0x88d   : > { %v4912_v5 = vpop.permute.xlu1 %4911  ;;  %v10706_v45 = vpop.permute.xlu2 %4823 }
 0x88e   : > { %v4922_v58 = vsel %vm11589_vm6, %v4912_v5, %v10640_v53  ;;  %v4830_v13 = vsel %vm12062_vm11, %v10650_v16, %v10706_v45  ;;  %vm11590_vm11 = vcmask 826368  }
 0x88f   : > { %5098 = vrot.lane.b32.xlu2 %v10492_v6, %s7705_s11  ;;  %4931 = vst [vmem:[#allocation4 + $0xa0] sm:$0x70] %v4922_v58  ;;  %v5370_v6 = vrot.slane %v10508_v33, 6  ;;  %5325 = vrot.lane.b32.xlu1 %v5319_v9, %s7708_s15  ;;  %s7709_s11 = smov 78   ;;  %v4737_v16 = vpop.permute.xlu0 %4736 }
 0x890   : > { %4839 = vst [vmem:[#allocation4 + $0x80] sm:$0xc0] %v4830_v13 }
 0x891   : > { %4844 = vst [vmem:[#allocation4 + $0xa8] sm:$0x1] %v4830_v13  ;;  %5376 = vrot.lane.b32.xlu0 %v5370_v6, %s7709_s11  ;;  %v5234_v13 = vrot.slane %v10546_v60, 7 }
 0x892   : > { %4752 = vst.msk [vmem:[#allocation4 + $0x98] sm:$0x7] %vm3523_vm10, %v4737_v16 }
 0x895   : > { %v4735_v50 = vpop.permute.xlu1 %4734  ;;  %v10722_v38 = vpop.permute.xlu2 %5055 }
 0x896   : > { %v4741_v21 = vsel %vm4738_vm14, %v4733_v12, %v4735_v50  ;;  %v4742_v33 = vsel %vm4738_vm14, %v4735_v50, %v4737_v16  ;;  %vm12063_vm14 = vcmask 818176   ;;  %v5236_v50 = vrot.slane %v10634_v55, 7 }
 0x897   : > { %5146 = vrot.lane.b32.xlu2 %v5138_v39, %s7706_s14  ;;  %4750 = vst [vmem:[#allocation4 + $0x88] sm:$0x7] %v4741_v21  ;;  %5144 = vrot.lane.b32.xlu1 %v5137_v43, %s7706_s14  ;;  %v4958_v10 = vpop.permute.xlu0 %4957  ;;  %v5321_v16 = vrot.slane %v10582_v1, 1  ;;  %v5322_v1 = vrot.slane %v10675_v7, 1 }
 0x898   : > { %4751 = vst [vmem:[#allocation4 + $0x90] sm:$0x7] %v4742_v33 }
 0x899   : > { %5190 = vrot.lane.b32.xlu0 %v5183_v27, %s7707_s25 }
 0x89d   : > { %v10730_v19 = vpop.permute.xlu1 %4959  ;;  %v4828_v49 = vpop.permute.xlu2 %4827 }
 0x89e   : > { %v4968_v57 = vsel %vm11590_vm11, %v4958_v10, %v10730_v19  ;;  %4842 = vst.msk [vmem:[#allocation4 + $0x98] sm:$0xc0] %vm4469_vm3, %v4828_v49 }
 0x89f   : > { %5374 = vrot.lane.b32.xlu2 %v5369_v32, %s7709_s11  ;;  %4977 = vst [vmem:[#allocation4 + $0xa0] sm:$0x80] %v4968_v57  ;;  %5192 = vrot.lane.b32.xlu1 %v5184_v22, %s7707_s25  ;;  %v10744_v29 = vpop.permute.xlu0 %5010 }
 0x8a0   : > { %4982 = vst [vmem:[#allocation4 + $0xc8] sm:$0x3] %v4968_v57  ;;  %v5018_v62 = vsel %vm12063_vm14, %v10692_v31, %v10744_v29  ;;  %vm12064_vm14 = vcmask 850944   ;;  %v5417_v57 = vrot.slane %v10629_v52, 3 }
 0x8a1   : > { %4847 = vst.msk [vmem:[#allocation4 + $0xc0] sm:$0x1] %vm11588_vm12, %v4828_v49  ;;  %5194 = vrot.lane.b32.xlu0 %v5185_v28, %s7707_s25  ;;  %vm12065_vm0 = vmmov %vm12064_vm14  ;;  %vm5104_vm12 = vcmask 744448   ;;  %s12109_s25 = smov 92  }
 0x8a2   : > { %5027 = vst [vmem:[#allocation4 + $0xc8] sm:$0x1c] %v5018_v62  ;;  %v5372_v62 = vrot.slane %v10605_v4, 6  ;;  %v5460_v4 = vld.sshfl [vmem:[#allocation1 + $0x20] sm:$0xff pattern:$0x75316420] }
 0x8a5   : > { %v10742_v34 = vpop.permute.xlu1 %4782  ;;  %v4876_v35 = vpop.permute.xlu2 %4875 }
 0x8a6   : > { %4797 = vst.msk [vmem:[#allocation4 + $0x98] sm:$0x38] %vm4423_vm15, %v10742_v34 }
 0x8a7   : > { %5148 = vrot.lane.b32.xlu2 %v5139_v61, %s7706_s14  ;;  %s7710_s14 = smov 77   ;;  %v4826_v12 = vpop.permute.xlu0 %4825  ;;  %v5459_v61 = vld.sshfl [vmem:[#allocation1 + $0x18] sm:$0xff pattern:$0x75316420] }
 0x8a8   : > { %5420 = vrot.lane.b32.xlu1 %v5415_v59, %s7710_s14  ;;  %v4831_v3 = vsel %vm12064_vm14, %v10706_v45, %v4826_v12  ;;  %v4832_v47 = vsel %vm12065_vm0, %v4826_v12, %v4828_v49  ;;  %vm5150_vm0 = vcmask 736256   ;;  %vm5196_vm14 = vcmask 728064  }
 0x8a9   : > { %5243 = vrot.lane.b32.xlu0 %v5235_v63, %s11778_s22  ;;  %4840 = vst [vmem:[#allocation4 + $0x88] sm:$0xc0] %v4831_v3 }
 0x8aa   : > { %4841 = vst [vmem:[#allocation4 + $0x90] sm:$0xc0] %v4832_v47 }
 0x8ab   : > { %4845 = vst [vmem:[#allocation4 + $0xb0] sm:$0x1] %v4831_v3 }
 0x8ac   : > { %4846 = vst [vmem:[#allocation4 + $0xb8] sm:$0x1] %v4832_v47 }
 0x8ad   : > { %v5054_v5 = vpop.permute.xlu1 %5053  ;;  %v5095_v58 = vpop.permute.xlu2 %5094 }
 0x8ae   : > { %v5064_v31 = vsel %vm5063_vm7, %v5054_v5, %v10722_v38  ;;  %v5419_v5 = vrot.slane %v10713_v41, 3  ;;  %v4397_v41 = vrot.slane %v10299_v30, 5 }
 0x8af   : > { %5422 = vrot.lane.b32.xlu2 %v5416_v15, %s7710_s14  ;;  %5073 = vst [vmem:[#allocation4 + $0xc8] sm:$0xe0] %v5064_v31  ;;  %v10766_v9 = vpop.permute.xlu0 %5096 }
 0x8b0   : > { %5463 = vrot.lane.b32.xlu1 %v5457_v37, %s7693_s9  ;;  %v5105_v39 = vsel %vm5104_vm12, %v5095_v58, %v10766_v9  ;;  %v4772_v37 = vrot.slane %v10373_v2, 5  ;;  %v4444_v2 = vrot.slane %v10310_v44, 2 }
 0x8b1   : > { %5461 = vrot.lane.b32.xlu0 %v5456_v40, %s7693_s9  ;;  %5114 = vst [vmem:[#allocation4 + $0xf0] sm:$0x7] %v5105_v39  ;;  %v5458_v40 = vld.sshfl [vmem:[#allocation1 + $0x10] sm:$0xff pattern:$0x75316420]  ;;  %v4398_v39 = vrot.slane %v10301_v17, 5 }
 0x8b2   : > { %v4496_v17 = vrot.slane %v10318_v36, 7 }
 0x8b5   : > { %v4874_v45 = vpop.permute.xlu1 %4873 }
 0x8b6   : > { %v4881_v6 = vsel %vm11591_vm2, %v10683_v24, %v4874_v45  ;;  %v4882_v23 = vsel %vm11591_vm2, %v4874_v45, %v4876_v35 }
 0x8b7   : > { %5241 = vrot.lane.b32.xlu2 %v5234_v13, %s11778_s22  ;;  %4890 = vst [vmem:[#allocation4 + $0xa8] sm:$0xe] %v4881_v6  ;;  %v4878_v21 = vpop.permute.xlu0 %4877 }
 0x8b8   : > { %4891 = vst [vmem:[#allocation4 + $0xb0] sm:$0xe] %v4882_v23  ;;  %5245 = vrot.lane.b32.xlu1 %v5236_v50, %s11778_s22  ;;  %v4883_v33 = vsel %vm11591_vm2, %v4876_v35, %v4878_v21  ;;  %vm12068_vm2 = vcmask 719872   ;;  %v4443_v23 = vrot.slane %v10308_v8, 2  ;;  %v4495_v8 = vrot.slane %v10316_v14, 7  ;;  %s7712_s22 = smov 95  }
 0x8b9   : > { %v10773_v60 = vpop.permute.xlu2 %5142  ;;  %5329 = vrot.lane.b32.xlu0 %v5321_v16, %s7708_s15  ;;  %4893 = vst.msk [vmem:[#allocation4 + $0xc0] sm:$0xe] %vm4521_vm4, %v4878_v21 }
 0x8ba   : > { %4892 = vst [vmem:[#allocation4 + $0xb8] sm:$0xe] %v4883_v33 }
 0x8bd   : > { %v4918_v24 = vpop.permute.xlu1 %4917 }
 0x8bf   : > { %5284 = vrot.lane.b32.xlu2 %v10564_v26, %s7689_s23  ;;  %v4916_v27 = vpop.permute.xlu0 %4915 }
 0x8c0   : > { %5282 = vrot.lane.b32.xlu1 %v10562_v18, %s7689_s23  ;;  %v4924_v10 = vsel %vm11589_vm6, %v4916_v27, %v4918_v24  ;;  %v5371_v18 = vrot.slane %v10603_v51, 6 }
 0x8c1   : > { %v4962_v43 = vpop.permute.xlu2 %4961  ;;  %5331 = vrot.lane.b32.xlu0 %v5322_v1, %s7708_s15  ;;  %4933 = vst [vmem:[#allocation4 + $0xb0] sm:$0x70] %v4924_v10 }
 0x8c2   : > { %v4969_v55 = vsel %vm11590_vm11, %v10730_v19, %v4962_v43  ;;  %v4923_v19 = vsel %vm11589_vm6, %v10640_v53, %v4916_v27 }
 0x8c3   : > { %4978 = vst [vmem:[#allocation4 + $0xa8] sm:$0x80] %v4969_v55 }
 0x8c4   : > { %4983 = vst [vmem:[#allocation4 + $0xd0] sm:$0x3] %v4969_v55 }
 0x8c5   : > { %v4920_v26 = vpop.permute.xlu1 %4919  ;;  %4932 = vst [vmem:[#allocation4 + $0xa8] sm:$0x70] %v4923_v19 }
 0x8c6   : > { %v4925_v32 = vsel %vm11589_vm6, %v4918_v24, %v4920_v26  ;;  %4935 = vst.msk [vmem:[#allocation4 + $0xc0] sm:$0x70] %vm4563_vm8, %v4920_v26  ;;  %vm12066_vm6 = vcmask 818176  }
 0x8c7   : > { %5286 = vrot.lane.b32.xlu2 %v10645_v54, %s7689_s23  ;;  %4934 = vst [vmem:[#allocation4 + $0xb8] sm:$0x70] %v4925_v32  ;;  %v5320_v54 = vrot.slane %v10580_v46, 1  ;;  %v4964_v49 = vpop.permute.xlu0 %4963  ;;  %v5373_v46 = vrot.slane %v10695_v56, 6  ;;  %v5418_v56 = vrot.slane %v10627_v42, 3 }
 0x8c8   : > { %5378 = vrot.lane.b32.xlu1 %v5371_v18, %s7709_s11  ;;  %v4970_v52 = vsel %vm11590_vm11, %v4962_v43, %v4964_v49 }
 0x8c9   : > { %v4966_v7 = vpop.permute.xlu2 %4965  ;;  %5424 = vrot.lane.b32.xlu0 %v5417_v57, %s7710_s14  ;;  %4979 = vst [vmem:[#allocation4 + $0xb0] sm:$0x80] %v4970_v52 }
 0x8ca   : > { %4981 = vst.msk [vmem:[#allocation4 + $0xc0] sm:$0x80] %vm4610_vm5, %v4966_v7  ;;  %v4971_v22 = vsel %vm11590_vm11, %v4964_v49, %v4966_v7  ;;  %vm12067_vm11 = vmmov %vm12066_vm6 }
 0x8cb   : > { %4986 = vst.msk [vmem:[#allocation4 + $0xe8] sm:$0x3] %vm4616_vm13, %v4966_v7 }
 0x8cc   : > { %4980 = vst [vmem:[#allocation4 + $0xb8] sm:$0x80] %v4971_v22 }
 0x8cd   : > { %v5141_v53 = vpop.permute.xlu1 %5140  ;;  %4984 = vst [vmem:[#allocation4 + $0xd8] sm:$0x3] %v4970_v52 }
 0x8ce   : > { %v5151_v51 = vsel %vm5150_vm0, %v5141_v53, %v10773_v60  ;;  %4985 = vst [vmem:[#allocation4 + $0xe0] sm:$0x3] %v4971_v22 }
 0x8cf   : > { %5327 = vrot.lane.b32.xlu2 %v5320_v54, %s7708_s15  ;;  %5160 = vst [vmem:[#allocation4 + $0xf0] sm:$0x38] %v5151_v51  ;;  %v5187_v59 = vpop.permute.xlu0 %5186  ;;  %s12110_s15 = smov 120  }
 0x8d0   : > { %5382 = vrot.lane.b32.xlu1 %v5373_v46, %s7709_s11 }
 0x8d1   : > { %v5015_v28 = vpop.permute.xlu2 %5014  ;;  %5467 = vrot.lane.b32.xlu0 %v5459_v61, %s7693_s9 }
 0x8d5   : > { %v10813_v35 = vpop.permute.xlu1 %5188 }
 0x8d6   : > { %v5197_v63 = vsel %vm5196_vm14, %v5187_v59, %v10813_v35 }
 0x8d7   : > { %5380 = vrot.lane.b32.xlu2 %v5372_v62, %s7709_s11  ;;  %5206 = vst [vmem:[#allocation4 + $0xf0] sm:$0xc0] %v5197_v63  ;;  %s7717_s11 = smov 119  }
 0x8d8   : > { %5211 = vst [vmem:[#allocation4 + $0x118] sm:$0x1] %v5197_v63  ;;  %5426 = vrot.lane.b32.xlu1 %v5418_v56, %s7710_s14 }
 0x8d9   : > { %v5238_v15 = vpop.permute.xlu2 %5237  ;;  %5469 = vrot.lane.b32.xlu0 %v5460_v4, %s7693_s9 }
 0x8db   : > { %v10822_v31 = vpop.permute.xlu0 %5239 }
 0x8dc   : > { %v5247_v42 = vsel %vm12068_vm2, %v5238_v15, %v10822_v31  ;;  %vm12069_vm2 = vcmask 654336  }
 0x8dd   : > { %v5013_v12 = vpop.permute.xlu1 %5012  ;;  %5256 = vst [vmem:[#allocation4 + $0x118] sm:$0xe] %v5247_v42 }
 0x8de   : > { %v5019_v3 = vsel %vm12066_vm6, %v10744_v29, %v5013_v12  ;;  %v5020_v47 = vsel %vm12067_vm11, %v5013_v12, %v5015_v28  ;;  %vm5333_vm11 = vcmask 646144  }
 0x8df   : > { %5428 = vrot.lane.b32.xlu2 %v5419_v5, %s7710_s14  ;;  %5028 = vst [vmem:[#allocation4 + $0xd0] sm:$0x1c] %v5019_v3  ;;  %s7718_s14 = smov 118  }
 0x8e0   : > { %5029 = vst [vmem:[#allocation4 + $0xd8] sm:$0x1c] %v5020_v47  ;;  %4404 = vrot.lane.b32.xlu1 %v4397_v41, %s11773_s26  ;;  %v7711_v47 = vmov 65535  }
 0x8e1   : > { %v10829_v58 = vpop.permute.xlu2 %5280  ;;  %4780 = vrot.lane.b32.xlu0 %v4772_v37, %s7686_s20 }
 0x8e3   : > { %v5017_v13 = vpop.permute.xlu0 %5016 }
 0x8e4   : > { %v5021_v45 = vsel %vm12066_vm6, %v5015_v28, %v5017_v13  ;;  %5031 = vst.msk [vmem:[#allocation4 + $0xe8] sm:$0x1c] %vm4663_vm9, %v5017_v13  ;;  %vm5384_vm6 = vcmask 637952  }
 0x8e5   : > { %v5060_v29 = vpop.permute.xlu1 %5059  ;;  %5030 = vst [vmem:[#allocation4 + $0xe0] sm:$0x1c] %v5021_v45 }
 0x8e7   : > { %5465 = vrot.lane.b32.xlu2 %v5458_v40, %s7693_s9  ;;  %s7714_s9 = smov 110  }
 0x8e8   : > { %4452 = vrot.lane.b32.xlu1 %v4444_v2, %s11774_s18 }
 0x8e9   : > { %v5099_v6 = vpop.permute.xlu2 %5098  ;;  %4450 = vrot.lane.b32.xlu0 %v4443_v23, %s11774_s18 }
 0x8ea   : > { %v5106_v30 = vsel %vm5104_vm12, %v10766_v9, %v5099_v6 }
 0x8eb   : > { %5115 = vst [vmem:[#allocation4 + $0xf8] sm:$0x7] %v5106_v30  ;;  %v5058_v16 = vpop.permute.xlu0 %5057 }
 0x8ec   : > { %v5065_v9 = vsel %vm5063_vm7, %v10722_v38, %v5058_v16  ;;  %v5066_v44 = vsel %vm5063_vm7, %v5058_v16, %v5060_v29 }
 0x8ed   : > { %v5279_v50 = vpop.permute.xlu1 %5278  ;;  %5074 = vst [vmem:[#allocation4 + $0xd0] sm:$0xe0] %v5065_v9 }
 0x8ee   : > { %v5288_v24 = vsel %vm12069_vm2, %v5279_v50, %v10829_v58  ;;  %5075 = vst [vmem:[#allocation4 + $0xd8] sm:$0xe0] %v5066_v44  ;;  %v5516_v50 = vld [vmem:[#allocation4 + $0xf0] sm:$0xff] }
 0x8ef   : > { %4406 = vrot.lane.b32.xlu2 %v4398_v39, %s11773_s26  ;;  %5297 = vst [vmem:[#allocation4 + $0x118] sm:$0x70] %v5288_v24 }
 0x8f0   : > { %4544 = vrot.lane.b32.xlu1 %v10322_v0, %s11787_s28 }
 0x8f1   : > { %v5147_v21 = vpop.permute.xlu2 %5146  ;;  %4504 = vrot.lane.b32.xlu0 %v4496_v17, %s11775_s17 }
 0x8f3   : > { %v5101_v43 = vpop.permute.xlu0 %5100 }
 0x8f4   : > { %v5107_v55 = vsel %vm5104_vm12, %v5099_v6, %v5101_v43 }
 0x8f5   : > { %v5062_v33 = vpop.permute.xlu1 %5061  ;;  %5116 = vst [vmem:[#allocation4 + $0x100] sm:$0x7] %v5107_v55  ;;  %v5501_v55 = vld [vmem:[#allocation4 + $0x78] sm:$0xff] }
 0x8f6   : > { %v5067_v38 = vsel %vm5063_vm7, %v5060_v29, %v5062_v33  ;;  %5077 = vst.msk [vmem:[#allocation4 + $0xe8] sm:$0xe0] %vm4710_vm1, %v5062_v33  ;;  %v5511_v33 = vld [vmem:[#allocation4 + $0xc8] sm:$0xff] }
 0x8f7   : > { %4502 = vrot.lane.b32.xlu2 %v4495_v8, %s11775_s17  ;;  %5076 = vst [vmem:[#allocation4 + $0xe0] sm:$0xe0] %v5067_v38 }
 0x8f9   : > { %v5375_v1 = vpop.permute.xlu2 %5374 }
 0x8fb   : > { %v5324_v36 = vpop.permute.xlu0 %5323 }
 0x8fd   : > { %v5103_v14 = vpop.permute.xlu1 %5102 }
 0x8fe   : > { %v5108_v0 = vsel %vm5104_vm12, %v5101_v43, %v5103_v14  ;;  %5118 = vst.msk [vmem:[#allocation4 + $0x110] sm:$0x7] %vm3523_vm10, %v5103_v14  ;;  %vm12071_vm12 = vcmask 516096   ;;  %v5506_v43 = vld [vmem:[#allocation4 + $0xa0] sm:$0xff] }
 0x8ff   : > { %4546 = vrot.lane.b32.xlu2 %v10324_v20, %s11787_s28  ;;  %5117 = vst [vmem:[#allocation4 + $0x108] sm:$0x7] %v5108_v0  ;;  %v5546_v38 = vpack.c.bf16 %v5511_v33, %v5506_v43 }
 0x901   : > { %v5149_v26 = vpop.permute.xlu2 %5148 }
 0x902   : > { %v5154_v27 = vsel %vm5150_vm0, %v5147_v21, %v5149_v26  ;;  %5164 = vst.msk [vmem:[#allocation4 + $0x110] sm:$0x38] %vm4423_vm15, %v5149_v26  ;;  %vm12070_vm15 = vcmask 719872  }
 0x903   : > { %5163 = vst [vmem:[#allocation4 + $0x108] sm:$0x38] %v5154_v27  ;;  %v10866_v19 = vpop.permute.xlu0 %5376  ;;  %vm12072_vm2 = vmmov %vm12070_vm15 }
 0x904   : > { %v5385_v10 = vsel %vm5384_vm6, %v5375_v1, %v10866_v19 }
 0x905   : > { %v5326_v32 = vpop.permute.xlu1 %5325  ;;  %5394 = vst [vmem:[#allocation4 + $0x140] sm:$0x1c] %v5385_v10 }
 0x906   : > { %v5334_v20 = vsel %vm5333_vm11, %v5324_v36, %v5326_v32 }
 0x907   : > { %5343 = vst [vmem:[#allocation4 + $0x118] sm:$0x80] %v5334_v20 }
 0x908   : > { %5348 = vst [vmem:[#allocation4 + $0x140] sm:$0x3] %v5334_v20  ;;  %v5491_v20 = vld [vmem:[#allocation4 + $0x28] sm:$0xff] }
 0x909   : > { %v10871_v7 = vpop.permute.xlu2 %5422 }
 0x90b   : > { %v5191_v57 = vpop.permute.xlu0 %5190 }
 0x90c   : > { %v5198_v49 = vsel %vm5196_vm14, %v10813_v35, %v5191_v57 }
 0x90d   : > { %v5145_v18 = vpop.permute.xlu1 %5144  ;;  %5207 = vst [vmem:[#allocation4 + $0xf8] sm:$0xc0] %v5198_v49 }
 0x90e   : > { %v5152_v54 = vsel %vm5150_vm0, %v10773_v60, %v5145_v18  ;;  %v5153_v53 = vsel %vm5150_vm0, %v5145_v18, %v5147_v21  ;;  %5212 = vst [vmem:[#allocation4 + $0x120] sm:$0x1] %v5198_v49  ;;  %vm5430_vm0 = vcmask 629760   ;;  %v5521_v39 = vld [vmem:[#allocation4 + $0x118] sm:$0xff]  ;;  %v5486_v18 = vld [vmem:[#allocation4] sm:$0xff] }
 0x90f   : > { %5161 = vst [vmem:[#allocation4 + $0xf8] sm:$0x38] %v5152_v54  ;;  %v5551_v9 = vpack.c.bf16 %v5521_v39, %v5516_v50  ;;  %v5497_v50 = vld [vmem:[#allocation4 + $0x58] sm:$0xff] }
 0x910   : > { %5162 = vst [vmem:[#allocation4 + $0x100] sm:$0x38] %v5153_v53 }
 0x911   : > { %v5242_v51 = vpop.permute.xlu2 %5241 }
 0x912   : > { %v5248_v52 = vsel %vm12070_vm15, %v10822_v31, %v5242_v51  ;;  %vm5565_vm15 = vcmask 1044480  }
 0x913   : > { %5257 = vst [vmem:[#allocation4 + $0x120] sm:$0xe] %v5248_v52  ;;  %v5195_v28 = vpop.permute.xlu0 %5194  ;;  %v5567_v42 = vsel %vm5565_vm15, 4294967295, %v7711_v47  ;;  %vm12088_vm15 = vcmask 1014784  }
 0x914   : > { %5210 = vst.msk [vmem:[#allocation4 + $0x110] sm:$0xc0] %vm4469_vm3, %v5195_v28  ;;  %vm12074_vm3 = vcmask 621568  }
 0x915   : > { %v5193_v22 = vpop.permute.xlu1 %5192  ;;  %5215 = vst.msk [vmem:[#allocation4 + $0x138] sm:$0x1] %vm12071_vm12, %v5195_v28  ;;  %vm5566_vm12 = vcmask 1045504  }
 0x916   : > { %v5199_v46 = vsel %vm5196_vm14, %v5191_v57, %v5193_v22  ;;  %v5200_v60 = vsel %vm5196_vm14, %v5193_v22, %v5195_v28  ;;  %vm12073_vm14 = vcmask 654336   ;;  %v10894_v30 = vsel %vm5566_vm12, %v5567_v42, 0 }
 0x917   : > { %5208 = vst [vmem:[#allocation4 + $0x100] sm:$0xc0] %v5199_v46  ;;  %v5536_v57 = vpack.c.bf16 %v5491_v20, %v5486_v18  ;;  %vm12090_vm12 = vcmask 1031168  }
 0x918   : > { %5213 = vst [vmem:[#allocation4 + $0x128] sm:$0x1] %v5199_v46 }
 0x919   : > { %v5285_v61 = vpop.permute.xlu2 %5284  ;;  %5209 = vst [vmem:[#allocation4 + $0x108] sm:$0xc0] %v5200_v60 }
 0x91a   : > { %5214 = vst [vmem:[#allocation4 + $0x130] sm:$0x1] %v5200_v60 }
 0x91b   : > { %v5244_v35 = vpop.permute.xlu0 %5243 }
 0x91c   : > { %v5249_v63 = vsel %vm12072_vm2, %v5242_v51, %v5244_v35 }
 0x91d   : > { %v5421_v62 = vpop.permute.xlu1 %5420  ;;  %5258 = vst [vmem:[#allocation4 + $0x128] sm:$0xe] %v5249_v63 }
 0x91e   : > { %v5431_v59 = vsel %vm5430_vm0, %v5421_v62, %v10871_v7 }
 0x91f   : > { %5440 = vst [vmem:[#allocation4 + $0x140] sm:$0xe0] %v5431_v59 }
 0x921   : > { %v5287_v15 = vpop.permute.xlu2 %5286 }
 0x922   : > { %v5291_v56 = vsel %vm12073_vm14, %v5285_v61, %v5287_v15  ;;  %5301 = vst.msk [vmem:[#allocation4 + $0x138] sm:$0x70] %vm4563_vm8, %v5287_v15  ;;  %vm12075_vm8 = vmmov %vm12073_vm14  ;;  %vm12085_vm14 = vcmask 916480  }
 0x923   : > { %5300 = vst [vmem:[#allocation4 + $0x130] sm:$0x70] %v5291_v56  ;;  %v5462_v5 = vpop.permute.xlu0 %5461 }
 0x925   : > { %v5464_v4 = vpop.permute.xlu1 %5463 }
 0x926   : > { %v5471_v12 = vsel %vm12074_vm3, %v5462_v5, %v5464_v4  ;;  %v5526_v45 = vld [vmem:[#allocation4 + $0x140] sm:$0xff] }
 0x927   : > { %5480 = vst [vmem:[#allocation4 + $0x168] sm:$0x7] %v5471_v12  ;;  %v5512_v12 = vld [vmem:[#allocation4 + $0xd0] sm:$0xff] }
 0x929   : > { %v5328_v31 = vpop.permute.xlu2 %5327 }
 0x92a   : > { %v5335_v3 = vsel %vm5333_vm11, %v5326_v32, %v5328_v31 }
 0x92b   : > { %5344 = vst [vmem:[#allocation4 + $0x120] sm:$0x80] %v5335_v3  ;;  %v5330_v37 = vpop.permute.xlu0 %5329 }
 0x92c   : > { %5349 = vst [vmem:[#allocation4 + $0x148] sm:$0x3] %v5335_v3  ;;  %v5336_v29 = vsel %vm5333_vm11, %v5328_v31, %v5330_v37  ;;  %v5507_v31 = vld [vmem:[#allocation4 + $0xa8] sm:$0xff] }
 0x92d   : > { %v5246_v41 = vpop.permute.xlu1 %5245  ;;  %5345 = vst [vmem:[#allocation4 + $0x128] sm:$0x80] %v5336_v29  ;;  %v5547_v3 = vpack.c.bf16 %v5512_v12, %v5507_v31  ;;  %v12094_v12 = vld [vmem:[#allocation72_spill] sm:$0xff] }
 0x92e   : > { %v5250_v40 = vsel %vm12072_vm2, %v5244_v35, %v5246_v41  ;;  %5260 = vst.msk [vmem:[#allocation4 + $0x138] sm:$0xe] %vm4521_vm4, %v5246_v41  ;;  %v5531_v6 = vld [vmem:[#allocation4 + $0x168] sm:$0x7]  ;;  %vm12076_vm4 = vmmov %vm12075_vm8  ;;  %v5502_v41 = vld [vmem:[#allocation4 + $0x80] sm:$0xff] }
 0x92f   : > { %5259 = vst [vmem:[#allocation4 + $0x130] sm:$0xe] %v5250_v40  ;;  %v5556_v2 = vpack.c.bf16 %v5531_v6, %v5526_v45  ;;  %v12082_v40 = vld [vmem:[#allocation70_spill] sm:$0xff]  ;;  %vm12092_vm2 = vmmov %vm12090_vm12 }
 0x930   : > { %5350 = vst [vmem:[#allocation4 + $0x150] sm:$0x3] %v5336_v29 }
 0x931   : > { %v5381_v13 = vpop.permute.xlu2 %5380  ;;  %v5570_v23 = vand.u32 %v10894_v30, %v5556_v2 }
 0x933   : > { %5587 = vmatpush.bf16.msra.mxu0 %v5570_v23  ;;  %v5332_v24 = vpop.permute.xlu0 %5331 }
 0x934   : > { %v5337_v17 = vsel %vm5333_vm11, %v5330_v37, %v5332_v24  ;;  %5347 = vst.msk [vmem:[#allocation4 + $0x138] sm:$0x80] %vm4610_vm5, %v5332_v24  ;;  %vm12077_vm5 = vmmov %vm12074_vm3  ;;  %vm12079_vm11 = vcmask 1039360  }
 0x935   : > { %v5283_v16 = vpop.permute.xlu1 %5282  ;;  %5346 = vst [vmem:[#allocation4 + $0x130] sm:$0x80] %v5337_v17 }
 0x936   : > { %v5289_v44 = vsel %vm12075_vm8, %v10829_v58, %v5283_v16  ;;  %v5290_v21 = vsel %vm12076_vm4, %v5283_v16, %v5285_v61  ;;  %5351 = vst [vmem:[#allocation4 + $0x158] sm:$0x3] %v5337_v17  ;;  %v5496_v58 = vld [vmem:[#allocation4 + $0x50] sm:$0xff]  ;;  %v5542_v17 = vpack.c.bf16 %v5502_v41, %v5497_v50  ;;  %vm12093_vm8 = vmmov %vm12092_vm2  ;;  %v5495_v41 = vld [vmem:[#allocation4 + $0x48] sm:$0xff] }
 0x937   : > { %5298 = vst [vmem:[#allocation4 + $0x120] sm:$0x70] %v5289_v44  ;;  %5588 = vmatpush.bf16.msra.mxu0 %v5551_v9  ;;  %v5541_v36 = vpack.c.bf16 %v5501_v55, %v5496_v58  ;;  %v12087_v44 = vld [vmem:[#allocation112_spill] sm:$0xff]  ;;  %v5520_v58 = vld [vmem:[#allocation4 + $0x110] sm:$0xff]  ;;  %vm12095_vm4 = vmmov %vm12088_vm15 }
 0x938   : > { %5299 = vst [vmem:[#allocation4 + $0x128] sm:$0x70] %v5290_v21 }
 0x939   : > { %v5429_v8 = vpop.permute.xlu2 %5428  ;;  %5352 = vst.msk [vmem:[#allocation4 + $0x160] sm:$0x3] %vm4616_vm13, %v5332_v24  ;;  %vm12078_vm13 = vmmov %vm12074_vm3 }
 0x93a   : > { %5444 = vst.msk [vmem:[#allocation4 + $0x160] sm:$0xe0] %vm4710_vm1, %v5429_v8  ;;  %vm5561_vm1 = vcmask 613376  }
 0x93b   : > { %5589 = vmatpush.bf16.msra.mxu0 %v5546_v38  ;;  %v5425_v14 = vpop.permute.xlu0 %5424 }
 0x93c   : > { %v5432_v27 = vsel %vm5430_vm0, %v10871_v7, %v5425_v14 }
 0x93d   : > { %v5379_v1 = vpop.permute.xlu1 %5378  ;;  %5441 = vst [vmem:[#allocation4 + $0x148] sm:$0xe0] %v5432_v27 }
 0x93e   : > { %v5386_v0 = vsel %vm5384_vm6, %v10866_v19, %v5379_v1  ;;  %v5387_v26 = vsel %vm5384_vm6, %v5379_v1, %v5381_v13  ;;  %v10913_v19 = vld [vmem:[%s11462_s4] sm:$0x7]  ;;  %v5522_v35 = vld [vmem:[#allocation4 + $0x120] sm:$0xff] }
 0x93f   : > { %5395 = vst [vmem:[#allocation4 + $0x148] sm:$0x1c] %v5386_v0  ;;  %5590 = vmatpush.bf16.msra.mxu0 %v5541_v36  ;;  %v5523_v38 = vld [vmem:[#allocation4 + $0x128] sm:$0xff]  ;;  %v5518_v1 = vld [vmem:[#allocation4 + $0x100] sm:$0xff] }
 0x940   : > { %5396 = vst [vmem:[#allocation4 + $0x150] sm:$0x1c] %v5387_v26  ;;  %v5553_v27 = vpack.c.bf16 %v5523_v38, %v5518_v1 }
 0x941   : > { %v5466_v32 = vpop.permute.xlu2 %5465 }
 0x942   : > { %v5472_v10 = vsel %vm12077_vm5, %v5464_v4, %v5466_v32  ;;  %v5517_v4 = vld [vmem:[#allocation4 + $0xf8] sm:$0xff]  ;;  %vm12096_vm5 = vmmov %vm12095_vm4 }
 0x943   : > { %5481 = vst [vmem:[#allocation4 + $0x170] sm:$0x7] %v5472_v10  ;;  %5591 = vmatpush.bf16.msra.mxu0 %v5536_v57  ;;  %v5468_v7 = vpop.permute.xlu0 %5467  ;;  %v5552_v5 = vpack.c.bf16 %v5522_v35, %v5517_v4  ;;  %v12091_v10 = vld [vmem:[#allocation23_spill] sm:$0xff]  ;;  %v5519_v57 = vld [vmem:[#allocation4 + $0x108] sm:$0xff] }
 0x944   : > { %v5473_v49 = vsel %vm12078_vm13, %v5466_v32, %v5468_v7  ;;  %v12089_v32 = vld [vmem:[#allocation150_spill] sm:$0xff] }
 0x945   : > { %v5383_v54 = vpop.permute.xlu1 %5382  ;;  %5482 = vst [vmem:[#allocation4 + $0x178] sm:$0x7] %v5473_v49  ;;  %v5510_v49 = vld [vmem:[#allocation4 + $0xc0] sm:$0xff]  ;;  %v5500_v35 = vld [vmem:[#allocation4 + $0x70] sm:$0xff] }
 0x946   : > { %v5388_v53 = vsel %vm5384_vm6, %v5381_v13, %v5383_v54  ;;  %5398 = vst.msk [vmem:[#allocation4 + $0x160] sm:$0x1c] %vm4663_vm9, %v5383_v54  ;;  %7321 = vmatmul.msk.bf16.vlgmr.msra.gmra.mxu0 %vm5561_vm1, %v10913_v19  ;;  %v5527_v22 = vld [vmem:[#allocation4 + $0x148] sm:$0xff]  ;;  %vm12080_vm9 = vmmov %vm12074_vm3  ;;  %vm12081_vm6 = vcmask 1022976  }
 0x947   : > { %5397 = vst [vmem:[#allocation4 + $0x158] sm:$0x1c] %v5388_v53  ;;  %vm12086_vm3 = vmmov %vm12085_vm14  ;;  %v5515_v54 = vld [vmem:[#allocation4 + $0xe8] sm:$0xff] }
 0x948   : > { %vm12097_vm13 = vmmov %vm12081_vm6 }
 0x949   : > { %v4407_v51 = vpop.permute.xlu2 %4406 }
 0x94a   : > { %v4413_v52 = vsel %vm12079_vm11, %v4407_v51, %v10506_v11  ;;  %v5532_v28 = vld [vmem:[#allocation4 + $0x170] sm:$0x7] }
 0x94b   : > { %4422 = vst [vmem:[#allocation4 + $0x18] sm:$0x38] %v4413_v52  ;;  %v5557_v46 = vpack.c.bf16 %v5532_v28, %v5527_v22  ;;  %v5470_v62 = vpop.permute.xlu0 %5469  ;;  %v5514_v52 = vld [vmem:[#allocation4 + $0xe0] sm:$0xff]  ;;  %v5550_v22 = vpack.c.bf16 %v5515_v54, %v5510_v49 }
 0x94c   : > { %v5474_v15 = vsel %vm12080_vm9, %v5468_v7, %v5470_v62  ;;  %5484 = vst.msk [vmem:[#allocation4 + $0x188] sm:$0x7] %vm3523_vm10, %v5470_v62  ;;  %vm12083_vm10 = vmmov %vm12079_vm11  ;;  %v5533_v23 = vld [vmem:[#allocation4 + $0x178] sm:$0x7]  ;;  %vm5649_vm9 = vcmask 628224  }
 0x94d   : > { %v5573_v60 = vand.u32 %v10894_v30, %v5557_v46  ;;  %v5427_v61 = vpop.permute.xlu1 %5426  ;;  %5483 = vst [vmem:[#allocation4 + $0x180] sm:$0x7] %v5474_v15  ;;  %v5530_v6 = vld [vmem:[#allocation4 + $0x160] sm:$0xff]  ;;  %v5513_v7 = vld [vmem:[#allocation4 + $0xd8] sm:$0xff]  ;;  %vm12099_vm11 = vmmov %vm12081_vm6 }
 0x94e   : > { %v5433_v59 = vsel %vm5430_vm0, %v5425_v14, %v5427_v61  ;;  %v5434_v63 = vsel %vm5430_vm0, %v5427_v61, %v5429_v8  ;;  %vm12084_vm0 = vmmov %vm12083_vm10  ;;  %v5524_v14 = vld [vmem:[#allocation4 + $0x130] sm:$0xff]  ;;  %v5509_v46 = vld [vmem:[#allocation4 + $0xb8] sm:$0xff] }
 0x94f   : > { %5600 = vmatpush.bf16.msrb.mxu3 %v5573_v60  ;;  %5442 = vst [vmem:[#allocation4 + $0x150] sm:$0xe0] %v5433_v59  ;;  %v5554_v53 = vpack.c.bf16 %v5524_v14, %v5519_v57  ;;  %v5505_v60 = vld [vmem:[#allocation4 + $0x98] sm:$0xff]  ;;  %v5549_v62 = vpack.c.bf16 %v5514_v52, %v5509_v46  ;;  %v5498_v59 = vld [vmem:[#allocation4 + $0x60] sm:$0xff] }
 0x950   : > { %5443 = vst [vmem:[#allocation4 + $0x158] sm:$0xe0] %v5434_v63  ;;  %v5545_v4 = vpack.c.bf16 %v5505_v60, %v5500_v35  ;;  %v7495_v46 = vld [vmem:[%s11464_s6 + $0x38] sm:$0xff]  ;;  %v7494_v60 = vld [vmem:[%s11464_s6 + $0x30] sm:$0xff] }
 0x951   : > { %v10927_v11 = vpop.permute.xlu2 %4502  ;;  %v7491_v35 = vld [vmem:[%s11464_s6 + $0x18] sm:$0xff] }
 0x952   : > { %v4509_v56 = vsel %vm12081_vm6, %v10422_v48, %v10927_v11  ;;  %vm5655_vm6 = vcmask 521216  }
 0x953   : > { %4518 = vst [vmem:[#allocation4 + $0x30] sm:$0xe] %v4509_v56  ;;  %5601 = vmatpush.bf16.msrb.mxu3 %v5552_v5  ;;  %v4781_v42 = vpop.permute.xlu0 %4780  ;;  %v5535_v37 = vld [vmem:[#allocation4 + $0x188] sm:$0x7] }
 0x954   : > { %v4786_v48 = vsel %vm12085_vm14, %v10670_v25, %v4781_v42  ;;  %v4787_v39 = vsel %vm12086_vm3, %v4781_v42, %v10742_v34  ;;  %v5560_v16 = vpack.c.bf16 %v5535_v37, %v5530_v6  ;;  %v5534_v25 = vld [vmem:[#allocation4 + $0x180] sm:$0x7]  ;;  %v5525_v34 = vld [vmem:[#allocation4 + $0x138] sm:$0xff]  ;;  %v5499_v42 = vld [vmem:[#allocation4 + $0x68] sm:$0xff]  ;;  %vm5741_vm3 = vcmask 291840  }
 0x955   : > { %v4405_v47 = vpop.permute.xlu1 %4404  ;;  %4795 = vst [vmem:[#allocation4 + $0x88] sm:$0x38] %v4786_v48  ;;  %v5555_v26 = vpack.c.bf16 %v5525_v34, %v5520_v58  ;;  %v12098_v37 = vld [vmem:[#allocation81_spill] sm:$0xff]  ;;  %vm12103_vm14 = vmmov %vm12084_vm0 }
 0x956   : > { %v4411_v29 = vsel %vm12083_vm10, %v12082_v40, %v4405_v47  ;;  %v4412_v13 = vsel %vm12084_vm0, %v4405_v47, %v4407_v51  ;;  %v5528_v2 = vld [vmem:[#allocation4 + $0x150] sm:$0xff]  ;;  %v5582_v8 = vand.u32 %v10894_v30, %v5560_v16  ;;  %4796 = vst [vmem:[#allocation4 + $0x90] sm:$0x38] %v4787_v39  ;;  %vm12102_vm10 = vmmov %vm12084_vm0 }
 0x957   : > { %5602 = vmatpush.bf16.msrb.mxu3 %v5547_v3  ;;  %4420 = vst [vmem:[#allocation4 + $0x8] sm:$0x38] %v4411_v29  ;;  %v5558_v24 = vpack.c.bf16 %v5533_v23, %v5528_v2  ;;  %v5529_v9 = vld [vmem:[#allocation4 + $0x158] sm:$0xff]  ;;  %v5508_v51 = vld [vmem:[#allocation4 + $0xb0] sm:$0xff] }
 0x958   : > { %4421 = vst [vmem:[#allocation4 + $0x10] sm:$0x38] %v4412_v13  ;;  %v5559_v43 = vpack.c.bf16 %v5534_v25, %v5529_v9  ;;  %5639 = vmatpush.bf16.msrb.mxu2 %v5582_v8  ;;  %v5548_v28 = vpack.c.bf16 %v5513_v7, %v5508_v51  ;;  %v5490_v13 = vld [vmem:[#allocation4 + $0x20] sm:$0xff] }
 0x959   : > { %v10937_v45 = vpop.permute.xlu2 %4546  ;;  %v5576_v33 = vand.u32 %v10894_v30, %v5558_v24  ;;  %v5540_v48 = vpack.c.bf16 %v5495_v41, %v5490_v13 }
 0x95a   : > { %v4553_v21 = vsel %vm12088_vm15, %v10937_v45, %v12087_v44  ;;  %v5579_v55 = vand.u32 %v10894_v30, %v5559_v43  ;;  %vm12104_vm15 = vcmask 949248  }
 0x95b   : > { %5603 = vmatpush.bf16.msrb.mxu3 %v5542_v17  ;;  %4562 = vst [vmem:[#allocation4 + $0x40] sm:$0x70] %v4553_v21  ;;  %5613 = vmatpush.bf16.msrb.mxu0 %v5576_v33  ;;  %v4451_v0 = vpop.permute.xlu0 %4450  ;;  %v12100_v21 = vmov 0.0  }
 0x95c   : > { %5626 = vmatpush.bf16.msrb.mxu1 %v5579_v55  ;;  %v4457_v18 = vsel %vm12092_vm2, %v12091_v10, %v4451_v0  ;;  %5640 = vmatpush.bf16.msrb.mxu2 %v5555_v26  ;;  %v5503_v61 = vld [vmem:[#allocation4 + $0x88] sm:$0xff]  ;;  %5650 = vst.msk [vmem:[#allocation5 + $0x20] sm:$0x3f] %vm5649_vm9, %v12100_v21  ;;  %vm12114_vm9 = vcmask 654336  }
 0x95d   : > { %v4453_v36 = vpop.permute.xlu1 %4452  ;;  %4466 = vst [vmem:[#allocation4 + $0x8] sm:$0xc0] %v4457_v18  ;;  %v5504_v63 = vld [vmem:[#allocation4 + $0x90] sm:$0xff]  ;;  %v5543_v5 = vpack.c.bf16 %v5503_v61, %v5498_v59  ;;  %v7493_v61 = vld [vmem:[%s11464_s6 + $0x28] sm:$0xff] }
 0x95e   : > { %v4459_v20 = vsel %vm12090_vm12, %v4453_v36, %v12089_v32  ;;  %v4458_v30 = vsel %vm12093_vm8, %v4451_v0, %v4453_v36  ;;  %4472 = vst [vmem:[#allocation4 + $0x30] sm:$0x1] %v4457_v18  ;;  %v5544_v29 = vpack.c.bf16 %v5504_v63, %v5499_v42  ;;  %v7490_v59 = vld [vmem:[%s11464_s6 + $0x10] sm:$0xff]  ;;  %v7496_v63 = vld [vmem:[%s11464_s6 + $0x40] sm:$0xff]  ;;  %vm12105_vm12 = vmmov %vm12104_vm15  ;;  %vm12107_vm8 = vcmask 130048  }
 0x95f   : > { %4468 = vst [vmem:[#allocation4 + $0x18] sm:$0xc0] %v4459_v20  ;;  %5614 = vmatpush.bf16.msrb.mxu0 %v5553_v27  ;;  %vm12106_vm2 = vmmov %vm12105_vm12 }
 0x960   : > { %4474 = vst [vmem:[#allocation4 + $0x40] sm:$0x1] %v4459_v20  ;;  %5627 = vmatpush.bf16.msrb.mxu1 %v5554_v53  ;;  %5641 = vmatpush.bf16.msrb.mxu2 %v5550_v22 }
 0x961   : > { %4467 = vst [vmem:[#allocation4 + $0x10] sm:$0xc0] %v4458_v30 }
 0x962   : > { %4473 = vst [vmem:[#allocation4 + $0x38] sm:$0x1] %v4458_v30 }
 0x963   : > { %5615 = vmatpush.bf16.msrb.mxu0 %v5548_v28  ;;  %v4505_v56 = vpop.permute.xlu0 %4504  ;;  %5742 = vst.msk [vmem:[#allocation9 + $0x10] sm:$0x3f] %vm5741_vm3, %v12100_v21  ;;  %vm5853_vm3 = vcmask 521696  }
 0x964   : > { %5628 = vmatpush.bf16.msrb.mxu1 %v5549_v62  ;;  %v4510_v47 = vsel %vm12097_vm13, %v10927_v11, %v4505_v56  ;;  %v4511_v40 = vsel %vm12099_vm11, %v4505_v56, %v12098_v37  ;;  %5642 = vmatpush.bf16.msrb.mxu2 %v5545_v4  ;;  %v5487_v11 = vld [vmem:[#allocation4 + $0x8] sm:$0xff]  ;;  %v7492_v62 = vld [vmem:[%s11464_s6 + $0x20] sm:$0xff]  ;;  %vm12112_vm13 = vcmask 916480  }
 0x965   : > { %v4545_v15 = vpop.permute.xlu1 %4544  ;;  %4519 = vst [vmem:[#allocation4 + $0x38] sm:$0xe] %v4510_v47  ;;  %v7488_v56 = vld [vmem:[%s11464_s6] sm:$0xff] }
 0x966   : > { %v4551_v31 = vsel %vm12095_vm4, %v12094_v12, %v4545_v15  ;;  %v4552_v3 = vsel %vm12096_vm5, %v4545_v15, %v10937_v45  ;;  %4520 = vst [vmem:[#allocation4 + $0x40] sm:$0xe] %v4511_v40  ;;  %v5489_v50 = vld [vmem:[#allocation4 + $0x18] sm:$0xff]  ;;  %v7489_v15 = vld [vmem:[%s11464_s6 + $0x8] sm:$0xff]  ;;  %vm12108_vm4 = vmmov %vm12106_vm2 }
 0x967   : > { %4560 = vst [vmem:[#allocation4 + $0x30] sm:$0x70] %v4551_v31  ;;  %5616 = vmatpush.bf16.msrb.mxu0 %v5543_v5  ;;  %vm12111_vm5 = vmmov %vm12107_vm8 }
 0x968   : > { %4561 = vst [vmem:[#allocation4 + $0x38] sm:$0x70] %v4552_v3  ;;  %5629 = vmatpush.bf16.msrb.mxu1 %v5544_v29  ;;  %5643 = vmatpush.bf16.msrb.mxu2 %v5540_v48  ;;  %v5488_v2 = vld [vmem:[#allocation4 + $0x10] sm:$0xff]  ;;  %vm12113_vm11 = vmmov %vm12111_vm5 }
 0x96b   : > { %7325 = vmatmul.msk.bf16.vlgmr.msrb.gmra.mxu2 %vm5561_vm1, %v10913_v19 }
 0x96c   : > { %5888 = vmatpush.bf16.msra.mxu2 %v7496_v63 }
 0x96d   : > { %v5494_v16 = vld [vmem:[#allocation4 + $0x40] sm:$0xff] }
 0x96e   : > { %v5492_v45 = vld [vmem:[#allocation4 + $0x30] sm:$0xff]  ;;  %v5539_v24 = vpack.c.bf16 %v5494_v16, %v5489_v50  ;;  %v6403_v16 = vld [vmem:[#allocation9 + $0x10] sm:$0x3f] }
 0x96f   : > { %v5537_v6 = vpack.c.bf16 %v5492_v45, %v5487_v11  ;;  %v5493_v23 = vld [vmem:[#allocation4 + $0x38] sm:$0xff] }
 0x970   : > { %v5538_v39 = vpack.c.bf16 %v5493_v23, %v5488_v2  ;;  %5630 = vmatpush.bf16.msrb.mxu1 %v5539_v24  ;;  %5983 = vmatpush.bf16.msrb.mxu2 %v7495_v46  ;;  %v6409_v24 = vrot.slane %v6403_v16, 4 }
 0x971   : > { %5604 = vmatpush.bf16.msrb.mxu3 %v5537_v6 }
 0x972   : > { %5617 = vmatpush.bf16.msrb.mxu0 %v5538_v39 }
 0x973   : > { %7324 = vmatmul.msk.bf16.vlgmr.msrb.gmra.mxu1 %vm5561_vm1, %v10913_v19 }
 0x974   : > { %7322 = vmatmul.msk.bf16.vlgmr.msrb.gmra.mxu3 %vm5561_vm1, %v10913_v19  ;;  %5868 = vmatpush.bf16.msra.mxu1 %v7495_v46 }
 0x975   : > { %7323 = vmatmul.msk.bf16.vlgmr.msrb.gmra.mxu0 %vm5561_vm1, %v10913_v19  ;;  %vm12101_vm1 = vmmov %vm12084_vm0  ;;  %5807 = vmatpush.bf16.msra.mxu3 %v7495_v46 }
 0x976   : > { %5827 = vmatpush.bf16.msra.mxu0 %v7496_v63  ;;  %5984 = vmatpush.bf16.msrb.mxu2 %v7494_v60 }
 0x978   : > { %5869 = vmatpush.bf16.msra.mxu1 %v7494_v60 }
 0x979   : > { %5808 = vmatpush.bf16.msra.mxu3 %v7494_v60 }
 0x97a   : > { %5927 = vmatpush.bf16.msrb.mxu0 %v7495_v46  ;;  %5985 = vmatpush.bf16.msrb.mxu2 %v7493_v61 }
 0x97c   : > { %5870 = vmatpush.bf16.msra.mxu1 %v7493_v61 }
 0x97d   : > { %5809 = vmatpush.bf16.msra.mxu3 %v7493_v61 }
 0x97e   : > { %5928 = vmatpush.bf16.msrb.mxu0 %v7494_v60  ;;  %5986 = vmatpush.bf16.msrb.mxu2 %v7492_v62 }
 0x980   : > { %5871 = vmatpush.bf16.msra.mxu1 %v7492_v62 }
 0x981   : > { %5810 = vmatpush.bf16.msra.mxu3 %v7492_v62 }
 0x982   : > { %5929 = vmatpush.bf16.msrb.mxu0 %v7493_v61  ;;  %5987 = vmatpush.bf16.msrb.mxu2 %v7491_v35 }
 0x984   : > { %5872 = vmatpush.bf16.msra.mxu1 %v7491_v35 }
 0x985   : > { %5811 = vmatpush.bf16.msra.mxu3 %v7491_v35 }
 0x986   : > { %5930 = vmatpush.bf16.msrb.mxu0 %v7492_v62  ;;  %5988 = vmatpush.bf16.msrb.mxu2 %v7490_v59  ;;  %v6079_v62 = vld [vmem:[#allocation9 + $0x10] sm:$0x3f] }
 0x988   : > { %5873 = vmatpush.bf16.msra.mxu1 %v7490_v59 }
 0x989   : > { %5812 = vmatpush.bf16.msra.mxu3 %v7490_v59 }
 0x98a   : > { %5931 = vmatpush.bf16.msrb.mxu0 %v7491_v35  ;;  %5989 = vmatpush.bf16.msrb.mxu2 %v7489_v15  ;;  %v6100_v35 = vld [vmem:[#allocation9 + $0x10] sm:$0x3f] }
 0x98c   : > { %5874 = vmatpush.bf16.msra.mxu1 %v7489_v15 }
 0x98d   : > { %5813 = vmatpush.bf16.msra.mxu3 %v7489_v15 }
 0x98e   : > { %5932 = vmatpush.bf16.msrb.mxu0 %v7490_v59  ;;  %5990 = vmatpush.bf16.msrb.mxu2 %v7488_v56  ;;  %v6056_v59 = vld [vmem:[#allocation9 + $0x10] sm:$0x3f] }
 0x990   : > { %5875 = vmatpush.bf16.msra.mxu1 %v7488_v56 }
 0x991   : > { %5814 = vmatpush.bf16.msra.mxu3 %v7488_v56 }
 0x992   : > { %5933 = vmatpush.bf16.msrb.mxu0 %v7489_v15  ;;  %v6062_v15 = vrot.slane %v6056_v59, 4 }
 0x994   : > { %6003 = vmatpush.bf16.msrb.mxu1 %v7496_v63 }
 0x995   : > { %5947 = vmatpush.bf16.msrb.mxu3 %v7496_v63  ;;  %v6085_v63 = vrot.slane %v6079_v62, 6 }
 0x996   : > { %5934 = vmatpush.bf16.msrb.mxu0 %v7488_v56 }
 0x9c3   : > { %v5593_v9 = vpop.f32.mrf.mxu0 }
 0x9c4   : > { %5651 = vst [vmem:[#allocation5] sm:$0x3f] %v5593_v9  ;;  %v5738_v9 = vld [vmem:[%s11463_s5] sm:$0x3f] }
 0x9cb   : > { %v5595_v44 = vpop.f32.mrf.mxu0  ;;  %v5657_v0 = vld [vmem:[#allocation5] sm:$0x3f] }
 0x9cc   : > { %v6466_v44 = vld [vmem:[#allocation9 + $0x10] sm:$0x3f] }
 0x9ee   : > { %v5645_v17 = vpop.f32.mrf.mxu2 }
 0x9ef   : > { %5656 = vst.msk [vmem:[#allocation5 + $0x20] sm:$0x3f] %vm5655_vm6, %v5645_v17  ;;  %v6472_v17 = vrot.slane %v6466_v44, 2  ;;  %vm12115_vm6 = vcmask 785408  }
 0x9f0   : > { %v5632_v8 = vpop.f32.mrf.mxu1 }
 0x9f1   : > { %5654 = vst [vmem:[#allocation5 + $0x18] sm:$0x3f] %v5632_v8  ;;  %v6380_v8 = vld [vmem:[#allocation9 + $0x10] sm:$0x3f] }
 0x9f2   : > { %v5619_v25 = vpop.f32.mrf.mxu0 }
 0x9f3   : > { %5653 = vst [vmem:[#allocation5 + $0x10] sm:$0x3f] %v5619_v25  ;;  %v6447_v25 = vld [vmem:[#allocation9 + $0x10] sm:$0x3f] }
 0x9f6   : > { %v5647_v43 = vpop.f32.mrf.mxu2  ;;  %v5661_v34 = vld [vmem:[#allocation5 + $0x20] sm:$0x3f] }
 0x9f7   : > { %v5606_v33 = vpop.f32.mrf.mxu3  ;;  %5675 = vrot.lane.b32.xlu1 %v5661_v34, %s11773_s26  ;;  %v6362_v43 = vld [vmem:[#allocation9 + $0x10] sm:$0x3f] }
 0x9f8   : > { %5652 = vst [vmem:[#allocation5 + $0x8] sm:$0x3f] %v5606_v33  ;;  %v5634_v55 = vpop.f32.mrf.mxu1  ;;  %v5660_v58 = vld [vmem:[#allocation5 + $0x18] sm:$0x3f]  ;;  %v6386_v33 = vrot.slane %v6380_v8, 2 }
 0x9fa   : > { %v5621_v19 = vpop.f32.mrf.mxu0  ;;  %v5659_v38 = vld [vmem:[#allocation5 + $0x10] sm:$0x3f] }
 0x9fb   : > { %v7606_v1 = vpack.i.bf16 %v5660_v58, %v5659_v38  ;;  %v6341_v19 = vld [vmem:[#allocation9 + $0x10] sm:$0x3f] }
 0x9fd   : > { %7607 = vrot.lane.b32.xlu0 %v7606_v1, %s11773_s26 }
 0x9ff   : > { %v5658_v14 = vld [vmem:[#allocation5 + $0x8] sm:$0x3f]  ;;  %v5608_v36 = vpop.f32.mrf.mxu3 }
 0xa00   : > { %5669 = vrot.lane.b32.xlu2 %v5658_v14, %s11773_s26  ;;  %v6294_v36 = vld [vmem:[#allocation9 + $0x10] sm:$0x3f] }
 0xa05   : > { %5667 = vrot.lane.b32.xlu0 %v5657_v0, %s11773_s26 }
 0xa5a   : > { %v5670_v20 = vpop.permute.xlu2 %5669 }
 0xa69   : > { %v5676_v26 = vpop.permute.xlu1 %5675 }
 0xa6a   : > { %v10973_v27 = vmax.f32 %v5661_v34, %v5676_v26  ;;  %v6318_v34 = vld [vmem:[#allocation9 + $0x10] sm:$0x3f] }
 0xa6b   : > { %v6324_v55 = vrot.slane %v6318_v34, 4 }
 0xa6c   : > { %5704 = vrot.lane.b32.xlu0 %v10973_v27, %s11598_s12 }
 0xa6f   : > { %v7608_v32 = vpop.permute.xlu0 %7607 }
 0xa70   : > { %v7610_v10 = vunpack.i.h.bf16 %v7608_v32  ;;  %v7609_v18 = vunpack.i.l.bf16 %v7608_v32  ;;  %v6207_v32 = vld [vmem:[#allocation9 + $0x10] sm:$0x3f] }
 0xa72   : > { %v5680_v57 = vsel %vm12101_vm1, %v7610_v10, %v5676_v26  ;;  %v5679_v54 = vsel %vm12102_vm10, %v7609_v18, %v7610_v10  ;;  %v5678_v7 = vsel %vm12084_vm0, %v5670_v20, %v7609_v18  ;;  %v6275_v26 = vld [vmem:[#allocation9 + $0x10] sm:$0x3f]  ;;  %v6213_v10 = vrot.slane %v6207_v32, 2  ;;  %vm12116_vm1 = vmmov %vm12111_vm5 }
 0xa73   : > { %v10980_v30 = vmax.f32 %v5660_v58, %v5680_v57  ;;  %v10982_v53 = vmax.f32 %v5659_v38, %v5679_v54  ;;  %v10984_v49 = vmax.f32 %v5658_v14, %v5678_v7  ;;  %v6426_v38 = vld [vmem:[#allocation9 + $0x10] sm:$0x3f]  ;;  %v6347_v58 = vrot.slane %v6341_v19, 6 }
 0xa74   : > { %v6432_v1 = vrot.slane %v6426_v38, 6  ;;  %v6253_v14 = vld [vmem:[#allocation9 + $0x10] sm:$0x3f]  ;;  %vm5838_vm10 = vcmask 324896   ;;  %vm5843_vm0 = vcmask 390496  }
 0xa75   : > { %5698 = vrot.lane.b32.xlu2 %v10984_v49, %s11598_s12  ;;  %v7611_v51 = vpack.i.bf16 %v10980_v30, %v10982_v53  ;;  %v6188_v18 = vld [vmem:[#allocation9 + $0x10] sm:$0x3f] }
 0xa76   : > { %v6536_v54 = vld [vmem:[#allocation9 + $0x10] sm:$0x3f] }
 0xa77   : > { %v5668_v52 = vpop.permute.xlu0 %5667  ;;  %7612 = vrot.lane.b32.xlu1 %v7611_v51, %s11598_s12  ;;  %v6118_v7 = vld [vmem:[#allocation9 + $0x10] sm:$0x3f] }
 0xa78   : > { %v5677_v22 = vsel %vm12103_vm14, %v5668_v52, %v5670_v20  ;;  %v6230_v20 = vld [vmem:[#allocation9 + $0x10] sm:$0x3f]  ;;  %vm5848_vm14 = vcmask 456096  }
 0xa79   : > { %v10992_v28 = vmax.f32 %v5657_v0, %v5677_v22  ;;  %v6259_v0 = vrot.slane %v6253_v14, 6  ;;  %v6236_v57 = vrot.slane %v6230_v20, 4  ;;  %v6166_v52 = vld [vmem:[#allocation9 + $0x10] sm:$0x3f] }
 0xa7a   : > { %v6514_v22 = vld [vmem:[#allocation9 + $0x10] sm:$0x3f]  ;;  %v6172_v46 = vrot.slane %v6166_v52, 6 }
 0xa7b   : > { %v6520_v60 = vrot.slane %v6514_v22, 6 }
 0xa7f   : > { %5696 = vrot.lane.b32.xlu1 %v10992_v28, %s11598_s12 }
 0xacf   : > { %v5699_v31 = vpop.permute.xlu2 %5698 }
 0xade   : > { %v5705_v3 = vpop.permute.xlu0 %5704 }
 0xadf   : > { %v5719_v2 = vmax.f32 %v10973_v27, %v5705_v3  ;;  %v6300_v27 = vrot.slane %v6294_v36, 2 }
 0xae1   : > { %v5971_v50 = vpack.c.bf16 %v5719_v2, %v5719_v2 }
 0xae9   : > { %v7613_v4 = vpop.permute.xlu1 %7612 }
 0xaea   : > { %v7615_v5 = vunpack.i.h.bf16 %v7613_v4  ;;  %v7614_v12 = vunpack.i.l.bf16 %v7613_v4 }
 0xaec   : > { %v5709_v47 = vsel %vm12104_vm15, %v7615_v5, %v5705_v3  ;;  %v5707_v42 = vsel %vm12105_vm12, %v5699_v31, %v7614_v12  ;;  %v5708_v41 = vsel %vm12106_vm2, %v7614_v12, %v7615_v5  ;;  %vm5899_vm15 = vcmask 849696  }
 0xaed   : > { %v5718_v37 = vmax.f32 %v10980_v30, %v5709_v47  ;;  %v5716_v40 = vmax.f32 %v10984_v49, %v5707_v42  ;;  %v5717_v29 = vmax.f32 %v10982_v53, %v5708_v41  ;;  %v6142_v30 = vld [vmem:[#allocation9 + $0x10] sm:$0x3f]  ;;  %v6124_v53 = vrot.slane %v6118_v7, 2 }
 0xaee   : > { %v6148_v49 = vrot.slane %v6142_v30, 4  ;;  %vm5904_vm12 = vcmask 915296   ;;  %vm5909_vm2 = vcmask 980896  }
 0xaef   : > { %v5855_v13 = vpack.c.bf16 %v5717_v29, %v5717_v29  ;;  %v5744_v48 = vpack.c.bf16 %v5716_v40, %v5716_v40  ;;  %v5916_v11 = vpack.c.bf16 %v5718_v37, %v5718_v37 }
 0xaf1   : > { %5860 = vrot.lane.b32.xlu2 %v5855_v13, %s7686_s20  ;;  %5858 = vrot.lane.b32.xlu0 %v5744_v48, %s7686_s20  ;;  %v5697_v45 = vpop.permute.xlu1 %5696 }
 0xaf2   : > { %7362 = vmatmul.msk.bf16.vlgmr.msra.gmra.mxu0 %vm12107_vm8, %v5744_v48  ;;  %5920 = vrot.lane.b32.xlu1 %v5916_v11, %s7688_s21  ;;  %v5706_v6 = vsel %vm12108_vm4, %v5697_v45, %v5699_v31  ;;  %vm5914_vm8 = vcmask 1046496   ;;  %vm12121_vm4 = vcmask 842752  }
 0xaf3   : > { %v5715_v23 = vmax.f32 %v10992_v28, %v5706_v6  ;;  %v6490_v28 = vld [vmem:[#allocation9 + $0x10] sm:$0x3f] }
 0xaf4   : > { %v6496_v61 = vrot.slane %v6490_v28, 4 }
 0xaf5   : > { %v5743_v39 = vpack.c.bf16 %v5715_v23, %v5715_v23 }
 0xaf7   : > { %5815 = vmatmul.bf16.vlgmr.msra.gmra.mxu3 %v5743_v39 }
 0xaf9   : > { %5973 = vrot.lane.b32.xlu2 %v5916_v11, %s7689_s23  ;;  %5975 = vrot.lane.b32.xlu0 %v5971_v50, %s7689_s23  ;;  %s7713_s23 = smov 111  }
 0xafa   : > { %5918 = vrot.lane.b32.xlu1 %v5855_v13, %s7688_s21 }
 0xb01   : > { %5747 = vperm.xlu2 %7616, %v5738_v9   ;;  %6414 = vrot.lane.b32.xlu0 %v6409_v24, %s7704_s30 }
 0xb02   : > { %6437 = vrot.lane.b32.xlu1 %v6432_v1, %s7696_s24 }
 0xb09   : > { %6455 = vrot.lane.b32.xlu2 %v6447_v25, %s7688_s21  ;;  %6477 = vrot.lane.b32.xlu0 %v6472_v17, %s7712_s22 }
 0xb0a   : > { %6305 = vrot.lane.b32.xlu1 %v6300_v27, %s11596_s10  ;;  %s11600_s10 = smov 93  }
 0xb11   : > { %6370 = vrot.lane.b32.xlu2 %v6362_v43, %s7702_s16  ;;  %6391 = vrot.lane.b32.xlu0 %v6386_v33, %s7703_s13 }
 0xb12   : > { %6241 = vrot.lane.b32.xlu1 %v6236_v57, %s7686_s20 }
 0xb19   : > { %6329 = vrot.lane.b32.xlu2 %v6324_v55, %s11792_s19  ;;  %6352 = vrot.lane.b32.xlu0 %v6347_v58, %s11777_s27 }
 0xb1a   : > { %6153 = vrot.lane.b32.xlu1 %v6148_v49, %s7717_s11 }
 0xb21   : > { %6264 = vrot.lane.b32.xlu2 %v6259_v0, %s7713_s23  ;;  %6283 = vrot.lane.b32.xlu0 %v6275_v26, %s7714_s9 }
 0xb29   : > { %6196 = vrot.lane.b32.xlu2 %v6188_v18, %s7716_s8  ;;  %6218 = vrot.lane.b32.xlu0 %v6213_v10, %s11598_s12  ;;  %s11602_s12 = smov 94  }
 0xb2a   : > { %6501 = vrot.lane.b32.xlu1 %v6496_v61, %s11602_s12  ;;  %s7722_s12 = smov 36  }
 0xb31   : > { %6544 = vrot.lane.b32.xlu2 %v6536_v54, %s12109_s25  ;;  %6129 = vrot.lane.b32.xlu0 %v6124_v53, %s12110_s15 }
 0xb32   : > { %6067 = vrot.lane.b32.xlu1 %v6062_v15, %s11774_s18 }
 0xb39   : > { %6177 = vrot.lane.b32.xlu2 %v6172_v46, %s7718_s14  ;;  %6525 = vrot.lane.b32.xlu0 %v6520_v60, %s11600_s10  ;;  %s7721_s10 = smov 40  }
 0xb41   : > { %6090 = vrot.lane.b32.xlu2 %v6085_v63, %s11775_s17  ;;  %6108 = vrot.lane.b32.xlu0 %v6100_v35, %s11787_s28 }
 0xb4b   : > { %v5861_v51 = vpop.permute.xlu2 %5860 }
 0xb4c   : > { %7363 = vmatmul.msk.bf16.vlgmr.msra.gmra.mxu2 %vm12111_vm5, %v5861_v51  ;;  %vm12122_vm5 = vmmov %vm12121_vm4 }
 0xb53   : > { %v5974_v12 = vpop.permute.xlu2 %5973 }
 0xb5b   : > { %v11072_v40 = vpop.permute.xlu2 %5747 }
 0xb63   : > { %v5859_v56 = vpop.permute.xlu0 %5858  ;;  %v11083_v23 = vpop.permute.xlu2 %6455 }
 0xb64   : > { %v5863_v4 = vsel %vm12112_vm13, %v5859_v56, %v5861_v51  ;;  %v5921_v5 = vpop.permute.xlu1 %5920  ;;  %vm6198_vm13 = vcmask 957440  }
 0xb65   : > { %7364 = vmatmul.msk.bf16.vlgmr.msrb.gmra.mxu3 %vm12113_vm11, %v5921_v5  ;;  %5876 = vmatmul.bf16.vlgmr.msra.gmra.mxu1 %v5863_v4  ;;  %vm12123_vm11 = vcmask 1014784  }
 0xb6b   : > { %v5976_v31 = vpop.permute.xlu0 %5975  ;;  %v11087_v50 = vpop.permute.xlu2 %6370 }
 0xb6c   : > { %v5978_v3 = vsel %vm12114_vm9, %v5974_v12, %v5976_v31  ;;  %v5919_v47 = vpop.permute.xlu1 %5918  ;;  %vm12124_vm9 = vmmov %vm12123_vm11 }
 0xb6d   : > { %v5922_v42 = vsel %vm12115_vm6, %v5919_v47, %v5921_v5  ;;  %5991 = vmatmul.bf16.vlgmr.msrb.gmra.mxu2 %v5978_v3  ;;  %vm12125_vm6 = vcmask 826368  }
 0xb6e   : > { %5935 = vmatmul.bf16.vlgmr.msrb.gmra.mxu0 %v5922_v42 }
 0xb6f   : > { %v5829_v41 = vpop.f32.mrf.mxu0 }
 0xb73   : > { %v11079_v6 = vpop.permute.xlu0 %6414  ;;  %v11091_v24 = vpop.permute.xlu2 %6329 }
 0xb74   : > { %v11093_v9 = vpop.permute.xlu1 %6437 }
 0xb75   : > { %7365 = vmatmul.msk.bf16.vlgmr.msrb.gmra.mxu1 %vm12116_vm1, %v5976_v31  ;;  %vm12126_vm1 = vmmov %vm12125_vm6 }
 0xb77   : > { %v5831_v37 = vpop.f32.mrf.mxu0 }
 0xb7a   : > { %v5816_v29 = vpop.f32.mrf.mxu3 }
 0xb7b   : > { %v5817_v13 = vadd.f32 %v5816_v29, %v11072_v40  ;;  %v11081_v2 = vpop.permute.xlu0 %6477  ;;  %v11097_v17 = vpop.permute.xlu2 %6264 }
 0xb7c   : > { %v11099_v25 = vpop.permute.xlu1 %6305 }
 0xb7d   : > { %v5830_v48 = vadd.f32 %v5829_v41, %v5817_v13 }
 0xb7f   : > { %v5833_v11 = vmax.f32 %v5830_v48, 0.0 }
 0xb81   : > { %5845 = vrot.lane.b32.xlu1 %v5833_v11, %s11813_s0  ;;  %5840 = vrot.lane.b32.xlu2 %v5833_v11, %s7721_s10 }
 0xb82   : > { %5835 = vrot.lane.b32.xlu0 %v5833_v11, %s7722_s12  ;;  %v5818_v45 = vpop.f32.mrf.mxu3 }
 0xb83   : > { %v11085_v39 = vpop.permute.xlu0 %6391  ;;  %v11103_v33 = vpop.permute.xlu2 %6196 }
 0xb84   : > { %v11105_v43 = vpop.permute.xlu1 %6241 }
 0xb8a   : > { %5850 = vrot.lane.b32.xlu0 %v5833_v11, %s11820_s29 }
 0xb8b   : > { %v11089_v16 = vpop.permute.xlu0 %6352  ;;  %v11109_v38 = vpop.permute.xlu2 %6544 }
 0xb8c   : > { %v11111_v58 = vpop.permute.xlu1 %6153 }
 0xb93   : > { %v11095_v44 = vpop.permute.xlu0 %6283  ;;  %v11115_v14 = vpop.permute.xlu2 %6177 }
 0xb9b   : > { %v11101_v8 = vpop.permute.xlu0 %6218  ;;  %v11121_v20 = vpop.permute.xlu2 %6090 }
 0xb9c   : > { %v11117_v0 = vpop.permute.xlu1 %6501 }
 0xba3   : > { %v11107_v19 = vpop.permute.xlu0 %6129 }
 0xba4   : > { %v11124_v57 = vpop.permute.xlu1 %6067 }
 0xbab   : > { %v11113_v1 = vpop.permute.xlu0 %6525 }
 0xbb3   : > { %v11119_v32 = vpop.permute.xlu0 %6108 }
 0xbcf   : > { %v5890_v34 = vpop.f32.mrf.mxu2 }
 0xbd7   : > { %v5892_v55 = vpop.f32.mrf.mxu2 }
 0xbdb   : > { %v5841_v46 = vpop.permute.xlu2 %5840 }
 0xbe2   : > { %v5877_v36 = vpop.f32.mrf.mxu1 }
 0xbe3   : > { %v5878_v7 = vadd.f32 %v5877_v36, %v11072_v40 }
 0xbe5   : > { %v5891_v22 = vadd.f32 %v5890_v34, %v5878_v7 }
 0xbe7   : > { %v5894_v61 = vmax.f32 %v5891_v22, 0.0 }
 0xbe8   : > { %v5949_v26 = vpop.f32.mrf.mxu3 }
 0xbea   : > { %v5879_v27 = vpop.f32.mrf.mxu1 }
 0xbeb   : > { %v5936_v10 = vpop.f32.mrf.mxu0 }
 0xbec   : > { %v5937_v18 = vadd.f32 %v5936_v10, %v11072_v40 }
 0xbee   : > { %v5950_v54 = vadd.f32 %v5949_v26, %v5937_v18 }
 0xbf0   : > { %v5953_v30 = vmax.f32 %v5950_v54, 0.0  ;;  %v5951_v53 = vpop.f32.mrf.mxu3  ;;  %v5992_v49 = vpop.f32.mrf.mxu2 }
 0xbf1   : > { %v5993_v62 = vadd.f32 %v5992_v49, %v11072_v40 }
 0xbf2   : > { %5963 = vrot.lane.b32.xlu2 %v5953_v30, %s11813_s0  ;;  %5959 = vrot.lane.b32.xlu0 %v5953_v30, %s7721_s10  ;;  %v6005_v51 = vpop.f32.mrf.mxu1  ;;  %s12117_s0 = smov 116  }
 0xbf3   : > { %5955 = vrot.lane.b32.xlu1 %v5953_v30, %s7722_s12  ;;  %v5938_v52 = vpop.f32.mrf.mxu0  ;;  %v5846_v60 = vpop.permute.xlu1 %5845  ;;  %v6006_v63 = vadd.f32 %v6005_v51, %v5993_v62 }
 0xbf4   : > { %v5836_v28 = vpop.permute.xlu0 %5835 }
 0xbf5   : > { %5839 = vst.msk [vmem:[#allocation9] sm:$0x3f] %vm5838_vm10, %v5836_v28  ;;  %v6009_v56 = vmax.f32 %v6006_v63, 0.0 }
 0xbf6   : > { %5844 = vst.msk [vmem:[#allocation9] sm:$0x3f] %vm5843_vm0, %v5841_v46 }
 0xbf7   : > { %5849 = vst.msk [vmem:[#allocation9] sm:$0x3f] %vm5848_vm14, %v5846_v60 }
 0xbf8   : > { %v5994_v35 = vpop.f32.mrf.mxu2 }
 0xbfa   : > { %5896 = vrot.lane.b32.xlu2 %v5894_v61, %s7696_s24  ;;  %5906 = vrot.lane.b32.xlu0 %v5894_v61, %s11792_s19  ;;  %v6007_v59 = vpop.f32.mrf.mxu1 }
 0xbfb   : > { %5967 = vrot.lane.b32.xlu1 %v5953_v30, %s11820_s29  ;;  %s12118_s29 = smov 109  }
 0xbfc   : > { %v5851_v15 = vpop.permute.xlu0 %5850 }
 0xbfd   : > { %5854 = vst.msk [vmem:[#allocation9] sm:$0x3f] %vm5853_vm3, %v5851_v15 }
 0xc02   : > { %5911 = vrot.lane.b32.xlu2 %v5894_v61, %s7686_s20  ;;  %6011 = vrot.lane.b32.xlu0 %v6009_v56, %s7696_s24 }
 0xc03   : > { %5901 = vrot.lane.b32.xlu1 %v5894_v61, %s11777_s27 }
 0xc0a   : > { %6015 = vrot.lane.b32.xlu2 %v6009_v56, %s11777_s27  ;;  %6023 = vrot.lane.b32.xlu0 %v6009_v56, %s7686_s20 }
 0xc0b   : > { %6019 = vrot.lane.b32.xlu1 %v6009_v56, %s11792_s19 }
 0xc4c   : > { %v5964_v4 = vpop.permute.xlu2 %5963 }
 0xc54   : > { %v5897_v5 = vpop.permute.xlu2 %5896 }
 0xc55   : > { %5900 = vst.msk [vmem:[#allocation9] sm:$0x3f] %vm5899_vm15, %v5897_v5 }
 0xc5c   : > { %v5912_v42 = vpop.permute.xlu2 %5911 }
 0xc64   : > { %v5960_v12 = vpop.permute.xlu0 %5959  ;;  %v6016_v40 = vpop.permute.xlu2 %6015 }
 0xc65   : > { %v5956_v31 = vpop.permute.xlu1 %5955 }
 0xc66   : > { %5958 = vst.msk [vmem:[#allocation9 + $0x8] sm:$0x3f] %vm5838_vm10, %v5956_v31  ;;  %vm6479_vm10 = vcmask 777216  }
 0xc67   : > { %5962 = vst.msk [vmem:[#allocation9 + $0x8] sm:$0x3f] %vm5843_vm0, %v5960_v12  ;;  %vm6307_vm0 = vcmask 891904  }
 0xc68   : > { %5966 = vst.msk [vmem:[#allocation9 + $0x8] sm:$0x3f] %vm5848_vm14, %v5964_v4  ;;  %vm12127_vm14 = vcmask 785408  }
 0xc6c   : > { %v5907_v3 = vpop.permute.xlu0 %5906 }
 0xc6d   : > { %v5968_v47 = vpop.permute.xlu1 %5967 }
 0xc6e   : > { %5970 = vst.msk [vmem:[#allocation9 + $0x8] sm:$0x3f] %vm5853_vm3, %v5968_v47  ;;  %vm12128_vm3 = vmmov %vm12127_vm14 }
 0xc74   : > { %v6012_v41 = vpop.permute.xlu0 %6011 }
 0xc75   : > { %6014 = vst.msk [vmem:[#allocation9 + $0x8] sm:$0x3f] %vm5899_vm15, %v6012_v41  ;;  %v5902_v37 = vpop.permute.xlu1 %5901  ;;  %vm12129_vm15 = vcmask 916480  }
 0xc76   : > { %5905 = vst.msk [vmem:[#allocation9] sm:$0x3f] %vm5904_vm12, %v5902_v37 }
 0xc77   : > { %5910 = vst.msk [vmem:[#allocation9] sm:$0x3f] %vm5909_vm2, %v5907_v3 }
 0xc78   : > { %5915 = vst.msk [vmem:[#allocation9] sm:$0x3f] %vm5914_vm8, %v5912_v42 }
 0xc79   : > { %6018 = vst.msk [vmem:[#allocation9 + $0x8] sm:$0x3f] %vm5904_vm12, %v6016_v40  ;;  %vm12130_vm12 = vmmov %vm12129_vm15 }
 0xc7c   : > { %v6024_v29 = vpop.permute.xlu0 %6023 }
 0xc7d   : > { %v6020_v13 = vpop.permute.xlu1 %6019 }
 0xc7e   : > { %6022 = vst.msk [vmem:[#allocation9 + $0x8] sm:$0x3f] %vm5909_vm2, %v6020_v13  ;;  %vm6285_vm2 = vcmask 900096  }
 0xc7f   : > { %6026 = vst.msk [vmem:[#allocation9 + $0x8] sm:$0x3f] %vm5914_vm8, %v6024_v29  ;;  %v6445_v48 = vld [vmem:[#allocation9] sm:$0x3f]  ;;  %vm6179_vm8 = vcmask 965632  }
 0xc80   : > { %v6360_v11 = vld [vmem:[#allocation9] sm:$0x3f]  ;;  %6451 = vrot.lane.b32.xlu2 %v6445_v48, %s7688_s21 }
 0xc81   : > { %6366 = vrot.lane.b32.xlu1 %v6360_v11, %s7702_s16  ;;  %v6424_v45 = vld [vmem:[#allocation9] sm:$0x3f] }
 0xc82   : > { %v6430_v34 = vrot.slane %v6424_v45, 6  ;;  %v6378_v36 = vld [vmem:[#allocation9] sm:$0x3f] }
 0xc83   : > { %v6273_v26 = vld [vmem:[#allocation9] sm:$0x3f]  ;;  %v6384_v10 = vrot.slane %v6378_v36, 2 }
 0xc84   : > { %6433 = vrot.lane.b32.xlu0 %v6430_v34, %s7696_s24  ;;  %v6186_v27 = vld [vmem:[#allocation9] sm:$0x3f] }
 0xc85   : > { %v6339_v18 = vld [vmem:[#allocation9] sm:$0x3f] }
 0xc86   : > { %v6028_v55 = vld [vmem:[#allocation9 + $0x8] sm:$0x3f]  ;;  %v6345_v54 = vrot.slane %v6339_v18, 6  ;;  %v6316_v7 = vld [vmem:[#allocation9] sm:$0x3f] }
 0xc87   : > { %6030 = vst [vmem:[#allocation6 + $0xd0] sm:$0x3f] %v6028_v55  ;;  %v6098_v30 = vld [vmem:[#allocation9] sm:$0x3f]  ;;  %v6322_v53 = vrot.slane %v6316_v7, 4 }
 0xc88   : > { %6279 = vrot.lane.b32.xlu2 %v6273_v26, %s7714_s9  ;;  %v6140_v49 = vld [vmem:[#allocation9] sm:$0x3f]  ;;  %v6361_v12 = vld [vmem:[#allocation9 + $0x8] sm:$0x3f] }
 0xc89   : > { %6192 = vrot.lane.b32.xlu1 %v6186_v27, %s7716_s8  ;;  %v6401_v51 = vld [vmem:[#allocation9] sm:$0x3f]  ;;  %v6146_v52 = vrot.slane %v6140_v49, 4  ;;  %v6187_v41 = vld [vmem:[#allocation9 + $0x8] sm:$0x3f] }
 0xc8a   : > { %v6407_v22 = vrot.slane %v6401_v51, 4  ;;  %v6251_v28 = vld [vmem:[#allocation9] sm:$0x3f]  ;;  %v6099_v13 = vld [vmem:[#allocation9 + $0x8] sm:$0x3f] }
 0xc8b   : > { %v6027_v46 = vld [vmem:[#allocation9] sm:$0x3f]  ;;  %v6257_v60 = vrot.slane %v6251_v28, 6  ;;  %v6446_v48 = vld [vmem:[#allocation9 + $0x8] sm:$0x3f] }
 0xc8c   : > { %6387 = vrot.lane.b32.xlu0 %v6384_v10, %s7703_s13  ;;  %6029 = vst [vmem:[#allocation6 + $0xb0] sm:$0x3f] %v6027_v46  ;;  %v6464_v61 = vld [vmem:[#allocation9] sm:$0x3f]  ;;  %v6402_v45 = vld [vmem:[#allocation9 + $0x8] sm:$0x3f] }
 0xc8d   : > { %v6077_v62 = vld [vmem:[#allocation9] sm:$0x3f]  ;;  %v6470_v35 = vrot.slane %v6464_v61, 2  ;;  %v6408_v55 = vrot.slane %v6402_v45, 4  ;;  %v6274_v36 = vld [vmem:[#allocation9 + $0x8] sm:$0x3f] }
 0xc8e   : > { %v6083_v59 = vrot.slane %v6077_v62, 6  ;;  %v6205_v63 = vld [vmem:[#allocation9] sm:$0x3f]  ;;  %v6465_v26 = vld [vmem:[#allocation9 + $0x8] sm:$0x3f] }
 0xc8f   : > { %v6211_v15 = vrot.slane %v6205_v63, 2  ;;  %v6292_v56 = vld [vmem:[#allocation9] sm:$0x3f]  ;;  %v6471_v27 = vrot.slane %v6465_v26, 2  ;;  %v6340_v10 = vld [vmem:[#allocation9 + $0x8] sm:$0x3f] }
 0xc90   : > { %6348 = vrot.lane.b32.xlu2 %v6345_v54, %s11777_s27  ;;  %v6298_v4 = vrot.slane %v6292_v56, 2  ;;  %v6116_v5 = vld [vmem:[#allocation9] sm:$0x3f]  ;;  %v6535_v18 = vld [vmem:[#allocation9 + $0x8] sm:$0x3f]  ;;  %v6346_v54 = vrot.slane %v6340_v10, 6 }
 0xc91   : > { %6104 = vrot.lane.b32.xlu1 %v6098_v30, %s11787_s28  ;;  %v6122_v31 = vrot.slane %v6116_v5, 2  ;;  %v6228_v3 = vld [vmem:[#allocation9] sm:$0x3f]  ;;  %v6425_v7 = vld [vmem:[#allocation9 + $0x8] sm:$0x3f] }
 0xc92   : > { %v6234_v47 = vrot.slane %v6228_v3, 4  ;;  %v6054_v42 = vld [vmem:[#allocation9] sm:$0x3f]  ;;  %v6293_v30 = vld [vmem:[#allocation9 + $0x8] sm:$0x3f] }
 0xc93   : > { %v6060_v37 = vrot.slane %v6054_v42, 4  ;;  %v6164_v40 = vld [vmem:[#allocation9] sm:$0x3f]  ;;  %v6299_v49 = vrot.slane %v6293_v30, 2  ;;  %v6141_v51 = vld [vmem:[#allocation9 + $0x8] sm:$0x3f] }
 0xc94   : > { %6325 = vrot.lane.b32.xlu0 %v6322_v53, %s11792_s19  ;;  %v6170_v29 = vrot.slane %v6164_v40, 6  ;;  %v6031_v11 = vld [vmem:[#allocation9] sm:$0x3f]  ;;  %v6431_v53 = vrot.slane %v6425_v7, 6  ;;  %v6229_v28 = vld [vmem:[#allocation9 + $0x8] sm:$0x3f] }
 0xc95   : > { %v6037_v34 = vrot.slane %v6031_v11, 2  ;;  %v6078_v61 = vld [vmem:[#allocation9 + $0x8] sm:$0x3f]  ;;  %v6512_v11 = vld [vmem:[#allocation9] sm:$0x3f] }
 0xc96   : > { %v6084_v62 = vrot.slane %v6078_v61, 6  ;;  %v6165_v63 = vld [vmem:[#allocation9 + $0x8] sm:$0x3f]  ;;  %v6518_v45 = vrot.slane %v6512_v11, 6  ;;  %v6488_v26 = vld [vmem:[#allocation9] sm:$0x3f] }
 0xc97   : > { %v6171_v56 = vrot.slane %v6165_v63, 6  ;;  %v6513_v3 = vld [vmem:[#allocation9 + $0x8] sm:$0x3f] }
 0xc98   : > { %6149 = vrot.lane.b32.xlu2 %v6146_v52, %s7717_s11  ;;  %v6147_v52 = vrot.slane %v6141_v51, 4  ;;  %v6519_v42 = vrot.slane %v6513_v3, 6  ;;  %v6206_v40 = vld [vmem:[#allocation9 + $0x8] sm:$0x3f]  ;;  %v6033_v51 = vld [vmem:[#allocation9 + $0x10] sm:$0x3f] }
 0xc99   : > { %6410 = vrot.lane.b32.xlu1 %v6407_v22, %s7704_s30  ;;  %v6379_v22 = vld [vmem:[#allocation9 + $0x8] sm:$0x3f] }
 0xc9a   : > { %v6385_v46 = vrot.slane %v6379_v22, 2  ;;  %v6055_v30 = vld [vmem:[#allocation9 + $0x8] sm:$0x3f] }
 0xc9c   : > { %6260 = vrot.lane.b32.xlu0 %v6257_v60, %s7713_s23  ;;  %v6235_v60 = vrot.slane %v6229_v28, 4 }
 0xca0   : > { %6086 = vrot.lane.b32.xlu2 %v6083_v59, %s11775_s17  ;;  %v6317_v59 = vld [vmem:[#allocation9 + $0x8] sm:$0x3f] }
 0xca1   : > { %6473 = vrot.lane.b32.xlu1 %v6470_v35, %s7712_s22 }
 0xca4   : > { %6214 = vrot.lane.b32.xlu0 %v6211_v15, %s12117_s0  ;;  %v6323_v15 = vrot.slane %v6317_v59, 4 }
 0xca8   : > { %6368 = vrot.lane.b32.xlu2 %v6361_v12, %s7702_s16 }
 0xca9   : > { %6301 = vrot.lane.b32.xlu1 %v6298_v4, %s12118_s29  ;;  %v6489_v4 = vld [vmem:[#allocation9 + $0x8] sm:$0x3f] }
 0xcaa   : > { %v6495_v5 = vrot.slane %v6489_v4, 4 }
 0xcac   : > { %6125 = vrot.lane.b32.xlu0 %v6122_v31, %s12110_s15  ;;  %v6252_v31 = vld [vmem:[#allocation9 + $0x8] sm:$0x3f] }
 0xcb0   : > { %6194 = vrot.lane.b32.xlu2 %v6187_v41, %s7716_s8 }
 0xcb1   : > { %6237 = vrot.lane.b32.xlu1 %v6234_v47, %s7686_s20  ;;  %v6258_v47 = vrot.slane %v6252_v31, 6 }
 0xcb4   : > { %6063 = vrot.lane.b32.xlu0 %v6060_v37, %s11774_s18  ;;  %v6534_v37 = vld [vmem:[#allocation9] sm:$0x3f] }
 0xcb8   : > { %6106 = vrot.lane.b32.xlu2 %v6099_v13, %s11787_s28  ;;  %v6212_v13 = vrot.slane %v6206_v40, 2 }
 0xcb9   : > { %6173 = vrot.lane.b32.xlu1 %v6170_v29, %s7718_s14  ;;  %v6032_v29 = vld [vmem:[#allocation9 + $0x8] sm:$0x3f] }
 0xcbc   : > { %6453 = vrot.lane.b32.xlu0 %v6446_v48, %s7688_s21  ;;  %v6038_v48 = vrot.slane %v6032_v29, 2 }
 0xcc0   : > { %6412 = vrot.lane.b32.xlu2 %v6408_v55, %s7704_s30  ;;  %s12153_s30 = sld [smem:[#allocation175_spill]] }
 0xcc1   : > { %6040 = vrot.lane.b32.xlu1 %v6037_v34, %s11773_s26 }
 0xcc4   : > { %6281 = vrot.lane.b32.xlu0 %v6274_v36, %s7714_s9  ;;  %v6117_v36 = vld [vmem:[#allocation9 + $0x8] sm:$0x3f] }
 0xcc5   : > { %v6123_v10 = vrot.slane %v6117_v36, 2 }
 0xcc8   : > { %6475 = vrot.lane.b32.xlu2 %v6471_v27, %s7712_s22  ;;  %s12157_s22 = sld [smem:[#allocation177_spill]] }
 0xcc9   : > { %6542 = vrot.lane.b32.xlu1 %v6535_v18, %s12109_s25  ;;  %v6494_v18 = vrot.slane %v6488_v26, 4 }
 0xccc   : > { %6350 = vrot.lane.b32.xlu0 %v6346_v54, %s11777_s27  ;;  %s12119_s27 = smov 94  }
 0xcd0   : > { %6303 = vrot.lane.b32.xlu2 %v6299_v49, %s12118_s29  ;;  %v6061_v49 = vrot.slane %v6055_v30, 4 }
 0xcd1   : > { %6435 = vrot.lane.b32.xlu1 %v6431_v53, %s7696_s24 }
 0xcd4   : > { %6151 = vrot.lane.b32.xlu0 %v6147_v52, %s7717_s11  ;;  %s12160_s11 = sld [smem:[#allocation176_spill]] }
 0xcd8   : > { %6239 = vrot.lane.b32.xlu2 %v6235_v60, %s7686_s20  ;;  %v6039_v60 = vrot.slane %v6033_v51, 2 }
 0xcd9   : > { %6389 = vrot.lane.b32.xlu1 %v6385_v46, %s7703_s13 }
 0xcda   : > { %v11183_v35 = vpop.permute.xlu2 %6451 }
 0xcdc   : > { %6088 = vrot.lane.b32.xlu0 %v6084_v62, %s11775_s17  ;;  %s12120_s17 = smov 93  }
 0xce0   : > { %6175 = vrot.lane.b32.xlu2 %v6171_v56, %s7718_s14 }
 0xce1   : > { %6327 = vrot.lane.b32.xlu1 %v6323_v15, %s11792_s19 }
 0xce2   : > { %v11188_v12 = vpop.permute.xlu2 %6279 }
 0xce4   : > { %6499 = vrot.lane.b32.xlu0 %v6495_v5, %s12119_s27 }
 0xce8   : > { %6523 = vrot.lane.b32.xlu2 %v6519_v42, %s12120_s17 }
 0xce9   : > { %6262 = vrot.lane.b32.xlu1 %v6258_v47, %s7713_s23  ;;  %s12148_s23 = sld [smem:[#allocation172_spill]] }
 0xcea   : > { %v11193_v41 = vpop.permute.xlu2 %6348 }
 0xcec   : > { %6540 = vrot.lane.b32.xlu0 %v6534_v37, %s12109_s25  ;;  %s12152_s25 = sld [smem:[#allocation173_spill]] }
 0xcf0   : > { %6042 = vrot.lane.b32.xlu2 %v6038_v48, %s11773_s26 }
 0xcf1   : > { %6216 = vrot.lane.b32.xlu1 %v6212_v13, %s12117_s0 }
 0xcf2   : > { %v11198_v34 = vpop.permute.xlu2 %6149 }
 0xcf3   : > { %v6367_v55 = vpop.permute.xlu1 %6366 }
 0xcf4   : > { %6521 = vrot.lane.b32.xlu0 %v6518_v45, %s12120_s17  ;;  %s12154_s17 = sld [smem:[#allocation174_spill]] }
 0xcf6   : > { %v11201_v27 = vpop.permute.xlu0 %6433 }
 0xcf8   : > { %6497 = vrot.lane.b32.xlu2 %v6494_v18, %s12119_s27  ;;  %s12163_s27 = sld [smem:[#allocation178_spill]] }
 0xcf9   : > { %6127 = vrot.lane.b32.xlu1 %v6123_v10, %s12110_s15 }
 0xcfa   : > { %v11205_v54 = vpop.permute.xlu2 %6086 }
 0xcfb   : > { %v6193_v7 = vpop.permute.xlu1 %6192 }
 0xcfe   : > { %v11207_v53 = vpop.permute.xlu0 %6387 }
 0xd01   : > { %6065 = vrot.lane.b32.xlu1 %v6061_v49, %s11774_s18 }
 0xd02   : > { %v6369_v52 = vpop.permute.xlu2 %6368 }
 0xd03   : > { %v6105_v22 = vpop.permute.xlu1 %6104  ;;  %v6372_v28 = vsel %vm12121_vm4, %v6367_v55, %v6369_v52  ;;  %v6373_v46 = vsel %vm12122_vm5, %v6369_v52, %v11087_v50  ;;  %vm12131_vm4 = vcmask 850944  }
 0xd04   : > { %6376 = vst [vmem:[#allocation6 + $0xa0] sm:$0x3f] %v6372_v28  ;;  %vm12132_vm5 = vmmov %vm12131_vm4 }
 0xd05   : > { %6377 = vst [vmem:[#allocation6 + $0x78] sm:$0x3f] %v6373_v46 }
 0xd06   : > { %v11213_v61 = vpop.permute.xlu0 %6325 }
 0xd09   : > { %6044 = vrot.lane.b32.xlu1 %v6039_v60, %s11773_s26 }
 0xd0a   : > { %v6195_v62 = vpop.permute.xlu2 %6194 }
 0xd0b   : > { %v6411_v59 = vpop.permute.xlu1 %6410  ;;  %v6199_v63 = vsel %vm6198_vm13, %v6193_v7, %v6195_v62  ;;  %v6200_v15 = vsel %vm6198_vm13, %v6195_v62, %v11103_v33  ;;  %vm6527_vm13 = vcmask 760832  }
 0xd0c   : > { %6203 = vst [vmem:[#allocation6 + $0x40] sm:$0x3f] %v6199_v63 }
 0xd0d   : > { %6204 = vst [vmem:[#allocation6 + $0xc8] sm:$0x3f] %v6200_v15 }
 0xd0e   : > { %v11217_v56 = vpop.permute.xlu0 %6260 }
 0xd12   : > { %v6107_v4 = vpop.permute.xlu2 %6106 }
 0xd13   : > { %v6474_v5 = vpop.permute.xlu1 %6473  ;;  %v6110_v50 = vsel %vm12123_vm11, %v6105_v22, %v6107_v4  ;;  %v6111_v31 = vsel %vm12124_vm9, %v6107_v4, %v11119_v32  ;;  %vm12133_vm11 = vcmask 818176  }
 0xd14   : > { %6114 = vst [vmem:[#allocation6 + $0x70] sm:$0x3f] %v6110_v50  ;;  %vm12134_vm9 = vmmov %vm12133_vm11 }
 0xd15   : > { %6115 = vst [vmem:[#allocation6 + $0x100] sm:$0x3f] %v6111_v31 }
 0xd16   : > { %v11222_v3 = vpop.permute.xlu0 %6214 }
 0xd1a   : > { %v6413_v47 = vpop.permute.xlu2 %6412 }
 0xd1b   : > { %v6302_v42 = vpop.permute.xlu1 %6301  ;;  %v6416_v37 = vsel %vm12125_vm6, %v6411_v59, %v6413_v47  ;;  %v6417_v33 = vsel %vm12126_vm1, %v6413_v47, %v11079_v6  ;;  %vm6155_vm6 = vcmask 973824   ;;  %vm6625_vm1 = vcmask 1042432  }
 0xd1c   : > { %6420 = vst [vmem:[#allocation6 + $0xc0] sm:$0xf0] %v6416_v37 }
 0xd1d   : > { %6421 = vst [vmem:[#allocation6 + $0x80] sm:$0xf0] %v6417_v33 }
 0xd1e   : > { %v11227_v40 = vpop.permute.xlu0 %6125  ;;  %6422 = vst [vmem:[#allocation6 + $0xe8] sm:$0x3] %v6416_v37 }
 0xd1f   : > { %6423 = vst [vmem:[#allocation6] sm:$0x3] %v6417_v33 }
 0xd22   : > { %v6476_v29 = vpop.permute.xlu2 %6475 }
 0xd23   : > { %v6238_v32 = vpop.permute.xlu1 %6237  ;;  %v6480_v13 = vsel %vm6479_vm10, %v6474_v5, %v6476_v29  ;;  %v6481_v48 = vsel %vm6479_vm10, %v6476_v29, %v11081_v2  ;;  %vm12135_vm10 = vcmask 1039360  }
 0xd24   : > { %6484 = vst [vmem:[#allocation6 + $0xd8] sm:$0xc0] %v6480_v13 }
 0xd25   : > { %6485 = vst [vmem:[#allocation6 + $0x28] sm:$0xc0] %v6481_v48 }
 0xd26   : > { %v11230_v11 = vpop.permute.xlu0 %6063  ;;  %6486 = vst [vmem:[#allocation6 + $0x60] sm:$0xf] %v6480_v13 }
 0xd27   : > { %6487 = vst [vmem:[#allocation6 + $0x68] sm:$0xf] %v6481_v48 }
 0xd2a   : > { %v6304_v6 = vpop.permute.xlu2 %6303 }
 0xd2b   : > { %v6174_v45 = vpop.permute.xlu1 %6173  ;;  %v6308_v55 = vsel %vm6307_vm0, %v6302_v42, %v6304_v6  ;;  %v6309_v36 = vsel %vm6307_vm0, %v6304_v6, %v11099_v25  ;;  %vm12136_vm0 = vcmask 834560  }
 0xd2c   : > { %6312 = vst [vmem:[#allocation6 + $0x8] sm:$0xc0] %v6308_v55 }
 0xd2d   : > { %6313 = vst [vmem:[#allocation6 + $0x98] sm:$0xc0] %v6309_v36 }
 0xd2e   : > { %v6454_v26 = vpop.permute.xlu0 %6453  ;;  %6314 = vst [vmem:[#allocation6 + $0xa8] sm:$0xf] %v6308_v55 }
 0xd2f   : > { %v6458_v10 = vsel %vm12127_vm14, %v11183_v35, %v6454_v26  ;;  %v6459_v2 = vsel %vm12128_vm3, %v6454_v26, %v11083_v23  ;;  %6315 = vst [vmem:[#allocation6 + $0x90] sm:$0xf] %v6309_v36  ;;  %vm12137_vm14 = vmmov %vm12136_vm0  ;;  %vm12138_vm3 = vcmask 1022976  }
 0xd30   : > { %6462 = vst [vmem:[#allocation6 + $0xd8] sm:$0x3f] %v6458_v10 }
 0xd31   : > { %6463 = vst [vmem:[#allocation6 + $0x28] sm:$0x3f] %v6459_v2 }
 0xd32   : > { %v6240_v18 = vpop.permute.xlu2 %6239 }
 0xd33   : > { %v6041_v7 = vpop.permute.xlu1 %6040  ;;  %v6243_v30 = vsel %vm12129_vm15, %v6238_v32, %v6240_v18  ;;  %v6244_v25 = vsel %vm12130_vm12, %v6240_v18, %v11105_v43  ;;  %vm12139_vm15 = vmmov %vm12138_vm3  ;;  %vm12140_vm12 = vcmask 883712  }
 0xd34   : > { %6247 = vst [vmem:[#allocation6 + $0x30] sm:$0xf0] %v6243_v30 }
 0xd35   : > { %6248 = vst [vmem:[#allocation6 + $0x20] sm:$0xf0] %v6244_v25 }
 0xd36   : > { %v6282_v49 = vpop.permute.xlu0 %6281  ;;  %6249 = vst [vmem:[#allocation6 + $0x128] sm:$0x3] %v6243_v30 }
 0xd37   : > { %v6286_v35 = vsel %vm6285_vm2, %v11188_v12, %v6282_v49  ;;  %v6287_v51 = vsel %vm6285_vm2, %v6282_v49, %v11095_v44  ;;  %6250 = vst [vmem:[#allocation6 + $0x50] sm:$0x3] %v6244_v25  ;;  %v6584_v31 = vld [vmem:[#allocation6 + $0xd8] sm:$0xff]  ;;  %vm12141_vm2 = vmmov %vm12140_vm12 }
 0xd38   : > { %6290 = vst [vmem:[#allocation6 + $0x8] sm:$0x3f] %v6286_v35  ;;  %v6585_v33 = vld [vmem:[#allocation6 + $0x28] sm:$0xff] }
 0xd39   : > { %6291 = vst [vmem:[#allocation6 + $0x98] sm:$0x3f] %v6287_v51 }
 0xd3a   : > { %v6176_v23 = vpop.permute.xlu2 %6175 }
 0xd3b   : > { %v11242_v52 = vpop.permute.xlu1 %6542  ;;  %v6180_v22 = vsel %vm6179_vm8, %v6174_v45, %v6176_v23  ;;  %v6181_v28 = vsel %vm6179_vm8, %v6176_v23, %v11115_v14  ;;  %vm6503_vm8 = vcmask 769024  }
 0xd3c   : > { %v6547_v43 = vsel %vm5063_vm7, %v11242_v52, %v11109_v38  ;;  %6184 = vst [vmem:[#allocation6 + $0x110] sm:$0xfc] %v6180_v22 }
 0xd3d   : > { %6185 = vst [vmem:[#allocation6 + $0xf0] sm:$0xfc] %v6181_v28 }
 0xd3e   : > { %v6351_v46 = vpop.permute.xlu0 %6350  ;;  %6551 = vst [vmem:[#allocation6 + $0xb8] sm:$0x3f] %v6547_v43 }
 0xd3f   : > { %v6354_v44 = vsel %vm12131_vm4, %v11193_v41, %v6351_v46  ;;  %v6355_v12 = vsel %vm12132_vm5, %v6351_v46, %v11089_v16  ;;  %vm6266_vm4 = vcmask 908288  }
 0xd40   : > { %6358 = vst [vmem:[#allocation6 + $0xe0] sm:$0xfc] %v6354_v44 }
 0xd41   : > { %6359 = vst [vmem:[#allocation6 + $0xf8] sm:$0xfc] %v6355_v12 }
 0xd42   : > { %v11252_v60 = vpop.permute.xlu2 %6523 }
 0xd43   : > { %v6436_v14 = vpop.permute.xlu1 %6435  ;;  %v6529_v38 = vsel %vm6527_vm13, %v11252_v60, %v11113_v1 }
 0xd44   : > { %v6439_v62 = vsel %vm12133_vm11, %v11201_v27, %v6436_v14  ;;  %v6440_v59 = vsel %vm12134_vm9, %v6436_v14, %v11093_v9  ;;  %6533 = vst [vmem:[#allocation6 + $0x58] sm:$0xfc] %v6529_v38  ;;  %v6572_v38 = vld [vmem:[#allocation6 + $0x8] sm:$0xff]  ;;  %vm6621_vm11 = vcmask 179200   ;;  %vm6131_vm9 = vcmask 982016  }
 0xd45   : > { %6443 = vst [vmem:[#allocation6 + $0xe8] sm:$0xfc] %v6439_v62  ;;  %v6591_v41 = vld [vmem:[#allocation6 + $0xb8] sm:$0x3f] }
 0xd46   : > { %v6152_v16 = vpop.permute.xlu0 %6151  ;;  %6444 = vst [vmem:[#allocation6] sm:$0xfc] %v6440_v59  ;;  %v6611_v4 = vpack.c.bf16 %v6591_v41, %v6591_v41 }
 0xd47   : > { %v6156_v63 = vsel %vm6155_vm6, %v11198_v34, %v6152_v16  ;;  %v6157_v15 = vsel %vm6155_vm6, %v6152_v16, %v11111_v58  ;;  %v6573_v16 = vld [vmem:[#allocation6 + $0x98] sm:$0xff] }
 0xd48   : > { %6160 = vst [vmem:[#allocation6 + $0x108] sm:$0xf0] %v6156_v63  ;;  %v6630_v1 = vsel %vm6625_vm1, %v6611_v4, 0 }
 0xd49   : > { %6161 = vst [vmem:[#allocation6 + $0x88] sm:$0xf0] %v6157_v15  ;;  %6680 = vmatpush.bf16.msra.mxu2 %v6630_v1 }
 0xd4a   : > { %6162 = vst [vmem:[#allocation6 + $0x110] sm:$0x3] %v6156_v63  ;;  %v11264_v9 = vpop.permute.xlu2 %6042 }
 0xd4b   : > { %6163 = vst [vmem:[#allocation6 + $0xf0] sm:$0x3] %v6157_v15  ;;  %v6390_v27 = vpop.permute.xlu1 %6389  ;;  %v6046_v5 = vsel %vm12135_vm10, %v6041_v7, %v11264_v9 }
 0xd4c   : > { %v6393_v50 = vsel %vm12136_vm0, %v11207_v53, %v6390_v27  ;;  %6050 = vst [vmem:[#allocation6 + $0xb0] sm:$0xc0] %v6046_v5  ;;  %v6394_v58 = vsel %vm12137_vm14, %v6390_v27, %v11085_v39  ;;  %v6582_v34 = vld [vmem:[#allocation6 + $0xe8] sm:$0xff] }
 0xd4d   : > { %6052 = vst [vmem:[#allocation6 + $0x10] sm:$0xf] %v6046_v5  ;;  %v6606_v42 = vpack.c.bf16 %v6584_v31, %v6582_v34  ;;  %v6583_v37 = vld [vmem:[#allocation6] sm:$0xff] }
 0xd4e   : > { %v6089_v47 = vpop.permute.xlu0 %6088  ;;  %6397 = vst [vmem:[#allocation6 + $0xa0] sm:$0xc0] %v6393_v50  ;;  %v6607_v29 = vpack.c.bf16 %v6585_v33, %v6583_v37 }
 0xd4f   : > { %6398 = vst [vmem:[#allocation6 + $0x78] sm:$0xc0] %v6394_v58  ;;  %v6092_v32 = vsel %vm12138_vm3, %v11205_v54, %v6089_v47  ;;  %6632 = vmatpush.bf16.msra.mxu3 %v6606_v42  ;;  %v6093_v53 = vsel %vm12139_vm15, %v6089_v47, %v11121_v20 }
 0xd50   : > { %6399 = vst [vmem:[#allocation6 + $0xc0] sm:$0xf] %v6393_v50  ;;  %6660 = vmatpush.bf16.msra.mxu1 %v6607_v29 }
 0xd51   : > { %6400 = vst [vmem:[#allocation6 + $0x80] sm:$0xf] %v6394_v58 }
 0xd52   : > { %6096 = vst [vmem:[#allocation6 + $0x120] sm:$0xfc] %v6092_v32  ;;  %v6498_v6 = vpop.permute.xlu2 %6497 }
 0xd53   : > { %v6328_v39 = vpop.permute.xlu1 %6327  ;;  %6097 = vst [vmem:[#allocation6 + $0x38] sm:$0xfc] %v6093_v53 }
 0xd54   : > { %v6331_v13 = vsel %vm12140_vm12, %v11213_v61, %v6328_v39  ;;  %v6332_v48 = vsel %vm12141_vm2, %v6328_v39, %v11091_v24  ;;  %v6564_v39 = vld [vmem:[#allocation6 + $0x110] sm:$0xff]  ;;  %vm6937_vm12 = vcmask 31744   ;;  %vm12155_vm2 = vcmask 523264  }
 0xd55   : > { %6335 = vst [vmem:[#allocation6 + $0xa8] sm:$0xf0] %v6331_v13  ;;  %v6578_v45 = vld [vmem:[#allocation6 + $0xa0] sm:$0xff] }
 0xd56   : > { %6336 = vst [vmem:[#allocation6 + $0x90] sm:$0xf0] %v6332_v48  ;;  %v6500_v54 = vpop.permute.xlu0 %6499  ;;  %v6579_v36 = vld [vmem:[#allocation6 + $0x78] sm:$0xff] }
 0xd57   : > { %6337 = vst [vmem:[#allocation6 + $0xe0] sm:$0x3] %v6331_v13  ;;  %v6504_v55 = vsel %vm6503_vm8, %v6498_v6, %v6500_v54  ;;  %v6505_v20 = vsel %vm6503_vm8, %v6500_v54, %v11117_v0  ;;  %v6580_v26 = vld [vmem:[#allocation6 + $0xc0] sm:$0xff]  ;;  %v6565_v6 = vld [vmem:[#allocation6 + $0xf0] sm:$0xff]  ;;  %vm12156_vm8 = vmmov %vm12155_vm2 }
 0xd58   : > { %6338 = vst [vmem:[#allocation6 + $0xf8] sm:$0x3] %v6332_v48  ;;  %v6604_v10 = vpack.c.bf16 %v6580_v26, %v6578_v45  ;;  %v6581_v2 = vld [vmem:[#allocation6 + $0x80] sm:$0xff] }
 0xd59   : > { %6508 = vst [vmem:[#allocation6 + $0x60] sm:$0xf0] %v6504_v55  ;;  %v6605_v61 = vpack.c.bf16 %v6581_v2, %v6579_v36 }
 0xd5a   : > { %6509 = vst [vmem:[#allocation6 + $0x68] sm:$0xf0] %v6505_v20  ;;  %6633 = vmatpush.bf16.msra.mxu3 %v6604_v10 }
 0xd5b   : > { %6510 = vst [vmem:[#allocation6 + $0x18] sm:$0x3] %v6504_v55  ;;  %v6263_v24 = vpop.permute.xlu1 %6262  ;;  %6661 = vmatpush.bf16.msra.mxu1 %v6605_v61  ;;  %v7368_v61 = vld [vmem:[%s11465_s7] sm:$0xf] }
 0xd5c   : > { %6511 = vst [vmem:[#allocation6 + $0x58] sm:$0x3] %v6505_v20  ;;  %v6267_v18 = vsel %vm6266_vm4, %v11217_v56, %v6263_v24  ;;  %v6268_v7 = vsel %vm6266_vm4, %v6263_v24, %v11097_v17  ;;  %v6574_v30 = vld [vmem:[#allocation6 + $0xa8] sm:$0xff]  ;;  %v7370_v56 = vld [vmem:[%s11465_s7 + $0x8] sm:$0xf0]  ;;  %vm12158_vm4 = vmmov %vm12155_vm2 }
 0xd5d   : > { %6271 = vst [vmem:[#allocation6 + $0x128] sm:$0xfc] %v6267_v18  ;;  %v6575_v0 = vld [vmem:[#allocation6 + $0x90] sm:$0xff]  ;;  %v7497_v17 = vld [vmem:[%s11465_s7 + $0x4] sm:$0xf] }
 0xd5e   : > { %6272 = vst [vmem:[#allocation6 + $0x50] sm:$0xfc] %v6268_v7  ;;  %v6541_v25 = vpop.permute.xlu0 %6540  ;;  %v6576_v49 = vld [vmem:[#allocation6 + $0xe0] sm:$0xff]  ;;  %v7373_v41 = vor.u32 %v7497_v17, %v7370_v56  ;;  %v7498_v24 = vld [vmem:[%s11465_s7 + $0x4] sm:$0xf0] }
 0xd5f   : > { %v6546_v35 = vsel %vm5063_vm7, %v6541_v25, %v11242_v52  ;;  %v6602_v51 = vpack.c.bf16 %v6576_v49, %v6574_v30  ;;  %v6577_v23 = vld [vmem:[#allocation6 + $0xf8] sm:$0xff]  ;;  %vm12142_vm7 = vcmask 949248   ;;  %v7369_v7 = vor.u32 %v7498_v24, %v7368_v61  ;;  %v7499_v61 = vld [vmem:[%s12152_s25] sm:$0xff] }
 0xd60   : > { %6550 = vst [vmem:[#allocation6 + $0x118] sm:$0x3f] %v6546_v35  ;;  %v6603_v22 = vpack.c.bf16 %v6577_v23, %v6575_v0  ;;  %vm12143_vm5 = vmmov %vm12142_vm7  ;;  %v6586_v37 = vld [vmem:[#allocation6 + $0x60] sm:$0xff] }
 0xd61   : > { %6634 = vmatpush.bf16.msra.mxu3 %v6602_v51  ;;  %v6587_v28 = vld [vmem:[#allocation6 + $0x68] sm:$0xff] }
 0xd62   : > { %6662 = vmatpush.bf16.msra.mxu1 %v6603_v22 }
 0xd63   : > { %v6589_v43 = vld [vmem:[#allocation6 + $0x58] sm:$0xff]  ;;  %v6217_v46 = vpop.permute.xlu1 %6216 }
 0xd64   : > { %v6609_v44 = vpack.c.bf16 %v6589_v43, %v6587_v28  ;;  %v6220_v52 = vsel %vm12142_vm7, %v11222_v3, %v6217_v46  ;;  %v6221_v12 = vsel %vm12143_vm5, %v6217_v46, %v11101_v8  ;;  %v6570_v14 = vld [vmem:[#allocation6 + $0x128] sm:$0xff]  ;;  %vm12159_vm7 = vmmov %vm12155_vm2 }
 0xd65   : > { %6224 = vst [vmem:[#allocation6 + $0x40] sm:$0xc0] %v6220_v52  ;;  %v6600_v62 = vpack.c.bf16 %v6572_v38, %v6570_v14  ;;  %v6571_v59 = vld [vmem:[#allocation6 + $0x50] sm:$0xff]  ;;  %vm12161_vm5 = vmmov %vm12155_vm2 }
 0xd66   : > { %6681 = vmatpush.bf16.msra.mxu2 %v6609_v44  ;;  %6225 = vst [vmem:[#allocation6 + $0xc8] sm:$0xc0] %v6221_v12  ;;  %v6522_v63 = vpop.permute.xlu0 %6521  ;;  %v6601_v15 = vpack.c.bf16 %v6573_v16, %v6571_v59 }
 0xd67   : > { %6226 = vst [vmem:[#allocation6 + $0x30] sm:$0xf] %v6220_v52  ;;  %v6528_v4 = vsel %vm6527_vm13, %v6522_v63, %v11252_v60  ;;  %6635 = vmatpush.bf16.msra.mxu3 %v6600_v62  ;;  %v6590_v3 = vld [vmem:[#allocation6 + $0x118] sm:$0x3f]  ;;  %vm12144_vm13 = vcmask 1031168  }
 0xd68   : > { %6227 = vst [vmem:[#allocation6 + $0x20] sm:$0xf] %v6221_v12  ;;  %6663 = vmatpush.bf16.msra.mxu1 %v6601_v15  ;;  %v6610_v8 = vpack.c.bf16 %v6590_v3, %v6590_v3  ;;  %vm12145_vm6 = vmmov %vm12144_vm13 }
 0xd69   : > { %6532 = vst [vmem:[#allocation6 + $0x18] sm:$0xfc] %v6528_v4  ;;  %7375 = vmatmul.msk.bf16.vlgmr.msra.gmra.mxu2 %vm6621_vm11, %v7373_v41 }
 0xd6a   : > { %v6627_v1 = vsel %vm6625_vm1, %v6610_v8, 0  ;;  %vm12146_vm1 = vmmov %vm12135_vm10  ;;  %vm6688_vm10 = vcmask 72704   ;;  %v6800_v8 = vld [vmem:[%s12148_s23 + $0x8] sm:$0xff] }
 0xd6b   : > { %6652 = vmatpush.bf16.msra.mxu0 %v6627_v1  ;;  %v6128_v27 = vpop.permute.xlu1 %6127  ;;  %6689 = vst.msk [vmem:[#allocation7 + $0x10] sm:$0xff] %vm6688_vm10, %v12100_v21  ;;  %vm12147_vm0 = vmmov %vm12146_vm1 }
 0xd6c   : > { %v6132_v5 = vsel %vm6131_vm9, %v11227_v40, %v6128_v27  ;;  %v6133_v50 = vsel %vm6131_vm9, %v6128_v27, %v11107_v19  ;;  %v6566_v60 = vld [vmem:[#allocation6 + $0x40] sm:$0xff]  ;;  %6690 = vst.msk [vmem:[#allocation7 + $0x28] sm:$0xff] %vm6688_vm10, %v12100_v21  ;;  %vm12149_vm14 = vmmov %vm12147_vm0 }
 0xd6d   : > { %6136 = vst [vmem:[#allocation6 + $0x70] sm:$0xc0] %v6132_v5  ;;  %v6567_v58 = vld [vmem:[#allocation6 + $0xc8] sm:$0xff]  ;;  %vm12150_vm3 = vmmov %vm12147_vm0 }
 0xd6e   : > { %6137 = vst [vmem:[#allocation6 + $0x100] sm:$0xc0] %v6133_v50  ;;  %v6568_v34 = vld [vmem:[#allocation6 + $0x30] sm:$0xff]  ;;  %vm12151_vm15 = vmmov %vm12147_vm0 }
 0xd6f   : > { %6138 = vst [vmem:[#allocation6 + $0x108] sm:$0xf] %v6132_v5  ;;  %v6598_v31 = vpack.c.bf16 %v6568_v34, %v6566_v60  ;;  %v6569_v47 = vld [vmem:[#allocation6 + $0x20] sm:$0xff] }
 0xd70   : > { %6139 = vst [vmem:[#allocation6 + $0x88] sm:$0xf] %v6133_v50  ;;  %v6599_v42 = vpack.c.bf16 %v6569_v47, %v6567_v58  ;;  %v6588_v33 = vld [vmem:[#allocation6 + $0x18] sm:$0xff] }
 0xd71   : > { %6636 = vmatpush.bf16.msra.mxu3 %v6598_v31  ;;  %v6608_v29 = vpack.c.bf16 %v6588_v33, %v6586_v37  ;;  %v6799_v37 = vld [vmem:[%s12148_s23] sm:$0xff] }
 0xd72   : > { %6664 = vmatpush.bf16.msra.mxu1 %v6599_v42  ;;  %v6699_v51 = vld [vmem:[#allocation7 + $0x10] sm:$0xff] }
 0xd73   : > { %6653 = vmatpush.bf16.msra.mxu0 %v6608_v29  ;;  %v6066_v40 = vpop.permute.xlu1 %6065  ;;  %v6700_v44 = vld [vmem:[#allocation7 + $0x28] sm:$0xff] }
 0xd74   : > { %v6069_v19 = vsel %vm12144_vm13, %v11230_v11, %v6066_v40  ;;  %v6070_v32 = vsel %vm12145_vm6, %v6066_v40, %v11124_v57  ;;  %v6560_v55 = vld [vmem:[#allocation6 + $0x70] sm:$0xff]  ;;  %vm7149_vm6 = vcmask 24576  }
 0xd75   : > { %6073 = vst [vmem:[#allocation6 + $0x10] sm:$0xf0] %v6069_v19  ;;  %v6561_v26 = vld [vmem:[#allocation6 + $0x100] sm:$0xff] }
 0xd76   : > { %6074 = vst [vmem:[#allocation6 + $0x48] sm:$0xf0] %v6070_v32  ;;  %v6562_v53 = vld [vmem:[#allocation6 + $0x108] sm:$0xff]  ;;  %7374 = vmatmul.msk.bf16.vlgmr.msra.gmra.mxu0 %vm6621_vm11, %v7373_v41 }
 0xd77   : > { %6075 = vst [vmem:[#allocation6 + $0x120] sm:$0x3] %v6069_v19  ;;  %v6596_v13 = vpack.c.bf16 %v6564_v39, %v6562_v53  ;;  %v6563_v48 = vld [vmem:[#allocation6 + $0x88] sm:$0xff]  ;;  %v7514_v53 = vld [vmem:[%s12152_s25 + $0x78] sm:$0xff] }
 0xd78   : > { %6076 = vst [vmem:[#allocation6 + $0x38] sm:$0x3] %v6070_v32  ;;  %v6597_v54 = vpack.c.bf16 %v6565_v6, %v6563_v48  ;;  %v7506_v39 = vld [vmem:[%s12152_s25 + $0x38] sm:$0xff]  ;;  %v7505_v48 = vld [vmem:[%s12152_s25 + $0x30] sm:$0xff]  ;;  %v7512_v6 = vld [vmem:[%s12152_s25 + $0x68] sm:$0xff] }
 0xd79   : > { %6637 = vmatpush.bf16.msra.mxu3 %v6596_v13  ;;  %v7513_v13 = vld [vmem:[%s12152_s25 + $0x70] sm:$0xff]  ;;  %6907 = vmatpush.bf16.msrb.mxu0 %v7506_v39 }
 0xd7a   : > { %6665 = vmatpush.bf16.msra.mxu1 %v6597_v54  ;;  %v7504_v54 = vld [vmem:[%s12152_s25 + $0x28] sm:$0xff] }
 0xd7b   : > { %v6045_v45 = vpop.permute.xlu1 %6044 }
 0xd7c   : > { %v6047_v11 = vsel %vm12146_vm1, %v11264_v9, %v6045_v45  ;;  %v6556_v2 = vld [vmem:[#allocation6 + $0x10] sm:$0xff]  ;;  %v7511_v45 = vld [vmem:[%s12152_s25 + $0x60] sm:$0xff] }
 0xd7d   : > { %6051 = vst [vmem:[#allocation6 + $0xd0] sm:$0xc0] %v6047_v11  ;;  %v6554_v9 = vld [vmem:[#allocation6 + $0xb0] sm:$0xff]  ;;  %6908 = vmatpush.bf16.msrb.mxu0 %v7505_v48 }
 0xd7e   : > { %6053 = vst [vmem:[#allocation6 + $0x48] sm:$0xf] %v6047_v11  ;;  %v6558_v57 = vld [vmem:[#allocation6 + $0x120] sm:$0xff]  ;;  %v6592_v18 = vpack.c.bf16 %v6556_v2, %v6554_v9  ;;  %v7500_v2 = vld [vmem:[%s12152_s25 + $0x8] sm:$0xff] }
 0xd7f   : > { %v6594_v20 = vpack.c.bf16 %v6560_v55, %v6558_v57  ;;  %v6559_v36 = vld [vmem:[#allocation6 + $0x38] sm:$0xff]  ;;  %v7503_v11 = vld [vmem:[%s12152_s25 + $0x20] sm:$0xff] }
 0xd80   : > { %v6595_v10 = vpack.c.bf16 %v6561_v26, %v6559_v36  ;;  %v7510_v57 = vld [vmem:[%s12152_s25 + $0x58] sm:$0xff]  ;;  %v7509_v55 = vld [vmem:[%s12152_s25 + $0x50] sm:$0xff]  ;;  %v7507_v26 = vld [vmem:[%s12152_s25 + $0x40] sm:$0xff] }
 0xd81   : > { %6638 = vmatpush.bf16.msra.mxu3 %v6594_v20  ;;  %6909 = vmatpush.bf16.msrb.mxu0 %v7504_v54  ;;  %v7508_v20 = vld [vmem:[%s12152_s25 + $0x48] sm:$0xff]  ;;  %v7502_v36 = vld [vmem:[%s12152_s25 + $0x18] sm:$0xff] }
 0xd82   : > { %6666 = vmatpush.bf16.msra.mxu1 %v6595_v10  ;;  %v7501_v10 = vld [vmem:[%s12152_s25 + $0x10] sm:$0xff] }
 0xd84   : > { %v6555_v30 = vld [vmem:[#allocation6 + $0xd0] sm:$0xff] }
 0xd85   : > { %6639 = vmatpush.bf16.msra.mxu3 %v6592_v18  ;;  %v6557_v0 = vld [vmem:[#allocation6 + $0x48] sm:$0xff]  ;;  %6910 = vmatpush.bf16.msrb.mxu0 %v7503_v11 }
 0xd86   : > { %v6593_v25 = vpack.c.bf16 %v6557_v0, %v6555_v30  ;;  %v7515_v11 = vld [vmem:[%s12154_s17] sm:$0xff] }
 0xd88   : > { %6640 = vmatmul.bf16.vlgmr.msra.gmra.mxu3 %v7369_v7  ;;  %6667 = vmatpush.bf16.msra.mxu1 %v6593_v25 }
 0xd89   : > { %6921 = vmatpush.bf16.msrb.mxu3 %v7514_v53  ;;  %6911 = vmatpush.bf16.msrb.mxu0 %v7502_v36  ;;  %v7108_v36 = vld [vmem:[%s12157_s22] sm:$0xff] }
 0xd8b   : > { %6668 = vmatmul.bf16.vlgmr.msra.gmra.mxu1 %v7369_v7 }
 0xd8d   : > { %6922 = vmatpush.bf16.msrb.mxu3 %v7513_v13  ;;  %6912 = vmatpush.bf16.msrb.mxu0 %v7501_v10  ;;  %v7518_v10 = vld [vmem:[%s12154_s17 + $0x18] sm:$0xff] }
 0xd91   : > { %6923 = vmatpush.bf16.msrb.mxu3 %v7512_v6  ;;  %6913 = vmatpush.bf16.msrb.mxu0 %v7500_v2 }
 0xd95   : > { %6924 = vmatpush.bf16.msrb.mxu3 %v7511_v45  ;;  %6914 = vmatpush.bf16.msrb.mxu0 %v7499_v61 }
 0xd99   : > { %6925 = vmatpush.bf16.msrb.mxu3 %v7510_v57  ;;  %v6992_v57 = vld [vmem:[%s12153_s30 + $0x30] sm:$0xff] }
 0xd9d   : > { %6926 = vmatpush.bf16.msrb.mxu3 %v7509_v55  ;;  %v6989_v55 = vld [vmem:[%s12153_s30 + $0x18] sm:$0xff] }
 0xda1   : > { %6927 = vmatpush.bf16.msrb.mxu3 %v7508_v20  ;;  %v7516_v20 = vld [vmem:[%s12154_s17 + $0x8] sm:$0xff] }
 0xda5   : > { %6928 = vmatpush.bf16.msrb.mxu3 %v7507_v26  ;;  %v7517_v26 = vld [vmem:[%s12154_s17 + $0x10] sm:$0xff] }
 0xdec   : > { %v6683_v49 = vpop.f32.mrf.mxu2 }
 0xdf3   : > { %v6655_v23 = vpop.f32.mrf.mxu0 }
 0xdf4   : > { %v6685_v43 = vpop.f32.mrf.mxu2 }
 0xdfb   : > { %v6657_v12 = vpop.f32.mrf.mxu0 }
 0xe08   : > { %v6669_v35 = vpop.f32.mrf.mxu1 }
 0xe09   : > { %v6684_v22 = vadd.f32 %v6683_v49, %v6669_v35 }
 0xe0b   : > { %v6641_v28 = vpop.f32.mrf.mxu3  ;;  %v7617_v17 = vpack.i.bf16 %v6699_v51, %v6684_v22 }
 0xe0c   : > { %v6656_v56 = vadd.f32 %v6655_v23, %v6641_v28 }
 0xe0d   : > { %7618 = vrot.lane.b32.xlu1 %v7617_v17, %s11773_s26 }
 0xe10   : > { %v6671_v46 = vpop.f32.mrf.mxu1 }
 0xe11   : > { %v6686_v52 = vadd.f32 %v6685_v43, %v6671_v46 }
 0xe13   : > { %v6643_v14 = vpop.f32.mrf.mxu3  ;;  %v7622_v38 = vpack.i.bf16 %v6700_v44, %v6686_v52 }
 0xe14   : > { %v6658_v62 = vadd.f32 %v6657_v12, %v6643_v14 }
 0xe15   : > { %7623 = vrot.lane.b32.xlu2 %v7622_v38, %s11773_s26 }
 0xe16   : > { %v7627_v21 = vpack.i.bf16 %v6658_v62, %v6656_v56 }
 0xe18   : > { %7628 = vrot.lane.b32.xlu0 %v7627_v21, %s11773_s26 }
 0xe6f   : > { %v7624_v59 = vpop.permute.xlu2 %7623 }
 0xe70   : > { %v7626_v16 = vunpack.i.h.bf16 %v7624_v59  ;;  %v7625_v41 = vunpack.i.l.bf16 %v7624_v59 }
 0xe72   : > { %v6734_v63 = vmax.f32 %v6700_v44, %v7626_v16  ;;  %v6722_v15 = vsel %vm12147_vm0, %v7625_v41, %v7626_v16 }
 0xe73   : > { %v11322_v4 = vmax.f32 %v6686_v52, %v6722_v15 }
 0xe75   : > { %v7637_v3 = vpack.i.bf16 %v6734_v63, %v11322_v4 }
 0xe77   : > { %7638 = vrot.lane.b32.xlu2 %v7637_v3, %s12110_s15 }
 0xe7f   : > { %v7619_v1 = vpop.permute.xlu1 %7618  ;;  %6808 = vperm.xlu2 %7616, %v6800_v8   ;;  %v6990_v8 = vld [vmem:[%s12153_s30 + $0x20] sm:$0xff] }
 0xe80   : > { %v7621_v27 = vunpack.i.h.bf16 %v7619_v1  ;;  %v7620_v5 = vunpack.i.l.bf16 %v7619_v1  ;;  %v6993_v1 = vld [vmem:[%s12153_s30 + $0x38] sm:$0xff] }
 0xe82   : > { %v6733_v50 = vmax.f32 %v6699_v51, %v7621_v27  ;;  %v6720_v60 = vsel %vm12149_vm14, %v7620_v5, %v7621_v27  ;;  %v6988_v27 = vld [vmem:[%s12153_s30 + $0x10] sm:$0xff] }
 0xe83   : > { %v6728_v58 = vmax.f32 %v6684_v22, %v6720_v60  ;;  %v6986_v60 = vld [vmem:[%s12153_s30] sm:$0xff] }
 0xe85   : > { %v7632_v34 = vpack.i.bf16 %v6733_v50, %v6728_v58  ;;  %v6987_v50 = vld [vmem:[%s12153_s30 + $0x8] sm:$0xff] }
 0xe87   : > { %7633 = vrot.lane.b32.xlu1 %v7632_v34, %s12110_s15 }
 0xe8a   : > { %v7629_v31 = vpop.permute.xlu0 %7628 }
 0xe8b   : > { %v7631_v47 = vunpack.i.h.bf16 %v7629_v31  ;;  %v7630_v42 = vunpack.i.l.bf16 %v7629_v31 }
 0xe8d   : > { %v6719_v33 = vsel %vm12150_vm3, %v7630_v42, %v7620_v5  ;;  %v6721_v29 = vsel %vm12151_vm15, %v7631_v47, %v7625_v41  ;;  %v6991_v5 = vld [vmem:[%s12153_s30 + $0x28] sm:$0xff] }
 0xe8e   : > { %v6727_v40 = vmax.f32 %v6656_v56, %v6719_v33  ;;  %v6729_v19 = vmax.f32 %v6658_v62, %v6721_v29 }
 0xe8f   : > { %6803 = vperm.xlu1 %7605, %v6799_v37  }
 0xe90   : > { %v7642_v32 = vpack.i.bf16 %v6729_v19, %v6727_v40 }
 0xe92   : > { %7643 = vrot.lane.b32.xlu0 %v7642_v32, %s12110_s15 }
 0xed1   : > { %v7639_v24 = vpop.permute.xlu2 %7638 }
 0xed2   : > { %v7641_v9 = vunpack.i.h.bf16 %v7639_v24  ;;  %v7640_v18 = vunpack.i.l.bf16 %v7639_v24 }
 0xed4   : > { %v6756_v30 = vsel %vm6131_vm9, %v7640_v18, %v7641_v9 }
 0xed5   : > { %v6764_v35 = vmax.f32 %v11322_v4, %v6756_v30 }
 0xed9   : > { %v6809_v16 = vpop.permute.xlu2 %6808 }
 0xef9   : > { %v7634_v7 = vpop.permute.xlu1 %7633 }
 0xefa   : > { %v7636_v0 = vunpack.i.h.bf16 %v7634_v7  ;;  %v7635_v25 = vunpack.i.l.bf16 %v7634_v7 }
 0xefc   : > { %v6754_v49 = vsel %vm6131_vm9, %v7635_v25, %v7636_v0 }
 0xefd   : > { %v6762_v51 = vmax.f32 %v6728_v58, %v6754_v49 }
 0xeff   : > { %v6766_v23 = vpack.c.bf16 %v6764_v35, %v6762_v51 }
 0xf01   : > { %6929 = vmatmul.bf16.vlgmr.msrb.gmra.mxu3 %v6766_v23  ;;  %v6804_v12 = vpop.permute.xlu1 %6803 }
 0xf04   : > { %v7644_v22 = vpop.permute.xlu0 %7643 }
 0xf05   : > { %v7646_v28 = vunpack.i.h.bf16 %v7644_v22  ;;  %v7645_v17 = vunpack.i.l.bf16 %v7644_v22 }
 0xf07   : > { %v6755_v56 = vsel %vm6131_vm9, %v7646_v28, %v7640_v18  ;;  %v6753_v43 = vsel %vm6131_vm9, %v7645_v17, %v7635_v25 }
 0xf08   : > { %v6763_v46 = vmax.f32 %v6729_v19, %v6755_v56  ;;  %v6761_v44 = vmax.f32 %v6727_v40, %v6753_v43 }
 0xf0a   : > { %v6765_v52 = vpack.c.bf16 %v6763_v46, %v6761_v44 }
 0xf0c   : > { %6915 = vmatmul.bf16.vlgmr.msrb.gmra.mxu0 %v6765_v52 }
 0xf84   : > { %v6930_v14 = vpop.f32.mrf.mxu3 }
 0xf89   : > { %v6916_v38 = vpop.f32.mrf.mxu0 }
 0xf8a   : > { %v6917_v62 = vadd.f32 %v6916_v38, %v6804_v12 }
 0xf8c   : > { %v6931_v21 = vadd.f32 %v6930_v14, %v6917_v62  ;;  %v6932_v15 = vpop.f32.mrf.mxu3 }
 0xf8e   : > { %v6935_v59 = vmax.f32 %v6931_v21, 0.0 }
 0xf90   : > { %6938 = vst.msk [vmem:[#allocation10] sm:$0xff] %vm6937_vm12, %v6935_v59  ;;  %6950 = vrot.lane.b32.xlu2 %v6935_v59, %s12110_s15  ;;  %6958 = vrot.lane.b32.xlu0 %v6935_v59, %s12117_s0 }
 0xf91   : > { %v6918_v41 = vpop.f32.mrf.mxu0 }
 0xf92   : > { %v6919_v63 = vadd.f32 %v6918_v41, %v6809_v16 }
 0xf94   : > { %v6933_v4 = vadd.f32 %v6932_v15, %v6919_v63 }
 0xf96   : > { %v6936_v3 = vmax.f32 %v6933_v4, 0.0 }
 0xf97   : > { %v6974_v54 = vld [vmem:[#allocation10] sm:$0xff] }
 0xf98   : > { %6939 = vst.msk [vmem:[#allocation10 + $0x8] sm:$0xff] %vm6937_vm12, %v6936_v3  ;;  %6960 = vrot.lane.b32.xlu1 %v6936_v3, %s12117_s0  ;;  %6944 = vrot.lane.b32.xlu2 %v6936_v3, %s11787_s28 }
 0xf99   : > { %6952 = vrot.lane.b32.xlu0 %v6936_v3, %s12110_s15 }
 0xf9f   : > { %v6975_v6 = vld [vmem:[#allocation10 + $0x8] sm:$0xff] }
 0xfa0   : > { %6942 = vrot.lane.b32.xlu1 %v6935_v59, %s11787_s28  ;;  %7016 = vperm.xlu2 %7616, %v6990_v8   ;;  %v6982_v45 = vpack.c.bf16 %v6975_v6, %v6974_v54  ;;  %s12162_s28 = sld [smem:[#allocation12_spill]] }
 0xfa1   : > { %7026 = vperm.xlu0 %7647, %v6992_v57  }
 0xfa6   : > { %s463_s19 = scalar_lea.vmem %s12163_s27, %s12162_s28 }
 0xfa8   : > { %7031 = vperm.xlu1 %7605, %v6993_v1   ;;  %7006 = vperm.xlu2 %7616, %v6988_v27  }
 0xfa9   : > { %7011 = vperm.xlu0 %7647, %v6989_v55  }
 0xfb0   : > { %7021 = vperm.xlu1 %7605, %v6991_v5   ;;  %7001 = vperm.xlu2 %7616, %v6987_v50   ;;  %v7103_v5 = vld [vmem:[%s12160_s11] sm:$0xf] }
 0xfb1   : > { %7111 = vperm.xlu0 %7647, %v7108_v36  }
 0xfb8   : > { %6996 = vperm.xlu1 %7605, %v6986_v60  }
 0xfea   : > { %v6951_v58 = vpop.permute.xlu2 %6950 }
 0xfeb   : > { %6956 = vst.msk [vmem:[#allocation10 + $0x20] sm:$0xff] %vm6937_vm12, %v6951_v58 }
 0xff2   : > { %v6945_v34 = vpop.permute.xlu2 %6944  ;;  %v6978_v32 = vld [vmem:[#allocation10 + $0x20] sm:$0xff] }
 0xff3   : > { %6949 = vst.msk [vmem:[#allocation10 + $0x18] sm:$0xff] %vm6937_vm12, %v6945_v34 }
 0xffa   : > { %v6977_v13 = vld [vmem:[#allocation10 + $0x18] sm:$0xff]  ;;  %v7017_v30 = vpop.permute.xlu2 %7016 }
0x1002   : > { %v6959_v31 = vpop.permute.xlu0 %6958  ;;  %v7007_v35 = vpop.permute.xlu2 %7006 }
0x1003   : > { %6964 = vst.msk [vmem:[#allocation10 + $0x30] sm:$0xff] %vm6937_vm12, %v6959_v31 }
0x100a   : > { %v6961_v47 = vpop.permute.xlu1 %6960  ;;  %v6980_v33 = vld [vmem:[#allocation10 + $0x30] sm:$0xff]  ;;  %v7002_v21 = vpop.permute.xlu2 %7001 }
0x100b   : > { %6965 = vst.msk [vmem:[#allocation10 + $0x38] sm:$0xff] %vm6937_vm12, %v6961_v47  ;;  %v6953_v42 = vpop.permute.xlu0 %6952 }
0x100c   : > { %6957 = vst.msk [vmem:[#allocation10 + $0x28] sm:$0xff] %vm6937_vm12, %v6953_v42 }
0x1012   : > { %v6943_v37 = vpop.permute.xlu1 %6942  ;;  %v6981_v29 = vld [vmem:[#allocation10 + $0x38] sm:$0xff] }
0x1013   : > { %6948 = vst.msk [vmem:[#allocation10 + $0x10] sm:$0xff] %vm6937_vm12, %v6943_v37  ;;  %v6985_v40 = vpack.c.bf16 %v6981_v29, %v6980_v33  ;;  %v6979_v19 = vld [vmem:[#allocation10 + $0x28] sm:$0xff]  ;;  %v7027_v25 = vpop.permute.xlu0 %7026 }
0x1014   : > { %v6984_v53 = vpack.c.bf16 %v6979_v19, %v6978_v32 }
0x1015   : > { %7070 = vmatpush.bf16.msrb.mxu2 %v6985_v40 }
0x1019   : > { %7071 = vmatpush.bf16.msrb.mxu2 %v6984_v53 }
0x101a   : > { %v6976_v39 = vld [vmem:[#allocation10 + $0x10] sm:$0xff]  ;;  %v7032_v0 = vpop.permute.xlu1 %7031 }
0x101b   : > { %v6983_v48 = vpack.c.bf16 %v6977_v13, %v6976_v39  ;;  %v7012_v56 = vpop.permute.xlu0 %7011 }
0x101d   : > { %7072 = vmatpush.bf16.msrb.mxu2 %v6983_v48 }
0x1021   : > { %7073 = vmatpush.bf16.msrb.mxu2 %v6982_v45 }
0x1022   : > { %v7022_v23 = vpop.permute.xlu1 %7021 }
0x1023   : > { %v7112_v50 = vpop.permute.xlu0 %7111 }
0x1024   : > { %7456 = vmatmul.msk.bf16.vlgmr.msrb.gmra.mxu2 %vm12155_vm2, %v7515_v11 }
0x102a   : > { %v6997_v63 = vpop.permute.xlu1 %6996 }
0x1034   : > { %7457 = vmatmul.msk.bf16.gmra.mxu2 %vm12156_vm8, %v7516_v20 }
0x1044   : > { %7458 = vmatmul.msk.bf16.gmra.mxu2 %vm12158_vm4, %v7517_v26 }
0x1054   : > { %7459 = vmatmul.msk.bf16.gmra.mxu2 %vm12159_vm7, %v7518_v10 }
0x10a7   : > { %v7075_v2 = vpop.f32.mrf.mxu2 }
0x10a8   : > { %v7076_v15 = vadd.f32 %v7075_v2, %v6997_v63 }
0x10aa   : > { %v7095_v1 = vmax.f32 %v7076_v15, 0.0 }
0x10af   : > { %v7077_v61 = vpop.f32.mrf.mxu2 }
0x10b0   : > { %v7078_v59 = vadd.f32 %v7077_v61, %v7002_v21 }
0x10b2   : > { %v7096_v3 = vmax.f32 %v7078_v59, 0.0 }
0x10b4   : > { %v7104_v27 = vpack.c.bf16 %v7096_v3, %v7095_v1 }
0x10b7   : > { %v7080_v24 = vpop.f32.mrf.mxu2 }
0x10b8   : > { %v7081_v38 = vadd.f32 %v7080_v24, %v7007_v35 }
0x10ba   : > { %v7097_v4 = vmax.f32 %v7081_v38, 0.0 }
0x10bf   : > { %v7082_v9 = vpop.f32.mrf.mxu2 }
0x10c0   : > { %v7083_v52 = vadd.f32 %v7082_v9, %v7012_v56 }
0x10c2   : > { %v7098_v16 = vmax.f32 %v7083_v52, 0.0 }
0x10c4   : > { %v7105_v8 = vpack.c.bf16 %v7098_v16, %v7097_v4 }
0x10c7   : > { %v7085_v18 = vpop.f32.mrf.mxu2 }
0x10c8   : > { %v7086_v43 = vadd.f32 %v7085_v18, %v7017_v30 }
0x10ca   : > { %v7099_v62 = vmax.f32 %v7086_v43, 0.0 }
0x10cf   : > { %v7087_v7 = vpop.f32.mrf.mxu2 }
0x10d0   : > { %v7088_v28 = vadd.f32 %v7087_v7, %v7022_v23 }
0x10d2   : > { %v7100_v12 = vmax.f32 %v7088_v28, 0.0 }
0x10d4   : > { %v7106_v41 = vpack.c.bf16 %v7100_v12, %v7099_v62 }
0x10d7   : > { %v7090_v49 = vpop.f32.mrf.mxu2 }
0x10d8   : > { %v7091_v51 = vadd.f32 %v7090_v49, %v7027_v25 }
0x10da   : > { %v7101_v46 = vmax.f32 %v7091_v51, 0.0 }
0x10df   : > { %v7092_v22 = vpop.f32.mrf.mxu2 }
0x10e0   : > { %v7093_v17 = vadd.f32 %v7092_v22, %v7032_v0 }
0x10e2   : > { %v7102_v44 = vmax.f32 %v7093_v17, 0.0 }
0x10e4   : > { %v7107_v14 = vpack.c.bf16 %v7102_v44, %v7101_v46 }
0x10e6   : > { %7121 = vmatpush.bf16.msrb.mxu1 %v7107_v14 }
0x10ea   : > { %7122 = vmatpush.bf16.msrb.mxu1 %v7106_v41 }
0x10ee   : > { %7123 = vmatpush.bf16.msrb.mxu1 %v7105_v8 }
0x10f2   : > { %7124 = vmatpush.bf16.msrb.mxu1 %v7104_v27 }
0x10f5   : > { %7460 = vmatmul.msk.bf16.vlgmr.msrb.gmra.mxu1 %vm12161_vm5, %v7103_v5 }
0x1172   : > { %v7126_v60 = vpop.f32.mrf.mxu1 }
0x1173   : > { %v7127_v58 = vadd.f32 %v7126_v60, %v7112_v50 }
0x1175   : > { %v7130_v34 = vsub.f32 0.0, %v7127_v58 }
0x1177   : > { %v7131_v31 = vmul.f32 1.442695, %v7130_v34 }
0x1179   : > { %7648 = vpow2.f32 %v7131_v31 }
0x117a   : > { %v7128_v47 = vpop.f32.mrf.mxu1 }
0x117f   : > { %v7649_v42 = vpop.eup %7648 }
0x1180   : > { %v7133_v37 = vadd.f32 1.0, %v7649_v42 }
0x1182   : > { %7650 = vrcp.f32 %v7133_v37  ;;  %v7145_v19 = vand.u32 2147483648, %v7133_v37  ;;  %v7143_v53 = vand.u32 2147483647, %v7133_v37  ;;  %vm7139_vm9 = vweird.f32 %v7133_v37 }
0x1184   : > { %v7146_v13 = vor.u32 1.1754944e-38, %v7145_v19  ;;  %vm7144_vm1 = vcmp.eq.f32.partialorder %v7143_v53, 8.507059e+37 }
0x1188   : > { %v7651_v33 = vpop.eup %7650 }
0x1189   : > { %v7135_v29 = vmul.f32 %v7651_v33, %v7133_v37  ;;  %vm7140_vm11 = vweird.f32 %v7651_v33 }
0x118a   : > { %vm7141_vm13 = vmor %vm7139_vm9, %vm7140_vm11 }
0x118b   : > { %v7136_v40 = vsub.f32 1.0, %v7135_v29 }
0x118d   : > { %v7137_v32 = vmul.f32 %v7651_v33, %v7136_v40 }
0x118f   : > { %v7138_v39 = vadd.f32 %v7651_v33, %v7137_v32 }
0x1191   : > { %v7142_v48 = vsel %vm7141_vm13, %v7651_v33, %v7138_v39 }
0x1192   : > { %v7147_v6 = vsel %vm7144_vm1, %v7146_v13, %v7142_v48 }
0x1193   : > { %7150 = vst.msk [vmem:[%s463_s19] sm:$0x1] %vm7149_vm6, %v7147_v6 }
0x1194 PF: > { %s12164_s18 = sld [smem:[#allocation11_spill]] }
0x119a   : > { %s24_s29 = sadd.s32 1, %s12164_s18  }
0x119b   : > { %p21_p4 = scmp.ge.s32.totalorder %s24_s29, 4  }
0x119d   :  { %23 = sbr.rel (!%p21_p4) target bundleno = 9 (0x9), region = 252 }

</bundles_post_ra>
